<compile_context>
chip_gen: v7x
topology: tpu7x:2x2x1
jax: 0.10.0
libtpu: 0.0.40
codegen_flags: <defaults>
</compile_context>

<pallas_src>
import functools

import jax
import jax.numpy as jnp
from jax.experimental import pallas as pl
from jax.experimental.pallas import tpu as pltpu

# ---- hyperparameters (shapes consistent with CGCNNConfig, demo-sized) --------
NODE_F   = 32     # config.node_features
EDGE_F   = 16     # config.edge_features (RBF bins; default 40, 16 for demo)
N_CONV   = 3      # config.conv_layers
BN_EPS   = 1e-5
ATOM_DIM = 200    # mat2vec atom encoding dim (folded on host)
N_TYPES  = 8

N_NODES   = 128   # nodes per batched graph (lane / MXU aligned)
N_EDGES   = 256   # edges per batched graph
N_GRAPHS  = 8     # crystals per batched graph (AvgPooling rows)
N_BATCHES = 2     # independent batched graphs -> "parallel" grid axis

# ---- shared vector-slab row layout (rows -> sublanes, 128 lanes wide) ---------
ROW_CENTERS = 0                       # RBF centers (lanes 0:EDGE_F)
ROW_LAYER0  = 1                       # 5 rows / layer: b_m, bnm_g, bnm_b, bn_g, bn_b
VEC_ROWS    = ROW_LAYER0 + 5 * N_CONV  # = 16


# ---- math helpers -------------------------------------------------------------
def _softplus(x):
    return jnp.maximum(x, 0.0) + jnp.log1p(jnp.exp(-jnp.abs(x)))


def _sigmoid_eup(x):
    # 1/(1+exp(-x)) with the reciprocal on the EUP slot instead of a VALU divide.
    return pl.reciprocal(1.0 + jnp.exp(-x), approx=True)


def _batchnorm_mxu(x, ones_row, inv_n, gamma, beta):
    # Training-mode BN (biased variance). Two-pass centered form (matches torch,
    # avoids E[x^2]-mu^2 cancellation) with axis-0 reductions on the MXU
    # (ones(1,n) @ x) instead of cross-sublane XLU reductions.
    mu = jnp.dot(ones_row, x, preferred_element_type=jnp.float32) * inv_n
    xc = x - mu
    var = jnp.dot(ones_row, xc * xc, preferred_element_type=jnp.float32) * inv_n
    return xc * jax.lax.rsqrt(var + BN_EPS) * gamma + beta


def _batchnorm_ref(x, gamma, beta):
    mu = jnp.mean(x, axis=0, keepdims=True)
    var = jnp.mean((x - mu) ** 2, axis=0, keepdims=True)
    return (x - mu) * jax.lax.rsqrt(var + BN_EPS) * gamma + beta


# ---- the Pallas kernel (one grid program = one independent batched graph) -----
def cgcnn_kernel(rbf_gamma,
                 vec_ref, w_cat_ref, w_edge_ref,
                 h0_ref, sd_ref, dist_ref, dt_ref, pool_ref,
                 out_ref):
    F, F2 = NODE_F, 2 * NODE_F

    centers = vec_ref[ROW_CENTERS:ROW_CENTERS + 1, :EDGE_F]   # (1, EDGE_F)

    h    = h0_ref[0]      # (N, F)   pre-embedded node features
    sd   = sd_ref[0]      # (E, 2N)  [S | D] one-hot incidence (lane-aligned)
    d    = dist_ref[0]    # (E, 1)   bond lengths
    dt   = dt_ref[0]      # (N, E)   D^T for sum-to-dst reduction
    pool = pool_ref[0]    # (B, N)   pre-scaled by 1/count (AvgPooling)

    # RBF expansion of bond lengths -> edge features (E, EDGE_F)
    edge_feats = jnp.exp(-rbf_gamma * (d - centers) ** 2)

    # ones rows for MXU-based BN statistics
    ones_e = jnp.ones((1, N_EDGES), jnp.float32)
    ones_n = jnp.ones((1, N_NODES), jnp.float32)
    inv_e = 1.0 / N_EDGES
    inv_n = 1.0 / N_NODES

    for l in range(N_CONV):                                   # static unroll
        base = ROW_LAYER0 + 5 * l
        b_m   = vec_ref[base + 0:base + 1, :F2]               # b_src+b_dst+b_edge
        bnm_g = vec_ref[base + 1:base + 2, :F2]
        bnm_b = vec_ref[base + 2:base + 3, :F2]
        bn_g  = vec_ref[base + 3:base + 4, :F]
        bn_b  = vec_ref[base + 4:base + 5, :F]

        # Fused src|dst linear: one 128-lane-wide matmul (N, 4F), then row-stack
        # h_src over h_dst so the u_add_v gather is a single MXU push below.
        hsd = jnp.dot(h, w_cat_ref[l], preferred_element_type=jnp.float32)
        stacked = jnp.concatenate([hsd[:, :F2], hsd[:, F2:]], axis=0)  # (2N, 2F)

        # per-layer edge linear (only edge_feats stays live across layers)
        edge_lin = jnp.dot(edge_feats, w_edge_ref[l],
                           preferred_element_type=jnp.float32)         # (E, 2F)

        # fn.u_add_v gather onto edges in ONE (E,2N)@(2N,2F) matmul + folded bias
        m = (jnp.dot(sd, stacked, preferred_element_type=jnp.float32)
             + edge_lin + b_m)
        m = _batchnorm_mxu(m, ones_e, inv_e, bnm_g, bnm_b)

        # gated softplus message (E, F)
        msg = _sigmoid_eup(m[:, :F]) * _softplus(m[:, F:])

        # copy_e + sum reduce onto destination nodes
        agg = jnp.dot(dt, msg, preferred_element_type=jnp.float32)      # (N, F)
        agg = _batchnorm_mxu(agg, ones_n, inv_n, bn_g, bn_b)
        h = _softplus(h + agg)

    # AvgPooling readout (pool rows pre-scaled by 1/count -> no divide)
    out_ref[0] = jnp.dot(pool, h, preferred_element_type=jnp.float32)


def cgcnn_forward(vec, w_cat, w_edge, h0, sd, dist, dt, pool, rbf_gamma):
    G = h0.shape[0]

    def shared_spec(arr):
        nd = arr.ndim
        return pl.BlockSpec(arr.shape, lambda g, nd=nd: (0,) * nd)

    def batched_spec(arr):
        tail = arr.shape[1:]
        nd = len(tail)
        return pl.BlockSpec((1,) + tail, lambda g, nd=nd: (g,) + (0,) * nd)

    in_specs = [
        shared_spec(vec),
        shared_spec(w_cat),
        shared_spec(w_edge),
        batched_spec(h0),
        batched_spec(sd),
        batched_spec(dist),
        batched_spec(dt),
        batched_spec(pool),
    ]
    out_specs = pl.BlockSpec((1, N_GRAPHS, NODE_F), lambda g: (g, 0, 0))

    return pl.pallas_call(
        functools.partial(cgcnn_kernel, rbf_gamma),
        out_shape=jax.ShapeDtypeStruct((G, N_GRAPHS, NODE_F), jnp.float32),
        grid=(G,),
        in_specs=in_specs,
        out_specs=out_specs,
        compiler_params=pltpu.CompilerParams(
            dimension_semantics=("parallel",)),
    )(vec, w_cat, w_edge, h0, sd, dist, dt, pool)


# ---- host-side packing (glue + exact algebraic folds) --------------------------
def pack_inputs(centers, atom_table, atom_types, w_emb, b_emb,
                S, D, dist2d, pool, cnt,
                w_src, b_src, w_dst, b_dst, b_edge,
                bnm_g, bnm_b, bn_g, bn_b):
    # shared vector slab (VEC_ROWS, 128)
    vec = jnp.zeros((VEC_ROWS, 128), jnp.float32)
    vec = vec.at[ROW_CENTERS, :EDGE_F].set(centers[0])
    for l in range(N_CONV):
        base = ROW_LAYER0 + 5 * l
        # one-hot incidence rows sum to 1 -> biases fold exactly into one vector
        vec = vec.at[base + 0, :2 * NODE_F].set((b_src[l] + b_dst[l] + b_edge[l])[0])
        vec = vec.at[base + 1, :2 * NODE_F].set(bnm_g[l, 0])
        vec = vec.at[base + 2, :2 * NODE_F].set(bnm_b[l, 0])
        vec = vec.at[base + 3, :NODE_F].set(bn_g[l, 0])
        vec = vec.at[base + 4, :NODE_F].set(bn_b[l, 0])

    # fused src|dst weights -> (L, NODE_F, 4*NODE_F) = (3, 32, 128)
    w_cat = jnp.concatenate([w_src, w_dst], axis=2)

    # atom embedding folded to a lookup table (exact: lookup o linear = lookup of
    # the linearly-mapped table) -> (N_TYPES, NODE_F), gathered by atom type.
    emb_table = atom_table @ w_emb + b_emb
    h0 = jnp.take(emb_table, atom_types, axis=0)          # (G, N, NODE_F)

    sd = jnp.concatenate([S, D], axis=2)                   # (G, E, 2N)
    dt = jnp.transpose(D, (0, 2, 1))                       # (G, N, E)
    pool_scaled = pool / cnt                               # (G, B, N)

    return vec, w_cat, h0, sd, dist2d, dt, pool_scaled


# ---- pure-JAX reference (faithful, unfused math on the raw parameters) ---------
def cgcnn_reference(raw, rbf_gamma):
    (dist2d, centers, atom_x, w_emb, b_emb, S, D,
     w_src, b_src, w_dst, b_dst, w_edge, b_edge,
     bnm_g, bnm_b, bn_g, bn_b, pool, cnt) = raw
    outs = []
    for g in range(dist2d.shape[0]):
        edge_feats = jnp.exp(-rbf_gamma * (dist2d[g] - centers) ** 2)
        h = atom_x[g] @ w_emb + b_emb
        Dt = D[g].T
        for l in range(N_CONV):
            h_src = h @ w_src[l] + b_src[l]
            h_dst = h @ w_dst[l] + b_dst[l]
            m = S[g] @ h_src + D[g] @ h_dst + edge_feats @ w_edge[l] + b_edge[l]
            m = _batchnorm_ref(m, bnm_g[l], bnm_b[l])
            msg = jax.nn.sigmoid(m[:, :NODE_F]) * _softplus(m[:, NODE_F:])
            agg = _batchnorm_ref(Dt @ msg, bn_g[l], bn_b[l])
            h = _softplus(h + agg)
        outs.append((pool[g] @ h) / cnt[g])
    return jnp.stack(outs)


if __name__ == "__main__":
    key = jax.random.PRNGKey(0)
    ks = jax.random.split(key, 20)
    G = N_BATCHES

    # --- synthetic batched graphs (crystals concatenated, DGL-style) ---
    nodes_per_graph = N_NODES // N_GRAPHS    # 16
    edges_per_graph = N_EDGES // N_GRAPHS    # 32
    node_graph_id = jnp.repeat(jnp.arange(N_GRAPHS, dtype=jnp.int32), nodes_per_graph)
    edge_graph_id = jnp.repeat(jnp.arange(N_GRAPHS, dtype=jnp.int32), edges_per_graph)

    atom_types = jax.random.randint(ks[0], (G, N_NODES), 0, N_TYPES)
    src = (jax.random.randint(ks[1], (G, N_EDGES), 0, nodes_per_graph)
           + edge_graph_id[None, :] * nodes_per_graph)
    dst = (jax.random.randint(ks[2], (G, N_EDGES), 0, nodes_per_graph)
           + edge_graph_id[None, :] * nodes_per_graph)
    distances = jax.random.uniform(ks[3], (G, N_EDGES), minval=0.5, maxval=4.0)

    # --- glue (host side): featurizer lookup, one-hot incidence, RBF centers ---
    atom_table = 0.1 * jax.random.normal(ks[4], (N_TYPES, ATOM_DIM), jnp.float32)
    atom_x = jnp.take(atom_table, atom_types, axis=0)                   # (G, N, ATOM_DIM)
    S = jax.nn.one_hot(src, N_NODES, dtype=jnp.float32)                 # (G, E, N)
    D = jax.nn.one_hot(dst, N_NODES, dtype=jnp.float32)                 # (G, E, N)
    pool = jnp.broadcast_to(
        jax.nn.one_hot(node_graph_id, N_GRAPHS, dtype=jnp.float32).T,
        (G, N_GRAPHS, N_NODES))                                         # (G, B, N)
    cnt = jnp.sum(pool, axis=2, keepdims=True)                          # (G, B, 1)
    centers = jnp.linspace(0.0, 8.0, EDGE_F).reshape(1, EDGE_F).astype(jnp.float32)
    rbf_gamma = float((EDGE_F - 1) / 8.0)     # 1 / mean(diff(centers))
    dist2d = distances[..., None].astype(jnp.float32)                   # (G, E, 1)

    # --- deterministic parameters (shapes from CGCNN.__init__) ---
    w_emb = jax.random.normal(ks[5], (ATOM_DIM, NODE_F), jnp.float32) / jnp.sqrt(ATOM_DIM * 1.0)
    b_emb = 0.1 * jax.random.normal(ks[6], (1, NODE_F), jnp.float32)
    w_src = jax.random.normal(ks[7], (N_CONV, NODE_F, 2 * NODE_F), jnp.float32) / jnp.sqrt(NODE_F * 1.0)
    b_src = 0.1 * jax.random.normal(ks[8], (N_CONV, 1, 2 * NODE_F), jnp.float32)
    w_dst = jax.random.normal(ks[9], (N_CONV, NODE_F, 2 * NODE_F), jnp.float32) / jnp.sqrt(NODE_F * 1.0)
    b_dst = 0.1 * jax.random.normal(ks[10], (N_CONV, 1, 2 * NODE_F), jnp.float32)
    w_edge = jax.random.normal(ks[11], (N_CONV, EDGE_F, 2 * NODE_F), jnp.float32) / jnp.sqrt(EDGE_F * 1.0)
    b_edge = 0.1 * jax.random.normal(ks[12], (N_CONV, 1, 2 * NODE_F), jnp.float32)
    bnm_g = 1.0 + 0.1 * jax.random.normal(ks[13], (N_CONV, 1, 2 * NODE_F), jnp.float32)
    bnm_b = 0.1 * jax.random.normal(ks[14], (N_CONV, 1, 2 * NODE_F), jnp.float32)
    bn_g = 1.0 + 0.1 * jax.random.normal(ks[15], (N_CONV, 1, NODE_F), jnp.float32)
    bn_b = 0.1 * jax.random.normal(ks[16], (N_CONV, 1, NODE_F), jnp.float32)

    packed = pack_inputs(centers, atom_table, atom_types, w_emb, b_emb,
                         S, D, dist2d, pool, cnt,
                         w_src, b_src, w_dst, b_dst, b_edge,
                         bnm_g, bnm_b, bn_g, bn_b)
    vec, w_cat, h0, sd, dist, dt, pool_scaled = packed

    out = cgcnn_forward(vec, w_cat, w_edge, h0, sd, dist, dt, pool_scaled, rbf_gamma)
    out = jax.block_until_ready(out)

    raw = (dist2d, centers, atom_x, w_emb, b_emb, S, D,
           w_src, b_src, w_dst, b_dst, w_edge, b_edge,
           bnm_g, bnm_b, bn_g, bn_b, pool, cnt)
    ref = jax.block_until_ready(cgcnn_reference(raw, rbf_gamma))

    assert out.shape == (N_BATCHES, N_GRAPHS, NODE_F)
    assert jnp.allclose(out, ref, rtol=2e-3, atol=2e-3), (out, ref)

    print("KERNEL_OK")
</pallas_src>

<mosaic_0001>
module attributes {stable_mosaic.version = 11 : i64} {
  func.func @cgcnn_kernel(%arg0: i32, %arg1: memref<16x128xf32, #tpu.memory_space<vmem>>, %arg2: memref<3x32x128xf32, #tpu.memory_space<vmem>>, %arg3: memref<3x16x64xf32, #tpu.memory_space<vmem>>, %arg4: memref<1x128x32xf32, #tpu.memory_space<vmem>>, %arg5: memref<1x256x256xf32, #tpu.memory_space<vmem>>, %arg6: memref<1x256x1xf32, #tpu.memory_space<vmem>>, %arg7: memref<1x128x256xf32, #tpu.memory_space<vmem>>, %arg8: memref<1x8x128xf32, #tpu.memory_space<vmem>>, %arg9: memref<1x8x32xf32, #tpu.memory_space<vmem>>) attributes {dimension_semantics = [#tpu.dimension_semantics<parallel>], iteration_bounds = array<i64: 2>, scalar_prefetch = 0 : i64, scratch_operands = 0 : i64, tpu.core_type = #tpu.core_type<tc>, window_params = [{pipeline_mode = #tpu.pipeline_mode<synchronous>, transform_indices = @transform_0, window_bounds = array<i64: 16, 128>}, {pipeline_mode = #tpu.pipeline_mode<synchronous>, transform_indices = @transform_1, window_bounds = array<i64: 3, 32, 128>}, {pipeline_mode = #tpu.pipeline_mode<synchronous>, transform_indices = @transform_2, window_bounds = array<i64: 3, 16, 64>}, {transform_indices = @transform_3, window_bounds = array<i64: 1, 128, 32>}, {transform_indices = @transform_4, window_bounds = array<i64: 1, 256, 256>}, {transform_indices = @transform_5, window_bounds = array<i64: 1, 256, 1>}, {transform_indices = @transform_6, window_bounds = array<i64: 1, 128, 256>}, {transform_indices = @transform_7, window_bounds = array<i64: 1, 8, 128>}, {transform_indices = @transform_8, window_bounds = array<i64: 1, 8, 32>}]} {
    %c0 = arith.constant 0 : index
    %c0_0 = arith.constant 0 : index
    %0 = vector.load %arg1[%c0, %c0_0] : memref<16x128xf32, #tpu.memory_space<vmem>>, vector<1x16xf32>
    %c0_1 = arith.constant 0 : index
    %c0_2 = arith.constant 0 : index
    %c0_3 = arith.constant 0 : index
    %1 = vector.load %arg4[%c0_1, %c0_2, %c0_3] : memref<1x128x32xf32, #tpu.memory_space<vmem>>, vector<1x128x32xf32>
    %2 = vector.shape_cast %1 : vector<1x128x32xf32> to vector<128x32xf32>
    %c0_4 = arith.constant 0 : index
    %c0_5 = arith.constant 0 : index
    %c0_6 = arith.constant 0 : index
    %3 = vector.load %arg5[%c0_4, %c0_5, %c0_6] : memref<1x256x256xf32, #tpu.memory_space<vmem>>, vector<1x256x256xf32>
    %4 = vector.shape_cast %3 : vector<1x256x256xf32> to vector<256x256xf32>
    %c0_7 = arith.constant 0 : index
    %c0_8 = arith.constant 0 : index
    %c0_9 = arith.constant 0 : index
    %5 = vector.load %arg6[%c0_7, %c0_8, %c0_9] : memref<1x256x1xf32, #tpu.memory_space<vmem>>, vector<1x256x1xf32>
    %6 = vector.shape_cast %5 : vector<1x256x1xf32> to vector<256x1xf32>
    %c0_10 = arith.constant 0 : index
    %c0_11 = arith.constant 0 : index
    %c0_12 = arith.constant 0 : index
    %7 = vector.load %arg7[%c0_10, %c0_11, %c0_12] : memref<1x128x256xf32, #tpu.memory_space<vmem>>, vector<1x128x256xf32>
    %8 = vector.shape_cast %7 : vector<1x128x256xf32> to vector<128x256xf32>
    %c0_13 = arith.constant 0 : index
    %c0_14 = arith.constant 0 : index
    %c0_15 = arith.constant 0 : index
    %9 = vector.load %arg8[%c0_13, %c0_14, %c0_15] : memref<1x8x128xf32, #tpu.memory_space<vmem>>, vector<1x8x128xf32>
    %10 = vector.shape_cast %9 : vector<1x8x128xf32> to vector<8x128xf32>
    %11 = vector.broadcast %6 : vector<256x1xf32> to vector<256x16xf32>
    %12 = vector.broadcast %0 : vector<1x16xf32> to vector<256x16xf32>
    %13 = arith.subf %11, %12 : vector<256x16xf32>
    %14 = arith.mulf %13, %13 : vector<256x16xf32>
    %cst = arith.constant -1.875000e+00 : f32
    %15 = vector.broadcast %cst : f32 to vector<256x16xf32>
    %16 = arith.mulf %15, %14 : vector<256x16xf32>
    %17 = math.exp %16 : vector<256x16xf32>
    %cst_16 = arith.constant 1.000000e+00 : f32
    %18 = vector.broadcast %cst_16 : f32 to vector<1x256xf32>
    %cst_17 = arith.constant 1.000000e+00 : f32
    %19 = vector.broadcast %cst_17 : f32 to vector<1x128xf32>
    %c1 = arith.constant 1 : index
    %c0_18 = arith.constant 0 : index
    %20 = vector.load %arg1[%c1, %c0_18] : memref<16x128xf32, #tpu.memory_space<vmem>>, vector<1x64xf32>
    %c2 = arith.constant 2 : index
    %c0_19 = arith.constant 0 : index
    %21 = vector.load %arg1[%c2, %c0_19] : memref<16x128xf32, #tpu.memory_space<vmem>>, vector<1x64xf32>
    %c3 = arith.constant 3 : index
    %c0_20 = arith.constant 0 : index
    %22 = vector.load %arg1[%c3, %c0_20] : memref<16x128xf32, #tpu.memory_space<vmem>>, vector<1x64xf32>
    %c4 = arith.constant 4 : index
    %c0_21 = arith.constant 0 : index
    %23 = vector.load %arg1[%c4, %c0_21] : memref<16x128xf32, #tpu.memory_space<vmem>>, vector<1x32xf32>
    %c5 = arith.constant 5 : index
    %c0_22 = arith.constant 0 : index
    %24 = vector.load %arg1[%c5, %c0_22] : memref<16x128xf32, #tpu.memory_space<vmem>>, vector<1x32xf32>
    %c0_23 = arith.constant 0 : index
    %c0_24 = arith.constant 0 : index
    %c0_25 = arith.constant 0 : index
    %25 = vector.load %arg2[%c0_23, %c0_24, %c0_25] : memref<3x32x128xf32, #tpu.memory_space<vmem>>, vector<1x32x128xf32>
    %26 = vector.shape_cast %25 : vector<1x32x128xf32> to vector<32x128xf32>
    %cst_26 = arith.constant dense<0.000000e+00> : vector<128x128xf32>
    %27 = tpu.matmul %2, %26, %cst_26 {dimension_numbers = #tpu.dot_dimension_numbers<[1], [0], [0], [1], [0, 0, 1, 1], [], []>} : vector<128x32xf32>, vector<32x128xf32>, vector<128x128xf32> -> vector<128x128xf32>
    %28 = vector.extract_strided_slice %27 {offsets = [0, 0], sizes = [128, 64], strides = [1, 1]} : vector<128x128xf32> to vector<128x64xf32>
    %29 = vector.extract_strided_slice %27 {offsets = [0, 64], sizes = [128, 64], strides = [1, 1]} : vector<128x128xf32> to vector<128x64xf32>
    %30 = tpu.concatenate %28, %29 in 0 : vector<128x64xf32>, vector<128x64xf32> -> vector<256x64xf32>
    %c0_27 = arith.constant 0 : index
    %c0_28 = arith.constant 0 : index
    %c0_29 = arith.constant 0 : index
    %31 = vector.load %arg3[%c0_27, %c0_28, %c0_29] : memref<3x16x64xf32, #tpu.memory_space<vmem>>, vector<1x16x64xf32>
    %32 = vector.shape_cast %31 : vector<1x16x64xf32> to vector<16x64xf32>
    %cst_30 = arith.constant dense<0.000000e+00> : vector<256x64xf32>
    %33 = tpu.matmul %17, %32, %cst_30 {dimension_numbers = #tpu.dot_dimension_numbers<[1], [0], [0], [1], [0, 0, 1, 1], [], []>} : vector<256x16xf32>, vector<16x64xf32>, vector<256x64xf32> -> vector<256x64xf32>
    %cst_31 = arith.constant dense<0.000000e+00> : vector<256x64xf32>
    %34 = tpu.matmul %4, %30, %cst_31 {dimension_numbers = #tpu.dot_dimension_numbers<[1], [0], [0], [1], [0, 0, 1, 1], [], []>} : vector<256x256xf32>, vector<256x64xf32>, vector<256x64xf32> -> vector<256x64xf32>
    %35 = arith.addf %34, %33 : vector<256x64xf32>
    %36 = vector.broadcast %20 : vector<1x64xf32> to vector<256x64xf32>
    %37 = arith.addf %35, %36 : vector<256x64xf32>
    %cst_32 = arith.constant dense<0.000000e+00> : vector<1x64xf32>
    %38 = tpu.matmul %18, %37, %cst_32 {dimension_numbers = #tpu.dot_dimension_numbers<[1], [0], [0], [1], [0, 0, 1, 1], [], []>} : vector<1x256xf32>, vector<256x64xf32>, vector<1x64xf32> -> vector<1x64xf32>
    %cst_33 = arith.constant 3.906250e-03 : f32
    %39 = vector.broadcast %cst_33 : f32 to vector<1x64xf32>
    %40 = arith.mulf %38, %39 : vector<1x64xf32>
    %41 = vector.broadcast %40 : vector<1x64xf32> to vector<256x64xf32>
    %42 = arith.subf %37, %41 : vector<256x64xf32>
    %43 = arith.mulf %42, %42 : vector<256x64xf32>
    %cst_34 = arith.constant dense<0.000000e+00> : vector<1x64xf32>
    %44 = tpu.matmul %18, %43, %cst_34 {dimension_numbers = #tpu.dot_dimension_numbers<[1], [0], [0], [1], [0, 0, 1, 1], [], []>} : vector<1x256xf32>, vector<256x64xf32>, vector<1x64xf32> -> vector<1x64xf32>
    %cst_35 = arith.constant 3.906250e-03 : f32
    %45 = vector.broadcast %cst_35 : f32 to vector<1x64xf32>
    %46 = arith.mulf %44, %45 : vector<1x64xf32>
    %cst_36 = arith.constant 9.99999974E-6 : f32
    %47 = vector.broadcast %cst_36 : f32 to vector<1x64xf32>
    %48 = arith.addf %46, %47 : vector<1x64xf32>
    %49 = math.rsqrt %48 : vector<1x64xf32>
    %50 = vector.broadcast %49 : vector<1x64xf32> to vector<256x64xf32>
    %51 = arith.mulf %42, %50 : vector<256x64xf32>
    %52 = vector.broadcast %21 : vector<1x64xf32> to vector<256x64xf32>
    %53 = arith.mulf %51, %52 : vector<256x64xf32>
    %54 = vector.broadcast %22 : vector<1x64xf32> to vector<256x64xf32>
    %55 = arith.addf %53, %54 : vector<256x64xf32>
    %56 = vector.extract_strided_slice %55 {offsets = [0, 0], sizes = [256, 32], strides = [1, 1]} : vector<256x64xf32> to vector<256x32xf32>
    %cst_37 = arith.constant 0.000000e+00 : f32
    %57 = vector.broadcast %cst_37 : f32 to vector<256x32xf32>
    %58 = arith.subf %57, %56 : vector<256x32xf32>
    %59 = math.exp %58 : vector<256x32xf32>
    %cst_38 = arith.constant 1.000000e+00 : f32
    %60 = vector.broadcast %cst_38 : f32 to vector<256x32xf32>
    %61 = arith.addf %60, %59 : vector<256x32xf32>
    %62 = tpu.reciprocal %61 {approx = true} : vector<256x32xf32> -> vector<256x32xf32>
    %63 = vector.extract_strided_slice %55 {offsets = [0, 32], sizes = [256, 32], strides = [1, 1]} : vector<256x64xf32> to vector<256x32xf32>
    %cst_39 = arith.constant 0.000000e+00 : f32
    %64 = vector.broadcast %cst_39 : f32 to vector<256x32xf32>
    %65 = arith.maximumf %63, %64 : vector<256x32xf32>
    %66 = math.absf %63 : vector<256x32xf32>
    %cst_40 = arith.constant 0.000000e+00 : f32
    %67 = vector.broadcast %cst_40 : f32 to vector<256x32xf32>
    %68 = arith.subf %67, %66 : vector<256x32xf32>
    %69 = math.exp %68 : vector<256x32xf32>
    %70 = math.log1p %69 : vector<256x32xf32>
    %71 = arith.addf %65, %70 : vector<256x32xf32>
    %72 = arith.mulf %62, %71 : vector<256x32xf32>
    %cst_41 = arith.constant dense<0.000000e+00> : vector<128x32xf32>
    %73 = tpu.matmul %8, %72, %cst_41 {dimension_numbers = #tpu.dot_dimension_numbers<[1], [0], [0], [1], [0, 0, 1, 1], [], []>} : vector<128x256xf32>, vector<256x32xf32>, vector<128x32xf32> -> vector<128x32xf32>
    %cst_42 = arith.constant dense<0.000000e+00> : vector<1x32xf32>
    %74 = tpu.matmul %19, %73, %cst_42 {dimension_numbers = #tpu.dot_dimension_numbers<[1], [0], [0], [1], [0, 0, 1, 1], [], []>} : vector<1x128xf32>, vector<128x32xf32>, vector<1x32xf32> -> vector<1x32xf32>
    %cst_43 = arith.constant 7.812500e-03 : f32
    %75 = vector.broadcast %cst_43 : f32 to vector<1x32xf32>
    %76 = arith.mulf %74, %75 : vector<1x32xf32>
    %77 = vector.broadcast %76 : vector<1x32xf32> to vector<128x32xf32>
    %78 = arith.subf %73, %77 : vector<128x32xf32>
    %79 = arith.mulf %78, %78 : vector<128x32xf32>
    %cst_44 = arith.constant dense<0.000000e+00> : vector<1x32xf32>
    %80 = tpu.matmul %19, %79, %cst_44 {dimension_numbers = #tpu.dot_dimension_numbers<[1], [0], [0], [1], [0, 0, 1, 1], [], []>} : vector<1x128xf32>, vector<128x32xf32>, vector<1x32xf32> -> vector<1x32xf32>
    %cst_45 = arith.constant 7.812500e-03 : f32
    %81 = vector.broadcast %cst_45 : f32 to vector<1x32xf32>
    %82 = arith.mulf %80, %81 : vector<1x32xf32>
    %cst_46 = arith.constant 9.99999974E-6 : f32
    %83 = vector.broadcast %cst_46 : f32 to vector<1x32xf32>
    %84 = arith.addf %82, %83 : vector<1x32xf32>
    %85 = math.rsqrt %84 : vector<1x32xf32>
    %86 = vector.broadcast %85 : vector<1x32xf32> to vector<128x32xf32>
    %87 = arith.mulf %78, %86 : vector<128x32xf32>
    %88 = vector.broadcast %23 : vector<1x32xf32> to vector<128x32xf32>
    %89 = arith.mulf %87, %88 : vector<128x32xf32>
    %90 = vector.broadcast %24 : vector<1x32xf32> to vector<128x32xf32>
    %91 = arith.addf %89, %90 : vector<128x32xf32>
    %92 = arith.addf %2, %91 : vector<128x32xf32>
    %cst_47 = arith.constant 0.000000e+00 : f32
    %93 = vector.broadcast %cst_47 : f32 to vector<128x32xf32>
    %94 = arith.maximumf %92, %93 : vector<128x32xf32>
    %95 = math.absf %92 : vector<128x32xf32>
    %cst_48 = arith.constant 0.000000e+00 : f32
    %96 = vector.broadcast %cst_48 : f32 to vector<128x32xf32>
    %97 = arith.subf %96, %95 : vector<128x32xf32>
    %98 = math.exp %97 : vector<128x32xf32>
    %99 = math.log1p %98 : vector<128x32xf32>
    %100 = arith.addf %94, %99 : vector<128x32xf32>
    %c6 = arith.constant 6 : index
    %c0_49 = arith.constant 0 : index
    %101 = vector.load %arg1[%c6, %c0_49] : memref<16x128xf32, #tpu.memory_space<vmem>>, vector<1x64xf32>
    %c7 = arith.constant 7 : index
    %c0_50 = arith.constant 0 : index
    %102 = vector.load %arg1[%c7, %c0_50] : memref<16x128xf32, #tpu.memory_space<vmem>>, vector<1x64xf32>
    %c8 = arith.constant 8 : index
    %c0_51 = arith.constant 0 : index
    %103 = vector.load %arg1[%c8, %c0_51] : memref<16x128xf32, #tpu.memory_space<vmem>>, vector<1x64xf32>
    %c9 = arith.constant 9 : index
    %c0_52 = arith.constant 0 : index
    %104 = vector.load %arg1[%c9, %c0_52] : memref<16x128xf32, #tpu.memory_space<vmem>>, vector<1x32xf32>
    %c10 = arith.constant 10 : index
    %c0_53 = arith.constant 0 : index
    %105 = vector.load %arg1[%c10, %c0_53] : memref<16x128xf32, #tpu.memory_space<vmem>>, vector<1x32xf32>
    %c1_54 = arith.constant 1 : index
    %c0_55 = arith.constant 0 : index
    %c0_56 = arith.constant 0 : index
    %106 = vector.load %arg2[%c1_54, %c0_55, %c0_56] : memref<3x32x128xf32, #tpu.memory_space<vmem>>, vector<1x32x128xf32>
    %107 = vector.shape_cast %106 : vector<1x32x128xf32> to vector<32x128xf32>
    %cst_57 = arith.constant dense<0.000000e+00> : vector<128x128xf32>
    %108 = tpu.matmul %100, %107, %cst_57 {dimension_numbers = #tpu.dot_dimension_numbers<[1], [0], [0], [1], [0, 0, 1, 1], [], []>} : vector<128x32xf32>, vector<32x128xf32>, vector<128x128xf32> -> vector<128x128xf32>
    %109 = vector.extract_strided_slice %108 {offsets = [0, 0], sizes = [128, 64], strides = [1, 1]} : vector<128x128xf32> to vector<128x64xf32>
    %110 = vector.extract_strided_slice %108 {offsets = [0, 64], sizes = [128, 64], strides = [1, 1]} : vector<128x128xf32> to vector<128x64xf32>
    %111 = tpu.concatenate %109, %110 in 0 : vector<128x64xf32>, vector<128x64xf32> -> vector<256x64xf32>
    %c1_58 = arith.constant 1 : index
    %c0_59 = arith.constant 0 : index
    %c0_60 = arith.constant 0 : index
    %112 = vector.load %arg3[%c1_58, %c0_59, %c0_60] : memref<3x16x64xf32, #tpu.memory_space<vmem>>, vector<1x16x64xf32>
    %113 = vector.shape_cast %112 : vector<1x16x64xf32> to vector<16x64xf32>
    %cst_61 = arith.constant dense<0.000000e+00> : vector<256x64xf32>
    %114 = tpu.matmul %17, %113, %cst_61 {dimension_numbers = #tpu.dot_dimension_numbers<[1], [0], [0], [1], [0, 0, 1, 1], [], []>} : vector<256x16xf32>, vector<16x64xf32>, vector<256x64xf32> -> vector<256x64xf32>
    %cst_62 = arith.constant dense<0.000000e+00> : vector<256x64xf32>
    %115 = tpu.matmul %4, %111, %cst_62 {dimension_numbers = #tpu.dot_dimension_numbers<[1], [0], [0], [1], [0, 0, 1, 1], [], []>} : vector<256x256xf32>, vector<256x64xf32>, vector<256x64xf32> -> vector<256x64xf32>
    %116 = arith.addf %115, %114 : vector<256x64xf32>
    %117 = vector.broadcast %101 : vector<1x64xf32> to vector<256x64xf32>
    %118 = arith.addf %116, %117 : vector<256x64xf32>
    %cst_63 = arith.constant dense<0.000000e+00> : vector<1x64xf32>
    %119 = tpu.matmul %18, %118, %cst_63 {dimension_numbers = #tpu.dot_dimension_numbers<[1], [0], [0], [1], [0, 0, 1, 1], [], []>} : vector<1x256xf32>, vector<256x64xf32>, vector<1x64xf32> -> vector<1x64xf32>
    %cst_64 = arith.constant 3.906250e-03 : f32
    %120 = vector.broadcast %cst_64 : f32 to vector<1x64xf32>
    %121 = arith.mulf %119, %120 : vector<1x64xf32>
    %122 = vector.broadcast %121 : vector<1x64xf32> to vector<256x64xf32>
    %123 = arith.subf %118, %122 : vector<256x64xf32>
    %124 = arith.mulf %123, %123 : vector<256x64xf32>
    %cst_65 = arith.constant dense<0.000000e+00> : vector<1x64xf32>
    %125 = tpu.matmul %18, %124, %cst_65 {dimension_numbers = #tpu.dot_dimension_numbers<[1], [0], [0], [1], [0, 0, 1, 1], [], []>} : vector<1x256xf32>, vector<256x64xf32>, vector<1x64xf32> -> vector<1x64xf32>
    %cst_66 = arith.constant 3.906250e-03 : f32
    %126 = vector.broadcast %cst_66 : f32 to vector<1x64xf32>
    %127 = arith.mulf %125, %126 : vector<1x64xf32>
    %cst_67 = arith.constant 9.99999974E-6 : f32
    %128 = vector.broadcast %cst_67 : f32 to vector<1x64xf32>
    %129 = arith.addf %127, %128 : vector<1x64xf32>
    %130 = math.rsqrt %129 : vector<1x64xf32>
    %131 = vector.broadcast %130 : vector<1x64xf32> to vector<256x64xf32>
    %132 = arith.mulf %123, %131 : vector<256x64xf32>
    %133 = vector.broadcast %102 : vector<1x64xf32> to vector<256x64xf32>
    %134 = arith.mulf %132, %133 : vector<256x64xf32>
    %135 = vector.broadcast %103 : vector<1x64xf32> to vector<256x64xf32>
    %136 = arith.addf %134, %135 : vector<256x64xf32>
    %137 = vector.extract_strided_slice %136 {offsets = [0, 0], sizes = [256, 32], strides = [1, 1]} : vector<256x64xf32> to vector<256x32xf32>
    %cst_68 = arith.constant 0.000000e+00 : f32
    %138 = vector.broadcast %cst_68 : f32 to vector<256x32xf32>
    %139 = arith.subf %138, %137 : vector<256x32xf32>
    %140 = math.exp %139 : vector<256x32xf32>
    %cst_69 = arith.constant 1.000000e+00 : f32
    %141 = vector.broadcast %cst_69 : f32 to vector<256x32xf32>
    %142 = arith.addf %141, %140 : vector<256x32xf32>
    %143 = tpu.reciprocal %142 {approx = true} : vector<256x32xf32> -> vector<256x32xf32>
    %144 = vector.extract_strided_slice %136 {offsets = [0, 32], sizes = [256, 32], strides = [1, 1]} : vector<256x64xf32> to vector<256x32xf32>
    %cst_70 = arith.constant 0.000000e+00 : f32
    %145 = vector.broadcast %cst_70 : f32 to vector<256x32xf32>
    %146 = arith.maximumf %144, %145 : vector<256x32xf32>
    %147 = math.absf %144 : vector<256x32xf32>
    %cst_71 = arith.constant 0.000000e+00 : f32
    %148 = vector.broadcast %cst_71 : f32 to vector<256x32xf32>
    %149 = arith.subf %148, %147 : vector<256x32xf32>
    %150 = math.exp %149 : vector<256x32xf32>
    %151 = math.log1p %150 : vector<256x32xf32>
    %152 = arith.addf %146, %151 : vector<256x32xf32>
    %153 = arith.mulf %143, %152 : vector<256x32xf32>
    %cst_72 = arith.constant dense<0.000000e+00> : vector<128x32xf32>
    %154 = tpu.matmul %8, %153, %cst_72 {dimension_numbers = #tpu.dot_dimension_numbers<[1], [0], [0], [1], [0, 0, 1, 1], [], []>} : vector<128x256xf32>, vector<256x32xf32>, vector<128x32xf32> -> vector<128x32xf32>
    %cst_73 = arith.constant dense<0.000000e+00> : vector<1x32xf32>
    %155 = tpu.matmul %19, %154, %cst_73 {dimension_numbers = #tpu.dot_dimension_numbers<[1], [0], [0], [1], [0, 0, 1, 1], [], []>} : vector<1x128xf32>, vector<128x32xf32>, vector<1x32xf32> -> vector<1x32xf32>
    %cst_74 = arith.constant 7.812500e-03 : f32
    %156 = vector.broadcast %cst_74 : f32 to vector<1x32xf32>
    %157 = arith.mulf %155, %156 : vector<1x32xf32>
    %158 = vector.broadcast %157 : vector<1x32xf32> to vector<128x32xf32>
    %159 = arith.subf %154, %158 : vector<128x32xf32>
    %160 = arith.mulf %159, %159 : vector<128x32xf32>
    %cst_75 = arith.constant dense<0.000000e+00> : vector<1x32xf32>
    %161 = tpu.matmul %19, %160, %cst_75 {dimension_numbers = #tpu.dot_dimension_numbers<[1], [0], [0], [1], [0, 0, 1, 1], [], []>} : vector<1x128xf32>, vector<128x32xf32>, vector<1x32xf32> -> vector<1x32xf32>
    %cst_76 = arith.constant 7.812500e-03 : f32
    %162 = vector.broadcast %cst_76 : f32 to vector<1x32xf32>
    %163 = arith.mulf %161, %162 : vector<1x32xf32>
    %cst_77 = arith.constant 9.99999974E-6 : f32
    %164 = vector.broadcast %cst_77 : f32 to vector<1x32xf32>
    %165 = arith.addf %163, %164 : vector<1x32xf32>
    %166 = math.rsqrt %165 : vector<1x32xf32>
    %167 = vector.broadcast %166 : vector<1x32xf32> to vector<128x32xf32>
    %168 = arith.mulf %159, %167 : vector<128x32xf32>
    %169 = vector.broadcast %104 : vector<1x32xf32> to vector<128x32xf32>
    %170 = arith.mulf %168, %169 : vector<128x32xf32>
    %171 = vector.broadcast %105 : vector<1x32xf32> to vector<128x32xf32>
    %172 = arith.addf %170, %171 : vector<128x32xf32>
    %173 = arith.addf %100, %172 : vector<128x32xf32>
    %cst_78 = arith.constant 0.000000e+00 : f32
    %174 = vector.broadcast %cst_78 : f32 to vector<128x32xf32>
    %175 = arith.maximumf %173, %174 : vector<128x32xf32>
    %176 = math.absf %173 : vector<128x32xf32>
    %cst_79 = arith.constant 0.000000e+00 : f32
    %177 = vector.broadcast %cst_79 : f32 to vector<128x32xf32>
    %178 = arith.subf %177, %176 : vector<128x32xf32>
    %179 = math.exp %178 : vector<128x32xf32>
    %180 = math.log1p %179 : vector<128x32xf32>
    %181 = arith.addf %175, %180 : vector<128x32xf32>
    %c11 = arith.constant 11 : index
    %c0_80 = arith.constant 0 : index
    %182 = vector.load %arg1[%c11, %c0_80] : memref<16x128xf32, #tpu.memory_space<vmem>>, vector<1x64xf32>
    %c12 = arith.constant 12 : index
    %c0_81 = arith.constant 0 : index
    %183 = vector.load %arg1[%c12, %c0_81] : memref<16x128xf32, #tpu.memory_space<vmem>>, vector<1x64xf32>
    %c13 = arith.constant 13 : index
    %c0_82 = arith.constant 0 : index
    %184 = vector.load %arg1[%c13, %c0_82] : memref<16x128xf32, #tpu.memory_space<vmem>>, vector<1x64xf32>
    %c14 = arith.constant 14 : index
    %c0_83 = arith.constant 0 : index
    %185 = vector.load %arg1[%c14, %c0_83] : memref<16x128xf32, #tpu.memory_space<vmem>>, vector<1x32xf32>
    %c15 = arith.constant 15 : index
    %c0_84 = arith.constant 0 : index
    %186 = vector.load %arg1[%c15, %c0_84] : memref<16x128xf32, #tpu.memory_space<vmem>>, vector<1x32xf32>
    %c2_85 = arith.constant 2 : index
    %c0_86 = arith.constant 0 : index
    %c0_87 = arith.constant 0 : index
    %187 = vector.load %arg2[%c2_85, %c0_86, %c0_87] : memref<3x32x128xf32, #tpu.memory_space<vmem>>, vector<1x32x128xf32>
    %188 = vector.shape_cast %187 : vector<1x32x128xf32> to vector<32x128xf32>
    %cst_88 = arith.constant dense<0.000000e+00> : vector<128x128xf32>
    %189 = tpu.matmul %181, %188, %cst_88 {dimension_numbers = #tpu.dot_dimension_numbers<[1], [0], [0], [1], [0, 0, 1, 1], [], []>} : vector<128x32xf32>, vector<32x128xf32>, vector<128x128xf32> -> vector<128x128xf32>
    %190 = vector.extract_strided_slice %189 {offsets = [0, 0], sizes = [128, 64], strides = [1, 1]} : vector<128x128xf32> to vector<128x64xf32>
    %191 = vector.extract_strided_slice %189 {offsets = [0, 64], sizes = [128, 64], strides = [1, 1]} : vector<128x128xf32> to vector<128x64xf32>
    %192 = tpu.concatenate %190, %191 in 0 : vector<128x64xf32>, vector<128x64xf32> -> vector<256x64xf32>
    %c2_89 = arith.constant 2 : index
    %c0_90 = arith.constant 0 : index
    %c0_91 = arith.constant 0 : index
    %193 = vector.load %arg3[%c2_89, %c0_90, %c0_91] : memref<3x16x64xf32, #tpu.memory_space<vmem>>, vector<1x16x64xf32>
    %194 = vector.shape_cast %193 : vector<1x16x64xf32> to vector<16x64xf32>
    %cst_92 = arith.constant dense<0.000000e+00> : vector<256x64xf32>
    %195 = tpu.matmul %17, %194, %cst_92 {dimension_numbers = #tpu.dot_dimension_numbers<[1], [0], [0], [1], [0, 0, 1, 1], [], []>} : vector<256x16xf32>, vector<16x64xf32>, vector<256x64xf32> -> vector<256x64xf32>
    %cst_93 = arith.constant dense<0.000000e+00> : vector<256x64xf32>
    %196 = tpu.matmul %4, %192, %cst_93 {dimension_numbers = #tpu.dot_dimension_numbers<[1], [0], [0], [1], [0, 0, 1, 1], [], []>} : vector<256x256xf32>, vector<256x64xf32>, vector<256x64xf32> -> vector<256x64xf32>
    %197 = arith.addf %196, %195 : vector<256x64xf32>
    %198 = vector.broadcast %182 : vector<1x64xf32> to vector<256x64xf32>
    %199 = arith.addf %197, %198 : vector<256x64xf32>
    %cst_94 = arith.constant dense<0.000000e+00> : vector<1x64xf32>
    %200 = tpu.matmul %18, %199, %cst_94 {dimension_numbers = #tpu.dot_dimension_numbers<[1], [0], [0], [1], [0, 0, 1, 1], [], []>} : vector<1x256xf32>, vector<256x64xf32>, vector<1x64xf32> -> vector<1x64xf32>
    %cst_95 = arith.constant 3.906250e-03 : f32
    %201 = vector.broadcast %cst_95 : f32 to vector<1x64xf32>
    %202 = arith.mulf %200, %201 : vector<1x64xf32>
    %203 = vector.broadcast %202 : vector<1x64xf32> to vector<256x64xf32>
    %204 = arith.subf %199, %203 : vector<256x64xf32>
    %205 = arith.mulf %204, %204 : vector<256x64xf32>
    %cst_96 = arith.constant dense<0.000000e+00> : vector<1x64xf32>
    %206 = tpu.matmul %18, %205, %cst_96 {dimension_numbers = #tpu.dot_dimension_numbers<[1], [0], [0], [1], [0, 0, 1, 1], [], []>} : vector<1x256xf32>, vector<256x64xf32>, vector<1x64xf32> -> vector<1x64xf32>
    %cst_97 = arith.constant 3.906250e-03 : f32
    %207 = vector.broadcast %cst_97 : f32 to vector<1x64xf32>
    %208 = arith.mulf %206, %207 : vector<1x64xf32>
    %cst_98 = arith.constant 9.99999974E-6 : f32
    %209 = vector.broadcast %cst_98 : f32 to vector<1x64xf32>
    %210 = arith.addf %208, %209 : vector<1x64xf32>
    %211 = math.rsqrt %210 : vector<1x64xf32>
    %212 = vector.broadcast %211 : vector<1x64xf32> to vector<256x64xf32>
    %213 = arith.mulf %204, %212 : vector<256x64xf32>
    %214 = vector.broadcast %183 : vector<1x64xf32> to vector<256x64xf32>
    %215 = arith.mulf %213, %214 : vector<256x64xf32>
    %216 = vector.broadcast %184 : vector<1x64xf32> to vector<256x64xf32>
    %217 = arith.addf %215, %216 : vector<256x64xf32>
    %218 = vector.extract_strided_slice %217 {offsets = [0, 0], sizes = [256, 32], strides = [1, 1]} : vector<256x64xf32> to vector<256x32xf32>
    %cst_99 = arith.constant 0.000000e+00 : f32
    %219 = vector.broadcast %cst_99 : f32 to vector<256x32xf32>
    %220 = arith.subf %219, %218 : vector<256x32xf32>
    %221 = math.exp %220 : vector<256x32xf32>
    %cst_100 = arith.constant 1.000000e+00 : f32
    %222 = vector.broadcast %cst_100 : f32 to vector<256x32xf32>
    %223 = arith.addf %222, %221 : vector<256x32xf32>
    %224 = tpu.reciprocal %223 {approx = true} : vector<256x32xf32> -> vector<256x32xf32>
    %225 = vector.extract_strided_slice %217 {offsets = [0, 32], sizes = [256, 32], strides = [1, 1]} : vector<256x64xf32> to vector<256x32xf32>
    %cst_101 = arith.constant 0.000000e+00 : f32
    %226 = vector.broadcast %cst_101 : f32 to vector<256x32xf32>
    %227 = arith.maximumf %225, %226 : vector<256x32xf32>
    %228 = math.absf %225 : vector<256x32xf32>
    %cst_102 = arith.constant 0.000000e+00 : f32
    %229 = vector.broadcast %cst_102 : f32 to vector<256x32xf32>
    %230 = arith.subf %229, %228 : vector<256x32xf32>
    %231 = math.exp %230 : vector<256x32xf32>
    %232 = math.log1p %231 : vector<256x32xf32>
    %233 = arith.addf %227, %232 : vector<256x32xf32>
    %234 = arith.mulf %224, %233 : vector<256x32xf32>
    %cst_103 = arith.constant dense<0.000000e+00> : vector<128x32xf32>
    %235 = tpu.matmul %8, %234, %cst_103 {dimension_numbers = #tpu.dot_dimension_numbers<[1], [0], [0], [1], [0, 0, 1, 1], [], []>} : vector<128x256xf32>, vector<256x32xf32>, vector<128x32xf32> -> vector<128x32xf32>
    %cst_104 = arith.constant dense<0.000000e+00> : vector<1x32xf32>
    %236 = tpu.matmul %19, %235, %cst_104 {dimension_numbers = #tpu.dot_dimension_numbers<[1], [0], [0], [1], [0, 0, 1, 1], [], []>} : vector<1x128xf32>, vector<128x32xf32>, vector<1x32xf32> -> vector<1x32xf32>
    %cst_105 = arith.constant 7.812500e-03 : f32
    %237 = vector.broadcast %cst_105 : f32 to vector<1x32xf32>
    %238 = arith.mulf %236, %237 : vector<1x32xf32>
    %239 = vector.broadcast %238 : vector<1x32xf32> to vector<128x32xf32>
    %240 = arith.subf %235, %239 : vector<128x32xf32>
    %241 = arith.mulf %240, %240 : vector<128x32xf32>
    %cst_106 = arith.constant dense<0.000000e+00> : vector<1x32xf32>
    %242 = tpu.matmul %19, %241, %cst_106 {dimension_numbers = #tpu.dot_dimension_numbers<[1], [0], [0], [1], [0, 0, 1, 1], [], []>} : vector<1x128xf32>, vector<128x32xf32>, vector<1x32xf32> -> vector<1x32xf32>
    %cst_107 = arith.constant 7.812500e-03 : f32
    %243 = vector.broadcast %cst_107 : f32 to vector<1x32xf32>
    %244 = arith.mulf %242, %243 : vector<1x32xf32>
    %cst_108 = arith.constant 9.99999974E-6 : f32
    %245 = vector.broadcast %cst_108 : f32 to vector<1x32xf32>
    %246 = arith.addf %244, %245 : vector<1x32xf32>
    %247 = math.rsqrt %246 : vector<1x32xf32>
    %248 = vector.broadcast %247 : vector<1x32xf32> to vector<128x32xf32>
    %249 = arith.mulf %240, %248 : vector<128x32xf32>
    %250 = vector.broadcast %185 : vector<1x32xf32> to vector<128x32xf32>
    %251 = arith.mulf %249, %250 : vector<128x32xf32>
    %252 = vector.broadcast %186 : vector<1x32xf32> to vector<128x32xf32>
    %253 = arith.addf %251, %252 : vector<128x32xf32>
    %254 = arith.addf %181, %253 : vector<128x32xf32>
    %cst_109 = arith.constant 0.000000e+00 : f32
    %255 = vector.broadcast %cst_109 : f32 to vector<128x32xf32>
    %256 = arith.maximumf %254, %255 : vector<128x32xf32>
    %257 = math.absf %254 : vector<128x32xf32>
    %cst_110 = arith.constant 0.000000e+00 : f32
    %258 = vector.broadcast %cst_110 : f32 to vector<128x32xf32>
    %259 = arith.subf %258, %257 : vector<128x32xf32>
    %260 = math.exp %259 : vector<128x32xf32>
    %261 = math.log1p %260 : vector<128x32xf32>
    %262 = arith.addf %256, %261 : vector<128x32xf32>
    %cst_111 = arith.constant dense<0.000000e+00> : vector<8x32xf32>
    %263 = tpu.matmul %10, %262, %cst_111 {dimension_numbers = #tpu.dot_dimension_numbers<[1], [0], [0], [1], [0, 0, 1, 1], [], []>} : vector<8x128xf32>, vector<128x32xf32>, vector<8x32xf32> -> vector<8x32xf32>
    %c0_112 = arith.constant 0 : index
    %c0_113 = arith.constant 0 : index
    %c0_114 = arith.constant 0 : index
    %264 = vector.load %arg9[%c0_112, %c0_113, %c0_114] : memref<1x8x32xf32, #tpu.memory_space<vmem>>, vector<1x8x32xf32>
    %265 = vector.shape_cast %264 : vector<1x8x32xf32> to vector<8x32xf32>
    %266 = vector.shape_cast %263 : vector<8x32xf32> to vector<1x8x32xf32>
    tpu.vector_store %arg9[%c0_112, %c0_113, %c0_114], %266 {strides = array<i32>} : memref<1x8x32xf32, #tpu.memory_space<vmem>>, vector<1x8x32xf32>,
    return
  }
  func.func @transform_0(%arg0: i32) -> (i32, i32) {
    %c0_i32 = arith.constant 0 : i32
    %c0_i32_0 = arith.constant 0 : i32
    %c0_i32_1 = arith.constant 0 : i32
    return %c0_i32, %c0_i32_0 : i32, i32
  }
  func.func @transform_1(%arg0: i32) -> (i32, i32, i32) {
    %c0_i32 = arith.constant 0 : i32
    %c0_i32_0 = arith.constant 0 : i32
    %c0_i32_1 = arith.constant 0 : i32
    %c0_i32_2 = arith.constant 0 : i32
    return %c0_i32, %c0_i32_0, %c0_i32_1 : i32, i32, i32
  }
  func.func @transform_2(%arg0: i32) -> (i32, i32, i32) {
    %c0_i32 = arith.constant 0 : i32
    %c0_i32_0 = arith.constant 0 : i32
    %c0_i32_1 = arith.constant 0 : i32
    %c0_i32_2 = arith.constant 0 : i32
    return %c0_i32, %c0_i32_0, %c0_i32_1 : i32, i32, i32
  }
  func.func @transform_3(%arg0: i32) -> (i32, i32, i32) {
    %c0_i32 = arith.constant 0 : i32
    %c0_i32_0 = arith.constant 0 : i32
    %c0_i32_1 = arith.constant 0 : i32
    return %arg0, %c0_i32, %c0_i32_0 : i32, i32, i32
  }
  func.func @transform_4(%arg0: i32) -> (i32, i32, i32) {
    %c0_i32 = arith.constant 0 : i32
    %c0_i32_0 = arith.constant 0 : i32
    %c0_i32_1 = arith.constant 0 : i32
    return %arg0, %c0_i32, %c0_i32_0 : i32, i32, i32
  }
  func.func @transform_5(%arg0: i32) -> (i32, i32, i32) {
    %c0_i32 = arith.constant 0 : i32
    %c0_i32_0 = arith.constant 0 : i32
    %c0_i32_1 = arith.constant 0 : i32
    return %arg0, %c0_i32, %c0_i32_0 : i32, i32, i32
  }
  func.func @transform_6(%arg0: i32) -> (i32, i32, i32) {
    %c0_i32 = arith.constant 0 : i32
    %c0_i32_0 = arith.constant 0 : i32
    %c0_i32_1 = arith.constant 0 : i32
    return %arg0, %c0_i32, %c0_i32_0 : i32, i32, i32
  }
  func.func @transform_7(%arg0: i32) -> (i32, i32, i32) {
    %c0_i32 = arith.constant 0 : i32
    %c0_i32_0 = arith.constant 0 : i32
    %c0_i32_1 = arith.constant 0 : i32
    return %arg0, %c0_i32, %c0_i32_0 : i32, i32, i32
  }
  func.func @transform_8(%arg0: i32) -> (i32, i32, i32) {
    %c0_i32 = arith.constant 0 : i32
    %c0_i32_0 = arith.constant 0 : i32
    %c0_i32_1 = arith.constant 0 : i32
    return %arg0, %c0_i32, %c0_i32_0 : i32, i32, i32
  }
}

</mosaic_0001>

<bundles_post_ra>
// kernel: tpu_custom_call.1
= control target key start
LH: loop header
LB: loop body
LE: loop exit
PB: predicated region body
PF: predicated region fallthrough
CT: control target
= control target key end

     0   :  { %s17941_s0 = inlined_call_operand.vmem [shape: f32[16,128], index: 0, kind: input, shape index: {}]   ;;  %s17942_s1 = inlined_call_operand.vmem [shape: f32[3,32,128], index: 1, kind: input, shape index: {}]   ;;  %s17943_s2 = inlined_call_operand.vmem [shape: f32[3,16,64], index: 2, kind: input, shape index: {}]   ;;  %s17944_s3 = inlined_call_operand.vmem [shape: f32[2,128,32], index: 3, kind: input, shape index: {}]   ;;  %s17945_s4 = inlined_call_operand.hbm [shape: f32[2,256,256], index: 4, kind: input, shape index: {}]   ;;  %s17946_s5 = inlined_call_operand.vmem [shape: f32[2,256,1], index: 5, kind: input, shape index: {}]   ;;  %s17947_s6 = inlined_call_operand.vmem [shape: f32[2,128,256], index: 6, kind: input, shape index: {}]   ;;  %s17948_s7 = inlined_call_operand.vmem [shape: f32[2,8,128], index: 7, kind: input, shape index: {}]   ;;  %s17949_s8 = inlined_call_operand.hbm [shape: f32[2,8,32], index: 8, kind: output, shape index: {}]  }
   0x1   :  { %18126 = sst [smem:[#allocation76_spill]] %s17945_s4 }
   0x2   :  { %13 = vsyncpa [#allocation3], 0 }
   0x3   :  { %15 = vsyncpa [#allocation3 + $0x1], 0 }
   0x4   :  { %16 = vsyncpa [#allocation4], 0 }
   0x5   :  { %18 = vsyncpa [#allocation4 + $0x1], 0  ;;  %s12357_s27 = smov 0   ;;  %s12359_s28 = smov 0  }
   0x6   :  { %s12361_s29 = smov 0   ;;  %s12363_s30 = smov 0  }
   0x7 LB: > { %s12378_s9 = sadd.s32 4294967295, %s12299_s30   ;;  %s8721_s10 = sadd.s32 4294967294, %s12299_s30   ;;  %s12299_s30 = sphi %s12363_s30, %s18707_s30   ;;  %s12295_s29 = sphi %s12361_s29, %s18706_s29   ;;  %s12291_s28 = sphi %s12359_s28, %s18705_s28   ;;  %s12287_s27 = sphi %s12357_s27, %s18704_s27  }
   0x8   : > { %s12382_s11 = sadd.s32 1, %s12299_s30   ;;  %s120_s12 = sadd.s32 1, %s12295_s29 }
   0x9   : > { %s117_s13 = ssub.s32 %s12299_s30, %s12382_s11  ;;  %p127_p0 = scmp.ne.s32.totalorder %s12295_s29, %s12291_s28 }
   0xa   : > { %p118_p1 = scmp.eq.s32.totalorder %s117_s13, 0  ;;  %p128_p2 = scmp.eq.s32.totalorder %s12299_s30, 0 }
   0xb   : > { %p133_p3 = scmp.ne.s32.totalorder %s12291_s28, %s12287_s27  ;;  %p134_p4 = scmp.eq.s32.totalorder %s12378_s9, 0 }
   0xc   : > { %s12394_s14 = scalar_select %p118_p1, %s12295_s29, %s120_s12  }
   0xd   : > { %p12396_p5 = por %p128_p2, %p127_p0  ;;  %p12400_p6 = por %p134_p4, %p133_p3 }
   0xe   : > { %p235_p7 = scmp.eq.s32.totalorder %s12378_s9, 1  ;;  %p241_p8 = scmp.eq.s32.totalorder %s8721_s10, 1 }
   0xf   : > { %p10793_p10 = scmp.lt.s32.totalorder %s12299_s30, 2  ;;  %s278_s19 = sand.u32 1, %s12295_s29  }
  0x10   : > { %p12407_p11 = por %p235_p7, %p127_p0  ;;  %p12411_p12 = por %p241_p8, %p133_p3 }
  0x11   : > { %s8913_s20 = sshll.u32 %s12299_s30, 13  ;;  %s8724_s21 = sshll.u32 %s278_s19, 9 }
  0x12   : > { %s18129_s17 = scalar_select %p12407_p11, 1, 0 }
  0x13   : > { %s18130_s18 = scalar_select %p12411_p12, 1, 0 }
  0x14   : > { %s18131_s4 = sld [smem:[#allocation76_spill]]  ;;  %s282_s25 = scalar_lea.vmem [#allocation2], %s8724_s21 }
  0x15   : > { %s289_s26 = sshll.u32 %s282_s25, 4  ;;  %p12424_p13 = pnand %p10793_p10, %p12396_p5  ;;  %s12428_s26 = int_to_ptr.vmem [resolvable:$true] %s289_s26 }
  0x16   : > { %s12430_s12 = scalar_lea.sflag [#allocation3], %s278_s19 }
  0x17   : > { %p12205_p1 = pneg %p12424_p13 }
  0x1a   : > { %s12420_s24 = scalar_lea.hbm %s18131_s4, %s8913_s20  ;;  %s12208_s21 = scalar_lea.hbm %s18131_s4, 16384 }
  0x1b   : > { %s12203_s13 = scalar_lea.hbm %s12420_s24, 8192  ;;  %p12209_p4 = scmp.lt.u32.totalorder %s12420_s24, %s18131_s4 }
  0x1c   : > { %p12204_p0 = scmp.ne.s32.totalorder %s12420_s24, %s12203_s13  ;;  %p12210_p5 = scmp.lt.u32.totalorder %s12208_s21, %s12203_s13 }
  0x1d   : > { %p12212_p8 = scmp.lt.u32.totalorder %s12203_s13, %s12420_s24 }
  0x1e   : > { %p12206_p2 = pnand %p12205_p1, %p12204_p0  ;;  %p12211_p7 = por %p12210_p5, %p12209_p4 }
  0x20   : > { %p12207_p3 = pneg %p12206_p2  ;;  %p12213_p10 = por %p12212_p8, %p12211_p7 }
  0x22   : > { %p12214_p9 = pnand %p12213_p10, %p12207_p3 }
  0x24   : > { %12217 = shalt.err (!%p12214_p9)
}
  0x25   : > { %s12218_s19 = scalar_lea.vmem %s12428_s26, 8192  ;;  %s12301_s25 = smov [#allocation2]  }
  0x26   : > { %p12219_p0 = scmp.ne.s32.totalorder %s12428_s26, %s12218_s19  ;;  %s12223_s20 = sshll.u32 %s12301_s25, 4  ;;  %s12224_s20 = int_to_ptr.vmem [resolvable:$false] %s12223_s20 }
  0x27   : > { %s12225_s15 = scalar_lea.vmem %s12224_s20, 16384  ;;  %p12226_p11 = scmp.lt.s32.totalorder %s12428_s26, %s12224_s20 }
  0x28   : > { %p12221_p2 = pnand %p12219_p0, %p12205_p1  ;;  %p12227_p4 = scmp.lt.s32.totalorder %s12225_s15, %s12218_s19 }
  0x2a   : > { %p12222_p12 = pneg %p12221_p2  ;;  %p12228_p5 = por %p12227_p4, %p12226_p11 }
  0x2c   : > { %p12229_p7 = pnand %p12228_p5, %p12222_p12 }
  0x2e   : > { %12232 = shalt.err (!%p12229_p7)
}
  0x2f   : > { %s12302_s13 = smov 256   ;;  %s12303_s21 = smov 16  }
  0x30   : > { %10788 = dma.hbm_to_vmem [thread:$0]  (!%p12424_p13), %s12420_s24, 8192, %s12428_s26, %s12430_s12, %s12302_s13, %s12302_s13, %s12303_s21  }
  0x31   : > { %p8727_p9 = scmp.ge.s32.totalorder %s12299_s30, 1  ;;  %p320_p1 = scmp.lt.s32.totalorder %s12299_s30, 3 }
  0x33   : > { %p321_p3 = pnand %p8727_p9, %p320_p1 }
  0x35   : > { %324 = sbr.rel (%p321_p3) target bundleno = 7290 (0x1c7a), region = 52 }
  0x3c   : > { %s12461_s22 = sand.u32 1, %s12291_s28  }
  0x3d   : > { %s8728_s23 = sshll.u32 %s12461_s22, 9  ;;  %s327_s19 = scalar_lea.sflag [#allocation3], %s12461_s22 }
  0x3e   : > { %s12465_s25 = scalar_lea.vmem [#allocation2], %s8728_s23 }
  0x3f   : > { %12278 = dma.done.wait (%p12400_p6), %s327_s19, 8192  }
  0x40   : > { %12280 = vsyncadd (%p12400_p6), %s327_s19, 4294959104  ;;  %p382_p11 = scmp.lt.s32.totalorder %s12378_s9, 1  ;;  %v12304_v0 = vmov 0   ;;  %vm880_vm0 = vcmask 261120   ;;  %v876_v1 = vld [vmem:[%s17942_s1] sm:$0xff]  ;;  %v877_v2 = vld [vmem:[%s17942_s1 + $0x8] sm:$0xff] }
  0x41   : > { %10836 = vset.pattern.permute.xlu0 %v12304_v0  ;;  %10837 = vset.pattern.permute.xlu1 %v12304_v0  ;;  %v878_v3 = vld [vmem:[%s17942_s1 + $0x10] sm:$0xff]  ;;  %v10145_v4 = vpack.c.bf16 %v877_v2, %v876_v1  ;;  %v879_v5 = vld [vmem:[%s17942_s1 + $0x18] sm:$0xff]  ;;  %v1138_v22 = vld [vmem:[%s17943_s2] sm:$0xff]  ;;  %v17951_v57 = vmov 0.0|0.0   ;;  %vm1140_vm1 = vcmask 130048   ;;  %s12306_s12 = smov 64  }
  0x42   : > { %s12473_s24 = scalar_select %p382_p11, %s12378_s9, 1  ;;  %v10149_v7 = vpack.c.bf16 %v879_v5, %v878_v3  ;;  %v1139_v23 = vld [vmem:[%s17943_s2 + $0x8] sm:$0xff]  ;;  %v12574_v58 = vld [vmem:[%s17941_s0] ss:$0 sm:$0xff] }
  0x43   : > { %10146 = vmatprep.subr.bf16.mxu0 %v10145_v4  ;;  %v10153_v26 = vpack.c.bf16 %v1139_v23, %v1138_v22  ;;  %s18022_s10 = smov 96   ;;  %s18335_s16 = smov 96  }
  0x44   : > { %s8914_s26 = sshll.u32 %s12473_s24, 7  ;;  %s8915_s4 = sshll.u32 %s12473_s24, 8  ;;  %10148 = vmatpush3.bf16.msra.mxu0 %v10145_v4 }
  0x45   : > { %s12479_s20 = scalar_lea.vmem %s17944_s3, %s8914_s26  ;;  %s12501_s15 = scalar_lea.vmem %s17946_s5, %s8915_s4  ;;  %10150 = vmatprep.subr.bf16.mxu0 %v10149_v7  ;;  %10154 = vmatprep.subr.bf16.mxu1 %v10153_v26 }
  0x46   : > { %v402_v6 = vld [vmem:[%s12479_s20] sm:$0xff]  ;;  %v484_v9 = vld [vmem:[%s12501_s15 + $0x10] sm:$0xff]  ;;  %v403_v10 = vld [vmem:[%s12479_s20 + $0x8] sm:$0xff]  ;;  %10156 = vmatpush3.bf16.msra.mxu1 %v10153_v26  ;;  %s13890_s21 = scalar_lea.vmem %s17947_s6, %s8915_s4  ;;  %s8736_s26 = sshll.u32 %s12473_s24, 3 }
  0x47   : > { %9656 = vmatprep.mubr.msk.f32.mxu0 %vm880_vm0, %v402_v6  ;;  %v482_v8 = vld [vmem:[%s12501_s15] sm:$0xff]  ;;  %v483_v11 = vld [vmem:[%s12501_s15 + $0x8] sm:$0xff]  ;;  %559 = vperm.xlu1 %10837, %v484_v9   ;;  %v404_v12 = vld [vmem:[%s12479_s20 + $0x10] sm:$0xff]  ;;  %s8910_s13 = sshll.u32 %s12378_s9, 7  ;;  %s8590_s23 = scalar_lea.sflag [#allocation4], %s12461_s22 }
  0x48   : > { %549 = vperm.xlu0 %10836, %v482_v8   ;;  %10152 = vmatpush3.bf16.msra.mxu0 %v10149_v7  ;;  %v485_v13 = vld [vmem:[%s12501_s15 + $0x18] sm:$0xff]  ;;  %v486_v15 = vld [vmem:[%s12501_s15 + $0x20] sm:$0xff]  ;;  %v487_v17 = vld [vmem:[%s12501_s15 + $0x28] sm:$0xff]  ;;  %s17896_s24 = scalar_lea.hbm %s17949_s8, %s8910_s13  ;;  %p18701_p12 = scmp.ne.s32.totalorder %s18129_s17, 0 }
  0x49   : > { %v405_v14 = vld [vmem:[%s12479_s20 + $0x18] sm:$0xff]  ;;  %v406_v16 = vld [vmem:[%s12479_s20 + $0x20] sm:$0xff]  ;;  %v407_v18 = vld [vmem:[%s12479_s20 + $0x28] sm:$0xff]  ;;  %10157 = vmatprep.subr.bf16.mxu1 %v17951_v57  ;;  %s12311_s9 = smov [#allocation5]  }
  0x4a   : > { %v488_v19 = vld [vmem:[%s12501_s15 + $0x30] sm:$0xff]  ;;  %v489_v21 = vld [vmem:[%s12501_s15 + $0x38] sm:$0xff]  ;;  %v490_v25 = vld [vmem:[%s12501_s15 + $0x40] sm:$0xff] }
  0x4b   : > { %9657 = vmatmul.mubr.msk.f32.vlgmr.msra.gmra.mrb[0].mxu0 %vm880_vm0, %v403_v10  ;;  %564 = vperm.xlu1 %10837, %v485_v13   ;;  %v408_v20 = vld [vmem:[%s12479_s20 + $0x30] sm:$0xff]  ;;  %v409_v24 = vld [vmem:[%s12479_s20 + $0x38] sm:$0xff]  ;;  %v410_v27 = vld [vmem:[%s12479_s20 + $0x40] sm:$0xff] }
  0x4c   : > { %554 = vperm.xlu0 %10836, %v483_v11   ;;  %9659 = vmatprep.mubr.msk.f32.mxu0 %vm880_vm0, %v404_v12  ;;  %v491_v28 = vld [vmem:[%s12501_s15 + $0x48] sm:$0xff]  ;;  %v492_v30 = vld [vmem:[%s12501_s15 + $0x50] sm:$0xff]  ;;  %v493_v32 = vld [vmem:[%s12501_s15 + $0x58] sm:$0xff] }
  0x4d   : > { %v411_v29 = vld [vmem:[%s12479_s20 + $0x48] sm:$0xff]  ;;  %v412_v31 = vld [vmem:[%s12479_s20 + $0x50] sm:$0xff]  ;;  %v413_v33 = vld [vmem:[%s12479_s20 + $0x58] sm:$0xff] }
  0x4e   : > { %v494_v34 = vld [vmem:[%s12501_s15 + $0x60] sm:$0xff]  ;;  %v495_v36 = vld [vmem:[%s12501_s15 + $0x68] sm:$0xff]  ;;  %v496_v38 = vld [vmem:[%s12501_s15 + $0x70] sm:$0xff] }
  0x4f   : > { %9660 = vmatmul.mubr.msk.f32.gmra.mrb[2].mxu0 %vm880_vm0, %v405_v14  ;;  %574 = vperm.xlu1 %10837, %v487_v17   ;;  %v414_v35 = vld [vmem:[%s12479_s20 + $0x60] sm:$0xff]  ;;  %v415_v37 = vld [vmem:[%s12479_s20 + $0x68] sm:$0xff]  ;;  %v416_v39 = vld [vmem:[%s12479_s20 + $0x70] sm:$0xff] }
  0x50   : > { %569 = vperm.xlu0 %10836, %v486_v15   ;;  %9662 = vmatprep.mubr.msk.f32.mxu0 %vm880_vm0, %v406_v16  ;;  %v497_v40 = vld [vmem:[%s12501_s15 + $0x78] sm:$0xff]  ;;  %v498_v42 = vld [vmem:[%s12501_s15 + $0x80] sm:$0xff]  ;;  %v499_v43 = vld [vmem:[%s12501_s15 + $0x88] sm:$0xff] }
  0x51   : > { %v417_v41 = vld [vmem:[%s12479_s20 + $0x78] sm:$0xff]  ;;  %v500_v44 = vld [vmem:[%s12501_s15 + $0x90] sm:$0xff]  ;;  %v502_v46 = vld [vmem:[%s12501_s15 + $0xa0] sm:$0xff] }
  0x52   : > { %v501_v45 = vld [vmem:[%s12501_s15 + $0x98] sm:$0xff]  ;;  %v503_v47 = vld [vmem:[%s12501_s15 + $0xa8] sm:$0xff]  ;;  %v504_v48 = vld [vmem:[%s12501_s15 + $0xb0] sm:$0xff] }
  0x53   : > { %9663 = vmatmul.mubr.msk.f32.gmra.mrb[4].mxu0 %vm880_vm0, %v407_v18  ;;  %584 = vperm.xlu1 %10837, %v489_v21   ;;  %v505_v49 = vld [vmem:[%s12501_s15 + $0xb8] sm:$0xff]  ;;  %v506_v50 = vld [vmem:[%s12501_s15 + $0xc0] sm:$0xff]  ;;  %v507_v51 = vld [vmem:[%s12501_s15 + $0xc8] sm:$0xff] }
  0x54   : > { %579 = vperm.xlu0 %10836, %v488_v19   ;;  %9665 = vmatprep.mubr.msk.f32.mxu0 %vm880_vm0, %v408_v20  ;;  %v508_v52 = vld [vmem:[%s12501_s15 + $0xd0] sm:$0xff]  ;;  %v509_v53 = vld [vmem:[%s12501_s15 + $0xd8] sm:$0xff]  ;;  %v510_v54 = vld [vmem:[%s12501_s15 + $0xe0] sm:$0xff] }
  0x55   : > { %v511_v55 = vld [vmem:[%s12501_s15 + $0xe8] sm:$0xff]  ;;  %v512_v56 = vld [vmem:[%s12501_s15 + $0xf0] sm:$0xff] }
  0x57   : > { %9666 = vmatmul.mubr.msk.f32.gmra.mrb[6].mxu0 %vm880_vm0, %v409_v24  ;;  %594 = vperm.xlu1 %10837, %v491_v28  }
  0x58   : > { %589 = vperm.xlu0 %10836, %v490_v25   ;;  %9668 = vmatprep.mubr.msk.f32.mxu0 %vm880_vm0, %v410_v27 }
  0x5b   : > { %9669 = vmatmul.mubr.msk.f32.gmra.mrb[8].mxu0 %vm880_vm0, %v411_v29  ;;  %604 = vperm.xlu1 %10837, %v493_v32  }
  0x5c   : > { %599 = vperm.xlu0 %10836, %v492_v30   ;;  %9671 = vmatprep.mubr.msk.f32.mxu0 %vm880_vm0, %v412_v31 }
  0x5f   : > { %9672 = vmatmul.mubr.msk.f32.gmra.mrb[10].mxu0 %vm880_vm0, %v413_v33  ;;  %614 = vperm.xlu1 %10837, %v495_v36  }
  0x60   : > { %609 = vperm.xlu0 %10836, %v494_v34   ;;  %9674 = vmatprep.mubr.msk.f32.mxu0 %vm880_vm0, %v414_v35 }
  0x63   : > { %9675 = vmatmul.mubr.msk.f32.gmra.mrb[12].mxu0 %vm880_vm0, %v415_v37  ;;  %624 = vperm.xlu1 %10837, %v497_v40  }
  0x64   : > { %619 = vperm.xlu0 %10836, %v496_v38   ;;  %9677 = vmatprep.mubr.msk.f32.mxu0 %vm880_vm0, %v416_v39 }
  0x67   : > { %9678 = vmatmul.mubr.msk.f32.gmra.mrb[14].mxu0 %vm880_vm0, %v417_v41  ;;  %634 = vperm.xlu1 %10837, %v499_v43  }
  0x68   : > { %629 = vperm.xlu0 %10836, %v498_v42  }
  0x6b   : > { %644 = vperm.xlu1 %10837, %v501_v45  }
  0x6c   : > { %639 = vperm.xlu0 %10836, %v500_v44  }
  0x6f   : > { %654 = vperm.xlu1 %10837, %v503_v47  }
  0x70   : > { %649 = vperm.xlu0 %10836, %v502_v46  }
  0x73   : > { %664 = vperm.xlu1 %10837, %v505_v49  }
  0x74   : > { %659 = vperm.xlu0 %10836, %v504_v48  }
  0x77   : > { %674 = vperm.xlu1 %10837, %v507_v51  }
  0x78   : > { %669 = vperm.xlu0 %10836, %v506_v50  }
  0x7b   : > { %684 = vperm.xlu1 %10837, %v509_v53  }
  0x7c   : > { %679 = vperm.xlu0 %10836, %v508_v52  }
  0x7f   : > { %694 = vperm.xlu1 %10837, %v511_v55  }
  0x80   : > { %689 = vperm.xlu0 %10836, %v510_v54  }
  0x83   : > { %699 = vperm.xlu1 %10837, %v512_v56  }
  0xc6   : > { %v560_v61 = vpop.permute.xlu1 %559 }
  0xc7   : > { %v550_v59 = vpop.permute.xlu0 %549  ;;  %v713_v62 = vsub.f32 %v560_v61, %v12574_v58 }
  0xc8   : > { %v711_v60 = vsub.f32 %v550_v59, %v12574_v58 }
  0xc9   : > { %v745_v1 = vmul.f32 %v713_v62, %v713_v62 }
  0xca   : > { %v743_v63 = vmul.f32 %v711_v60, %v711_v60  ;;  %v565_v4 = vpop.permute.xlu1 %564 }
  0xcb   : > { %v555_v0 = vpop.permute.xlu0 %554  ;;  %v777_v5 = vmul.f32 -1.875, %v745_v1  ;;  %v714_v6 = vsub.f32 %v565_v4, %v12574_v58 }
  0xcc   : > { %v775_v2 = vmul.f32 -1.875, %v743_v63  ;;  %v712_v3 = vsub.f32 %v555_v0, %v12574_v58 }
  0xcd   : > { %v811_v9 = vmul.f32 1.442695, %v777_v5  ;;  %v746_v10 = vmul.f32 %v714_v6, %v714_v6 }
  0xce   : > { %v807_v7 = vmul.f32 1.442695, %v775_v2  ;;  %v744_v8 = vmul.f32 %v712_v3, %v712_v3  ;;  %v575_v13 = vpop.permute.xlu1 %574 }
  0xcf   : > { %v570_v11 = vpop.permute.xlu0 %569  ;;  %v778_v15 = vmul.f32 -1.875, %v746_v10  ;;  %v716_v16 = vsub.f32 %v575_v13, %v12574_v58 }
  0xd0   : > { %10958 = vpow2.f32 %v807_v7  ;;  %v776_v12 = vmul.f32 -1.875, %v744_v8  ;;  %v715_v14 = vsub.f32 %v570_v11, %v12574_v58 }
  0xd1   : > { %10960 = vpow2.f32 %v811_v9  ;;  %v813_v19 = vmul.f32 1.442695, %v778_v15  ;;  %v748_v20 = vmul.f32 %v716_v16, %v716_v16 }
  0xd2   : > { %v809_v17 = vmul.f32 1.442695, %v776_v12  ;;  %v747_v18 = vmul.f32 %v715_v14, %v715_v14  ;;  %v585_v23 = vpop.permute.xlu1 %584 }
  0xd3   : > { %v580_v21 = vpop.permute.xlu0 %579  ;;  %v780_v25 = vmul.f32 -1.875, %v748_v20  ;;  %v718_v26 = vsub.f32 %v585_v23, %v12574_v58 }
  0xd4   : > { %10962 = vpow2.f32 %v809_v17  ;;  %v779_v22 = vmul.f32 -1.875, %v747_v18  ;;  %v717_v24 = vsub.f32 %v580_v21, %v12574_v58 }
  0xd5   : > { %10964 = vpow2.f32 %v813_v19  ;;  %v817_v29 = vmul.f32 1.442695, %v780_v25  ;;  %v750_v30 = vmul.f32 %v718_v26, %v718_v26 }
  0xd6   : > { %v815_v27 = vmul.f32 1.442695, %v779_v22  ;;  %v749_v28 = vmul.f32 %v717_v24, %v717_v24  ;;  %v595_v33 = vpop.permute.xlu1 %594 }
  0xd7   : > { %v590_v31 = vpop.permute.xlu0 %589  ;;  %v782_v35 = vmul.f32 -1.875, %v750_v30  ;;  %v720_v36 = vsub.f32 %v595_v33, %v12574_v58 }
  0xd8   : > { %10966 = vpow2.f32 %v815_v27  ;;  %v781_v32 = vmul.f32 -1.875, %v749_v28  ;;  %v719_v34 = vsub.f32 %v590_v31, %v12574_v58 }
  0xd9   : > { %10968 = vpow2.f32 %v817_v29  ;;  %v821_v40 = vmul.f32 1.442695, %v782_v35  ;;  %v752_v41 = vmul.f32 %v720_v36, %v720_v36 }
  0xda   : > { %v12586_v37 = vpop.eup %10958  ;;  %v819_v38 = vmul.f32 1.442695, %v781_v32  ;;  %v751_v39 = vmul.f32 %v719_v34, %v719_v34  ;;  %v605_v44 = vpop.permute.xlu1 %604 }
  0xdb   : > { %18133 = vst [vmem:[#allocation8_spill] sm:$0xff] %v12586_v37  ;;  %9684 = vmatprep.mubr.msk.f32.mxu1 %vm1140_vm1, %v12586_v37  ;;  %v600_v42 = vpop.permute.xlu0 %599  ;;  %v12591_v46 = vpop.eup %10960  ;;  %v784_v47 = vmul.f32 -1.875, %v752_v41  ;;  %v722_v48 = vsub.f32 %v605_v44, %v12574_v58 }
  0xdc   : > { %10970 = vpow2.f32 %v819_v38  ;;  %v783_v43 = vmul.f32 -1.875, %v751_v39  ;;  %v721_v45 = vsub.f32 %v600_v42, %v12574_v58  ;;  %18134 = vst [vmem:[#allocation9_spill] sm:$0xff] %v12591_v46 }
  0xdd   : > { %10972 = vpow2.f32 %v821_v40  ;;  %v825_v52 = vmul.f32 1.442695, %v784_v47  ;;  %v754_v53 = vmul.f32 %v722_v48, %v722_v48 }
  0xde   : > { %v12594_v49 = vpop.eup %10962  ;;  %v823_v50 = vmul.f32 1.442695, %v783_v43  ;;  %v753_v51 = vmul.f32 %v721_v45, %v721_v45  ;;  %v615_v59 = vpop.permute.xlu1 %614 }
  0xdf   : > { %18135 = vst [vmem:[#allocation10_spill] sm:$0xff] %v12594_v49  ;;  %9685 = vmatmul.mubr.msk.f32.vlgmr.msra.gmra.mrb[0].mxu1 %vm1140_vm1, %v12594_v49  ;;  %v610_v54 = vpop.permute.xlu0 %609  ;;  %v12598_v55 = vpop.eup %10964  ;;  %v786_v61 = vmul.f32 -1.875, %v754_v53  ;;  %v724_v62 = vsub.f32 %v615_v59, %v12574_v58 }
  0xe0   : > { %18136 = vst [vmem:[#allocation11_spill] sm:$0xff] %v12598_v55  ;;  %10974 = vpow2.f32 %v823_v50  ;;  %v785_v56 = vmul.f32 -1.875, %v753_v51  ;;  %v723_v60 = vsub.f32 %v610_v54, %v12574_v58  ;;  %9687 = vmatprep.mubr.msk.f32.mxu1 %vm1140_vm1, %v12591_v46 }
  0xe1   : > { %10976 = vpow2.f32 %v825_v52  ;;  %v829_v2 = vmul.f32 1.442695, %v786_v61  ;;  %v756_v3 = vmul.f32 %v724_v62, %v724_v62 }
  0xe2   : > { %v12604_v63 = vpop.eup %10966  ;;  %v827_v0 = vmul.f32 1.442695, %v785_v56  ;;  %v755_v1 = vmul.f32 %v723_v60, %v723_v60  ;;  %v625_v7 = vpop.permute.xlu1 %624 }
  0xe3   : > { %18137 = vst [vmem:[#allocation12_spill] sm:$0xff] %v12604_v63  ;;  %9688 = vmatmul.mubr.msk.f32.gmra.mrb[2].mxu1 %vm1140_vm1, %v12598_v55  ;;  %v620_v4 = vpop.permute.xlu0 %619  ;;  %v12608_v5 = vpop.eup %10968  ;;  %v788_v9 = vmul.f32 -1.875, %v756_v3  ;;  %v726_v10 = vsub.f32 %v625_v7, %v12574_v58 }
  0xe4   : > { %18138 = vst [vmem:[#allocation13_spill] sm:$0xff] %v12608_v5  ;;  %10978 = vpow2.f32 %v827_v0  ;;  %v787_v6 = vmul.f32 -1.875, %v755_v1  ;;  %v725_v8 = vsub.f32 %v620_v4, %v12574_v58  ;;  %9690 = vmatprep.mubr.msk.f32.mxu1 %vm1140_vm1, %v12604_v63 }
  0xe5   : > { %10980 = vpow2.f32 %v829_v2  ;;  %v833_v14 = vmul.f32 1.442695, %v788_v9  ;;  %v758_v15 = vmul.f32 %v726_v10, %v726_v10 }
  0xe6   : > { %v12614_v11 = vpop.eup %10970  ;;  %v831_v12 = vmul.f32 1.442695, %v787_v6  ;;  %v757_v13 = vmul.f32 %v725_v8, %v725_v8  ;;  %v635_v19 = vpop.permute.xlu1 %634 }
  0xe7   : > { %18139 = vst [vmem:[#allocation14_spill] sm:$0xff] %v12614_v11  ;;  %9691 = vmatmul.mubr.msk.f32.gmra.mrb[4].mxu1 %vm1140_vm1, %v12608_v5  ;;  %v630_v16 = vpop.permute.xlu0 %629  ;;  %v12618_v17 = vpop.eup %10972  ;;  %v790_v21 = vmul.f32 -1.875, %v758_v15  ;;  %v728_v22 = vsub.f32 %v635_v19, %v12574_v58 }
  0xe8   : > { %18140 = vst [vmem:[#allocation15_spill] sm:$0xff] %v12618_v17  ;;  %10982 = vpow2.f32 %v831_v12  ;;  %v789_v18 = vmul.f32 -1.875, %v757_v13  ;;  %v727_v20 = vsub.f32 %v630_v16, %v12574_v58  ;;  %9693 = vmatprep.mubr.msk.f32.mxu1 %vm1140_vm1, %v12614_v11 }
  0xe9   : > { %10984 = vpow2.f32 %v833_v14  ;;  %v837_v26 = vmul.f32 1.442695, %v790_v21  ;;  %v760_v27 = vmul.f32 %v728_v22, %v728_v22 }
  0xea   : > { %v12624_v23 = vpop.eup %10974  ;;  %v835_v24 = vmul.f32 1.442695, %v789_v18  ;;  %v759_v25 = vmul.f32 %v727_v20, %v727_v20  ;;  %v645_v31 = vpop.permute.xlu1 %644 }
  0xeb   : > { %18141 = vst [vmem:[#allocation16_spill] sm:$0xff] %v12624_v23  ;;  %9694 = vmatmul.mubr.msk.f32.gmra.mrb[6].mxu1 %vm1140_vm1, %v12618_v17  ;;  %v640_v28 = vpop.permute.xlu0 %639  ;;  %v12628_v29 = vpop.eup %10976  ;;  %v792_v33 = vmul.f32 -1.875, %v760_v27  ;;  %v730_v34 = vsub.f32 %v645_v31, %v12574_v58 }
  0xec   : > { %18142 = vst [vmem:[#allocation17_spill] sm:$0xff] %v12628_v29  ;;  %10986 = vpow2.f32 %v835_v24  ;;  %v791_v30 = vmul.f32 -1.875, %v759_v25  ;;  %v729_v32 = vsub.f32 %v640_v28, %v12574_v58  ;;  %9696 = vmatprep.mubr.msk.f32.mxu1 %vm1140_vm1, %v12624_v23 }
  0xed   : > { %10988 = vpow2.f32 %v837_v26  ;;  %v841_v39 = vmul.f32 1.442695, %v792_v33  ;;  %v762_v40 = vmul.f32 %v730_v34, %v730_v34 }
  0xee   : > { %v12634_v35 = vpop.eup %10978  ;;  %v839_v36 = vmul.f32 1.442695, %v791_v30  ;;  %v761_v38 = vmul.f32 %v729_v32, %v729_v32  ;;  %v655_v44 = vpop.permute.xlu1 %654 }
  0xef   : > { %18143 = vst [vmem:[#allocation18_spill] sm:$0xff] %v12634_v35  ;;  %9697 = vmatmul.mubr.msk.f32.gmra.mrb[8].mxu1 %vm1140_vm1, %v12628_v29  ;;  %v650_v41 = vpop.permute.xlu0 %649  ;;  %v12638_v42 = vpop.eup %10980  ;;  %v794_v47 = vmul.f32 -1.875, %v762_v40  ;;  %v732_v48 = vsub.f32 %v655_v44, %v12574_v58 }
  0xf0   : > { %18144 = vst [vmem:[#allocation19_spill] sm:$0xff] %v12638_v42  ;;  %10990 = vpow2.f32 %v839_v36  ;;  %v793_v43 = vmul.f32 -1.875, %v761_v38  ;;  %v731_v45 = vsub.f32 %v650_v41, %v12574_v58  ;;  %9699 = vmatprep.mubr.msk.f32.mxu1 %vm1140_vm1, %v12634_v35 }
  0xf1   : > { %10992 = vpow2.f32 %v841_v39  ;;  %v845_v53 = vmul.f32 1.442695, %v794_v47  ;;  %v764_v54 = vmul.f32 %v732_v48, %v732_v48 }
  0xf2   : > { %v12644_v50 = vpop.eup %10982  ;;  %v843_v51 = vmul.f32 1.442695, %v793_v43  ;;  %v763_v52 = vmul.f32 %v731_v45, %v731_v45  ;;  %v665_v61 = vpop.permute.xlu1 %664 }
  0xf3   : > { %18145 = vst [vmem:[#allocation20_spill] sm:$0xff] %v12644_v50  ;;  %9700 = vmatmul.mubr.msk.f32.gmra.mrb[10].mxu1 %vm1140_vm1, %v12638_v42  ;;  %v660_v56 = vpop.permute.xlu0 %659  ;;  %v12648_v59 = vpop.eup %10984  ;;  %v796_v0 = vmul.f32 -1.875, %v764_v54  ;;  %v734_v1 = vsub.f32 %v665_v61, %v12574_v58 }
  0xf4   : > { %18146 = vst [vmem:[#allocation21_spill] sm:$0xff] %v12648_v59  ;;  %10994 = vpow2.f32 %v843_v51  ;;  %v795_v60 = vmul.f32 -1.875, %v763_v52  ;;  %v733_v62 = vsub.f32 %v660_v56, %v12574_v58  ;;  %9702 = vmatprep.mubr.msk.f32.mxu1 %vm1140_vm1, %v12644_v50 }
  0xf5   : > { %10996 = vpow2.f32 %v845_v53  ;;  %v849_v6 = vmul.f32 1.442695, %v796_v0  ;;  %v766_v7 = vmul.f32 %v734_v1, %v734_v1 }
  0xf6   : > { %v12654_v2 = vpop.eup %10986  ;;  %v847_v3 = vmul.f32 1.442695, %v795_v60  ;;  %v765_v4 = vmul.f32 %v733_v62, %v733_v62  ;;  %v675_v12 = vpop.permute.xlu1 %674 }
  0xf7   : > { %18147 = vst [vmem:[#allocation22_spill] sm:$0xff] %v12654_v2  ;;  %9703 = vmatmul.mubr.msk.f32.gmra.mrb[12].mxu1 %vm1140_vm1, %v12648_v59  ;;  %v670_v8 = vpop.permute.xlu0 %669  ;;  %v12658_v9 = vpop.eup %10988  ;;  %v798_v14 = vmul.f32 -1.875, %v766_v7  ;;  %v736_v15 = vsub.f32 %v675_v12, %v12574_v58 }
  0xf8   : > { %18148 = vst [vmem:[#allocation23_spill] sm:$0xff] %v12658_v9  ;;  %10998 = vpow2.f32 %v847_v3  ;;  %v797_v10 = vmul.f32 -1.875, %v765_v4  ;;  %v735_v13 = vsub.f32 %v670_v8, %v12574_v58  ;;  %9705 = vmatprep.mubr.msk.f32.mxu1 %vm1140_vm1, %v12654_v2 }
  0xf9   : > { %11000 = vpow2.f32 %v849_v6  ;;  %v853_v20 = vmul.f32 1.442695, %v798_v14  ;;  %v768_v21 = vmul.f32 %v736_v15, %v736_v15 }
  0xfa   : > { %v12664_v16 = vpop.eup %10990  ;;  %v851_v18 = vmul.f32 1.442695, %v797_v10  ;;  %v767_v19 = vmul.f32 %v735_v13, %v735_v13  ;;  %v685_v26 = vpop.permute.xlu1 %684 }
  0xfb   : > { %18149 = vst [vmem:[#allocation24_spill] sm:$0xff] %v12664_v16  ;;  %9706 = vmatmul.mubr.msk.f32.gmra.mrb[14].mxu1 %vm1140_vm1, %v12658_v9  ;;  %v680_v22 = vpop.permute.xlu0 %679  ;;  %v12668_v24 = vpop.eup %10992  ;;  %v800_v28 = vmul.f32 -1.875, %v768_v21  ;;  %v738_v30 = vsub.f32 %v685_v26, %v12574_v58 }
  0xfc   : > { %18150 = vst [vmem:[#allocation25_spill] sm:$0xff] %v12668_v24  ;;  %11002 = vpow2.f32 %v851_v18  ;;  %v799_v25 = vmul.f32 -1.875, %v767_v19  ;;  %v737_v27 = vsub.f32 %v680_v22, %v12574_v58  ;;  %9708 = vmatprep.mubr.msk.f32.mxu1 %vm1140_vm1, %v12664_v16 }
  0xfd   : > { %11004 = vpow2.f32 %v853_v20  ;;  %v857_v34 = vmul.f32 1.442695, %v800_v28  ;;  %v770_v36 = vmul.f32 %v738_v30, %v738_v30 }
  0xfe   : > { %v12674_v31 = vpop.eup %10994  ;;  %v855_v32 = vmul.f32 1.442695, %v799_v25  ;;  %v769_v33 = vmul.f32 %v737_v27, %v737_v27  ;;  %v695_v41 = vpop.permute.xlu1 %694  ;;  %v513_v27 = vld [vmem:[%s12501_s15 + $0xf8] sm:$0xff]  ;;  %s8729_s15 = sshll.u32 %s12461_s22, 3 }
  0xff   : > { %18151 = vst [vmem:[#allocation26_spill] sm:$0xff] %v12674_v31  ;;  %9709 = vmatmul.mubr.msk.f32.gmra.mrb[16].mxu1 %vm1140_vm1, %v12668_v24  ;;  %v690_v38 = vpop.permute.xlu0 %689  ;;  %v12678_v39 = vpop.eup %10996  ;;  %v802_v44 = vmul.f32 -1.875, %v770_v36  ;;  %v740_v45 = vsub.f32 %v695_v41, %v12574_v58 }
 0x100   : > { %18152 = vst [vmem:[#allocation27_spill] sm:$0xff] %v12678_v39  ;;  %11006 = vpow2.f32 %v855_v32  ;;  %v801_v40 = vmul.f32 -1.875, %v769_v33  ;;  %v739_v43 = vsub.f32 %v690_v38, %v12574_v58  ;;  %9711 = vmatprep.mubr.msk.f32.mxu1 %vm1140_vm1, %v12674_v31 }
 0x101   : > { %11008 = vpow2.f32 %v857_v34  ;;  %v861_v52 = vmul.f32 1.442695, %v802_v44  ;;  %v772_v53 = vmul.f32 %v740_v45, %v740_v45 }
 0x102   : > { %v12684_v47 = vpop.eup %10998  ;;  %v859_v48 = vmul.f32 1.442695, %v801_v40  ;;  %v771_v51 = vmul.f32 %v739_v43, %v739_v43  ;;  %v700_v60 = vpop.permute.xlu1 %699 }
 0x103   : > { %18153 = vst [vmem:[#allocation28_spill] sm:$0xff] %v12684_v47  ;;  %9712 = vmatmul.mubr.msk.f32.gmra.mrb[18].mxu1 %vm1140_vm1, %v12678_v39  ;;  %v12688_v54 = vpop.eup %11000  ;;  %v804_v61 = vmul.f32 -1.875, %v772_v53  ;;  %v741_v62 = vsub.f32 %v700_v60, %v12574_v58 }
 0x104   : > { %18154 = vst [vmem:[#allocation29_spill] sm:$0xff] %v12688_v54  ;;  %11010 = vpow2.f32 %v859_v48  ;;  %v803_v56 = vmul.f32 -1.875, %v771_v51  ;;  %9714 = vmatprep.mubr.msk.f32.mxu1 %vm1140_vm1, %v12684_v47 }
 0x105   : > { %11012 = vpow2.f32 %v861_v52  ;;  %v865_v3 = vmul.f32 1.442695, %v804_v61  ;;  %v773_v4 = vmul.f32 %v741_v62, %v741_v62 }
 0x106   : > { %v12693_v0 = vpop.eup %11002  ;;  %v863_v1 = vmul.f32 1.442695, %v803_v56 }
 0x107   : > { %18155 = vst [vmem:[#allocation30_spill] sm:$0xff] %v12693_v0  ;;  %9715 = vmatmul.mubr.msk.f32.gmra.mrb[20].mxu1 %vm1140_vm1, %v12688_v54  ;;  %v12697_v6 = vpop.eup %11004  ;;  %v805_v7 = vmul.f32 -1.875, %v773_v4 }
 0x108   : > { %18156 = vst [vmem:[#allocation31_spill] sm:$0xff] %v12697_v6  ;;  %11014 = vpow2.f32 %v863_v1  ;;  %9717 = vmatprep.mubr.msk.f32.mxu1 %vm1140_vm1, %v12693_v0 }
 0x109   : > { %11016 = vpow2.f32 %v865_v3  ;;  %v867_v10 = vmul.f32 1.442695, %v805_v7 }
 0x10a   : > { %v12701_v8 = vpop.eup %11006 }
 0x10b   : > { %18157 = vst [vmem:[#allocation32_spill] sm:$0xff] %v12701_v8  ;;  %9718 = vmatmul.mubr.msk.f32.gmra.mrb[22].mxu1 %vm1140_vm1, %v12697_v6  ;;  %v12705_v12 = vpop.eup %11008  ;;  %11018 = vpow2.f32 %v867_v10  ;;  %v480_v6 = vld [vmem:[%s12465_s25 + $0x1f0] sm:$0xff] }
 0x10c   : > { %18158 = vst [vmem:[#allocation33_spill] sm:$0xff] %v12705_v12  ;;  %9720 = vmatprep.mubr.msk.f32.mxu1 %vm1140_vm1, %v12701_v8  ;;  %v479_v8 = vld [vmem:[%s12465_s25 + $0x1e8] sm:$0xff] }
 0x10e   : > { %v12709_v13 = vpop.eup %11010 }
 0x10f   : > { %18159 = vst [vmem:[#allocation34_spill] sm:$0xff] %v12709_v13  ;;  %9721 = vmatmul.mubr.msk.f32.gmra.mrb[24].mxu1 %vm1140_vm1, %v12705_v12  ;;  %v12713_v14 = vpop.eup %11012  ;;  %v474_v12 = vld [vmem:[%s12465_s25 + $0x1c0] sm:$0xff] }
 0x110   : > { %18160 = vst [vmem:[#allocation35_spill] sm:$0xff] %v12713_v14  ;;  %9723 = vmatprep.mubr.msk.f32.mxu1 %vm1140_vm1, %v12709_v13  ;;  %v447_v13 = vld [vmem:[%s12465_s25 + $0xe8] sm:$0xff] }
 0x112   : > { %v12717_v15 = vpop.eup %11014 }
 0x113   : > { %18161 = vst [vmem:[#allocation36_spill] sm:$0xff] %v12717_v15  ;;  %9724 = vmatmul.mubr.msk.f32.gmra.mrb[26].mxu1 %vm1140_vm1, %v12713_v14  ;;  %v12721_v18 = vpop.eup %11016  ;;  %v445_v14 = vld [vmem:[%s12465_s25 + $0xd8] sm:$0xff] }
 0x114   : > { %18162 = vst [vmem:[#allocation37_spill] sm:$0xff] %v12721_v18  ;;  %9726 = vmatprep.mubr.msk.f32.mxu1 %vm1140_vm1, %v12717_v15  ;;  %v443_v15 = vld [vmem:[%s12465_s25 + $0xc8] sm:$0xff] }
 0x115   : > { %v12725_v19 = vpop.eup %11018 }
 0x116   : > { %18163 = vst [vmem:[#allocation38_spill] sm:$0xff] %v12725_v19 }
 0x117   : > { %9727 = vmatmul.mubr.msk.f32.gmra.mrb[28].mxu1 %vm1140_vm1, %v12721_v18 }
 0x118   : > { %9729 = vmatprep.mubr.msk.f32.mxu1 %vm1140_vm1, %v12725_v19 }
 0x11e   : > { %v9658_v20 = vpop.f32.mrb[0].mxu0 }
 0x11f   : > { %v995_v21 = vpop.f32.mrb[1].mxu0 }
 0x120   : > { %v10838_v22 = vpack.i.bf16 %v9658_v20, %v995_v21  ;;  %v10158_v25 = vpack.c.bf16 %v9658_v20, %v995_v21 }
 0x122   : > { %10839 = vrot.lane.b32.xlu0 %v10838_v22, %s12306_s12  ;;  %10159 = vmatpush1.bf16.msra.mxu1 %v10158_v25  ;;  %v9661_v26 = vpop.f32.mrb[2].mxu0 }
 0x123   : > { %v1005_v28 = vpop.f32.mrb[3].mxu0  ;;  %10160 = vmatprep.subr.bf16.mxu1 %v17951_v57 }
 0x124   : > { %v10843_v30 = vpack.i.bf16 %v9661_v26, %v1005_v28  ;;  %v10161_v32 = vpack.c.bf16 %v9661_v26, %v1005_v28 }
 0x126   : > { %704 = vperm.xlu0 %10836, %v513_v27   ;;  %10844 = vrot.lane.b32.xlu1 %v10843_v30, %s12306_s12  ;;  %v9664_v33 = vpop.f32.mrb[4].mxu0 }
 0x127   : > { %10162 = vmatpush1.bf16.msra.mxu1 %v10161_v32  ;;  %v1015_v34 = vpop.f32.mrb[5].mxu0 }
 0x128   : > { %v10848_v36 = vpack.i.bf16 %v9664_v33, %v1015_v34  ;;  %v10164_v38 = vpack.c.bf16 %v9664_v33, %v1015_v34  ;;  %10163 = vmatprep.subr.bf16.mxu1 %v17951_v57 }
 0x12a   : > { %10849 = vrot.lane.b32.xlu0 %v10848_v36, %s12306_s12  ;;  %v9667_v40 = vpop.f32.mrb[6].mxu0 }
 0x12b   : > { %10165 = vmatpush1.bf16.msra.mxu1 %v10164_v38  ;;  %v1025_v41 = vpop.f32.mrb[7].mxu0 }
 0x12c   : > { %v10853_v43 = vpack.i.bf16 %v9667_v40, %v1025_v41  ;;  %v10167_v44 = vpack.c.bf16 %v9667_v40, %v1025_v41  ;;  %10166 = vmatprep.subr.bf16.mxu1 %v17951_v57 }
 0x12e   : > { %10854 = vrot.lane.b32.xlu1 %v10853_v43, %s12306_s12  ;;  %v9670_v45 = vpop.f32.mrb[8].mxu0 }
 0x12f   : > { %10168 = vmatpush1.bf16.msra.mxu1 %v10167_v44  ;;  %v1035_v48 = vpop.f32.mrb[9].mxu0 }
 0x130   : > { %v10858_v51 = vpack.i.bf16 %v9670_v45, %v1035_v48  ;;  %v10170_v52 = vpack.c.bf16 %v9670_v45, %v1035_v48  ;;  %10169 = vmatprep.subr.bf16.mxu1 %v17951_v57 }
 0x132   : > { %10859 = vrot.lane.b32.xlu0 %v10858_v51, %s12306_s12  ;;  %v9673_v53 = vpop.f32.mrb[10].mxu0 }
 0x133   : > { %10171 = vmatpush1.bf16.msra.mxu1 %v10170_v52  ;;  %v1045_v56 = vpop.f32.mrb[11].mxu0 }
 0x134   : > { %v10863_v60 = vpack.i.bf16 %v9673_v53, %v1045_v56  ;;  %v10173_v61 = vpack.c.bf16 %v9673_v53, %v1045_v56  ;;  %10172 = vmatprep.subr.bf16.mxu1 %v17951_v57 }
 0x136   : > { %10864 = vrot.lane.b32.xlu1 %v10863_v60, %s12306_s12  ;;  %v9676_v62 = vpop.f32.mrb[12].mxu0 }
 0x137   : > { %10174 = vmatpush1.bf16.msra.mxu1 %v10173_v61  ;;  %v1055_v1 = vpop.f32.mrb[13].mxu0 }
 0x138   : > { %v10868_v3 = vpack.i.bf16 %v9676_v62, %v1055_v1  ;;  %v10176_v4 = vpack.c.bf16 %v9676_v62, %v1055_v1  ;;  %10175 = vmatprep.subr.bf16.mxu1 %v17951_v57 }
 0x13a   : > { %10869 = vrot.lane.b32.xlu0 %v10868_v3, %s12306_s12  ;;  %v9679_v7 = vpop.f32.mrb[14].mxu0 }
 0x13b   : > { %10177 = vmatpush1.bf16.msra.mxu1 %v10176_v4  ;;  %v1065_v10 = vpop.f32.mrb[15].mxu0 }
 0x13c   : > { %v10873_v20 = vpack.i.bf16 %v9679_v7, %v1065_v10  ;;  %v10179_v21 = vpack.c.bf16 %v9679_v7, %v1065_v10  ;;  %10178 = vmatprep.subr.bf16.mxu1 %v17951_v57 }
 0x13e   : > { %10874 = vrot.lane.b32.xlu1 %v10873_v20, %s12306_s12 }
 0x13f   : > { %10180 = vmatpush1.bf16.msra.mxu1 %v10179_v21 }
 0x140   : > { %10181 = vmatprep.subr.bf16.mxu1 %v17951_v57 }
 0x194   : > { %v10840_v22 = vpop.permute.xlu0 %10839 }
 0x195   : > { %v10842_v25 = vunpack.i.h.bf16 %v10840_v22  ;;  %v10841_v26 = vunpack.i.l.bf16 %v10840_v22 }
 0x197   : > { %v10182_v27 = vpack.c.bf16 %v10842_v25, %v10841_v26 }
 0x198   : > { %v10845_v28 = vpop.permute.xlu1 %10844 }
 0x199   : > { %10183 = vmatpush1.bf16.msra.mxu1 %v10182_v27  ;;  %v10847_v30 = vunpack.i.h.bf16 %v10845_v28  ;;  %v10846_v32 = vunpack.i.l.bf16 %v10845_v28 }
 0x19a   : > { %10184 = vmatprep.subr.bf16.mxu1 %v17951_v57 }
 0x19b   : > { %v10185_v33 = vpack.c.bf16 %v10847_v30, %v10846_v32  ;;  %v419_v30 = vld [vmem:[%s12465_s25 + $0x8] sm:$0xff] }
 0x19d   : > { %10186 = vmatpush1.bf16.msra.mxu1 %v10185_v33 }
 0x19e   : > { %10187 = vmatprep.subr.bf16.mxu1 %v17951_v57 }
 0x1a0   : > { %v10855_v38 = vpop.permute.xlu1 %10854 }
 0x1a1   : > { %v10857_v43 = vunpack.i.h.bf16 %v10855_v38  ;;  %v10856_v51 = vunpack.i.l.bf16 %v10855_v38 }
 0x1a3   : > { %v10191_v60 = vpack.c.bf16 %v10857_v43, %v10856_v51 }
 0x1a5   : > { %v705_v34 = vpop.permute.xlu0 %704 }
 0x1a6   : > { %v742_v36 = vsub.f32 %v705_v34, %v12574_v58 }
 0x1a8   : > { %v774_v40 = vmul.f32 %v742_v36, %v742_v36  ;;  %v10865_v1 = vpop.permute.xlu1 %10864 }
 0x1a9   : > { %v10850_v41 = vpop.permute.xlu0 %10849  ;;  %v10867_v4 = vunpack.i.h.bf16 %v10865_v1  ;;  %v10866_v7 = vunpack.i.l.bf16 %v10865_v1  ;;  %v422_v1 = vld [vmem:[%s12465_s25 + $0x20] sm:$0xff] }
 0x1aa   : > { %v806_v44 = vmul.f32 -1.875, %v774_v40  ;;  %v10852_v45 = vunpack.i.h.bf16 %v10850_v41  ;;  %v10851_v48 = vunpack.i.l.bf16 %v10850_v41 }
 0x1ab   : > { %v10197_v22 = vpack.c.bf16 %v10867_v4, %v10866_v7  ;;  %v425_v4 = vld [vmem:[%s12465_s25 + $0x38] sm:$0xff] }
 0x1ac   : > { %v869_v52 = vmul.f32 1.442695, %v806_v44  ;;  %v10188_v53 = vpack.c.bf16 %v10852_v45, %v10851_v48  ;;  %v418_v48 = vld [vmem:[%s12465_s25] sm:$0xff] }
 0x1ad   : > { %v10860_v56 = vpop.permute.xlu0 %10859 }
 0x1ae   : > { %11020 = vpow2.f32 %v869_v52  ;;  %10189 = vmatpush1.bf16.msra.mxu1 %v10188_v53  ;;  %v10862_v61 = vunpack.i.h.bf16 %v10860_v56  ;;  %v10861_v62 = vunpack.i.l.bf16 %v10860_v56  ;;  %v421_v52 = vld [vmem:[%s12465_s25 + $0x18] sm:$0xff]  ;;  %v420_v56 = vld [vmem:[%s12465_s25 + $0x10] sm:$0xff] }
 0x1af   : > { %10190 = vmatprep.subr.bf16.mxu1 %v17951_v57 }
 0x1b0   : > { %v10194_v3 = vpack.c.bf16 %v10862_v61, %v10861_v62  ;;  %v10875_v28 = vpop.permute.xlu1 %10874  ;;  %v423_v61 = vld [vmem:[%s12465_s25 + $0x28] sm:$0xff] }
 0x1b1   : > { %v10870_v20 = vpop.permute.xlu0 %10869  ;;  %v10877_v36 = vunpack.i.h.bf16 %v10875_v28  ;;  %v10876_v38 = vunpack.i.l.bf16 %v10875_v28  ;;  %v426_v28 = vld [vmem:[%s12465_s25 + $0x40] sm:$0xff] }
 0x1b2   : > { %v12752_v58 = vpop.f32.mrb[0].mxu1  ;;  %10192 = vmatpush1.bf16.msra.mxu1 %v10191_v60  ;;  %v10872_v25 = vunpack.i.h.bf16 %v10870_v20  ;;  %v10871_v26 = vunpack.i.l.bf16 %v10870_v20  ;;  %v424_v20 = vld [vmem:[%s12465_s25 + $0x30] sm:$0xff] }
 0x1b3   : > { %v12754_v10 = vpop.f32.mrb[1].mxu1  ;;  %10193 = vmatprep.subr.bf16.mxu1 %v17951_v57  ;;  %v10203_v43 = vpack.c.bf16 %v10877_v36, %v10876_v38  ;;  %v428_v38 = vld [vmem:[%s12465_s25 + $0x50] sm:$0xff] }
 0x1b4   : > { %v10200_v34 = vpack.c.bf16 %v10872_v25, %v10871_v26  ;;  %v427_v25 = vld [vmem:[%s12465_s25 + $0x48] sm:$0xff] }
 0x1b6   : > { %v12757_v21 = vpop.f32.mrb[2].mxu1  ;;  %10195 = vmatpush1.bf16.msra.mxu1 %v10194_v3 }
 0x1b7   : > { %v12759_v27 = vpop.f32.mrb[3].mxu1  ;;  %10196 = vmatprep.subr.bf16.mxu1 %v17951_v57 }
 0x1b8   : > { %v12763_v32 = vpop.eup %11020 }
 0x1b9   : > { %18164 = vst [vmem:[#allocation39_spill] sm:$0xff] %v12763_v32  ;;  %9730 = vmatmul.mubr.msk.f32.gmra.mrb[30].mxu1 %vm1140_vm1, %v12763_v32 }
 0x1ba   : > { %v12767_v33 = vpop.f32.mrb[4].mxu1  ;;  %10198 = vmatpush1.bf16.msra.mxu1 %v10197_v22  ;;  %1526 = vmatprep.mubr.f32.mxu1 %v419_v30 }
 0x1bb   : > { %v12769_v40 = vpop.f32.mrb[5].mxu1  ;;  %10199 = vmatprep.subr.bf16.mxu1 %v17951_v57 }
 0x1be   : > { %v12772_v41 = vpop.f32.mrb[6].mxu1  ;;  %10201 = vmatpush1.bf16.msra.mxu1 %v10200_v34  ;;  %v429_v34 = vld [vmem:[%s12465_s25 + $0x58] sm:$0xff] }
 0x1bf   : > { %v12774_v44 = vpop.f32.mrb[7].mxu1  ;;  %10202 = vmatprep.subr.bf16.mxu1 %v17951_v57 }
 0x1c2   : > { %v12777_v45 = vpop.f32.mrb[8].mxu1  ;;  %10204 = vmatpush1.bf16.msra.mxu1 %v10203_v43 }
 0x1c3   : > { %v12780_v51 = vpop.f32.mrb[9].mxu1  ;;  %10325 = vmatprep.subr.bf16.mxu1 %v17951_v57  ;;  %v437_v57 = vld [vmem:[%s12465_s25 + $0x98] sm:$0xff] }
 0x1c5   : > { %1527 = vmatmul.mubr.f32.vlgmr.msra.gmra.mrb[32].mxu1 %v418_v48  ;;  %v431_v48 = vld [vmem:[%s12465_s25 + $0x68] sm:$0xff] }
 0x1c6   : > { %v12784_v53 = vpop.f32.mrb[10].mxu1  ;;  %1531 = vmatprep.mubr.f32.mxu1 %v421_v52 }
 0x1c7   : > { %v12787_v60 = vpop.f32.mrb[11].mxu1 }
 0x1c9   : > { %1532 = vmatmul.mubr.f32.gmra.mrb[34].mxu1 %v420_v56  ;;  %v430_v56 = vld [vmem:[%s12465_s25 + $0x60] sm:$0xff] }
 0x1ca   : > { %v12790_v62 = vpop.f32.mrb[12].mxu1  ;;  %1536 = vmatprep.mubr.f32.mxu1 %v423_v61 }
 0x1cb   : > { %v12793_v3 = vpop.f32.mrb[13].mxu1 }
 0x1cd   : > { %1537 = vmatmul.mubr.f32.gmra.mrb[36].mxu1 %v422_v1  ;;  %v433_v1 = vld [vmem:[%s12465_s25 + $0x78] sm:$0xff] }
 0x1ce   : > { %v12796_v7 = vpop.f32.mrb[14].mxu1  ;;  %1541 = vmatprep.mubr.f32.mxu1 %v425_v4 }
 0x1cf   : > { %v12799_v22 = vpop.f32.mrb[15].mxu1 }
 0x1d1   : > { %1542 = vmatmul.mubr.f32.gmra.mrb[38].mxu1 %v424_v20  ;;  %v432_v20 = vld [vmem:[%s12465_s25 + $0x70] sm:$0xff] }
 0x1d2   : > { %v12802_v26 = vpop.f32.mrb[16].mxu1  ;;  %1546 = vmatprep.mubr.f32.mxu1 %v427_v25 }
 0x1d3   : > { %v12805_v30 = vpop.f32.mrb[17].mxu1 }
 0x1d5   : > { %1547 = vmatmul.mubr.f32.gmra.mrb[40].mxu1 %v426_v28  ;;  %v435_v28 = vld [vmem:[%s12465_s25 + $0x88] sm:$0xff] }
 0x1d6   : > { %v12808_v36 = vpop.f32.mrb[18].mxu1  ;;  %1551 = vmatprep.mubr.f32.mxu1 %v429_v34 }
 0x1d7   : > { %v12811_v43 = vpop.f32.mrb[19].mxu1 }
 0x1d9   : > { %1552 = vmatmul.mubr.f32.gmra.mrb[42].mxu1 %v428_v38  ;;  %v434_v38 = vld [vmem:[%s12465_s25 + $0x80] sm:$0xff] }
 0x1da   : > { %v12814_v52 = vpop.f32.mrb[20].mxu1  ;;  %1556 = vmatprep.mubr.f32.mxu1 %v431_v48 }
 0x1db   : > { %v12817_v61 = vpop.f32.mrb[21].mxu1 }
 0x1dd   : > { %1557 = vmatmul.mubr.f32.gmra.mrb[44].mxu1 %v430_v56 }
 0x1de   : > { %v12820_v4 = vpop.f32.mrb[22].mxu1  ;;  %1561 = vmatprep.mubr.f32.mxu1 %v433_v1  ;;  %v436_v1 = vld [vmem:[%s12465_s25 + $0x90] sm:$0xff] }
 0x1df   : > { %v12823_v25 = vpop.f32.mrb[23].mxu1 }
 0x1e1   : > { %1562 = vmatmul.mubr.f32.gmra.mrb[46].mxu1 %v432_v20  ;;  %v439_v20 = vld [vmem:[%s12465_s25 + $0xa8] sm:$0xff] }
 0x1e2   : > { %v12826_v34 = vpop.f32.mrb[24].mxu1  ;;  %1566 = vmatprep.mubr.f32.mxu1 %v435_v28  ;;  %v438_v28 = vld [vmem:[%s12465_s25 + $0xa0] sm:$0xff] }
 0x1e3   : > { %v12829_v48 = vpop.f32.mrb[25].mxu1 }
 0x1e5   : > { %1567 = vmatmul.mubr.f32.gmra.mrb[48].mxu1 %v434_v38  ;;  %v441_v38 = vld [vmem:[%s12465_s25 + $0xb8] sm:$0xff] }
 0x1e6   : > { %v12832_v56 = vpop.f32.mrb[26].mxu1  ;;  %1571 = vmatprep.mubr.f32.mxu1 %v437_v57  ;;  %v440_v57 = vld [vmem:[%s12465_s25 + $0xb0] sm:$0xff] }
 0x1e7   : > { %v12835_v32 = vpop.f32.mrb[27].mxu1 }
 0x1e9   : > { %1572 = vmatmul.mubr.f32.gmra.mrb[50].mxu1 %v436_v1  ;;  %v442_v1 = vld [vmem:[%s12465_s25 + $0xc0] sm:$0xff] }
 0x1ea   : > { %v12838_v19 = vpop.f32.mrb[28].mxu1  ;;  %1576 = vmatprep.mubr.f32.mxu1 %v439_v20  ;;  %v444_v20 = vld [vmem:[%s12465_s25 + $0xd0] sm:$0xff] }
 0x1eb   : > { %v12841_v18 = vpop.f32.mrb[29].mxu1 }
 0x1ed   : > { %1577 = vmatmul.mubr.f32.gmra.mrb[52].mxu1 %v438_v28  ;;  %v446_v28 = vld [vmem:[%s12465_s25 + $0xe0] sm:$0xff] }
 0x1ee   : > { %1581 = vmatprep.mubr.f32.mxu1 %v441_v38  ;;  %v449_v38 = vld [vmem:[%s12465_s25 + $0xf8] sm:$0xff] }
 0x1f1   : > { %1582 = vmatmul.mubr.f32.gmra.mrb[54].mxu1 %v440_v57  ;;  %v448_v57 = vld [vmem:[%s12465_s25 + $0xf0] sm:$0xff] }
 0x1f2   : > { %1586 = vmatprep.mubr.f32.mxu1 %v443_v15  ;;  %v451_v15 = vld [vmem:[%s12465_s25 + $0x108] sm:$0xff] }
 0x1f5   : > { %1587 = vmatmul.mubr.f32.gmra.mrb[56].mxu1 %v442_v1  ;;  %v450_v1 = vld [vmem:[%s12465_s25 + $0x100] sm:$0xff] }
 0x1f6   : > { %1591 = vmatprep.mubr.f32.mxu1 %v445_v14  ;;  %v453_v14 = vld [vmem:[%s12465_s25 + $0x118] sm:$0xff] }
 0x1f9   : > { %1592 = vmatmul.mubr.f32.gmra.mrb[58].mxu1 %v444_v20  ;;  %v452_v20 = vld [vmem:[%s12465_s25 + $0x110] sm:$0xff] }
 0x1fa   : > { %1596 = vmatprep.mubr.f32.mxu1 %v447_v13  ;;  %v455_v13 = vld [vmem:[%s12465_s25 + $0x128] sm:$0xff] }
 0x1fd   : > { %1597 = vmatmul.mubr.f32.gmra.mrb[60].mxu1 %v446_v28  ;;  %v454_v28 = vld [vmem:[%s12465_s25 + $0x120] sm:$0xff] }
 0x1fe   : > { %1601 = vmatprep.mubr.f32.mxu1 %v449_v38  ;;  %v457_v38 = vld [vmem:[%s12465_s25 + $0x138] sm:$0xff] }
 0x201   : > { %1602 = vmatmul.mubr.f32.gmra.mrb[62].mxu1 %v448_v57  ;;  %v456_v57 = vld [vmem:[%s12465_s25 + $0x130] sm:$0xff] }
 0x202   : > { %1606 = vmatprep.mubr.f32.mxu1 %v451_v15  ;;  %v459_v15 = vld [vmem:[%s12465_s25 + $0x148] sm:$0xff] }
 0x205   : > { %1607 = vmatmul.mubr.f32.gmra.mrb[64].mxu1 %v450_v1  ;;  %v458_v1 = vld [vmem:[%s12465_s25 + $0x140] sm:$0xff] }
 0x206   : > { %1611 = vmatprep.mubr.f32.mxu1 %v453_v14  ;;  %v461_v14 = vld [vmem:[%s12465_s25 + $0x158] sm:$0xff] }
 0x209   : > { %1612 = vmatmul.mubr.f32.gmra.mrb[66].mxu1 %v452_v20  ;;  %v460_v20 = vld [vmem:[%s12465_s25 + $0x150] sm:$0xff] }
 0x20a   : > { %1616 = vmatprep.mubr.f32.mxu1 %v455_v13  ;;  %v463_v13 = vld [vmem:[%s12465_s25 + $0x168] sm:$0xff] }
 0x20d   : > { %1617 = vmatmul.mubr.f32.gmra.mrb[68].mxu1 %v454_v28  ;;  %v462_v28 = vld [vmem:[%s12465_s25 + $0x160] sm:$0xff] }
 0x20e   : > { %1621 = vmatprep.mubr.f32.mxu1 %v457_v38  ;;  %v465_v38 = vld [vmem:[%s12465_s25 + $0x178] sm:$0xff] }
 0x211   : > { %1622 = vmatmul.mubr.f32.gmra.mrb[70].mxu1 %v456_v57  ;;  %v464_v57 = vld [vmem:[%s12465_s25 + $0x170] sm:$0xff] }
 0x212   : > { %1626 = vmatprep.mubr.f32.mxu1 %v459_v15  ;;  %v467_v15 = vld [vmem:[%s12465_s25 + $0x188] sm:$0xff] }
 0x215   : > { %1627 = vmatmul.mubr.f32.gmra.mrb[72].mxu1 %v458_v1  ;;  %v466_v1 = vld [vmem:[%s12465_s25 + $0x180] sm:$0xff] }
 0x216   : > { %1631 = vmatprep.mubr.f32.mxu1 %v461_v14  ;;  %v469_v14 = vld [vmem:[%s12465_s25 + $0x198] sm:$0xff] }
 0x219   : > { %1632 = vmatmul.mubr.f32.gmra.mrb[74].mxu1 %v460_v20  ;;  %v468_v20 = vld [vmem:[%s12465_s25 + $0x190] sm:$0xff] }
 0x21a   : > { %1636 = vmatprep.mubr.f32.mxu1 %v463_v13  ;;  %v471_v13 = vld [vmem:[%s12465_s25 + $0x1a8] sm:$0xff] }
 0x21d   : > { %1637 = vmatmul.mubr.f32.gmra.mrb[76].mxu1 %v462_v28  ;;  %v470_v28 = vld [vmem:[%s12465_s25 + $0x1a0] sm:$0xff] }
 0x21e   : > { %1641 = vmatprep.mubr.f32.mxu1 %v465_v38  ;;  %v473_v38 = vld [vmem:[%s12465_s25 + $0x1b8] sm:$0xff] }
 0x221   : > { %1642 = vmatmul.mubr.f32.gmra.mrb[78].mxu1 %v464_v57  ;;  %v472_v57 = vld [vmem:[%s12465_s25 + $0x1b0] sm:$0xff] }
 0x222   : > { %1646 = vmatprep.mubr.f32.mxu1 %v467_v15  ;;  %v475_v15 = vld [vmem:[%s12465_s25 + $0x1c8] sm:$0xff] }
 0x225   : > { %1647 = vmatmul.mubr.f32.gmra.mrb[80].mxu1 %v466_v1  ;;  %v477_v1 = vld [vmem:[%s12465_s25 + $0x1d8] sm:$0xff] }
 0x226   : > { %1651 = vmatprep.mubr.f32.mxu1 %v469_v14  ;;  %v476_v14 = vld [vmem:[%s12465_s25 + $0x1d0] sm:$0xff] }
 0x229   : > { %1652 = vmatmul.mubr.f32.gmra.mrb[82].mxu1 %v468_v20  ;;  %v478_v20 = vld [vmem:[%s12465_s25 + $0x1e0] sm:$0xff] }
 0x22a   : > { %1656 = vmatprep.mubr.f32.mxu1 %v471_v13  ;;  %v481_v13 = vld [vmem:[%s12465_s25 + $0x1f8] sm:$0xff] }
 0x22d   : > { %1657 = vmatmul.mubr.f32.gmra.mrb[84].mxu1 %v470_v28 }
 0x22e   : > { %1661 = vmatprep.mubr.f32.mxu1 %v473_v38 }
 0x231   : > { %1662 = vmatmul.mubr.f32.gmra.mrb[86].mxu1 %v472_v57 }
 0x232   : > { %1666 = vmatprep.mubr.f32.mxu1 %v475_v15 }
 0x235   : > { %1667 = vmatmul.mubr.f32.gmra.mrb[88].mxu1 %v474_v12 }
 0x236   : > { %1671 = vmatprep.mubr.f32.mxu1 %v477_v1 }
 0x239   : > { %1672 = vmatmul.mubr.f32.gmra.mrb[90].mxu1 %v476_v14  ;;  %v17981_v14 = vmov 1.0  }
 0x23a   : > { %1676 = vmatprep.mubr.f32.mxu1 %v479_v8  ;;  %1787 = vmatprep.mubr.f32.mxu0 %v17981_v14 }
 0x23d   : > { %1677 = vmatmul.mubr.f32.gmra.mrb[92].mxu1 %v478_v20 }
 0x23e   : > { %1681 = vmatprep.mubr.f32.mxu1 %v481_v13 }
 0x241   : > { %1682 = vmatmul.mubr.f32.gmra.mrb[94].mxu1 %v480_v6 }
 0x28c   : > { %v12885_v28 = vpop.f32.mrb[30].mxu1 }
 0x28d   : > { %v12887_v38 = vpop.f32.mrb[31].mxu1 }
 0x298   : > { %v1528_v57 = vpop.f32.mrb[32].mxu1 }
 0x299   : > { %v1529_v15 = vadd.f32 %v1528_v57, %v12754_v10  ;;  %v1530_v0 = vpop.f32.mrb[33].mxu1 }
 0x29c   : > { %v1533_v12 = vpop.f32.mrb[34].mxu1 }
 0x29d   : > { %v1534_v1 = vadd.f32 %v12752_v58, %v1533_v12  ;;  %v1535_v54 = vpop.f32.mrb[35].mxu1 }
 0x2a0   : > { %v1538_v8 = vpop.f32.mrb[36].mxu1 }
 0x2a1   : > { %v12893_v20 = vadd.f32 %v1538_v8, %v12759_v27  ;;  %v1540_v6 = vpop.f32.mrb[37].mxu1 }
 0x2a4   : > { %v1543_v13 = vpop.f32.mrb[38].mxu1 }
 0x2a5   : > { %v1544_v47 = vadd.f32 %v12757_v21, %v1543_v13  ;;  %v1545_v39 = vpop.f32.mrb[39].mxu1 }
 0x2a8   : > { %v1548_v31 = vpop.f32.mrb[40].mxu1 }
 0x2a9   : > { %v12897_v10 = vadd.f32 %v1548_v31, %v12769_v40  ;;  %v1550_v0 = vpop.f32.mrb[41].mxu1 }
 0x2ac   : > { %v1553_v57 = vpop.f32.mrb[42].mxu1 }
 0x2ad   : > { %v12900_v54 = vadd.f32 %v12767_v33, %v1553_v57  ;;  %v1555_v58 = vpop.f32.mrb[43].mxu1 }
 0x2b0   : > { %v1558_v12 = vpop.f32.mrb[44].mxu1 }
 0x2b1   : > { %v12903_v14 = vadd.f32 %v1558_v12, %v12774_v44  ;;  %v1560_v27 = vpop.f32.mrb[45].mxu1 }
 0x2b4   : > { %v1563_v8 = vpop.f32.mrb[46].mxu1 }
 0x2b5   : > { %v12906_v6 = vadd.f32 %v12772_v41, %v1563_v8  ;;  %v1565_v39 = vpop.f32.mrb[47].mxu1 }
 0x2b8   : > { %v1568_v21 = vpop.f32.mrb[48].mxu1 }
 0x2b9   : > { %v12909_v31 = vadd.f32 %v1568_v21, %v12780_v51  ;;  %v1570_v40 = vpop.f32.mrb[49].mxu1 }
 0x2bc   : > { %v1573_v13 = vpop.f32.mrb[50].mxu1 }
 0x2bd   : > { %v12912_v33 = vadd.f32 %v12777_v45, %v1573_v13  ;;  %v1575_v0 = vpop.f32.mrb[51].mxu1 }
 0x2c0   : > { %v1578_v57 = vpop.f32.mrb[52].mxu1 }
 0x2c1   : > { %v12915_v44 = vadd.f32 %v1578_v57, %v12787_v60  ;;  %v1580_v58 = vpop.f32.mrb[53].mxu1 }
 0x2c4   : > { %v1583_v12 = vpop.f32.mrb[54].mxu1 }
 0x2c5   : > { %v12918_v41 = vadd.f32 %v12784_v53, %v1583_v12  ;;  %v1585_v27 = vpop.f32.mrb[55].mxu1 }
 0x2c8   : > { %v1588_v8 = vpop.f32.mrb[56].mxu1 }
 0x2c9   : > { %v12921_v51 = vadd.f32 %v1588_v8, %v12793_v3  ;;  %v1590_v39 = vpop.f32.mrb[57].mxu1 }
 0x2cc   : > { %v1593_v21 = vpop.f32.mrb[58].mxu1 }
 0x2cd   : > { %v12924_v45 = vadd.f32 %v12790_v62, %v1593_v21  ;;  %v1595_v40 = vpop.f32.mrb[59].mxu1  ;;  %v12936_v62 = vld [vmem:[%s17941_s0 + $0x1] ss:$0 sm:$0xff] }
 0x2ce   : > { %v12940_v21 = vadd.f32 %v12936_v62, %v1534_v1 }
 0x2d0   : > { %v1598_v13 = vpop.f32.mrb[60].mxu1 }
 0x2d1   : > { %v12927_v60 = vadd.f32 %v1598_v13, %v12799_v22  ;;  %v1600_v0 = vpop.f32.mrb[61].mxu1 }
 0x2d4   : > { %v1603_v57 = vpop.f32.mrb[62].mxu1 }
 0x2d5   : > { %v12930_v53 = vadd.f32 %v12796_v7, %v1603_v57  ;;  %v1605_v58 = vpop.f32.mrb[63].mxu1 }
 0x2d8   : > { %v1608_v12 = vpop.f32.mrb[64].mxu1 }
 0x2d9   : > { %v1609_v3 = vadd.f32 %v1608_v12, %v12805_v30  ;;  %v1610_v27 = vpop.f32.mrb[65].mxu1  ;;  %v12949_v30 = vadd.f32 %v12936_v62, %v1529_v15 }
 0x2da   : > { %v12958_v27 = vadd.f32 %v12936_v62, %v1544_v47 }
 0x2db   : > { %v12943_v7 = vadd.f32 %v12936_v62, %v1609_v3  ;;  %v10207_v1 = vpack.c.bf16 %v12940_v21, %v12949_v30 }
 0x2dc   : > { %v1613_v8 = vpop.f32.mrb[66].mxu1 }
 0x2dd   : > { %v1614_v39 = vadd.f32 %v12802_v26, %v1613_v8  ;;  %v1615_v22 = vpop.f32.mrb[67].mxu1  ;;  %v12968_v8 = vadd.f32 %v12936_v62, %v12893_v20  ;;  %v12978_v20 = vadd.f32 %v12936_v62, %v12900_v54 }
 0x2df   : > { %v12946_v40 = vadd.f32 %v12936_v62, %v1614_v39  ;;  %v10211_v47 = vpack.c.bf16 %v12958_v27, %v12968_v8 }
 0x2e0   : > { %v1618_v13 = vpop.f32.mrb[68].mxu1 }
 0x2e1   : > { %v1619_v0 = vadd.f32 %v1618_v13, %v12811_v43  ;;  %v1620_v57 = vpop.f32.mrb[69].mxu1  ;;  %v10205_v26 = vpack.c.bf16 %v12946_v40, %v12943_v7 }
 0x2e3   : > { %10206 = vmatprep.subr.bf16.mxu0 %v10205_v26  ;;  %v12961_v15 = vadd.f32 %v12936_v62, %v1619_v0 }
 0x2e4   : > { %v1623_v58 = vpop.f32.mrb[70].mxu1  ;;  %10208 = vmatpush3.bf16.msra.mxu0 %v10207_v1 }
 0x2e5   : > { %v1624_v12 = vadd.f32 %v12808_v36, %v1623_v58  ;;  %v1625_v3 = vpop.f32.mrb[71].mxu1  ;;  %v12988_v58 = vadd.f32 %v12936_v62, %v12897_v10  ;;  %v12998_v10 = vadd.f32 %v12936_v62, %v12906_v6 }
 0x2e7   : > { %v12964_v43 = vadd.f32 %v12936_v62, %v1624_v12  ;;  %v10215_v54 = vpack.c.bf16 %v12978_v20, %v12988_v58 }
 0x2e8   : > { %v1628_v39 = vpop.f32.mrb[72].mxu1 }
 0x2e9   : > { %v1629_v22 = vadd.f32 %v1628_v39, %v12817_v61  ;;  %v1630_v13 = vpop.f32.mrb[73].mxu1  ;;  %v10209_v36 = vpack.c.bf16 %v12964_v43, %v12961_v15 }
 0x2eb   : > { %10210 = vmatprep.subr.bf16.mxu0 %v10209_v36  ;;  %v12981_v1 = vadd.f32 %v12936_v62, %v1629_v22 }
 0x2ec   : > { %v1633_v0 = vpop.f32.mrb[74].mxu1  ;;  %10212 = vmatpush3.bf16.msra.mxu0 %v10211_v47 }
 0x2ed   : > { %v1634_v57 = vadd.f32 %v12814_v52, %v1633_v0  ;;  %v1635_v26 = vpop.f32.mrb[75].mxu1  ;;  %v13008_v0 = vadd.f32 %v12936_v62, %v12903_v14  ;;  %v13018_v14 = vadd.f32 %v12936_v62, %v12912_v33 }
 0x2ef   : > { %v12984_v61 = vadd.f32 %v12936_v62, %v1634_v57  ;;  %v10219_v6 = vpack.c.bf16 %v12998_v10, %v13008_v0 }
 0x2f0   : > { %v1638_v12 = vpop.f32.mrb[76].mxu1 }
 0x2f1   : > { %v1639_v3 = vadd.f32 %v1638_v12, %v12823_v25  ;;  %v1640_v39 = vpop.f32.mrb[77].mxu1  ;;  %v10213_v52 = vpack.c.bf16 %v12984_v61, %v12981_v1 }
 0x2f3   : > { %10214 = vmatprep.subr.bf16.mxu0 %v10213_v52  ;;  %v13001_v47 = vadd.f32 %v12936_v62, %v1639_v3 }
 0x2f4   : > { %v1643_v22 = vpop.f32.mrb[78].mxu1  ;;  %10216 = vmatpush3.bf16.msra.mxu0 %v10215_v54 }
 0x2f5   : > { %v1644_v13 = vadd.f32 %v12820_v4, %v1643_v22  ;;  %v1645_v36 = vpop.f32.mrb[79].mxu1  ;;  %v13028_v22 = vadd.f32 %v12936_v62, %v12909_v31  ;;  %v13038_v31 = vadd.f32 %v12936_v62, %v12918_v41 }
 0x2f7   : > { %v13004_v25 = vadd.f32 %v12936_v62, %v1644_v13  ;;  %v10223_v33 = vpack.c.bf16 %v13018_v14, %v13028_v22 }
 0x2f8   : > { %v1648_v57 = vpop.f32.mrb[80].mxu1 }
 0x2f9   : > { %v1649_v26 = vadd.f32 %v1648_v57, %v12829_v48  ;;  %v1650_v12 = vpop.f32.mrb[81].mxu1  ;;  %v10217_v4 = vpack.c.bf16 %v13004_v25, %v13001_v47 }
 0x2fb   : > { %10218 = vmatprep.subr.bf16.mxu0 %v10217_v4  ;;  %v13021_v54 = vadd.f32 %v12936_v62, %v1649_v26 }
 0x2fc   : > { %v1653_v3 = vpop.f32.mrb[82].mxu1  ;;  %10220 = vmatpush3.bf16.msra.mxu0 %v10219_v6 }
 0x2fd   : > { %v1654_v39 = vadd.f32 %v12826_v34, %v1653_v3  ;;  %v1655_v52 = vpop.f32.mrb[83].mxu1  ;;  %v13048_v3 = vadd.f32 %v12936_v62, %v12915_v44  ;;  %v13058_v44 = vadd.f32 %v12936_v62, %v12924_v45 }
 0x2ff   : > { %v13024_v48 = vadd.f32 %v12936_v62, %v1654_v39  ;;  %v10227_v41 = vpack.c.bf16 %v13038_v31, %v13048_v3 }
 0x300   : > { %v1658_v13 = vpop.f32.mrb[84].mxu1 }
 0x301   : > { %v1659_v36 = vadd.f32 %v1658_v13, %v12835_v32  ;;  %v1660_v57 = vpop.f32.mrb[85].mxu1  ;;  %v10221_v34 = vpack.c.bf16 %v13024_v48, %v13021_v54 }
 0x303   : > { %10222 = vmatprep.subr.bf16.mxu0 %v10221_v34  ;;  %v13041_v6 = vadd.f32 %v12936_v62, %v1659_v36 }
 0x304   : > { %v1663_v26 = vpop.f32.mrb[86].mxu1  ;;  %10224 = vmatpush3.bf16.msra.mxu0 %v10223_v33 }
 0x305   : > { %v1664_v12 = vadd.f32 %v12832_v56, %v1663_v26  ;;  %v1665_v4 = vpop.f32.mrb[87].mxu1  ;;  %v13068_v26 = vadd.f32 %v12936_v62, %v12921_v51  ;;  %v13078_v51 = vadd.f32 %v12936_v62, %v12930_v53  ;;  %v18165_v53 = vmov 1.0  }
 0x307   : > { %v13044_v32 = vadd.f32 %v12936_v62, %v1664_v12  ;;  %v10231_v45 = vpack.c.bf16 %v13058_v44, %v13068_v26 }
 0x308   : > { %v1668_v39 = vpop.f32.mrb[88].mxu1 }
 0x309   : > { %v1669_v52 = vadd.f32 %v1668_v39, %v12841_v18  ;;  %v1670_v13 = vpop.f32.mrb[89].mxu1  ;;  %v10225_v56 = vpack.c.bf16 %v13044_v32, %v13041_v6 }
 0x30b   : > { %10226 = vmatprep.subr.bf16.mxu0 %v10225_v56  ;;  %v13061_v33 = vadd.f32 %v12936_v62, %v1669_v52 }
 0x30c   : > { %v1673_v36 = vpop.f32.mrb[90].mxu1  ;;  %10228 = vmatpush3.bf16.msra.mxu0 %v10227_v41 }
 0x30d   : > { %v1674_v57 = vadd.f32 %v12838_v19, %v1673_v36  ;;  %v1675_v34 = vpop.f32.mrb[91].mxu1  ;;  %v13088_v36 = vadd.f32 %v12936_v62, %v12927_v60 }
 0x30e   : > { %v1794_v34 = vlaneseq }
 0x30f   : > { %v13064_v18 = vadd.f32 %v12936_v62, %v1674_v57 }
 0x310   : > { %v1678_v12 = vpop.f32.mrb[92].mxu1 }
 0x311   : > { %v1679_v4 = vadd.f32 %v1678_v12, %v12887_v38  ;;  %v1680_v39 = vpop.f32.mrb[93].mxu1  ;;  %v10229_v19 = vpack.c.bf16 %v13064_v18, %v13061_v33 }
 0x312   : > { %v1795_v39 = vshrl.u32 %v1794_v34, 7 }
 0x313   : > { %10230 = vmatprep.subr.bf16.mxu0 %v10229_v19  ;;  %v13081_v41 = vadd.f32 %v12936_v62, %v1679_v4 }
 0x314   : > { %v1683_v52 = vpop.f32.mrb[94].mxu1  ;;  %10232 = vmatpush3.bf16.msra.mxu0 %v10231_v45  ;;  %v13096_v60 = vsub.s32 0, %v1795_v39 }
 0x315   : > { %v1684_v13 = vadd.f32 %v12885_v28, %v1683_v52  ;;  %v1685_v56 = vpop.f32.mrb[95].mxu1  ;;  %v10235_v28 = vpack.c.bf16 %v13078_v51, %v13088_v36 }
 0x316   : > { %18166 = vst [vmem:[#allocation40_spill] sm:$0xff] %v13096_v60 }
 0x317   : > { %v13084_v38 = vadd.f32 %v12936_v62, %v1684_v13 }
 0x319   : > { %v10233_v57 = vpack.c.bf16 %v13084_v38, %v13081_v41 }
 0x31b   : > { %10234 = vmatprep.subr.bf16.mxu0 %v10233_v57 }
 0x31c   : > { %10236 = vmatpush3.bf16.msra.mxu0 %v10235_v28 }
 0x31f   : > { %1788 = vmatmul.mubr.f32.vlgmr.msra.gmra.mrb[16].mxu0 %v18165_v53 }
 0x320   : > { %1926 = vmatprep.mubr.f32.mxu0 %v18165_v53 }
 0x3f2   : > { %v9003_v12 = vpop.f32.mrb[16].mxu0 }
 0x3f3   : > { %v9004_v4 = vpop.f32.mrb[17].mxu0 }
 0x3f4   : > { %v9005_v19 = vadd.f32 %v9004_v4, %v9003_v12 }
 0x3f6   : > { %v1793_v45 = vmul.f32 0.00390625, %v9005_v19 }
 0x3f8   : > { %v13099_v62 = vrot.slane %v1793_v45, %v13096_v60 }
 0x3fa   : > { %v13103_v52 = vsub.f32 %v12949_v30, %v13099_v62  ;;  %v13107_v13 = vsub.f32 %v12940_v21, %v13099_v62  ;;  %v13111_v56 = vsub.f32 %v12943_v7, %v13099_v62  ;;  %v13115_v57 = vsub.f32 %v12946_v40, %v13099_v62 }
 0x3fb   : > { %v13119_v28 = vsub.f32 %v12961_v15, %v13099_v62  ;;  %v13123_v30 = vsub.f32 %v12964_v43, %v13099_v62  ;;  %v13131_v7 = vsub.f32 %v12968_v8, %v13099_v62  ;;  %v13135_v40 = vsub.f32 %v12958_v27, %v13099_v62 }
 0x3fc   : > { %v1830_v21 = vmul.f32 %v13103_v52, %v13103_v52  ;;  %v1831_v34 = vmul.f32 %v13107_v13, %v13107_v13  ;;  %v13139_v15 = vsub.f32 %v12981_v1, %v13099_v62  ;;  %v13143_v43 = vsub.f32 %v12984_v61, %v13099_v62 }
 0x3fd   : > { %v1846_v12 = vmul.f32 %v13111_v56, %v13111_v56  ;;  %v1847_v4 = vmul.f32 %v13115_v57, %v13115_v57  ;;  %v1848_v8 = vmul.f32 %v13119_v28, %v13119_v28  ;;  %v1849_v27 = vmul.f32 %v13123_v30, %v13123_v30 }
 0x3fe   : > { %v10239_v39 = vpack.c.bf16 %v1831_v34, %v1830_v21  ;;  %v13155_v1 = vsub.f32 %v12988_v58, %v13099_v62  ;;  %v13159_v61 = vsub.f32 %v12978_v20, %v13099_v62  ;;  %v13163_v45 = vsub.f32 %v13001_v47, %v13099_v62 }
 0x3ff   : > { %v10237_v19 = vpack.c.bf16 %v1847_v4, %v1846_v12  ;;  %v1832_v24 = vmul.f32 %v13131_v7, %v13131_v7  ;;  %v1833_v21 = vmul.f32 %v13135_v40, %v13135_v40  ;;  %v13171_v34 = vsub.f32 %v13004_v25, %v13099_v62 }
 0x400   : > { %v10241_v58 = vpack.c.bf16 %v1849_v27, %v1848_v8  ;;  %v1850_v20 = vmul.f32 %v13139_v15, %v13139_v15  ;;  %v1851_v12 = vmul.f32 %v13143_v43, %v13143_v43  ;;  %v13179_v47 = vsub.f32 %v13008_v0, %v13099_v62 }
 0x401   : > { %10238 = vmatprep.subr.bf16.mxu0 %v10237_v19  ;;  %v13183_v4 = vsub.f32 %v12998_v10, %v13099_v62  ;;  %v13187_v25 = vsub.f32 %v13021_v54, %v13099_v62  ;;  %v1834_v8 = vmul.f32 %v13155_v1, %v13155_v1  ;;  %v1835_v27 = vmul.f32 %v13159_v61, %v13159_v61 }
 0x402   : > { %10240 = vmatpush3.bf16.msra.mxu0 %v10239_v39  ;;  %v10243_v39 = vpack.c.bf16 %v1833_v21, %v1832_v24  ;;  %v13195_v0 = vsub.f32 %v13024_v48, %v13099_v62  ;;  %v10245_v19 = vpack.c.bf16 %v1851_v12, %v1850_v20  ;;  %v1852_v10 = vmul.f32 %v13163_v45, %v13163_v45 }
 0x403   : > { %10242 = vmatprep.subr.bf16.mxu0 %v10241_v58  ;;  %v1853_v58 = vmul.f32 %v13171_v34, %v13171_v34  ;;  %v13203_v54 = vsub.f32 %v13028_v22, %v13099_v62  ;;  %v13207_v16 = vsub.f32 %v13018_v14, %v13099_v62  ;;  %v13211_v24 = vsub.f32 %v13041_v6, %v13099_v62 }
 0x404   : > { %v1836_v48 = vmul.f32 %v13179_v47, %v13179_v47  ;;  %v1837_v21 = vmul.f32 %v13183_v4, %v13183_v4  ;;  %v10247_v20 = vpack.c.bf16 %v1835_v27, %v1834_v8  ;;  %v13219_v22 = vsub.f32 %v13044_v32, %v13099_v62 }
 0x405   : > { %v10249_v12 = vpack.c.bf16 %v1853_v58, %v1852_v10  ;;  %v1854_v14 = vmul.f32 %v13187_v25, %v13187_v25  ;;  %v1808_v6 = vsub.f32 %v13048_v3, %v13099_v62  ;;  %v13231_v8 = vsub.f32 %v13061_v33, %v13099_v62 }
 0x406   : > { %10244 = vmatpush3.bf16.msra.mxu0 %v10243_v39  ;;  %v1855_v39 = vmul.f32 %v13195_v0, %v13195_v0  ;;  %v1838_v32 = vmul.f32 %v13203_v54, %v13203_v54  ;;  %v1839_v27 = vmul.f32 %v13207_v16, %v13207_v16  ;;  %v10251_v10 = vpack.c.bf16 %v1837_v21, %v1836_v48 }
 0x407   : > { %10246 = vmatprep.subr.bf16.mxu0 %v10245_v19  ;;  %v1809_v19 = vsub.f32 %v13038_v31, %v13099_v62  ;;  %v13239_v58 = vsub.f32 %v13064_v18, %v13099_v62  ;;  %v1856_v31 = vmul.f32 %v13211_v24, %v13211_v24  ;;  %v1810_v33 = vsub.f32 %v13068_v26, %v13099_v62 }
 0x408   : > { %v10253_v3 = vpack.c.bf16 %v1855_v39, %v1854_v14  ;;  %v13251_v48 = vsub.f32 %v13081_v41, %v13099_v62  ;;  %v1840_v18 = vmul.f32 %v1808_v6, %v1808_v6  ;;  %v10255_v14 = vpack.c.bf16 %v1839_v27, %v1838_v32 }
 0x409   : > { %v1841_v21 = vmul.f32 %v1809_v19, %v1809_v19  ;;  %v13255_v39 = vsub.f32 %v13084_v38, %v13099_v62  ;;  %v1859_v26 = vmul.f32 %v13239_v58, %v13239_v58  ;;  %v1813_v41 = vsub.f32 %v13078_v51, %v13099_v62 }
 0x40a   : > { %10248 = vmatpush3.bf16.msra.mxu0 %v10247_v20  ;;  %v1857_v20 = vmul.f32 %v13219_v22, %v13219_v22  ;;  %v1842_v32 = vmul.f32 %v1810_v33, %v1810_v33 }
 0x40b   : > { %10250 = vmatprep.subr.bf16.mxu0 %v10249_v12  ;;  %v1811_v12 = vsub.f32 %v13058_v44, %v13099_v62  ;;  %v1812_v44 = vsub.f32 %v13088_v36, %v13099_v62  ;;  %v1845_v2 = vmul.f32 %v1813_v41, %v1813_v41 }
 0x40c   : > { %v10257_v9 = vpack.c.bf16 %v1857_v20, %v1856_v31  ;;  %v1860_v31 = vmul.f32 %v13251_v48, %v13251_v48  ;;  %v1861_v20 = vmul.f32 %v13255_v39, %v13255_v39 }
 0x40d   : > { %v1843_v27 = vmul.f32 %v1811_v12, %v1811_v12 }
 0x40e   : > { %10252 = vmatpush3.bf16.msra.mxu0 %v10251_v10  ;;  %v1858_v10 = vmul.f32 %v13231_v8, %v13231_v8  ;;  %v10265_v36 = vpack.c.bf16 %v1861_v20, %v1860_v31 }
 0x40f   : > { %10254 = vmatprep.subr.bf16.mxu0 %v10253_v3  ;;  %v10259_v3 = vpack.c.bf16 %v1841_v21, %v1840_v18  ;;  %v10263_v59 = vpack.c.bf16 %v1843_v27, %v1842_v32 }
 0x410   : > { %v10261_v38 = vpack.c.bf16 %v1859_v26, %v1858_v10 }
 0x412   : > { %10256 = vmatpush3.bf16.msra.mxu0 %v10255_v14  ;;  %v1844_v14 = vmul.f32 %v1812_v44, %v1812_v44 }
 0x413   : > { %10258 = vmatprep.subr.bf16.mxu0 %v10257_v9 }
 0x414   : > { %v10267_v9 = vpack.c.bf16 %v1845_v2, %v1844_v14 }
 0x416   : > { %10260 = vmatpush3.bf16.msra.mxu0 %v10259_v3 }
 0x417   : > { %10262 = vmatprep.subr.bf16.mxu0 %v10261_v38 }
 0x41a   : > { %10264 = vmatpush3.bf16.msra.mxu0 %v10263_v59  ;;  %v13278_v59 = vld [vmem:[%s17941_s0 + $0x2] ss:$0 sm:$0xff] }
 0x41b   : > { %10266 = vmatprep.subr.bf16.mxu0 %v10265_v36 }
 0x41e   : > { %10268 = vmatpush3.bf16.msra.mxu0 %v10267_v9 }
 0x421   : > { %1927 = vmatmul.mubr.f32.vlgmr.msra.gmra.mrb[18].mxu0 %v18165_v53 }
 0x4f4   : > { %v9038_v51 = vpop.f32.mrb[18].mxu0 }
 0x4f5   : > { %v9039_v62 = vpop.f32.mrb[19].mxu0 }
 0x4f6   : > { %v9040_v18 = vadd.f32 %v9039_v62, %v9038_v51 }
 0x4f8   : > { %v1932_v21 = vmul.f32 0.00390625, %v9040_v18 }
 0x4fa   : > { %v1933_v10 = vadd.f32 1e-05, %v1932_v21 }
 0x4fc   : > { %11022 = vrsqrt.f32 %v1933_v10 }
 0x506   : > { %v11023_v26 = vpop.eup %11022 }
 0x507   : > { %v13271_v3 = vrot.slane %v11023_v26, %v13096_v60 }
 0x509   : > { %v1956_v32 = vmul.f32 %v13271_v3, %v13115_v57  ;;  %v1939_v2 = vmul.f32 %v13271_v3, %v13103_v52  ;;  %v1940_v27 = vmul.f32 %v13271_v3, %v13107_v13  ;;  %v1947_v38 = vmul.f32 %v13271_v3, %v13203_v54  ;;  %v13295_v52 = vld [vmem:[%s17941_s0 + $0x3] ss:$0 sm:$0xff] }
 0x50a   : > { %v1948_v31 = vmul.f32 %v13271_v3, %v13207_v16  ;;  %v1949_v20 = vmul.f32 %v13271_v3, %v1808_v6  ;;  %v1950_v57 = vmul.f32 %v13271_v3, %v1809_v19  ;;  %v1951_v14 = vmul.f32 %v13271_v3, %v1810_v33 }
 0x50b   : > { %v1952_v36 = vmul.f32 %v13271_v3, %v1811_v12  ;;  %v1953_v13 = vmul.f32 %v13271_v3, %v1812_v44  ;;  %v1954_v54 = vmul.f32 %v13271_v3, %v1813_v41  ;;  %v1955_v16 = vmul.f32 %v13271_v3, %v13111_v56 }
 0x50c   : > { %v1992_v6 = vmul.f32 %v13278_v59, %v1956_v32  ;;  %v1958_v19 = vmul.f32 %v13271_v3, %v13123_v30  ;;  %v1963_v33 = vmul.f32 %v13271_v3, %v13187_v25  ;;  %v1964_v12 = vmul.f32 %v13271_v3, %v13195_v0 }
 0x50d   : > { %v1965_v9 = vmul.f32 %v13271_v3, %v13211_v24  ;;  %v1966_v44 = vmul.f32 %v13271_v3, %v13219_v22  ;;  %v13316_v56 = vmul.f32 %v13278_v59, %v1947_v38  ;;  %v13319_v30 = vmul.f32 %v13278_v59, %v1948_v31 }
 0x50e   : > { %v13313_v41 = vadd.f32 %v13295_v52, %v1992_v6  ;;  %v13322_v25 = vmul.f32 %v13278_v59, %v1949_v20  ;;  %v13325_v0 = vmul.f32 %v13278_v59, %v1950_v57  ;;  %v13328_v24 = vmul.f32 %v13278_v59, %v1951_v14 }
 0x50f   : > { %v13331_v22 = vmul.f32 %v13278_v59, %v1952_v36  ;;  %v1967_v51 = vmul.f32 %v13271_v3, %v13231_v8  ;;  %v1968_v62 = vmul.f32 %v13271_v3, %v13239_v58  ;;  %v13339_v21 = vmul.f32 %v13278_v59, %v1953_v13 }
 0x510   : > { %v2252_v18 = vand.u32 2147483647, %v13313_v41  ;;  %v1969_v10 = vmul.f32 %v13271_v3, %v13251_v48  ;;  %v1970_v26 = vmul.f32 %v13271_v3, %v13255_v39  ;;  %v13346_v32 = vmul.f32 %v13278_v59, %v1954_v54 }
 0x511   : > { %18167 = vst [vmem:[#allocation41_spill] sm:$0xff] %v13339_v21  ;;  %v1991_v38 = vmul.f32 %v13278_v59, %v1955_v16  ;;  %v1957_v8 = vmul.f32 %v13271_v3, %v13119_v28  ;;  %v1975_v31 = vmul.f32 %v13278_v59, %v1939_v2  ;;  %v1976_v20 = vmul.f32 %v13278_v59, %v1940_v27 }
 0x512   : > { %v2284_v58 = vsub.f32 0.0, %v2252_v18  ;;  %v1942_v57 = vmul.f32 %v13271_v3, %v13135_v40  ;;  %v1994_v48 = vmul.f32 %v13278_v59, %v1958_v19  ;;  %v13357_v39 = vmul.f32 %v13278_v59, %v1963_v33 }
 0x513   : > { %v13360_v14 = vmul.f32 %v13278_v59, %v1964_v12  ;;  %v13363_v13 = vmul.f32 %v13278_v59, %v1965_v9  ;;  %v13366_v28 = vmul.f32 %v13278_v59, %v1966_v44  ;;  %v13369_v2 = vmul.f32 %v13278_v59, %v1967_v51 }
 0x514   : > { %v2333_v36 = vmul.f32 1.442695, %v2284_v58  ;;  %v13372_v40 = vmul.f32 %v13278_v59, %v1968_v62  ;;  %v13375_v27 = vmul.f32 %v13278_v59, %v1969_v10  ;;  %v13378_v54 = vmul.f32 %v13278_v59, %v1970_v26 }
 0x515   : > { %v13381_v16 = vadd.f32 %v13295_v52, %v1991_v38  ;;  %v1993_v6 = vmul.f32 %v13278_v59, %v1957_v8  ;;  %v13385_v19 = vadd.f32 %v13295_v52, %v1976_v20  ;;  %v13388_v33 = vadd.f32 %v13295_v52, %v1975_v31 }
 0x516   : > { %11024 = vpow2.f32 %v2333_v36  ;;  %v1941_v9 = vmul.f32 %v13271_v3, %v13131_v7  ;;  %v1978_v44 = vmul.f32 %v13278_v59, %v1942_v57  ;;  %v13396_v62 = vadd.f32 %v13295_v52, %v1994_v48 }
 0x517   : > { %v2251_v12 = vand.u32 2147483647, %v13381_v16  ;;  %v2236_v51 = vand.u32 2147483647, %v13385_v19  ;;  %v2235_v10 = vand.u32 2147483647, %v13388_v33  ;;  %v13400_v38 = vadd.f32 %v13295_v52, %v1993_v6 }
 0x518   : > { %v1960_v8 = vmul.f32 %v13271_v3, %v13143_v43  ;;  %v1977_v7 = vmul.f32 %v13278_v59, %v1941_v9  ;;  %v2254_v57 = vand.u32 2147483647, %v13396_v62  ;;  %v13407_v48 = vadd.f32 %v13295_v52, %v1978_v44 }
 0x519   : > { %v2283_v18 = vsub.f32 0.0, %v2251_v12  ;;  %v2268_v26 = vsub.f32 0.0, %v2236_v51  ;;  %v2267_v31 = vsub.f32 0.0, %v2235_v10  ;;  %v2253_v6 = vand.u32 2147483647, %v13400_v38 }
 0x51a   : > { %v2286_v12 = vsub.f32 0.0, %v2254_v57  ;;  %v1996_v51 = vmul.f32 %v13278_v59, %v1960_v8  ;;  %v2238_v43 = vand.u32 2147483647, %v13407_v48  ;;  %v1959_v8 = vmul.f32 %v13271_v3, %v13139_v15 }
 0x51b   : > { %v2331_v58 = vmul.f32 1.442695, %v2283_v18  ;;  %v2301_v20 = vmul.f32 1.442695, %v2268_v26  ;;  %v2299_v36 = vmul.f32 1.442695, %v2267_v31  ;;  %v13413_v26 = vadd.f32 %v13295_v52, %v1977_v7 }
 0x51c   : > { %v2337_v10 = vmul.f32 1.442695, %v2286_v12  ;;  %v2285_v9 = vsub.f32 0.0, %v2253_v6  ;;  %v2270_v44 = vsub.f32 0.0, %v2238_v43  ;;  %v1944_v31 = vmul.f32 %v13271_v3, %v13159_v61 }
 0x51d   : > { %11026 = vpow2.f32 %v2331_v58  ;;  %v1943_v58 = vmul.f32 %v13271_v3, %v13155_v1  ;;  %v1961_v7 = vmul.f32 %v13271_v3, %v13163_v45  ;;  %v1962_v12 = vmul.f32 %v13271_v3, %v13171_v34 }
 0x51e   : > { %11028 = vpow2.f32 %v2301_v20  ;;  %v2335_v20 = vmul.f32 1.442695, %v2285_v9  ;;  %v2305_v57 = vmul.f32 1.442695, %v2270_v44  ;;  %v2237_v1 = vand.u32 2147483647, %v13413_v26 }
 0x51f   : > { %11030 = vpow2.f32 %v2299_v36  ;;  %v13422_v36 = vadd.f32 %v13295_v52, %v1996_v51  ;;  %v13431_v6 = vmul.f32 %v13271_v3, %v13179_v47  ;;  %v1979_v15 = vmul.f32 %v13278_v59, %v1943_v58 }
 0x520   : > { %v11025_v18 = vpop.eup %11024  ;;  %11032 = vpow2.f32 %v2337_v10  ;;  %v2269_v51 = vsub.f32 0.0, %v2237_v1  ;;  %v2220_v43 = vmax.f32 %v13313_v41, 0.0  ;;  %v1980_v34 = vmul.f32 %v13278_v59, %v1944_v31 }
 0x521   : > { %v2516_v50 = vadd.f32 1.0, %v11025_v18  ;;  %v2519_v61 = vmul.f32 -0.5, %v11025_v18  ;;  %v1995_v10 = vmul.f32 %v13278_v59, %v1959_v8  ;;  %v2256_v9 = vand.u32 2147483647, %v13422_v36 }
 0x522   : > { %v13443_v47 = vmul.f32 %v13278_v59, %v1961_v7  ;;  %v2303_v29 = vmul.f32 1.442695, %v2269_v51 }
 0x523   : > { %11034 = vlog2.f32 %v2516_v50  ;;  %v13435_v50 = vmul.f32 %v13271_v3, %v13183_v4  ;;  %v1998_v4 = vmul.f32 %v13278_v59, %v1962_v12  ;;  %v2520_v58 = vadd.f32 1.0, %v2519_v61 }
 0x524   : > { %11036 = vpow2.f32 %v2335_v20  ;;  %v2522_v20 = vand.u32 2147483647, %v11025_v18  ;;  %v2288_v23 = vsub.f32 0.0, %v2256_v9  ;;  %v13462_v51 = vadd.f32 %v13295_v52, %v1995_v10 }
 0x525   : > { %11038 = vpow2.f32 %v2305_v57  ;;  %v2521_v8 = vmul.f32 %v11025_v18, %v2520_v58 }
 0x526   : > { %vm13456_vm2 = vcmp.lt.f32.partialorder %v2522_v20, 0.0004427343  ;;  %v2341_v58 = vmul.f32 1.442695, %v2288_v23 }
 0x527   : > { %v11027_v45 = vpop.eup %11026 }
 0x528   : > { %v11029_v44 = vpop.eup %11028  ;;  %v2507_v3 = vadd.f32 1.0, %v11027_v45  ;;  %v2510_v42 = vmul.f32 -0.5, %v11027_v45  ;;  %v2513_v20 = vand.u32 2147483647, %v11027_v45 }
 0x529   : > { %v13446_v57 = vpop.eup %11030  ;;  %v2372_v31 = vadd.f32 1.0, %v11029_v44  ;;  %v2375_v1 = vmul.f32 -0.5, %v11029_v44 }
 0x52a   : > { %11040 = vlog2.f32 %v2507_v3  ;;  %v2363_v35 = vadd.f32 1.0, %v13446_v57  ;;  %v13454_v17 = vpop.eup %11032  ;;  %v2366_v7 = vmul.f32 -0.5, %v13446_v57  ;;  %v2511_v63 = vadd.f32 1.0, %v2510_v42 }
 0x52b   : > { %11042 = vlog2.f32 %v2372_v31  ;;  %v2534_v11 = vadd.f32 1.0, %v13454_v17  ;;  %v13465_v31 = vadd.f32 %v13295_v52, %v1980_v34  ;;  %v2376_v34 = vadd.f32 1.0, %v2375_v1 }
 0x52c   : > { %11044 = vlog2.f32 %v2363_v35  ;;  %v2378_v35 = vand.u32 2147483647, %v11029_v44  ;;  %v2369_v55 = vand.u32 2147483647, %v13446_v57  ;;  %vm13480_vm3 = vcmp.lt.f32.partialorder %v2513_v20, 0.0004427343 }
 0x52d   : > { %v11035_v3 = vpop.eup %11034  ;;  %11046 = vpow2.f32 %v2303_v29  ;;  %v13478_v29 = vadd.f32 %v13295_v52, %v1979_v15  ;;  %v2537_v23 = vmul.f32 -0.5, %v13454_v17 }
 0x52e   : > { %v13467_v9 = vpop.eup %11036  ;;  %v2518_v12 = vmul.f32 0.6931472, %v11035_v3  ;;  %11048 = vlog2.f32 %v2534_v11  ;;  %v2367_v11 = vadd.f32 1.0, %v2366_v7  ;;  %vm13489_vm4 = vcmp.lt.f32.partialorder %v2378_v35, 0.0004427343 }
 0x52f   : > { %v13470_v5 = vpop.eup %11038  ;;  %v2525_v18 = vadd.f32 1.0, %v13467_v9  ;;  %v2528_v15 = vmul.f32 -0.5, %v13467_v9  ;;  %v2377_v7 = vmul.f32 %v11029_v44, %v2376_v34  ;;  %vm13495_vm5 = vcmp.lt.f32.partialorder %v2369_v55, 0.0004427343 }
 0x530   : > { %v2524_v10 = vsel %vm13456_vm2, %v2521_v8, %v2518_v12  ;;  %v2390_v3 = vadd.f32 1.0, %v13470_v5  ;;  %v13486_v8 = vadd.f32 %v13295_v52, %v1998_v4  ;;  %v2512_v12 = vmul.f32 %v11027_v45, %v2511_v63 }
 0x531   : > { %v2668_v46 = vadd.f32 %v2524_v10, %v2220_v43  ;;  %11050 = vlog2.f32 %v2525_v18  ;;  %v2255_v43 = vand.u32 2147483647, %v13462_v51  ;;  %v2393_v35 = vmul.f32 -0.5, %v13470_v5 }
 0x532   : > { %11052 = vlog2.f32 %v2390_v3  ;;  %v2368_v3 = vmul.f32 %v13446_v57, %v2367_v11  ;;  %v2538_v60 = vadd.f32 1.0, %v2537_v23  ;;  %v2240_v63 = vand.u32 2147483647, %v13465_v31 }
 0x533   : > { %2749 = vrot.lane.b32.xlu1 %v2668_v46, %s18022_s10  ;;  %11054 = vpow2.f32 %v2341_v58  ;;  %v2540_v46 = vand.u32 2147483647, %v13454_v17  ;;  %v2287_v18 = vsub.f32 0.0, %v2255_v43  ;;  %v2529_v44 = vadd.f32 1.0, %v2528_v15 }
 0x534   : > { %v11041_v1 = vpop.eup %11040  ;;  %v2272_v57 = vsub.f32 0.0, %v2240_v63  ;;  %v18177_v23 = vmax.f32 %v13385_v19, 0.0  ;;  %v2394_v15 = vadd.f32 1.0, %v2393_v35  ;;  %v18178_v35 = vmax.f32 %v13388_v33, 0.0 }
 0x535   : > { %v11043_v4 = vpop.eup %11042  ;;  %v2509_v20 = vmul.f32 0.6931472, %v11041_v1  ;;  %v2339_v58 = vmul.f32 1.442695, %v2287_v18  ;;  %v18176_v1 = vmax.f32 %v13381_v16, 0.0  ;;  %v2539_v18 = vmul.f32 %v13454_v17, %v2538_v60 }
 0x536   : > { %v11045_v10 = vpop.eup %11044  ;;  %v2374_v37 = vmul.f32 0.6931472, %v11043_v4  ;;  %v2531_v4 = vand.u32 2147483647, %v13467_v9  ;;  %vm2541_vm6 = vcmp.lt.f32.partialorder %v2540_v46, 0.0004427343  ;;  %v2530_v42 = vmul.f32 %v13467_v9, %v2529_v44 }
 0x537   : > { %v2515_v55 = vsel %vm13480_vm3, %v2512_v12, %v2509_v20  ;;  %v2365_v45 = vmul.f32 0.6931472, %v11045_v10  ;;  %v13505_v34 = vpop.eup %11046  ;;  %11056 = vpow2.f32 %v2339_v58  ;;  %v2309_v61 = vmul.f32 1.442695, %v2272_v57 }
 0x538   : > { %v2667_v53 = vadd.f32 %v2515_v55, %v18176_v1  ;;  %v2380_v43 = vsel %vm13489_vm4, %v2377_v7, %v2374_v37  ;;  %v11049_v11 = vpop.eup %11048  ;;  %v2381_v12 = vadd.f32 1.0, %v13505_v34  ;;  %v2396_v7 = vand.u32 2147483647, %v13470_v5 }
 0x539   : > { %v2652_v21 = vadd.f32 %v2380_v43, %v18177_v23  ;;  %v2371_v49 = vsel %vm13495_vm5, %v2368_v3, %v2365_v45  ;;  %v2536_v20 = vmul.f32 0.6931472, %v11049_v11  ;;  %v18179_v17 = vmax.f32 %v13396_v62, 0.0 }
 0x53a   : > { %2747 = vrot.lane.b32.xlu0 %v2667_v53, %s18022_s10  ;;  %11058 = vlog2.f32 %v2381_v12  ;;  %v2651_v10 = vadd.f32 %v2371_v49, %v18178_v35  ;;  %v2239_v53 = vand.u32 2147483647, %v13478_v29  ;;  %vm2532_vm7 = vcmp.lt.f32.partialorder %v2531_v4, 0.0004427343 }
 0x53b   : > { %v11051_v37 = vpop.eup %11050  ;;  %2717 = vrot.lane.b32.xlu1 %v2652_v21, %s18022_s10  ;;  %v2542_v3 = vsel %vm2541_vm6, %v2539_v18, %v2536_v20  ;;  %v2395_v21 = vmul.f32 %v13470_v5, %v2394_v15  ;;  %11060 = vpow2.f32 %v2309_v61  ;;  %v2384_v44 = vmul.f32 -0.5, %v13505_v34 }
 0x53c   : > { %v2527_v63 = vmul.f32 0.6931472, %v11051_v37  ;;  %v11053_v55 = vpop.eup %11052  ;;  %v2670_v60 = vadd.f32 %v2542_v3, %v18179_v17  ;;  %v2271_v58 = vsub.f32 0.0, %v2239_v53  ;;  %v2206_v1 = vmax.f32 %v13407_v48, 0.0 }
 0x53d   : > { %v11055_v9 = vpop.eup %11054  ;;  %v2392_v45 = vmul.f32 0.6931472, %v11053_v55  ;;  %vm2397_vm8 = vcmp.lt.f32.partialorder %v2396_v7, 0.0004427343  ;;  %v13534_v4 = vadd.f32 %v13295_v52, %v13443_v47  ;;  %v18180_v5 = vmax.f32 %v13400_v38, 0.0 }
 0x53e   : > { %2715 = vrot.lane.b32.xlu0 %v2651_v10, %s18022_s10  ;;  %v2533_v46 = vsel %vm2532_vm7, %v2530_v42, %v2527_v63  ;;  %v2552_v43 = vadd.f32 1.0, %v11055_v9  ;;  %v2307_v23 = vmul.f32 1.442695, %v2271_v58  ;;  %v2258_v49 = vand.u32 2147483647, %v13486_v8 }
 0x53f   : > { %2753 = vrot.lane.b32.xlu1 %v2670_v60, %s18022_s10  ;;  %v2669_v57 = vadd.f32 %v2533_v46, %v18180_v5  ;;  %v2398_v11 = vsel %vm2397_vm8, %v2395_v21, %v2392_v45  ;;  %v1982_v15 = vmul.f32 %v13278_v59, %v13435_v50  ;;  %v2385_v20 = vadd.f32 1.0, %v2384_v44 }
 0x540   : > { %v2654_v12 = vadd.f32 %v2398_v11, %v2206_v1  ;;  %11062 = vlog2.f32 %v2552_v43  ;;  %v2387_v18 = vand.u32 2147483647, %v13505_v34  ;;  %v2290_v47 = vsub.f32 0.0, %v2258_v49 }
 0x541   : > { %11064 = vpow2.f32 %v2307_v23  ;;  %v1981_v37 = vmul.f32 %v13278_v59, %v13431_v6  ;;  %v2257_v42 = vand.u32 2147483647, %v13534_v4  ;;  %v13547_v7 = vpop.eup %11056  ;;  %v2555_v61 = vmul.f32 -0.5, %v11055_v9 }
 0x542   : > { %2751 = vrot.lane.b32.xlu0 %v2669_v57, %s18022_s10  ;;  %v2345_v50 = vmul.f32 1.442695, %v2290_v47  ;;  %v2205_v10 = vmax.f32 %v13413_v26, 0.0  ;;  %v2543_v3 = vadd.f32 1.0, %v13547_v7  ;;  %v13552_v53 = vadd.f32 %v13295_v52, %v1982_v15 }
 0x543   : > { %2721 = vrot.lane.b32.xlu1 %v2654_v12, %s18022_s10  ;;  %v2289_v63 = vsub.f32 0.0, %v2257_v42  ;;  %v2386_v59 = vmul.f32 %v13505_v34, %v2385_v20  ;;  %vm2388_vm9 = vcmp.lt.f32.partialorder %v2387_v18, 0.0004427343  ;;  %v2558_v17 = vand.u32 2147483647, %v11055_v9 }
 0x544   : > { %v11059_v35 = vpop.eup %11058  ;;  %11066 = vpow2.f32 %v2345_v50  ;;  %v13556_v21 = vadd.f32 %v13295_v52, %v1981_v37  ;;  %v2556_v45 = vadd.f32 1.0, %v2555_v61  ;;  %v13560_v58 = vadd.f32 %v13295_v52, %v13360_v14 }
 0x545   : > { %v2383_v55 = vmul.f32 0.6931472, %v11059_v35  ;;  %v11061_v6 = vpop.eup %11060  ;;  %11068 = vlog2.f32 %v2543_v3  ;;  %v2343_v60 = vmul.f32 1.442695, %v2289_v63  ;;  %v2546_v43 = vmul.f32 -0.5, %v13547_v7 }
 0x546   : > { %v2408_v44 = vadd.f32 1.0, %v11061_v6  ;;  %v2242_v34 = vand.u32 2147483647, %v13552_v53  ;;  %v2224_v57 = vmax.f32 %v13422_v36, 0.0  ;;  %v2241_v23 = vand.u32 2147483647, %v13556_v21 }
 0x547   : > { %v2389_v46 = vsel %vm2388_vm9, %v2386_v59, %v2383_v55  ;;  %11070 = vpow2.f32 %v2343_v60  ;;  %v2557_v14 = vmul.f32 %v11055_v9, %v2556_v45  ;;  %v2411_v12 = vmul.f32 -0.5, %v11061_v6 }
 0x548   : > { %v2653_v1 = vadd.f32 %v2389_v46, %v2205_v10  ;;  %11072 = vlog2.f32 %v2408_v44  ;;  %v2274_v11 = vsub.f32 0.0, %v2242_v34  ;;  %v2260_v20 = vand.u32 2147483647, %v13560_v58 }
 0x549   : > { %vm2559_vm10 = vcmp.lt.f32.partialorder %v2558_v17, 0.0004427343  ;;  %v2547_v18 = vadd.f32 1.0, %v2546_v43  ;;  %v2273_v61 = vsub.f32 0.0, %v2241_v23  ;;  %v13573_v35 = vadd.f32 %v13295_v52, %v13357_v39 }
 0x54a   : > { %v11063_v5 = vpop.eup %11062  ;;  %2719 = vrot.lane.b32.xlu0 %v2653_v1, %s18022_s10  ;;  %v2313_v37 = vmul.f32 1.442695, %v2274_v11  ;;  %v2292_v50 = vsub.f32 0.0, %v2260_v20  ;;  %v2549_v3 = vand.u32 2147483647, %v13547_v7  ;;  %v2223_v55 = vmax.f32 %v13462_v51, 0.0 }
 0x54b   : > { %v13567_v49 = vpop.eup %11064  ;;  %v2554_v15 = vmul.f32 0.6931472, %v11063_v5  ;;  %v2414_v63 = vand.u32 2147483647, %v11061_v6  ;;  %v2412_v59 = vadd.f32 1.0, %v2411_v12  ;;  %v2548_v46 = vmul.f32 %v13547_v7, %v2547_v18 }
 0x54c   : > { %v2399_v47 = vadd.f32 1.0, %v13567_v49  ;;  %v2311_v17 = vmul.f32 1.442695, %v2273_v61  ;;  %v2208_v39 = vmax.f32 %v13465_v31, 0.0  ;;  %v2349_v44 = vmul.f32 1.442695, %v2292_v50 }
 0x54d   : > { %v2560_v42 = vsel %vm2559_vm10, %v2557_v14, %v2554_v15  ;;  %v2402_v43 = vmul.f32 -0.5, %v13567_v49  ;;  %v2259_v34 = vand.u32 2147483647, %v13573_v35  ;;  %vm2550_vm11 = vcmp.lt.f32.partialorder %v2549_v3, 0.0004427343 }
 0x54e   : > { %v2672_v10 = vadd.f32 %v2560_v42, %v2224_v57  ;;  %11074 = vlog2.f32 %v2399_v47  ;;  %v13576_v9 = vpop.eup %11066  ;;  %vm13587_vm12 = vcmp.lt.f32.partialorder %v2414_v63, 0.0004427343  ;;  %v13593_v7 = vadd.f32 %v13295_v52, %v13319_v30 }
 0x54f   : > { %11076 = vpow2.f32 %v2313_v37  ;;  %v11069_v60 = vpop.eup %11068  ;;  %v2570_v45 = vadd.f32 1.0, %v13576_v9  ;;  %v2413_v15 = vmul.f32 %v11061_v6, %v2412_v59  ;;  %v2405_v14 = vand.u32 2147483647, %v13567_v49 }
 0x550   : > { %2757 = vrot.lane.b32.xlu1 %v2672_v10, %s18022_s10  ;;  %v2545_v1 = vmul.f32 0.6931472, %v11069_v60  ;;  %11078 = vpow2.f32 %v2311_v17  ;;  %v13599_v47 = vadd.f32 %v13295_v52, %v13316_v56  ;;  %v2403_v37 = vadd.f32 1.0, %v2402_v43 }
 0x551   : > { %v13585_v5 = vpop.eup %11070  ;;  %11080 = vlog2.f32 %v2570_v45  ;;  %v2573_v42 = vmul.f32 -0.5, %v13576_v9  ;;  %v2291_v30 = vsub.f32 0.0, %v2259_v34  ;;  %v2244_v61 = vand.u32 2147483647, %v13593_v7 }
 0x552   : > { %v11073_v11 = vpop.eup %11072  ;;  %v2551_v23 = vsel %vm2550_vm11, %v2548_v46, %v2545_v1  ;;  %v2561_v12 = vadd.f32 1.0, %v13585_v5  ;;  %11082 = vpow2.f32 %v2349_v44  ;;  %v2207_v10 = vmax.f32 %v13478_v29, 0.0 }
 0x553   : > { %v2671_v20 = vadd.f32 %v2551_v23, %v2223_v55  ;;  %v2410_v18 = vmul.f32 0.6931472, %v11073_v11  ;;  %v2347_v3 = vmul.f32 1.442695, %v2291_v30  ;;  %vm13607_vm13 = vcmp.lt.f32.partialorder %v2405_v14, 0.0004427343 }
 0x554   : > { %11084 = vlog2.f32 %v2561_v12  ;;  %v2564_v55 = vmul.f32 -0.5, %v13585_v5  ;;  %v2276_v59 = vsub.f32 0.0, %v2244_v61  ;;  %v2243_v17 = vand.u32 2147483647, %v13599_v47 }
 0x555   : > { %2755 = vrot.lane.b32.xlu0 %v2671_v20, %s18022_s10  ;;  %v2416_v6 = vsel %vm13587_vm12, %v2413_v15, %v2410_v18  ;;  %v2574_v45 = vadd.f32 1.0, %v2573_v42  ;;  %11086 = vpow2.f32 %v2347_v3  ;;  %v2576_v44 = vand.u32 2147483647, %v13576_v9 }
 0x556   : > { %v2656_v50 = vadd.f32 %v2416_v6, %v2208_v39  ;;  %v2404_v39 = vmul.f32 %v13567_v49, %v2403_v37  ;;  %v2317_v43 = vmul.f32 1.442695, %v2276_v59  ;;  %v13621_v34 = vadd.f32 %v13295_v52, %v13366_v28 }
 0x557   : > { %v2060_v11 = vsub.f32 0.0, %v13313_v41  ;;  %v2567_v49 = vand.u32 2147483647, %v13585_v5  ;;  %v2275_v15 = vsub.f32 0.0, %v2243_v17  ;;  %v2226_v20 = vmax.f32 %v13486_v8, 0.0 }
 0x558   : > { %v11075_v63 = vpop.eup %11074  ;;  %2725 = vrot.lane.b32.xlu1 %v2656_v50, %s18022_s10  ;;  %v2565_v18 = vadd.f32 1.0, %v2564_v55  ;;  %v2575_v28 = vmul.f32 %v13576_v9, %v2574_v45  ;;  %v2225_v42 = vmax.f32 %v13534_v4, 0.0  ;;  %vm2577_vm14 = vcmp.lt.f32.partialorder %v2576_v44, 0.0004427343 }
 0x559   : > { %v13613_v60 = vpop.eup %11076  ;;  %v2401_v46 = vmul.f32 0.6931472, %v11075_v63  ;;  %v2315_v6 = vmul.f32 1.442695, %v2275_v15  ;;  %v2262_v61 = vand.u32 2147483647, %v13621_v34  ;;  %v13654_v44 = vadd.f32 %v13295_v52, %v13325_v0 }
 0x55a   : > { %v2426_v1 = vadd.f32 1.0, %v13613_v60  ;;  %v13623_v57 = vpop.eup %11078  ;;  %vm13637_vm15 = vcmp.lt.f32.partialorder %v2567_v49, 0.0004427343  ;;  %v2429_v9 = vmul.f32 -0.5, %v13613_v60  ;;  %v2566_v55 = vmul.f32 %v13585_v5, %v2565_v18 }
 0x55b   : > { %v2407_v23 = vsel %vm13607_vm13, %v2404_v39, %v2401_v46  ;;  %v11081_v14 = vpop.eup %11080  ;;  %v2417_v30 = vadd.f32 1.0, %v13623_v57  ;;  %v2420_v17 = vmul.f32 -0.5, %v13623_v57  ;;  %v2294_v46 = vsub.f32 0.0, %v2262_v61 }
 0x55c   : > { %v2655_v12 = vadd.f32 %v2407_v23, %v2207_v10  ;;  %11088 = vlog2.f32 %v2426_v1  ;;  %v2572_v37 = vmul.f32 0.6931472, %v11081_v14  ;;  %v13633_v41 = vpop.eup %11082  ;;  %v13647_v39 = vadd.f32 %v13295_v52, %v13363_v13 }
 0x55d   : > { %11090 = vpow2.f32 %v2317_v43  ;;  %v2588_v59 = vadd.f32 1.0, %v13633_v41  ;;  %v2430_v43 = vadd.f32 1.0, %v2429_v9  ;;  %v2353_v23 = vmul.f32 1.442695, %v2294_v46 }
 0x55e   : > { %2723 = vrot.lane.b32.xlu0 %v2655_v12, %s18022_s10  ;;  %v11085_v50 = vpop.eup %11084  ;;  %v2578_v10 = vsel %vm2577_vm14, %v2575_v28, %v2572_v37  ;;  %11092 = vlog2.f32 %v2417_v30  ;;  %v13658_v49 = vmul.f32 1.442695, %v2060_v11  ;;  %v2432_v13 = vand.u32 2147483647, %v13613_v60 }
 0x55f   : > { %v2674_v63 = vadd.f32 %v2578_v10, %v2226_v20  ;;  %v2563_v56 = vmul.f32 0.6931472, %v11085_v50  ;;  %11094 = vpow2.f32 %v2315_v6  ;;  %v13656_v5 = vpop.eup %11086  ;;  %v2591_v15 = vmul.f32 -0.5, %v13633_v41 }
 0x560   : > { %11096 = vlog2.f32 %v2588_v59  ;;  %v2579_v14 = vadd.f32 1.0, %v13656_v5  ;;  %v2210_v12 = vmax.f32 %v13552_v53, 0.0  ;;  %v2421_v20 = vadd.f32 1.0, %v2420_v17 }
 0x561   : > { %2761 = vrot.lane.b32.xlu1 %v2674_v63, %s18022_s10  ;;  %v2569_v45 = vsel %vm13637_vm15, %v2566_v55, %v2563_v56  ;;  %11098 = vpow2.f32 %v2353_v23  ;;  %v2261_v0 = vand.u32 2147483647, %v13647_v39  ;;  %v2209_v37 = vmax.f32 %v13556_v21, 0.0 }
 0x562   : > { %v2673_v1 = vadd.f32 %v2569_v45, %v2225_v42  ;;  %v2228_v11 = vmax.f32 %v13560_v58, 0.0  ;;  %11100 = vlog2.f32 %v2579_v14  ;;  %v2246_v28 = vand.u32 2147483647, %v13654_v44 }
 0x563   : > { %v2431_v30 = vmul.f32 %v13613_v60, %v2430_v43  ;;  %v2423_v6 = vand.u32 2147483647, %v13623_v57  ;;  %v2293_v61 = vsub.f32 0.0, %v2261_v0  ;;  %vm2433_vm2 = vcmp.lt.f32.partialorder %v2432_v13, 0.0004427343 }
 0x564   : > { %2759 = vrot.lane.b32.xlu0 %v2673_v1, %s18022_s10  ;;  %v2592_v10 = vadd.f32 1.0, %v2591_v15  ;;  %v2227_v3 = vmax.f32 %v13573_v35, 0.0  ;;  %v2278_v9 = vsub.f32 0.0, %v2246_v28  ;;  %v2422_v55 = vmul.f32 %v13623_v57, %v2421_v20 }
 0x565   : > { %v2582_v59 = vmul.f32 -0.5, %v13656_v5  ;;  %v2594_v45 = vand.u32 2147483647, %v13633_v41  ;;  %v2351_v1 = vmul.f32 1.442695, %v2293_v61  ;;  %v13680_v13 = vadd.f32 %v13295_v52, %v13322_v25 }
 0x566   : > { %v11089_v18 = vpop.eup %11088  ;;  %vm2424_vm3 = vcmp.lt.f32.partialorder %v2423_v6, 0.0004427343  ;;  %v2321_v23 = vmul.f32 1.442695, %v2278_v9  ;;  %v2593_v14 = vmul.f32 %v13633_v41, %v2592_v10  ;;  %v13688_v25 = vadd.f32 %v13295_v52, %v13372_v40 }
 0x567   : > { %v2428_v42 = vmul.f32 0.6931472, %v11089_v18  ;;  %v13671_v50 = vpop.eup %11090  ;;  %v2583_v28 = vadd.f32 1.0, %v2582_v59  ;;  %vm2595_vm4 = vcmp.lt.f32.partialorder %v2594_v45, 0.0004427343  ;;  %v13701_v40 = vadd.f32 %v13295_v52, %v13369_v2 }
 0x568   : > { %v11093_v63 = vpop.eup %11092  ;;  %v2444_v17 = vadd.f32 1.0, %v13671_v50 }
 0x569   : > { %v2434_v56 = vsel %vm2433_vm2, %v2431_v30, %v2428_v42  ;;  %v2419_v60 = vmul.f32 0.6931472, %v11093_v63  ;;  %v11095_v43 = vpop.eup %11094  ;;  %v2447_v42 = vmul.f32 -0.5, %v13671_v50 }
 0x56a   : > { %v2658_v46 = vadd.f32 %v2434_v56, %v2210_v12  ;;  %11102 = vlog2.f32 %v2444_v17  ;;  %v11097_v15 = vpop.eup %11096  ;;  %v2585_v12 = vand.u32 2147483647, %v13656_v5  ;;  %v2435_v20 = vadd.f32 1.0, %v11095_v43 }
 0x56b   : > { %v2425_v57 = vsel %vm2424_vm3, %v2422_v55, %v2419_v60  ;;  %v2590_v18 = vmul.f32 0.6931472, %v11097_v15  ;;  %11104 = vpow2.f32 %v2351_v1  ;;  %v13690_v30 = vpop.eup %11098  ;;  %v2438_v6 = vmul.f32 -0.5, %v11095_v43 }
 0x56c   : > { %2729 = vrot.lane.b32.xlu1 %v2658_v46, %s18022_s10  ;;  %v2657_v0 = vadd.f32 %v2425_v57, %v2209_v37  ;;  %11106 = vlog2.f32 %v2435_v20  ;;  %v2245_v37 = vand.u32 2147483647, %v13680_v13  ;;  %v11101_v61 = vpop.eup %11100  ;;  %vm13694_vm5 = vcmp.lt.f32.partialorder %v2585_v12, 0.0004427343 }
 0x56d   : > { %v2596_v41 = vsel %vm2595_vm4, %v2593_v14, %v2590_v18  ;;  %11108 = vpow2.f32 %v2321_v23  ;;  %v2606_v63 = vadd.f32 1.0, %v13690_v30  ;;  %v2581_v56 = vmul.f32 0.6931472, %v11101_v61 }
 0x56e   : > { %2727 = vrot.lane.b32.xlu0 %v2657_v0, %s18022_s10  ;;  %v2676_v10 = vadd.f32 %v2596_v41, %v2228_v11  ;;  %v2584_v55 = vmul.f32 %v13656_v5, %v2583_v28  ;;  %v2277_v59 = vsub.f32 0.0, %v2245_v37  ;;  %v13706_v17 = vadd.f32 %v13295_v52, %v13331_v22 }
 0x56f   : > { %v2448_v11 = vadd.f32 1.0, %v2447_v42  ;;  %v2450_v46 = vand.u32 2147483647, %v13671_v50  ;;  %11110 = vlog2.f32 %v2606_v63  ;;  %v2264_v60 = vand.u32 2147483647, %v13688_v25 }
 0x570   : > { %2765 = vrot.lane.b32.xlu1 %v2676_v10, %s18022_s10  ;;  %v2587_v2 = vsel %vm13694_vm5, %v2584_v55, %v2581_v56  ;;  %v2439_v45 = vadd.f32 1.0, %v2438_v6  ;;  %v2441_v1 = vand.u32 2147483647, %v11095_v43  ;;  %v2319_v23 = vmul.f32 1.442695, %v2277_v59 }
 0x571   : > { %v2675_v5 = vadd.f32 %v2587_v2, %v2227_v3  ;;  %v2609_v15 = vmul.f32 -0.5, %v13690_v30  ;;  %v2296_v57 = vsub.f32 0.0, %v2264_v60  ;;  %v2263_v22 = vand.u32 2147483647, %v13701_v40 }
 0x572   : > { %v2059_v12 = vsub.f32 0.0, %v13381_v16  ;;  %v2212_v20 = vmax.f32 %v13593_v7, 0.0  ;;  %11112 = vpow2.f32 %v2319_v23  ;;  %v2248_v0 = vand.u32 2147483647, %v13706_v17 }
 0x573   : > { %2763 = vrot.lane.b32.xlu0 %v2675_v5, %s18022_s10  ;;  %v2449_v28 = vmul.f32 %v13671_v50, %v2448_v11  ;;  %v2357_v42 = vmul.f32 1.442695, %v2296_v57  ;;  %v2295_v3 = vsub.f32 0.0, %v2263_v22  ;;  %vm2451_vm6 = vcmp.lt.f32.partialorder %v2450_v46, 0.0004427343 }
 0x574   : > { %v11103_v14 = vpop.eup %11102  ;;  %v2211_v6 = vmax.f32 %v13599_v47, 0.0  ;;  %v2440_v37 = vmul.f32 %v11095_v43, %v2439_v45  ;;  %vm13723_vm7 = vcmp.lt.f32.partialorder %v2441_v1, 0.0004427343  ;;  %v2610_v9 = vadd.f32 1.0, %v2609_v15 }
 0x575   : > { %v2446_v18 = vmul.f32 0.6931472, %v11103_v14  ;;  %v13720_v41 = vpop.eup %11104  ;;  %v2280_v56 = vsub.f32 0.0, %v2248_v0  ;;  %11114 = vpow2.f32 %v2357_v42  ;;  %v2355_v11 = vmul.f32 1.442695, %v2295_v3 }
 0x576   : > { %v11107_v61 = vpop.eup %11106  ;;  %v2597_v63 = vadd.f32 1.0, %v13720_v41  ;;  %v2612_v46 = vand.u32 2147483647, %v13690_v30  ;;  %v13734_v60 = vadd.f32 %v13295_v52, %v13328_v24  ;;  %v2044_v2 = vsub.f32 0.0, %v13385_v19 }
 0x577   : > { %v2452_v10 = vsel %vm2451_vm6, %v2449_v28, %v2446_v18  ;;  %v13728_v55 = vpop.eup %11108  ;;  %v2437_v59 = vmul.f32 0.6931472, %v11107_v61  ;;  %v13742_v1 = vadd.f32 %v13295_v52, %v13378_v54  ;;  %v2600_v15 = vmul.f32 -0.5, %v13720_v41 }
 0x578   : > { %v2660_v50 = vadd.f32 %v2452_v10, %v2212_v20  ;;  %11116 = vlog2.f32 %v2597_v63  ;;  %v2462_v43 = vadd.f32 1.0, %v13728_v55  ;;  %v2325_v57 = vmul.f32 1.442695, %v2280_v56 }
 0x579   : > { %v2443_v45 = vsel %vm13723_vm7, %v2440_v37, %v2437_v59  ;;  %11118 = vpow2.f32 %v2355_v11  ;;  %v11111_v23 = vpop.eup %11110  ;;  %v2043_v24 = vsub.f32 0.0, %v13388_v33  ;;  %v2230_v19 = vmax.f32 %v13621_v34, 0.0  ;;  %v11994_v11 = vld [vmem:[%s17941_s0 + $0x3] ss:$0 sm:$0xff] }
 0x57a   : > { %2733 = vrot.lane.b32.xlu1 %v2660_v50, %s18022_s10  ;;  %v2659_v5 = vadd.f32 %v2443_v45, %v2211_v6  ;;  %11120 = vlog2.f32 %v2462_v43  ;;  %v2608_v22 = vmul.f32 0.6931472, %v11111_v23  ;;  %v2611_v14 = vmul.f32 %v13690_v30, %v2610_v9 }
 0x57b   : > { %vm2613_vm8 = vcmp.lt.f32.partialorder %v2612_v46, 0.0004427343  ;;  %11122 = vpow2.f32 %v2325_v57  ;;  %v2247_v54 = vand.u32 2147483647, %v13734_v60  ;;  %v13752_v20 = vadd.f32 %v13295_v52, %v13375_v27 }
 0x57c   : > { %2731 = vrot.lane.b32.xlu0 %v2659_v5, %s18022_s10  ;;  %v13754_v0 = vpop.eup %11112  ;;  %v13756_v18 = vmul.f32 1.442695, %v2059_v12  ;;  %v2614_v33 = vsel %vm2613_vm8, %v2611_v14, %v2608_v22  ;;  %v2465_v28 = vmul.f32 -0.5, %v13728_v55  ;;  %v2266_v42 = vand.u32 2147483647, %v13742_v1 }
 0x57d   : > { %v2678_v30 = vadd.f32 %v2614_v33, %v2230_v19  ;;  %v2601_v3 = vadd.f32 1.0, %v2600_v15  ;;  %v2603_v6 = vand.u32 2147483647, %v13720_v41  ;;  %v2453_v37 = vadd.f32 1.0, %v13754_v0 }
 0x57e   : > { %v13762_v16 = vmul.f32 1.442695, %v2044_v2  ;;  %v13764_v61 = vmul.f32 1.442695, %v2043_v24  ;;  %v2062_v52 = vsub.f32 0.0, %v13396_v62  ;;  %v2279_v27 = vsub.f32 0.0, %v2247_v54 }
 0x57f   : > { %2769 = vrot.lane.b32.xlu1 %v2678_v30, %s18022_s10  ;;  %v2468_v12 = vand.u32 2147483647, %v13728_v55  ;;  %11124 = vlog2.f32 %v2453_v37  ;;  %v2298_v10 = vsub.f32 0.0, %v2266_v42  ;;  %v2265_v9 = vand.u32 2147483647, %v13752_v20  ;;  %v13770_v63 = vpop.eup %11114 }
 0x580   : > { %v2229_v56 = vmax.f32 %v13647_v39, 0.0  ;;  %v2466_v50 = vadd.f32 1.0, %v2465_v28  ;;  %v2323_v59 = vmul.f32 1.442695, %v2279_v27  ;;  %v13777_v62 = vadd.f32 %v11994_v11, %v13346_v32 }
 0x581   : > { %v2602_v43 = vmul.f32 %v13720_v41, %v2601_v3  ;;  %vm13780_vm9 = vcmp.lt.f32.partialorder %v2603_v6, 0.0004427343  ;;  %v2214_v45 = vmax.f32 %v13654_v44, 0.0  ;;  %v2624_v23 = vadd.f32 1.0, %v13770_v63 }
 0x582   : > { %v11117_v46 = vpop.eup %11116  ;;  %v2456_v57 = vmul.f32 -0.5, %v13754_v0  ;;  %11126 = vpow2.f32 %v2323_v59  ;;  %v2297_v24 = vsub.f32 0.0, %v2265_v9  ;;  %vm13789_vm10 = vcmp.lt.f32.partialorder %v2468_v12, 0.0004427343 }
 0x583   : > { %v13786_v5 = vpop.eup %11118  ;;  %v2599_v15 = vmul.f32 0.6931472, %v11117_v46  ;;  %11128 = vlog2.f32 %v2624_v23  ;;  %v2361_v22 = vmul.f32 1.442695, %v2298_v10  ;;  %v2467_v33 = vmul.f32 %v13728_v55, %v2466_v50  ;;  %v18195_v46 = vld [vmem:[#allocation41_spill] sm:$0xff] }
 0x584   : > { %v11121_v32 = vpop.eup %11120  ;;  %v2615_v41 = vadd.f32 1.0, %v13786_v5  ;;  %v2250_v28 = vand.u32 2147483647, %v13777_v62  ;;  %v2459_v3 = vand.u32 2147483647, %v13754_v0  ;;  %v2457_v27 = vadd.f32 1.0, %v2456_v57 }
 0x585   : > { %v2605_v14 = vsel %vm13780_vm9, %v2602_v43, %v2599_v15  ;;  %v2464_v54 = vmul.f32 0.6931472, %v11121_v32  ;;  %v13798_v42 = vpop.eup %11122  ;;  %v2359_v6 = vmul.f32 1.442695, %v2297_v24  ;;  %v2627_v12 = vmul.f32 -0.5, %v13770_v63 }
 0x586   : > { %v2677_v30 = vadd.f32 %v2605_v14, %v2229_v56  ;;  %11130 = vlog2.f32 %v2615_v41  ;;  %v2480_v10 = vadd.f32 1.0, %v13798_v42  ;;  %v2061_v9 = vsub.f32 0.0, %v13400_v38 }
 0x587   : > { %v2470_v37 = vsel %vm13789_vm10, %v2467_v33, %v2464_v54  ;;  %v2618_v50 = vmul.f32 -0.5, %v13786_v5  ;;  %11132 = vpow2.f32 %v2361_v22  ;;  %v13808_v56 = vmul.f32 1.442695, %v2062_v52 }
 0x588   : > { %2767 = vrot.lane.b32.xlu0 %v2677_v30, %s18022_s10  ;;  %v2662_v55 = vadd.f32 %v2470_v37, %v2214_v45  ;;  %11134 = vlog2.f32 %v2480_v10  ;;  %v2282_v59 = vsub.f32 0.0, %v2250_v28  ;;  %v13811_v43 = vadd.f32 %v11994_v11, %v18195_v46 }
 0x589   : > { %v11125_v2 = vpop.eup %11124  ;;  %v2213_v23 = vmax.f32 %v13680_v13, 0.0  ;;  %vm13815_vm11 = vcmp.lt.f32.partialorder %v2459_v3, 0.0004427343  ;;  %v2630_v45 = vand.u32 2147483647, %v13770_v63  ;;  %11136 = vpow2.f32 %v2359_v6 }
 0x58a   : > { %2737 = vrot.lane.b32.xlu1 %v2662_v55, %s18022_s10  ;;  %v2455_v57 = vmul.f32 0.6931472, %v11125_v2  ;;  %v2458_v52 = vmul.f32 %v13754_v0, %v2457_v27  ;;  %v2628_v24 = vadd.f32 1.0, %v2627_v12  ;;  %v2329_v32 = vmul.f32 1.442695, %v2282_v59 }
 0x58b   : > { %v2619_v19 = vadd.f32 1.0, %v2618_v50  ;;  %v2483_v11 = vmul.f32 -0.5, %v13798_v42  ;;  %v2249_v41 = vand.u32 2147483647, %v13811_v43  ;;  %11138 = vpow2.f32 %v13658_v49 }
 0x58c   : > { %v13824_v22 = vpop.eup %11126  ;;  %v2046_v14 = vsub.f32 0.0, %v13407_v48  ;;  %v2461_v54 = vsel %vm13815_vm11, %v2458_v52, %v2455_v57  ;;  %v2232_v33 = vmax.f32 %v13688_v25, 0.0  ;;  %11140 = vpow2.f32 %v2329_v32 }
 0x58d   : > { %v11129_v0 = vpop.eup %11128  ;;  %v2661_v28 = vadd.f32 %v2461_v54, %v2213_v23  ;;  %vm13830_vm12 = vcmp.lt.f32.partialorder %v2630_v45, 0.0004427343  ;;  %v2621_v3 = vand.u32 2147483647, %v13786_v5  ;;  %v2471_v49 = vadd.f32 1.0, %v13824_v22 }
 0x58e   : > { %v2626_v6 = vmul.f32 0.6931472, %v11129_v0  ;;  %v2629_v37 = vmul.f32 %v13770_v63, %v2628_v24  ;;  %v2281_v48 = vsub.f32 0.0, %v2249_v41  ;;  %11142 = vpow2.f32 %v13756_v18 }
 0x58f   : > { %2735 = vrot.lane.b32.xlu0 %v2661_v28, %s18022_s10  ;;  %v2620_v12 = vmul.f32 %v13786_v5, %v2619_v19  ;;  %v2484_v10 = vadd.f32 1.0, %v2483_v11  ;;  %v2486_v55 = vand.u32 2147483647, %v13798_v42  ;;  %11144 = vlog2.f32 %v2471_v49 }
 0x590   : > { %v11131_v27 = vpop.eup %11130  ;;  %v2632_v50 = vsel %vm13830_vm12, %v2629_v37, %v2626_v6  ;;  %v2327_v46 = vmul.f32 1.442695, %v2281_v48  ;;  %11146 = vpow2.f32 %v13762_v16  ;;  %v2231_v18 = vmax.f32 %v13701_v40, 0.0 }
 0x591   : > { %v2617_v59 = vmul.f32 0.6931472, %v11131_v27  ;;  %v13844_v63 = vpop.eup %11132  ;;  %v2680_v2 = vadd.f32 %v2632_v50, %v2232_v33  ;;  %vm2622_vm13 = vcmp.lt.f32.partialorder %v2621_v3, 0.0004427343  ;;  %11148 = vpow2.f32 %v13764_v61 }
 0x592   : > { %v11135_v5 = vpop.eup %11134  ;;  %v2045_v23 = vsub.f32 0.0, %v13413_v26  ;;  %v2474_v45 = vmul.f32 -0.5, %v13824_v22  ;;  %v2642_v57 = vadd.f32 1.0, %v13844_v63  ;;  %v2485_v32 = vmul.f32 %v13798_v42, %v2484_v10 }
 0x593   : > { %v2623_v15 = vsel %vm2622_vm13, %v2620_v12, %v2617_v59  ;;  %v13851_v52 = vpop.eup %11136  ;;  %2773 = vrot.lane.b32.xlu1 %v2680_v2, %s18022_s10  ;;  %v2482_v24 = vmul.f32 0.6931472, %v11135_v5  ;;  %11150 = vpow2.f32 %v2327_v46  ;;  %v2216_v19 = vmax.f32 %v13706_v17, 0.0 }
 0x594   : > { %v2679_v16 = vadd.f32 %v2623_v15, %v2231_v18  ;;  %vm2487_vm14 = vcmp.lt.f32.partialorder %v2486_v55, 0.0004427343  ;;  %11152 = vlog2.f32 %v2642_v57  ;;  %v2633_v26 = vadd.f32 1.0, %v13851_v52 }
 0x595   : > { %v11139_v61 = vpop.eup %11138  ;;  %v2488_v11 = vsel %vm2487_vm14, %v2485_v32, %v2482_v24  ;;  %11154 = vpow2.f32 %v13808_v56  ;;  %v2111_v54 = vmul.f32 1.442695, %v2061_v9  ;;  %v2475_v42 = vadd.f32 1.0, %v2474_v45 }
 0x596   : > { %2771 = vrot.lane.b32.xlu0 %v2679_v16, %s18022_s10  ;;  %v13859_v41 = vpop.eup %11140  ;;  %v2664_v33 = vadd.f32 %v2488_v11, %v2216_v19  ;;  %11156 = vlog2.f32 %v2633_v26  ;;  %v2477_v0 = vand.u32 2147483647, %v13824_v22  ;;  %v2645_v28 = vmul.f32 -0.5, %v13844_v63 }
 0x597   : > { %v2498_v30 = vadd.f32 1.0, %v13859_v41  ;;  %v2156_v3 = vadd.f32 1.0, %v11139_v61  ;;  %v2081_v6 = vmul.f32 1.442695, %v2046_v14  ;;  %v2079_v37 = vmul.f32 1.442695, %v2045_v23 }
 0x598   : > { %v11143_v49 = vpop.eup %11142  ;;  %v2064_v56 = vsub.f32 0.0, %v13422_v36  ;;  %2741 = vrot.lane.b32.xlu1 %v2664_v33, %s18022_s10  ;;  %v2063_v38 = vsub.f32 0.0, %v13462_v51  ;;  %v2636_v9 = vmul.f32 -0.5, %v13851_v52  ;;  %v2215_v10 = vmax.f32 %v13734_v60, 0.0 }
 0x599   : > { %v11145_v48 = vpop.eup %11144  ;;  %11158 = vlog2.f32 %v2498_v30  ;;  %v2155_v27 = vadd.f32 1.0, %v11143_v49  ;;  %v2476_v50 = vmul.f32 %v13824_v22, %v2475_v42  ;;  %vm2478_vm15 = vcmp.lt.f32.partialorder %v2477_v0, 0.0004427343 }
 0x59a   : > { %v11147_v12 = vpop.eup %11146  ;;  %v2473_v55 = vmul.f32 0.6931472, %v11145_v48  ;;  %11160 = vpow2.f32 %v2111_v54  ;;  %v2646_v59 = vadd.f32 1.0, %v2645_v28  ;;  %v2648_v2 = vand.u32 2147483647, %v13844_v63 }
 0x59b   : > { %v11149_v14 = vpop.eup %11148  ;;  %11162 = vrcp.f32 %v2156_v3  ;;  %v2140_v36 = vadd.f32 1.0, %v11147_v12  ;;  %v2501_v51 = vmul.f32 -0.5, %v13859_v41  ;;  %v2234_v23 = vmax.f32 %v13742_v1, 0.0 }
 0x59c   : > { %v2479_v46 = vsel %vm2478_vm15, %v2476_v50, %v2473_v55  ;;  %11164 = vpow2.f32 %v2081_v6  ;;  %v2637_v15 = vadd.f32 1.0, %v2636_v9  ;;  %v2639_v45 = vand.u32 2147483647, %v13851_v52 }
 0x59d   : > { %v13874_v18 = vpop.eup %11150  ;;  %v2663_v5 = vadd.f32 %v2479_v46, %v2215_v10  ;;  %11166 = vrcp.f32 %v2155_v27  ;;  %v2139_v16 = vadd.f32 1.0, %v11149_v14  ;;  %v2647_v19 = vmul.f32 %v13844_v63, %v2646_v59 }
 0x59e   : > { %v11153_v22 = vpop.eup %11152  ;;  %v2489_v57 = vadd.f32 1.0, %v13874_v18  ;;  %11168 = vrcp.f32 %v2140_v36  ;;  %v2233_v26 = vmax.f32 %v13752_v20, 0.0  ;;  %vm2649_vm2 = vcmp.lt.f32.partialorder %v2648_v2, 0.0004427343 }
 0x59f   : > { %v11155_v24 = vpop.eup %11154  ;;  %2739 = vrot.lane.b32.xlu0 %v2663_v5, %s18022_s10  ;;  %v2644_v32 = vmul.f32 0.6931472, %v11153_v22  ;;  %11170 = vpow2.f32 %v2079_v37  ;;  %v2502_v11 = vadd.f32 1.0, %v2501_v51  ;;  %v2504_v54 = vand.u32 2147483647, %v13859_v41  ;;  %v515_v51 = vld [vmem:[%s13890_s21 + $0x8] sm:$0xff] }
 0x5a0   : > { %v11157_v61 = vpop.eup %11156  ;;  %11172 = vlog2.f32 %v2489_v57  ;;  %v2638_v0 = vmul.f32 %v13851_v52, %v2637_v15  ;;  %v2158_v28 = vadd.f32 1.0, %v11155_v24  ;;  %vm2640_vm3 = vcmp.lt.f32.partialorder %v2639_v45, 0.0004427343  ;;  %2907 = vmatprep.mubr.f32.mxu0 %v515_v51 }
 0x5a1   : > { %v2650_v33 = vsel %vm2649_vm2, %v2647_v19, %v2644_v32  ;;  %v2635_v42 = vmul.f32 0.6931472, %v11157_v61  ;;  %v2492_v3 = vmul.f32 -0.5, %v13874_v18  ;;  %11174 = vrcp.f32 %v2139_v16 }
 0x5a2   : > { %v2682_v30 = vadd.f32 %v2650_v33, %v2234_v23  ;;  %v2117_v48 = vmul.f32 1.442695, %v2064_v56  ;;  %v2503_v27 = vmul.f32 %v13859_v41, %v2502_v11  ;;  %v2218_v10 = vmax.f32 %v13777_v62, 0.0 }
 0x5a3   : > { %v11159_v63 = vpop.eup %11158  ;;  %v2641_v49 = vsel %vm2640_vm3, %v2638_v0, %v2635_v42  ;;  %vm2505_vm4 = vcmp.lt.f32.partialorder %v2504_v54, 0.0004427343  ;;  %11176 = vrcp.f32 %v2158_v28  ;;  %v2115_v14 = vmul.f32 1.442695, %v2063_v38 }
 0x5a4   : > { %v11161_v37 = vpop.eup %11160  ;;  %2777 = vrot.lane.b32.xlu1 %v2682_v30, %s18022_s10  ;;  %v2681_v52 = vadd.f32 %v2641_v49, %v2233_v26  ;;  %v2500_v9 = vmul.f32 0.6931472, %v11159_v63  ;;  %v2493_v36 = vadd.f32 1.0, %v2492_v3  ;;  %v2048_v41 = vsub.f32 0.0, %v13465_v31 }
 0x5a5   : > { %v2750_v6 = vpop.permute.xlu1 %2749  ;;  %v11163_v12 = vpop.eup %11162  ;;  %v2157_v55 = vadd.f32 1.0, %v11161_v37  ;;  %v2495_v23 = vand.u32 2147483647, %v13874_v18  ;;  %v2047_v24 = vsub.f32 0.0, %v13478_v29  ;;  %v2217_v33 = vmax.f32 %v13811_v43, 0.0 }
 0x5a6   : > { %v11165_v50 = vpop.eup %11164  ;;  %2775 = vrot.lane.b32.xlu0 %v2681_v52, %s18022_s10  ;;  %v2506_v59 = vsel %vm2505_vm4, %v2503_v27, %v2500_v9  ;;  %v2828_v2 = vmul.f32 %v11163_v12, %v2750_v6  ;;  %v2494_v32 = vmul.f32 %v13874_v18, %v2493_v36  ;;  %v2085_v54 = vmul.f32 1.442695, %v2048_v41 }
 0x5a7   : > { %v11167_v56 = vpop.eup %11166  ;;  %v2666_v46 = vadd.f32 %v2506_v59, %v2218_v10  ;;  %11178 = vrcp.f32 %v2157_v55  ;;  %v2142_v57 = vadd.f32 1.0, %v11165_v50  ;;  %vm2496_vm5 = vcmp.lt.f32.partialorder %v2495_v23, 0.0004427343 }
 0x5a8   : > { %v11169_v5 = vpop.eup %11168  ;;  %11180 = vpow2.f32 %v2117_v48  ;;  %v2083_v3 = vmul.f32 1.442695, %v2047_v24  ;;  %v2066_v18 = vsub.f32 0.0, %v13486_v8  ;;  %v2065_v6 = vsub.f32 0.0, %v13534_v4 }
 0x5a9   : > { %v11171_v22 = vpop.eup %11170  ;;  %2745 = vrot.lane.b32.xlu1 %v2666_v46, %s18022_s10  ;;  %11182 = vpow2.f32 %v2115_v14  ;;  %v2050_v4 = vsub.f32 0.0, %v13552_v53  ;;  %v2067_v24 = vsub.f32 0.0, %v13573_v35  ;;  %v2051_v35 = vsub.f32 0.0, %v13599_v47 }
 0x5aa   : > { %v11173_v16 = vpop.eup %11172  ;;  %v2141_v61 = vadd.f32 1.0, %v11171_v22  ;;  %11184 = vrcp.f32 %v2142_v57  ;;  %v2121_v12 = vmul.f32 1.442695, %v2066_v18  ;;  %v2119_v55 = vmul.f32 1.442695, %v2065_v6 }
 0x5ab   : > { %v2491_v19 = vmul.f32 0.6931472, %v11173_v16  ;;  %v11175_v11 = vpop.eup %11174  ;;  %v2089_v22 = vmul.f32 1.442695, %v2050_v4  ;;  %v2068_v57 = vsub.f32 0.0, %v13560_v58  ;;  %v2052_v58 = vsub.f32 0.0, %v13593_v7 }
 0x5ac   : > { %v2748_v15 = vpop.permute.xlu0 %2747  ;;  %11186 = vrcp.f32 %v2141_v61  ;;  %vm12309_vm6 = vmmov 0  }
 0x5ad   : > { %v2827_v38 = vmul.f32 %v11167_v56, %v2748_v15  ;;  %v2718_v45 = vpop.permute.xlu1 %2717  ;;  %v2497_v0 = vsel %vm2496_vm5, %v2494_v32, %v2491_v19  ;;  %v11177_v63 = vpop.eup %11176  ;;  %11188 = vpow2.f32 %v2085_v54 }
 0x5ae   : > { %v2812_v31 = vmul.f32 %v11169_v5, %v2718_v45  ;;  %v2665_v29 = vadd.f32 %v2497_v0, %v2217_v33  ;;  %11190 = vpow2.f32 %v2083_v3  ;;  %v2049_v5 = vsub.f32 0.0, %v13556_v21 }
 0x5af   : > { %v10269_v26 = vpack.c.bf16 %v2828_v2, %v2827_v38  ;;  %11192 = vpow2.f32 %v2121_v12  ;;  %v2123_v33 = vmul.f32 1.442695, %v2067_v24 }
 0x5b0   : > { %v2716_v42 = vpop.permute.xlu0 %2715  ;;  %2743 = vrot.lane.b32.xlu0 %v2665_v29, %s18022_s10  ;;  %11194 = vpow2.f32 %v2119_v55  ;;  %v2087_v45 = vmul.f32 1.442695, %v2049_v5 }
 0x5b1   : > { %v2811_v28 = vmul.f32 %v11175_v11, %v2716_v42  ;;  %10270 = vmatprep.subr.bf16.mxu0 %v10269_v26  ;;  %v2754_v30 = vpop.permute.xlu1 %2753  ;;  %v11179_v52 = vpop.eup %11178  ;;  %v2125_v26 = vmul.f32 1.442695, %v2068_v57 }
 0x5b2   : > { %v2830_v37 = vmul.f32 %v11177_v63, %v2754_v30  ;;  %v11181_v9 = vpop.eup %11180 }
 0x5b3   : > { %v10271_v49 = vpack.c.bf16 %v2812_v31, %v2811_v28  ;;  %v11183_v10 = vpop.eup %11182  ;;  %v2160_v8 = vadd.f32 1.0, %v11181_v9 }
 0x5b4   : > { %v2752_v48 = vpop.permute.xlu0 %2751  ;;  %v11185_v59 = vpop.eup %11184  ;;  %v2159_v36 = vadd.f32 1.0, %v11183_v10 }
 0x5b5   : > { %10272 = vmatpush3.bf16.msra.mxu0 %v10271_v49  ;;  %v2829_v27 = vmul.f32 %v11179_v52, %v2752_v48  ;;  %v2722_v14 = vpop.permute.xlu1 %2721  ;;  %11196 = vrcp.f32 %v2160_v8  ;;  %v2093_v49 = vmul.f32 1.442695, %v2052_v58  ;;  %v2091_v48 = vmul.f32 1.442695, %v2051_v35 }
 0x5b6   : > { %v2814_v56 = vmul.f32 %v11185_v59, %v2722_v14  ;;  %v11187_v46 = vpop.eup %11186  ;;  %11198 = vrcp.f32 %v2159_v36  ;;  %v2070_v8 = vsub.f32 0.0, %v13621_v34 }
 0x5b7   : > { %v10273_v50 = vpack.c.bf16 %v2830_v37, %v2829_v27  ;;  %v11189_v51 = vpop.eup %11188  ;;  %11200 = vpow2.f32 %v2089_v22 }
 0x5b8   : > { %v11191_v23 = vpop.eup %11190  ;;  %v2144_v38 = vadd.f32 1.0, %v11189_v51  ;;  %v2129_v51 = vmul.f32 1.442695, %v2070_v8 }
 0x5b9   : > { %10274 = vmatprep.subr.bf16.mxu0 %v10273_v50  ;;  %v2143_v16 = vadd.f32 1.0, %v11191_v23  ;;  %v11193_v53 = vpop.eup %11192 }
 0x5ba   : > { %11202 = vrcp.f32 %v2144_v38  ;;  %v11195_v19 = vpop.eup %11194  ;;  %v2162_v61 = vadd.f32 1.0, %v11193_v53  ;;  %v2054_v38 = vsub.f32 0.0, %v13654_v44  ;;  %v2071_v44 = vsub.f32 0.0, %v13701_v40 }
 0x5bb   : > { %11204 = vpow2.f32 %v2087_v45  ;;  %v2161_v0 = vadd.f32 1.0, %v11195_v19 }
 0x5bc   : > { %v2720_v2 = vpop.permute.xlu0 %2719  ;;  %11206 = vrcp.f32 %v2143_v16  ;;  %v2053_v16 = vsub.f32 0.0, %v13680_v13  ;;  %v2131_v35 = vmul.f32 1.442695, %v2071_v44 }
 0x5bd   : > { %v2813_v41 = vmul.f32 %v11187_v46, %v2720_v2  ;;  %11208 = vpow2.f32 %v2125_v26  ;;  %v2072_v26 = vsub.f32 0.0, %v13688_v25 }
 0x5be   : > { %11210 = vrcp.f32 %v2162_v61 }
 0x5bf   : > { %v10275_v15 = vpack.c.bf16 %v2814_v56, %v2813_v41  ;;  %v11197_v21 = vpop.eup %11196  ;;  %11212 = vpow2.f32 %v2123_v33  ;;  %v2069_v56 = vsub.f32 0.0, %v13647_v39 }
 0x5c0   : > { %v11199_v11 = vpop.eup %11198  ;;  %11214 = vrcp.f32 %v2161_v0  ;;  %v2133_v0 = vmul.f32 1.442695, %v2072_v26 }
 0x5c1   : > { %10276 = vmatpush3.bf16.msra.mxu0 %v10275_v15  ;;  %v11201_v3 = vpop.eup %11200  ;;  %11216 = vpow2.f32 %v2093_v49  ;;  %v2127_v41 = vmul.f32 1.442695, %v2069_v56 }
 0x5c2   : > { %v2758_v32 = vpop.permute.xlu1 %2757  ;;  %v2146_v9 = vadd.f32 1.0, %v11201_v3  ;;  %11218 = vpow2.f32 %v2091_v48 }
 0x5c3   : > { %v2832_v31 = vmul.f32 %v11197_v21, %v2758_v32  ;;  %v2097_v32 = vmul.f32 1.442695, %v2054_v38 }
 0x5c4   : > { %v11203_v29 = vpop.eup %11202  ;;  %11220 = vrcp.f32 %v2146_v9 }
 0x5c5   : > { %v11205_v63 = vpop.eup %11204 }
 0x5c6   : > { %v11207_v6 = vpop.eup %11206  ;;  %v2145_v7 = vadd.f32 1.0, %v11205_v63  ;;  %v2056_v63 = vsub.f32 0.0, %v13706_v17 }
 0x5c7   : > { %v2756_v54 = vpop.permute.xlu0 %2755  ;;  %v11209_v12 = vpop.eup %11208 }
 0x5c8   : > { %v2831_v42 = vmul.f32 %v11199_v11, %v2756_v54  ;;  %v11211_v47 = vpop.eup %11210  ;;  %11222 = vrcp.f32 %v2145_v7  ;;  %v2164_v4 = vadd.f32 1.0, %v11209_v12  ;;  %v2074_v12 = vsub.f32 0.0, %v13742_v1 }
 0x5c9   : > { %v11213_v55 = vpop.eup %11212 }
 0x5ca   : > { %v10277_v28 = vpack.c.bf16 %v2832_v31, %v2831_v42  ;;  %v2726_v30 = vpop.permute.xlu1 %2725  ;;  %v11215_v14 = vpop.eup %11214  ;;  %v2163_v2 = vadd.f32 1.0, %v11213_v55  ;;  %11224 = vrcp.f32 %v2164_v4  ;;  %v2095_v31 = vmul.f32 1.442695, %v2053_v16 }
 0x5cb   : > { %v2816_v18 = vmul.f32 %v11203_v29, %v2726_v30  ;;  %v11217_v5 = vpop.eup %11216  ;;  %v2073_v55 = vsub.f32 0.0, %v13752_v20 }
 0x5cc   : > { %10278 = vmatprep.subr.bf16.mxu0 %v10277_v28  ;;  %v11219_v23 = vpop.eup %11218  ;;  %11226 = vrcp.f32 %v2163_v2  ;;  %v2148_v45 = vadd.f32 1.0, %v11217_v5 }
 0x5cd   : > { %11228 = vpow2.f32 %v2129_v51  ;;  %v2147_v24 = vadd.f32 1.0, %v11219_v23  ;;  %v2135_v4 = vmul.f32 1.442695, %v2073_v55  ;;  %v2058_v51 = vsub.f32 0.0, %v13777_v62  ;;  %v514_v55 = vld [vmem:[%s13890_s21] sm:$0xff] }
 0x5ce   : > { %v11221_v22 = vpop.eup %11220  ;;  %11230 = vpow2.f32 %v2127_v41  ;;  %v2057_v23 = vsub.f32 0.0, %v13811_v43 }
 0x5cf   : > { %11232 = vrcp.f32 %v2148_v45 }
 0x5d0   : > { %v2724_v37 = vpop.permute.xlu0 %2723  ;;  %11234 = vrcp.f32 %v2147_v24 }
 0x5d1   : > { %v2815_v52 = vmul.f32 %v11207_v6, %v2724_v37  ;;  %11236 = vpow2.f32 %v2097_v32  ;;  %v2055_v37 = vsub.f32 0.0, %v13734_v60  ;;  %v2137_v60 = vmul.f32 1.442695, %v2074_v12 }
 0x5d2   : > { %v11223_v57 = vpop.eup %11222  ;;  %11238 = vpow2.f32 %v2095_v31 }
 0x5d3   : > { %v10279_v27 = vpack.c.bf16 %v2816_v18, %v2815_v52  ;;  %v2762_v10 = vpop.permute.xlu1 %2761  ;;  %11240 = vpow2.f32 %v2133_v0 }
 0x5d4   : > { %v2834_v50 = vmul.f32 %v11211_v47, %v2762_v10  ;;  %v11225_v61 = vpop.eup %11224  ;;  %11242 = vpow2.f32 %v2131_v35  ;;  %v2099_v10 = vmul.f32 1.442695, %v2055_v37 }
 0x5d5   : > { %10280 = vmatpush3.bf16.msra.mxu0 %v10279_v27  ;;  %v2101_v27 = vmul.f32 1.442695, %v2056_v63 }
 0x5d6   : > { %v2760_v59 = vpop.permute.xlu0 %2759  ;;  %v11227_v54 = vpop.eup %11226 }
 0x5d7   : > { %v2833_v36 = vmul.f32 %v11215_v14, %v2760_v59  ;;  %v11229_v33 = vpop.eup %11228 }
 0x5d8   : > { %v11231_v58 = vpop.eup %11230  ;;  %v2166_v30 = vadd.f32 1.0, %v11229_v33 }
 0x5d9   : > { %v10281_v46 = vpack.c.bf16 %v2834_v50, %v2833_v36  ;;  %v11233_v25 = vpop.eup %11232  ;;  %v2165_v29 = vadd.f32 1.0, %v11231_v58 }
 0x5da   : > { %v11235_v18 = vpop.eup %11234  ;;  %11244 = vrcp.f32 %v2166_v30 }
 0x5db   : > { %10282 = vmatprep.subr.bf16.mxu0 %v10281_v46  ;;  %v11237_v6 = vpop.eup %11236  ;;  %11246 = vrcp.f32 %v2165_v29 }
 0x5dc   : > { %v11239_v52 = vpop.eup %11238  ;;  %v2150_v7 = vadd.f32 1.0, %v11237_v6  ;;  %11248 = vpow2.f32 %v2101_v27 }
 0x5dd   : > { %v2149_v47 = vadd.f32 1.0, %v11239_v52  ;;  %v11241_v17 = vpop.eup %11240 }
 0x5de   : > { %v2730_v15 = vpop.permute.xlu1 %2729  ;;  %11250 = vrcp.f32 %v2150_v7  ;;  %v11243_v14 = vpop.eup %11242  ;;  %v2168_v59 = vadd.f32 1.0, %v11241_v17 }
 0x5df   : > { %v2818_v34 = vmul.f32 %v11221_v22, %v2730_v15  ;;  %11252 = vpow2.f32 %v2099_v10  ;;  %v2167_v1 = vadd.f32 1.0, %v11243_v14  ;;  %v18200_v14 = vmov 0.0|0.0  }
 0x5e0   : > { %v2728_v39 = vpop.permute.xlu0 %2727  ;;  %11254 = vrcp.f32 %v2149_v47 }
 0x5e1   : > { %v2817_v53 = vmul.f32 %v11223_v57, %v2728_v39  ;;  %11256 = vpow2.f32 %v2137_v60  ;;  %v516_v60 = vld [vmem:[%s13890_s21 + $0x10] sm:$0xff] }
 0x5e2   : > { %v2766_v21 = vpop.permute.xlu1 %2765  ;;  %11258 = vrcp.f32 %v2168_v59  ;;  %v518_v59 = vld [vmem:[%s13890_s21 + $0x20] sm:$0xff] }
 0x5e3   : > { %v10283_v19 = vpack.c.bf16 %v2818_v34, %v2817_v53  ;;  %v2836_v11 = vmul.f32 %v11225_v61, %v2766_v21  ;;  %11260 = vpow2.f32 %v2135_v4  ;;  %v2105_v34 = vmul.f32 1.442695, %v2058_v51  ;;  %v520_v4 = vld [vmem:[%s13890_s21 + $0x30] sm:$0xff]  ;;  %v527_v51 = vld [vmem:[%s13890_s21 + $0x68] sm:$0xff] }
 0x5e4   : > { %v11245_v8 = vpop.eup %11244  ;;  %11262 = vrcp.f32 %v2167_v1  ;;  %v2103_v53 = vmul.f32 1.442695, %v2057_v23  ;;  %v525_v1 = vld [vmem:[%s13890_s21 + $0x58] sm:$0xff]  ;;  %v531_v23 = vld [vmem:[%s13890_s21 + $0x88] sm:$0xff] }
 0x5e5   : > { %10284 = vmatpush3.bf16.msra.mxu0 %v10283_v19  ;;  %v2764_v13 = vpop.permute.xlu0 %2763  ;;  %v11247_v56 = vpop.eup %11246  ;;  %11264 = vpow2.f32 %v2105_v34  ;;  %v535_v34 = vld [vmem:[%s13890_s21 + $0xa8] sm:$0xff] }
 0x5e6   : > { %v2835_v42 = vmul.f32 %v11227_v54, %v2764_v13  ;;  %v11249_v41 = vpop.eup %11248 }
 0x5e7   : > { %v2152_v16 = vadd.f32 1.0, %v11249_v41  ;;  %v528_v41 = vld [vmem:[%s13890_s21 + $0x70] sm:$0xff] }
 0x5e8   : > { %v10285_v28 = vpack.c.bf16 %v2836_v11, %v2835_v42  ;;  %v11251_v15 = vpop.eup %11250 }
 0x5e9   : > { %v11253_v22 = vpop.eup %11252  ;;  %11266 = vrcp.f32 %v2152_v16  ;;  %v536_v16 = vld [vmem:[%s13890_s21 + $0xb0] sm:$0xff] }
 0x5ea   : > { %10286 = vmatprep.subr.bf16.mxu0 %v10285_v28  ;;  %v11255_v45 = vpop.eup %11254  ;;  %v2151_v24 = vadd.f32 1.0, %v11253_v22  ;;  %11268 = vpow2.f32 %v2103_v53  ;;  %v533_v22 = vld [vmem:[%s13890_s21 + $0x98] sm:$0xff]  ;;  %v538_v53 = vld [vmem:[%s13890_s21 + $0xc0] sm:$0xff] }
 0x5eb   : > { %v11257_v32 = vpop.eup %11256 }
 0x5ec   : > { %v2734_v3 = vpop.permute.xlu1 %2733  ;;  %v11259_v19 = vpop.eup %11258  ;;  %11270 = vrcp.f32 %v2151_v24  ;;  %v2170_v11 = vadd.f32 1.0, %v11257_v32  ;;  %v541_v24 = vld [vmem:[%s13890_s21 + $0xd8] sm:$0xff]  ;;  %v540_v32 = vld [vmem:[%s13890_s21 + $0xd0] sm:$0xff] }
 0x5ed   : > { %v2820_v40 = vmul.f32 %v11233_v25, %v2734_v3  ;;  %v11261_v26 = vpop.eup %11260 }
 0x5ee   : > { %v2732_v49 = vpop.permute.xlu0 %2731  ;;  %v11263_v43 = vpop.eup %11262  ;;  %v2169_v13 = vadd.f32 1.0, %v11261_v26  ;;  %11272 = vrcp.f32 %v2170_v11  ;;  %v544_v26 = vld [vmem:[%s13890_s21 + $0xf0] sm:$0xff] }
 0x5ef   : > { %v2819_v48 = vmul.f32 %v11235_v18, %v2732_v49  ;;  %v11265_v42 = vpop.eup %11264 }
 0x5f0   : > { %11274 = vrcp.f32 %v2169_v13  ;;  %v2154_v25 = vadd.f32 1.0, %v11265_v42 }
 0x5f1   : > { %v10287_v9 = vpack.c.bf16 %v2820_v40, %v2819_v48  ;;  %v2770_v50 = vpop.permute.xlu1 %2769 }
 0x5f2   : > { %v2838_v36 = vmul.f32 %v11245_v8, %v2770_v50  ;;  %11276 = vrcp.f32 %v2154_v25  ;;  %v517_v50 = vld [vmem:[%s13890_s21 + $0x18] sm:$0xff]  ;;  %v519_v8 = vld [vmem:[%s13890_s21 + $0x28] sm:$0xff] }
 0x5f3   : > { %10288 = vmatpush3.bf16.msra.mxu0 %v10287_v9  ;;  %v11267_v0 = vpop.eup %11266 }
 0x5f4   : > { %v11269_v58 = vpop.eup %11268 }
 0x5f5   : > { %v2153_v63 = vadd.f32 1.0, %v11269_v58 }
 0x5f6   : > { %v11271_v35 = vpop.eup %11270 }
 0x5f7   : > { %11278 = vrcp.f32 %v2153_v63 }
 0x5f8   : > { %v11273_v40 = vpop.eup %11272 }
 0x5fa   : > { %v2768_v46 = vpop.permute.xlu0 %2767  ;;  %v11275_v6 = vpop.eup %11274 }
 0x5fb   : > { %v2837_v2 = vmul.f32 %v11247_v56, %v2768_v46  ;;  %v523_v56 = vld [vmem:[%s13890_s21 + $0x48] sm:$0xff]  ;;  %v522_v46 = vld [vmem:[%s13890_s21 + $0x40] sm:$0xff] }
 0x5fc   : > { %v2738_v5 = vpop.permute.xlu1 %2737  ;;  %v11277_v27 = vpop.eup %11276 }
 0x5fd   : > { %v10289_v20 = vpack.c.bf16 %v2838_v36, %v2837_v2  ;;  %v2822_v38 = vmul.f32 %v11251_v15, %v2738_v5  ;;  %v521_v36 = vld [vmem:[%s13890_s21 + $0x38] sm:$0xff]  ;;  %v524_v2 = vld [vmem:[%s13890_s21 + $0x50] sm:$0xff]  ;;  %v530_v15 = vld [vmem:[%s13890_s21 + $0x80] sm:$0xff] }
 0x5fe   : > { %v529_v5 = vld [vmem:[%s13890_s21 + $0x78] sm:$0xff] }
 0x5ff   : > { %10290 = vmatprep.subr.bf16.mxu0 %v10289_v20  ;;  %v526_v20 = vld [vmem:[%s13890_s21 + $0x60] sm:$0xff] }
 0x601   : > { %v2736_v57 = vpop.permute.xlu0 %2735  ;;  %v11279_v12 = vpop.eup %11278 }
 0x602   : > { %v2821_v39 = vmul.f32 %v11255_v45, %v2736_v57  ;;  %v534_v45 = vld [vmem:[%s13890_s21 + $0xa0] sm:$0xff]  ;;  %v537_v57 = vld [vmem:[%s13890_s21 + $0xb8] sm:$0xff] }
 0x604   : > { %v10291_v62 = vpack.c.bf16 %v2822_v38, %v2821_v39  ;;  %v532_v38 = vld [vmem:[%s13890_s21 + $0x90] sm:$0xff]  ;;  %v539_v39 = vld [vmem:[%s13890_s21 + $0xc8] sm:$0xff] }
 0x605   : > { %v2774_v21 = vpop.permute.xlu1 %2773 }
 0x606   : > { %v2840_v31 = vmul.f32 %v11259_v19, %v2774_v21  ;;  %10292 = vmatpush3.bf16.msra.mxu0 %v10291_v62  ;;  %v543_v62 = vld [vmem:[%s13890_s21 + $0xe8] sm:$0xff]  ;;  %v542_v19 = vld [vmem:[%s13890_s21 + $0xe0] sm:$0xff]  ;;  %v545_v21 = vld [vmem:[%s13890_s21 + $0xf8] sm:$0xff] }
 0x608   : > { %v2772_v61 = vpop.permute.xlu0 %2771 }
 0x609   : > { %v2839_v44 = vmul.f32 %v11263_v43, %v2772_v61 }
 0x60a   : > { %v2742_v33 = vpop.permute.xlu1 %2741 }
 0x60b   : > { %v10293_v54 = vpack.c.bf16 %v2840_v31, %v2839_v44  ;;  %v2824_v28 = vmul.f32 %v11267_v0, %v2742_v33  ;;  %v18024_v31 = vmov 0.0  }
 0x60c   : > { %9799 = vmatprep.mubr.msk.f32.mxu1 %vm12309_vm6, %v18024_v31 }
 0x60d   : > { %10294 = vmatprep.subr.bf16.mxu0 %v10293_v54 }
 0x611   : > { %v2740_v30 = vpop.permute.xlu0 %2739 }
 0x612   : > { %v2823_v3 = vmul.f32 %v11271_v35, %v2740_v30 }
 0x614   : > { %v10295_v29 = vpack.c.bf16 %v2824_v28, %v2823_v3 }
 0x616   : > { %v2778_v18 = vpop.permute.xlu1 %2777  ;;  %10296 = vmatpush3.bf16.msra.mxu0 %v10295_v29 }
 0x617   : > { %v2842_v49 = vmul.f32 %v11273_v40, %v2778_v18 }
 0x618   : > { %v2776_v37 = vpop.permute.xlu0 %2775 }
 0x619   : > { %v2841_v48 = vmul.f32 %v11275_v6, %v2776_v37 }
 0x61b   : > { %v10297_v52 = vpack.c.bf16 %v2842_v49, %v2841_v48  ;;  %v2746_v9 = vpop.permute.xlu1 %2745 }
 0x61c   : > { %v2826_v7 = vmul.f32 %v11277_v27, %v2746_v9 }
 0x61d   : > { %10298 = vmatprep.subr.bf16.mxu0 %v10297_v52 }
 0x622   : > { %v2744_v10 = vpop.permute.xlu0 %2743 }
 0x623   : > { %v2825_v47 = vmul.f32 %v11279_v12, %v2744_v10 }
 0x625   : > { %v10299_v17 = vpack.c.bf16 %v2826_v7, %v2825_v47 }
 0x627   : > { %10300 = vmatpush3.bf16.msra.mxu0 %v10299_v17 }
 0x628   : > { %10301 = vmatprep.subr.bf16.mxu0 %v18200_v14 }
 0x62a   : > { %2908 = vmatmul.mubr.f32.vlgmr.msra.gmra.mrb[20].mxu0 %v514_v55 }
 0x62b   : > { %2912 = vmatprep.mubr.f32.mxu0 %v517_v50 }
 0x62e   : > { %2913 = vmatmul.mubr.f32.gmra.mrb[22].mxu0 %v516_v60 }
 0x62f   : > { %2917 = vmatprep.mubr.f32.mxu0 %v519_v8 }
 0x632   : > { %2918 = vmatmul.mubr.f32.gmra.mrb[24].mxu0 %v518_v59 }
 0x633   : > { %2922 = vmatprep.mubr.f32.mxu0 %v521_v36 }
 0x636   : > { %2923 = vmatmul.mubr.f32.gmra.mrb[26].mxu0 %v520_v4 }
 0x637   : > { %2927 = vmatprep.mubr.f32.mxu0 %v523_v56 }
 0x63a   : > { %2928 = vmatmul.mubr.f32.gmra.mrb[28].mxu0 %v522_v46 }
 0x63b   : > { %2932 = vmatprep.mubr.f32.mxu0 %v525_v1 }
 0x63e   : > { %2933 = vmatmul.mubr.f32.gmra.mrb[30].mxu0 %v524_v2 }
 0x63f   : > { %2937 = vmatprep.mubr.f32.mxu0 %v527_v51 }
 0x642   : > { %2938 = vmatmul.mubr.f32.gmra.mrb[32].mxu0 %v526_v20 }
 0x643   : > { %2942 = vmatprep.mubr.f32.mxu0 %v529_v5 }
 0x646   : > { %2943 = vmatmul.mubr.f32.gmra.mrb[34].mxu0 %v528_v41 }
 0x647   : > { %2947 = vmatprep.mubr.f32.mxu0 %v531_v23 }
 0x64a   : > { %2948 = vmatmul.mubr.f32.gmra.mrb[36].mxu0 %v530_v15 }
 0x64b   : > { %2952 = vmatprep.mubr.f32.mxu0 %v533_v22 }
 0x64e   : > { %2953 = vmatmul.mubr.f32.gmra.mrb[38].mxu0 %v532_v38 }
 0x64f   : > { %2957 = vmatprep.mubr.f32.mxu0 %v535_v34 }
 0x652   : > { %2958 = vmatmul.mubr.f32.gmra.mrb[40].mxu0 %v534_v45 }
 0x653   : > { %2962 = vmatprep.mubr.f32.mxu0 %v537_v57 }
 0x656   : > { %2963 = vmatmul.mubr.f32.gmra.mrb[42].mxu0 %v536_v16 }
 0x657   : > { %2967 = vmatprep.mubr.f32.mxu0 %v539_v39 }
 0x65a   : > { %2968 = vmatmul.mubr.f32.gmra.mrb[44].mxu0 %v538_v53 }
 0x65b   : > { %2972 = vmatprep.mubr.f32.mxu0 %v541_v24  ;;  %v18201_v24 = vmov 1.0  }
 0x65e   : > { %2973 = vmatmul.mubr.f32.gmra.mrb[46].mxu0 %v540_v32 }
 0x65f   : > { %2977 = vmatprep.mubr.f32.mxu0 %v543_v62 }
 0x662   : > { %2978 = vmatmul.mubr.f32.gmra.mrb[48].mxu0 %v542_v19 }
 0x663   : > { %2982 = vmatprep.mubr.f32.mxu0 %v545_v21  ;;  %v18202_v21 = vld [vmem:[#allocation40_spill] sm:$0xff] }
 0x666   : > { %2983 = vmatmul.mubr.f32.gmra.mrb[50].mxu0 %v544_v26 }
 0x667   : > { %9764 = vmatprep.mubr.msk.f32.mxu0 %vm12309_vm6, %v18024_v31 }
 0x6fd   : > { %v9073_v43 = vpop.f32.mrb[20].mxu0 }
 0x6fe   : > { %v9074_v61 = vpop.f32.mrb[21].mxu0 }
 0x6ff   : > { %v13960_v44 = vadd.f32 %v9074_v61, %v9073_v43 }
 0x701   : > { %v9076_v11 = vpop.f32.mrb[22].mxu0 }
 0x702   : > { %v9077_v54 = vpop.f32.mrb[23].mxu0 }
 0x703   : > { %v13962_v13 = vadd.f32 %v9077_v54, %v9076_v11 }
 0x705   : > { %v10302_v33 = vpack.c.bf16 %v13962_v13, %v13960_v44  ;;  %v9079_v42 = vpop.f32.mrb[24].mxu0 }
 0x706   : > { %v9080_v0 = vpop.f32.mrb[25].mxu0 }
 0x707   : > { %v13966_v58 = vadd.f32 %v9080_v0, %v9079_v42  ;;  %10303 = vmatpush3.bf16.msra.mxu0 %v10302_v33 }
 0x708   : > { %10304 = vmatprep.subr.bf16.mxu0 %v18200_v14 }
 0x709   : > { %v9082_v28 = vpop.f32.mrb[26].mxu0 }
 0x70a   : > { %v9083_v35 = vpop.f32.mrb[27].mxu0 }
 0x70b   : > { %v13969_v30 = vadd.f32 %v9083_v35, %v9082_v28 }
 0x70d   : > { %v10305_v3 = vpack.c.bf16 %v13969_v30, %v13966_v58  ;;  %v9085_v25 = vpop.f32.mrb[28].mxu0 }
 0x70e   : > { %v9086_v29 = vpop.f32.mrb[29].mxu0 }
 0x70f   : > { %v13973_v63 = vadd.f32 %v9086_v29, %v9085_v25  ;;  %10306 = vmatpush3.bf16.msra.mxu0 %v10305_v3 }
 0x710   : > { %10307 = vmatprep.subr.bf16.mxu0 %v18200_v14 }
 0x711   : > { %v9088_v40 = vpop.f32.mrb[30].mxu0 }
 0x712   : > { %v9089_v18 = vpop.f32.mrb[31].mxu0 }
 0x713   : > { %v13976_v49 = vadd.f32 %v9089_v18, %v9088_v40 }
 0x715   : > { %v10308_v6 = vpack.c.bf16 %v13976_v49, %v13973_v63  ;;  %v9091_v37 = vpop.f32.mrb[32].mxu0 }
 0x716   : > { %v9092_v48 = vpop.f32.mrb[33].mxu0 }
 0x717   : > { %v9093_v52 = vadd.f32 %v9092_v48, %v9091_v37  ;;  %10309 = vmatpush3.bf16.msra.mxu0 %v10308_v6 }
 0x718   : > { %10310 = vmatprep.subr.bf16.mxu0 %v18200_v14 }
 0x719   : > { %v9094_v9 = vpop.f32.mrb[34].mxu0 }
 0x71a   : > { %v9095_v27 = vpop.f32.mrb[35].mxu0 }
 0x71b   : > { %v9096_v7 = vadd.f32 %v9095_v27, %v9094_v9 }
 0x71d   : > { %v10311_v12 = vpack.c.bf16 %v9096_v7, %v9093_v52  ;;  %v9097_v10 = vpop.f32.mrb[36].mxu0 }
 0x71e   : > { %v9098_v47 = vpop.f32.mrb[37].mxu0 }
 0x71f   : > { %v13981_v17 = vadd.f32 %v9098_v47, %v9097_v10  ;;  %10312 = vmatpush3.bf16.msra.mxu0 %v10311_v12 }
 0x720   : > { %10313 = vmatprep.subr.bf16.mxu0 %v18200_v14 }
 0x721   : > { %v9100_v55 = vpop.f32.mrb[38].mxu0 }
 0x722   : > { %v9101_v50 = vpop.f32.mrb[39].mxu0 }
 0x723   : > { %v9102_v60 = vadd.f32 %v9101_v50, %v9100_v55 }
 0x725   : > { %v10314_v8 = vpack.c.bf16 %v9102_v60, %v13981_v17  ;;  %v9103_v59 = vpop.f32.mrb[40].mxu0 }
 0x726   : > { %v9104_v36 = vpop.f32.mrb[41].mxu0 }
 0x727   : > { %v9105_v4 = vadd.f32 %v9104_v36, %v9103_v59  ;;  %10315 = vmatpush3.bf16.msra.mxu0 %v10314_v8 }
 0x728   : > { %10316 = vmatprep.subr.bf16.mxu0 %v18200_v14 }
 0x729   : > { %v9106_v56 = vpop.f32.mrb[42].mxu0 }
 0x72a   : > { %v9107_v46 = vpop.f32.mrb[43].mxu0 }
 0x72b   : > { %v9108_v1 = vadd.f32 %v9107_v46, %v9106_v56  ;;  %v8811_v46 = vld [vmem:[%s17943_s2 + $0x10] sm:$0xff] }
 0x72d   : > { %v10317_v2 = vpack.c.bf16 %v9108_v1, %v9105_v4  ;;  %v9109_v51 = vpop.f32.mrb[44].mxu0 }
 0x72e   : > { %v9110_v20 = vpop.f32.mrb[45].mxu0 }
 0x72f   : > { %v9111_v5 = vadd.f32 %v9110_v20, %v9109_v51  ;;  %10318 = vmatpush3.bf16.msra.mxu0 %v10317_v2  ;;  %v18203_v20 = vld [vmem:[#allocation8_spill] sm:$0xff] }
 0x730   : > { %10319 = vmatprep.subr.bf16.mxu0 %v18200_v14 }
 0x731   : > { %v9112_v41 = vpop.f32.mrb[46].mxu0 }
 0x732   : > { %v9113_v23 = vpop.f32.mrb[47].mxu0 }
 0x733   : > { %v9114_v15 = vadd.f32 %v9113_v23, %v9112_v41  ;;  %v18205_v41 = vld [vmem:[#allocation9_spill] sm:$0xff]  ;;  %v18206_v23 = vld [vmem:[#allocation11_spill] sm:$0xff] }
 0x735   : > { %v10320_v22 = vpack.c.bf16 %v9114_v15, %v9111_v5  ;;  %v9115_v38 = vpop.f32.mrb[48].mxu0 }
 0x736   : > { %v9116_v34 = vpop.f32.mrb[49].mxu0 }
 0x737   : > { %v9117_v45 = vadd.f32 %v9116_v34, %v9115_v38  ;;  %10321 = vmatpush3.bf16.msra.mxu0 %v10320_v22  ;;  %v18208_v22 = vld [vmem:[#allocation13_spill] sm:$0xff]  ;;  %v18209_v38 = vld [vmem:[#allocation14_spill] sm:$0xff]  ;;  %v18210_v34 = vld [vmem:[#allocation15_spill] sm:$0xff] }
 0x738   : > { %10322 = vmatprep.subr.bf16.mxu0 %v18200_v14 }
 0x739   : > { %v9118_v57 = vpop.f32.mrb[50].mxu0 }
 0x73a   : > { %v9119_v16 = vpop.f32.mrb[51].mxu0 }
 0x73b   : > { %v9120_v39 = vadd.f32 %v9119_v16, %v9118_v57  ;;  %v18212_v57 = vld [vmem:[#allocation17_spill] sm:$0xff]  ;;  %v18213_v16 = vld [vmem:[#allocation18_spill] sm:$0xff] }
 0x73d   : > { %v10323_v53 = vpack.c.bf16 %v9120_v39, %v9117_v45 }
 0x73f   : > { %10324 = vmatpush3.bf16.msra.mxu0 %v10323_v53  ;;  %v18215_v53 = vld [vmem:[#allocation20_spill] sm:$0xff] }
 0x742   : > { %9765 = vmatmul.mubr.f32.vlgmr.msra.gmra.mrb[52].mxu0 %v18201_v24 }
 0x815   : > { %v3054_v32 = vpop.f32.mrb[52].mxu0 }
 0x816   : > { %v3058_v62 = vmul.f32 0.0078125, %v3054_v32  ;;  %v9766_v19 = vpop.f32.mrb[53].mxu0  ;;  %v18216_v32 = vld [vmem:[#allocation21_spill] sm:$0xff] }
 0x817   : > { %v18218_v19 = vld [vmem:[#allocation23_spill] sm:$0xff] }
 0x818   : > { %v3062_v26 = vrot.slane %v3058_v62, %v18202_v21  ;;  %v18217_v62 = vld [vmem:[#allocation22_spill] sm:$0xff] }
 0x81a   : > { %v13991_v43 = vsub.f32 %v13960_v44, %v3062_v26  ;;  %v13994_v61 = vsub.f32 %v13962_v13, %v3062_v26  ;;  %v13997_v11 = vsub.f32 %v13966_v58, %v3062_v26  ;;  %v14000_v54 = vsub.f32 %v13969_v30, %v3062_v26 }
 0x81b   : > { %v14007_v0 = vsub.f32 %v13973_v63, %v3062_v26  ;;  %v14014_v28 = vsub.f32 %v13976_v49, %v3062_v26  ;;  %v14017_v35 = vsub.f32 %v9093_v52, %v3062_v26  ;;  %v14019_v30 = vsub.f32 %v9096_v7, %v3062_v26 }
 0x81c   : > { %v3079_v33 = vmul.f32 %v13991_v43, %v13991_v43  ;;  %v3080_v42 = vmul.f32 %v13994_v61, %v13994_v61  ;;  %v3081_v13 = vmul.f32 %v13997_v11, %v13997_v11  ;;  %v3082_v58 = vmul.f32 %v14000_v54, %v14000_v54 }
 0x81d   : > { %v3083_v25 = vmul.f32 %v14007_v0, %v14007_v0  ;;  %v3084_v29 = vmul.f32 %v14014_v28, %v14014_v28  ;;  %v3085_v63 = vmul.f32 %v14017_v35, %v14017_v35  ;;  %v3086_v40 = vmul.f32 %v14019_v30, %v14019_v30 }
 0x81e   : > { %v10326_v44 = vpack.c.bf16 %v3080_v42, %v3079_v33  ;;  %v10329_v3 = vpack.c.bf16 %v3082_v58, %v3081_v13  ;;  %v14031_v49 = vsub.f32 %v13981_v17, %v3062_v26  ;;  %v14033_v6 = vsub.f32 %v9102_v60, %v3062_v26  ;;  %v18220_v33 = vld [vmem:[#allocation25_spill] sm:$0xff]  ;;  %v18221_v42 = vld [vmem:[#allocation26_spill] sm:$0xff]  ;;  %v18223_v13 = vld [vmem:[#allocation28_spill] sm:$0xff] }
 0x81f   : > { %v10332_v18 = vpack.c.bf16 %v3084_v29, %v3083_v25  ;;  %v10335_v37 = vpack.c.bf16 %v3086_v40, %v3085_v63  ;;  %v14040_v9 = vsub.f32 %v9105_v4, %v3062_v26  ;;  %v14042_v27 = vsub.f32 %v9108_v1, %v3062_v26  ;;  %v8812_v1 = vld [vmem:[%s17943_s2 + $0x18] sm:$0xff]  ;;  %v18226_v25 = vld [vmem:[#allocation31_spill] sm:$0xff]  ;;  %v18227_v29 = vld [vmem:[#allocation32_spill] sm:$0xff] }
 0x820   : > { %10327 = vmatpush3.bf16.msra.mxu1 %v10326_v44  ;;  %v3087_v48 = vmul.f32 %v14031_v49, %v14031_v49  ;;  %v3088_v52 = vmul.f32 %v14033_v6, %v14033_v6  ;;  %v14045_v7 = vsub.f32 %v9111_v5, %v3062_v26  ;;  %v14051_v17 = vsub.f32 %v9114_v15, %v3062_v26  ;;  %v18204_v5 = vld [vmem:[#allocation10_spill] sm:$0xff]  ;;  %v18207_v15 = vld [vmem:[#allocation12_spill] sm:$0xff]  ;;  %v18222_v44 = vld [vmem:[#allocation27_spill] sm:$0xff] }
 0x821   : > { %10328 = vmatprep.subr.bf16.mxu1 %v18200_v14  ;;  %v3089_v10 = vmul.f32 %v14040_v9, %v14040_v9  ;;  %v3090_v47 = vmul.f32 %v14042_v27, %v14042_v27  ;;  %v14054_v55 = vsub.f32 %v9117_v45, %v3062_v26  ;;  %v14060_v59 = vsub.f32 %v9120_v39, %v3062_v26  ;;  %v18211_v45 = vld [vmem:[#allocation16_spill] sm:$0xff]  ;;  %v18214_v39 = vld [vmem:[#allocation19_spill] sm:$0xff]  ;;  %v18224_v58 = vld [vmem:[#allocation29_spill] sm:$0xff] }
 0x822   : > { %v10338_v12 = vpack.c.bf16 %v3088_v52, %v3087_v48  ;;  %v3091_v60 = vmul.f32 %v14045_v7, %v14045_v7  ;;  %v3092_v8 = vmul.f32 %v14051_v17, %v14051_v17  ;;  %v10357_v2 = vpack.c.bf16 %v8812_v1, %v8811_v46  ;;  %v18219_v26 = vld [vmem:[#allocation24_spill] sm:$0xff]  ;;  %v18228_v63 = vld [vmem:[#allocation33_spill] sm:$0xff]  ;;  %v18229_v40 = vld [vmem:[#allocation34_spill] sm:$0xff] }
 0x823   : > { %v10341_v50 = vpack.c.bf16 %v3090_v47, %v3089_v10  ;;  %v3093_v4 = vmul.f32 %v14054_v55, %v14054_v55  ;;  %v3094_v56 = vmul.f32 %v14060_v59, %v14060_v59  ;;  %v18232_v48 = vld [vmem:[#allocation37_spill] sm:$0xff]  ;;  %v18233_v52 = vld [vmem:[#allocation38_spill] sm:$0xff]  ;;  %v8792_v47 = vld [vmem:[%s17942_s1 + $0x28] sm:$0xff] }
 0x824   : > { %10330 = vmatpush3.bf16.msra.mxu1 %v10329_v3  ;;  %v10344_v36 = vpack.c.bf16 %v3092_v8, %v3091_v60  ;;  %v18225_v3 = vld [vmem:[#allocation30_spill] sm:$0xff]  ;;  %v8793_v60 = vld [vmem:[%s17942_s1 + $0x30] sm:$0xff]  ;;  %v8794_v8 = vld [vmem:[%s17942_s1 + $0x38] sm:$0xff] }
 0x825   : > { %10331 = vmatprep.subr.bf16.mxu1 %v18200_v14  ;;  %v10347_v51 = vpack.c.bf16 %v3094_v56, %v3093_v4  ;;  %v8791_v10 = vld [vmem:[%s17942_s1 + $0x20] sm:$0xff] }
 0x828   : > { %10333 = vmatpush3.bf16.msra.mxu1 %v10332_v18  ;;  %v18230_v18 = vld [vmem:[#allocation35_spill] sm:$0xff] }
 0x829   : > { %10334 = vmatprep.subr.bf16.mxu1 %v18200_v14 }
 0x82c   : > { %10336 = vmatpush3.bf16.msra.mxu1 %v10335_v37  ;;  %v18231_v37 = vld [vmem:[#allocation36_spill] sm:$0xff] }
 0x82d   : > { %10337 = vmatprep.subr.bf16.mxu1 %v18200_v14 }
 0x830   : > { %10339 = vmatpush3.bf16.msra.mxu1 %v10338_v12  ;;  %v18234_v12 = vld [vmem:[#allocation39_spill] sm:$0xff] }
 0x831   : > { %10340 = vmatprep.subr.bf16.mxu1 %v18200_v14 }
 0x834   : > { %10342 = vmatpush3.bf16.msra.mxu1 %v10341_v50  ;;  %v10349_v50 = vpack.c.bf16 %v8792_v47, %v8791_v10 }
 0x835   : > { %10343 = vmatprep.subr.bf16.mxu1 %v18200_v14 }
 0x836   : > { %10350 = vmatprep.subr.bf16.mxu0 %v10349_v50 }
 0x837   : > { %10352 = vmatpush3.bf16.msra.mxu0 %v10349_v50 }
 0x838   : > { %10345 = vmatpush3.bf16.msra.mxu1 %v10344_v36  ;;  %v10353_v36 = vpack.c.bf16 %v8794_v8, %v8793_v60 }
 0x839   : > { %10346 = vmatprep.subr.bf16.mxu1 %v18200_v14 }
 0x83a   : > { %10354 = vmatprep.subr.bf16.mxu0 %v10353_v36 }
 0x83b   : > { %10356 = vmatpush3.bf16.msra.mxu0 %v10353_v36 }
 0x83c   : > { %10348 = vmatpush3.bf16.msra.mxu1 %v10347_v51  ;;  %10361 = vmatprep.subr.bf16.mxu0 %v18200_v14 }
 0x83d   : > { %10358 = vmatprep.subr.bf16.mxu1 %v10357_v2 }
 0x83f   : > { %9800 = vmatmul.mubr.f32.vlgmr.msra.gmra.mrb[96].mxu1 %v18201_v24 }
 0x840   : > { %10360 = vmatpush3.bf16.msra.mxu1 %v10357_v2  ;;  %9838 = vmatprep.mubr.msk.f32.mxu1 %vm1140_vm1, %v18203_v20 }
 0x843   : > { %9839 = vmatmul.mubr.msk.f32.vlgmr.msra.gmra.mrb[98].mxu1 %vm1140_vm1, %v18204_v5 }
 0x844   : > { %9841 = vmatprep.mubr.msk.f32.mxu1 %vm1140_vm1, %v18205_v41 }
 0x847   : > { %9842 = vmatmul.mubr.msk.f32.gmra.mrb[100].mxu1 %vm1140_vm1, %v18206_v23 }
 0x848   : > { %9844 = vmatprep.mubr.msk.f32.mxu1 %vm1140_vm1, %v18207_v15 }
 0x84b   : > { %9845 = vmatmul.mubr.msk.f32.gmra.mrb[102].mxu1 %vm1140_vm1, %v18208_v22 }
 0x84c   : > { %9847 = vmatprep.mubr.msk.f32.mxu1 %vm1140_vm1, %v18209_v38 }
 0x84f   : > { %9848 = vmatmul.mubr.msk.f32.gmra.mrb[104].mxu1 %vm1140_vm1, %v18210_v34  ;;  %v12006_v34 = vld [vmem:[%s12479_s20 + $0x58] sm:$0xff] }
 0x850   : > { %9850 = vmatprep.mubr.msk.f32.mxu1 %vm1140_vm1, %v18211_v45 }
 0x853   : > { %9851 = vmatmul.mubr.msk.f32.gmra.mrb[106].mxu1 %vm1140_vm1, %v18212_v57 }
 0x854   : > { %9853 = vmatprep.mubr.msk.f32.mxu1 %vm1140_vm1, %v18213_v16 }
 0x857   : > { %9854 = vmatmul.mubr.msk.f32.gmra.mrb[108].mxu1 %vm1140_vm1, %v18214_v39 }
 0x858   : > { %9856 = vmatprep.mubr.msk.f32.mxu1 %vm1140_vm1, %v18215_v53 }
 0x85b   : > { %9857 = vmatmul.mubr.msk.f32.gmra.mrb[110].mxu1 %vm1140_vm1, %v18216_v32 }
 0x85c   : > { %9859 = vmatprep.mubr.msk.f32.mxu1 %vm1140_vm1, %v18217_v62 }
 0x85f   : > { %9860 = vmatmul.mubr.msk.f32.gmra.mrb[112].mxu1 %vm1140_vm1, %v18218_v19  ;;  %v12002_v19 = vld [vmem:[%s12479_s20 + $0x38] sm:$0xff] }
 0x860   : > { %9862 = vmatprep.mubr.msk.f32.mxu1 %vm1140_vm1, %v18219_v26 }
 0x863   : > { %9863 = vmatmul.mubr.msk.f32.gmra.mrb[114].mxu1 %vm1140_vm1, %v18220_v33 }
 0x864   : > { %9865 = vmatprep.mubr.msk.f32.mxu1 %vm1140_vm1, %v18221_v42 }
 0x867   : > { %9866 = vmatmul.mubr.msk.f32.gmra.mrb[116].mxu1 %vm1140_vm1, %v18222_v44 }
 0x868   : > { %9868 = vmatprep.mubr.msk.f32.mxu1 %vm1140_vm1, %v18223_v13 }
 0x86b   : > { %9869 = vmatmul.mubr.msk.f32.gmra.mrb[118].mxu1 %vm1140_vm1, %v18224_v58 }
 0x86c   : > { %9871 = vmatprep.mubr.msk.f32.mxu1 %vm1140_vm1, %v18225_v3  ;;  %v11995_v3 = vld [vmem:[%s12479_s20] sm:$0xff] }
 0x86f   : > { %9872 = vmatmul.mubr.msk.f32.gmra.mrb[120].mxu1 %vm1140_vm1, %v18226_v25 }
 0x870   : > { %9874 = vmatprep.mubr.msk.f32.mxu1 %vm1140_vm1, %v18227_v29 }
 0x873   : > { %9875 = vmatmul.mubr.msk.f32.gmra.mrb[122].mxu1 %vm1140_vm1, %v18228_v63 }
 0x874   : > { %9877 = vmatprep.mubr.msk.f32.mxu1 %vm1140_vm1, %v18229_v40 }
 0x877   : > { %9878 = vmatmul.mubr.msk.f32.gmra.mrb[124].mxu1 %vm1140_vm1, %v18230_v18 }
 0x878   : > { %9880 = vmatprep.mubr.msk.f32.mxu1 %vm1140_vm1, %v18231_v37 }
 0x87b   : > { %9881 = vmatmul.mubr.msk.f32.gmra.mrb[126].mxu1 %vm1140_vm1, %v18232_v48 }
 0x87c   : > { %9883 = vmatprep.mubr.msk.f32.mxu1 %vm1140_vm1, %v18233_v52  ;;  %v14188_v52 = vld [vmem:[%s17941_s0 + $0x5] ss:$0 sm:$0xff] }
 0x87f   : > { %9884 = vmatmul.mubr.msk.f32.gmra.mrb[128].mxu1 %vm1140_vm1, %v18234_v12 }
 0x880   : > { %4304 = vmatprep.mubr.f32.mxu1 %v18201_v24 }
 0x912   : > { %v3161_v4 = vpop.f32.mrb[96].mxu1 }
 0x913   : > { %v3165_v56 = vmul.f32 0.0078125, %v3161_v4  ;;  %v9801_v46 = vpop.f32.mrb[97].mxu1 }
 0x914   : > { %v14175_v46 = vld [vmem:[%s17941_s0 + $0x4] ss:$0 sm:$0xff] }
 0x915   : > { %v3166_v1 = vadd.f32 1e-05, %v3165_v56 }
 0x916   : > { %v14153_v2 = vpop.f32.mrb[98].mxu1 }
 0x917   : > { %11280 = vrsqrt.f32 %v3166_v1  ;;  %v14155_v51 = vpop.f32.mrb[99].mxu1 }
 0x91a   : > { %v14157_v10 = vpop.f32.mrb[100].mxu1 }
 0x91b   : > { %v14159_v47 = vpop.f32.mrb[101].mxu1 }
 0x91e   : > { %v14161_v50 = vpop.f32.mrb[102].mxu1 }
 0x91f   : > { %v14163_v60 = vpop.f32.mrb[103].mxu1 }
 0x921   : > { %v11281_v8 = vpop.eup %11280 }
 0x922   : > { %v14166_v36 = vrot.slane %v11281_v8, %v18202_v21  ;;  %v14168_v4 = vpop.f32.mrb[104].mxu1 }
 0x923   : > { %v14170_v56 = vpop.f32.mrb[105].mxu1 }
 0x924   : > { %v3172_v1 = vmul.f32 %v14166_v36, %v13991_v43  ;;  %v3173_v31 = vmul.f32 %v14166_v36, %v13994_v61  ;;  %v3174_v12 = vmul.f32 %v14166_v36, %v13997_v11  ;;  %v3175_v8 = vmul.f32 %v14166_v36, %v14000_v54 }
 0x925   : > { %v3176_v48 = vmul.f32 %v14166_v36, %v14007_v0  ;;  %v3177_v43 = vmul.f32 %v14166_v36, %v14014_v28  ;;  %v3178_v61 = vmul.f32 %v14166_v36, %v14017_v35  ;;  %v3179_v11 = vmul.f32 %v14166_v36, %v14019_v30 }
 0x926   : > { %v14198_v37 = vpop.f32.mrb[106].mxu1  ;;  %v3192_v54 = vmul.f32 %v14175_v46, %v3172_v1  ;;  %v3193_v18 = vmul.f32 %v14175_v46, %v3173_v31  ;;  %v3194_v40 = vmul.f32 %v14175_v46, %v3174_v12  ;;  %v3195_v0 = vmul.f32 %v14175_v46, %v3175_v8 }
 0x927   : > { %18235 = vst [vmem:[#allocation41_spill] sm:$0xff] %v14198_v37  ;;  %v14204_v63 = vpop.f32.mrb[107].mxu1  ;;  %v3196_v28 = vmul.f32 %v14175_v46, %v3176_v48  ;;  %v3197_v35 = vmul.f32 %v14175_v46, %v3177_v43  ;;  %v3198_v30 = vmul.f32 %v14175_v46, %v3178_v61  ;;  %v3199_v1 = vmul.f32 %v14175_v46, %v3179_v11 }
 0x928   : > { %18236 = vst [vmem:[#allocation42_spill] sm:$0xff] %v14204_v63  ;;  %v3212_v31 = vadd.f32 %v14188_v52, %v3192_v54  ;;  %v3213_v29 = vadd.f32 %v14188_v52, %v3193_v18  ;;  %v3214_v12 = vadd.f32 %v14188_v52, %v3194_v40  ;;  %v3215_v8 = vadd.f32 %v14188_v52, %v3195_v0  ;;  %v11996_v54 = vld [vmem:[%s12479_s20 + $0x8] sm:$0xff]  ;;  %v11997_v18 = vld [vmem:[%s12479_s20 + $0x10] sm:$0xff]  ;;  %v11998_v40 = vld [vmem:[%s12479_s20 + $0x18] sm:$0xff] }
 0x929   : > { %v3216_v48 = vadd.f32 %v14188_v52, %v3196_v28  ;;  %v3217_v25 = vadd.f32 %v14188_v52, %v3197_v35  ;;  %v3218_v43 = vadd.f32 %v14188_v52, %v3198_v30  ;;  %v11999_v35 = vld [vmem:[%s12479_s20 + $0x20] sm:$0xff]  ;;  %v12000_v30 = vld [vmem:[%s12479_s20 + $0x28] sm:$0xff] }
 0x92a   : > { %v14217_v61 = vpop.f32.mrb[108].mxu1  ;;  %v14220_v11 = vadd.f32 %v11995_v3, %v3212_v31  ;;  %v14223_v58 = vadd.f32 %v11996_v54, %v3213_v29  ;;  %v14226_v13 = vadd.f32 %v11997_v18, %v3214_v12  ;;  %v14229_v0 = vadd.f32 %v11998_v40, %v3215_v8 }
 0x92b   : > { %18237 = vst [vmem:[#allocation43_spill] sm:$0xff] %v14217_v61  ;;  %v14231_v28 = vpop.f32.mrb[109].mxu1  ;;  %v14234_v44 = vadd.f32 %v11999_v35, %v3216_v48  ;;  %v14237_v42 = vadd.f32 %v12000_v30, %v3217_v25  ;;  %v3219_v3 = vadd.f32 %v14188_v52, %v3199_v1  ;;  %v12001_v35 = vld [vmem:[%s12479_s20 + $0x30] sm:$0xff] }
 0x92c   : > { %18238 = vst [vmem:[#allocation44_spill] sm:$0xff] %v14231_v28  ;;  %v3260_v29 = vand.u32 2147483647, %v14220_v11  ;;  %v3261_v31 = vand.u32 2147483647, %v14223_v58  ;;  %v14248_v25 = vadd.f32 %v12001_v35, %v3218_v43 }
 0x92d   : > { %v3262_v12 = vand.u32 2147483647, %v14226_v13  ;;  %v3263_v8 = vand.u32 2147483647, %v14229_v0  ;;  %v3264_v48 = vand.u32 2147483647, %v14234_v44  ;;  %v14254_v62 = vadd.f32 %v12002_v19, %v3219_v3 }
 0x92e   : > { %v14244_v54 = vpop.f32.mrb[110].mxu1  ;;  %v3276_v18 = vsub.f32 0.0, %v3260_v29  ;;  %v3277_v40 = vsub.f32 0.0, %v3261_v31  ;;  %v3265_v26 = vand.u32 2147483647, %v14237_v42 }
 0x92f   : > { %18239 = vst [vmem:[#allocation45_spill] sm:$0xff] %v14244_v54  ;;  %v14250_v30 = vpop.f32.mrb[111].mxu1  ;;  %v3278_v1 = vsub.f32 0.0, %v3262_v12  ;;  %v3279_v33 = vsub.f32 0.0, %v3263_v8  ;;  %v3280_v39 = vsub.f32 0.0, %v3264_v48  ;;  %v3180_v12 = vmul.f32 %v14166_v36, %v14031_v49 }
 0x930   : > { %18240 = vst [vmem:[#allocation46_spill] sm:$0xff] %v14250_v30  ;;  %v3292_v32 = vmul.f32 1.442695, %v3276_v18  ;;  %v3294_v53 = vmul.f32 1.442695, %v3277_v40  ;;  %v3281_v31 = vsub.f32 0.0, %v3265_v26  ;;  %v3181_v18 = vmul.f32 %v14166_v36, %v14033_v6 }
 0x931   : > { %v3296_v16 = vmul.f32 1.442695, %v3278_v1  ;;  %v3298_v29 = vmul.f32 1.442695, %v3279_v33  ;;  %v3300_v43 = vmul.f32 1.442695, %v3280_v39  ;;  %v3200_v33 = vmul.f32 %v14175_v46, %v3180_v12 }
 0x932   : > { %v14256_v57 = vpop.f32.mrb[112].mxu1  ;;  %11282 = vpow2.f32 %v3292_v32  ;;  %v3266_v35 = vand.u32 2147483647, %v14248_v25  ;;  %v3302_v19 = vmul.f32 1.442695, %v3281_v31  ;;  %v3182_v39 = vmul.f32 %v14166_v36, %v14040_v9 }
 0x933   : > { %18241 = vst [vmem:[#allocation47_spill] sm:$0xff] %v14256_v57  ;;  %v14261_v8 = vpop.f32.mrb[113].mxu1  ;;  %11284 = vpow2.f32 %v3294_v53  ;;  %v3267_v3 = vand.u32 2147483647, %v14254_v62  ;;  %v3201_v49 = vmul.f32 %v14175_v46, %v3181_v18  ;;  %v3183_v53 = vmul.f32 %v14166_v36, %v14042_v27 }
 0x934   : > { %18242 = vst [vmem:[#allocation48_spill] sm:$0xff] %v14261_v8  ;;  %11286 = vpow2.f32 %v3296_v16  ;;  %v3282_v26 = vsub.f32 0.0, %v3266_v35  ;;  %v3220_v16 = vadd.f32 %v14188_v52, %v3200_v33  ;;  %v3202_v48 = vmul.f32 %v14175_v46, %v3182_v39  ;;  %v12003_v35 = vld [vmem:[%s12479_s20 + $0x40] sm:$0xff] }
 0x935   : > { %11288 = vpow2.f32 %v3298_v29  ;;  %v3283_v32 = vsub.f32 0.0, %v3267_v3  ;;  %v3221_v29 = vadd.f32 %v14188_v52, %v3201_v49  ;;  %v3203_v31 = vmul.f32 %v14175_v46, %v3183_v53 }
 0x936   : > { %v14272_v40 = vpop.f32.mrb[114].mxu1  ;;  %11290 = vpow2.f32 %v3300_v43  ;;  %v3304_v6 = vmul.f32 1.442695, %v3282_v26  ;;  %v14281_v12 = vadd.f32 %v12003_v35, %v3220_v16  ;;  %v3222_v27 = vadd.f32 %v14188_v52, %v3202_v48  ;;  %v12004_v43 = vld [vmem:[%s12479_s20 + $0x48] sm:$0xff] }
 0x937   : > { %18243 = vst [vmem:[#allocation49_spill] sm:$0xff] %v14272_v40  ;;  %v14276_v1 = vpop.f32.mrb[115].mxu1  ;;  %v3306_v9 = vmul.f32 1.442695, %v3283_v32  ;;  %11292 = vpow2.f32 %v3302_v19  ;;  %v14285_v3 = vadd.f32 %v12004_v43, %v3221_v29  ;;  %v3184_v18 = vmul.f32 %v14166_v36, %v14045_v7  ;;  %v12005_v32 = vld [vmem:[%s12479_s20 + $0x50] sm:$0xff] }
 0x938   : > { %18244 = vst [vmem:[#allocation50_spill] sm:$0xff] %v14276_v1  ;;  %11294 = vpow2.f32 %v3304_v6  ;;  %v14294_v19 = vadd.f32 %v12005_v32, %v3222_v27  ;;  %v3223_v49 = vadd.f32 %v14188_v52, %v3203_v31  ;;  %v3185_v7 = vmul.f32 %v14166_v36, %v14051_v17 }
 0x939   : > { %11296 = vpow2.f32 %v3306_v9  ;;  %v3268_v31 = vand.u32 2147483647, %v14281_v12  ;;  %v3269_v6 = vand.u32 2147483647, %v14285_v3  ;;  %v3204_v9 = vmul.f32 %v14175_v46, %v3184_v18 }
 0x93a   : > { %v14289_v26 = vpop.f32.mrb[116].mxu1  ;;  %v3270_v29 = vand.u32 2147483647, %v14294_v19  ;;  %v14313_v35 = vadd.f32 %v12006_v34, %v3223_v49  ;;  %v14318_v23 = vmul.f32 %v14175_v46, %v3185_v7 }
 0x93b   : > { %18245 = vst [vmem:[#allocation51_spill] sm:$0xff] %v14289_v26  ;;  %v14297_v53 = vpop.f32.mrb[117].mxu1  ;;  %v3284_v24 = vsub.f32 0.0, %v3268_v31  ;;  %v14321_v34 = vadd.f32 %v14188_v52, %v3204_v9  ;;  %v3285_v26 = vsub.f32 0.0, %v3269_v6 }
 0x93c   : > { %18246 = vst [vmem:[#allocation52_spill] sm:$0xff] %v14297_v53  ;;  %v11283_v48 = vpop.eup %11282  ;;  %v3286_v53 = vsub.f32 0.0, %v3270_v29 }
 0x93d   : > { %v11285_v43 = vpop.eup %11284  ;;  %v3324_v32 = vadd.f32 1.0, %v11283_v48  ;;  %v3327_v39 = vmul.f32 -0.5, %v11283_v48  ;;  %v3330_v22 = vand.u32 2147483647, %v11283_v48 }
 0x93e   : > { %v11287_v16 = vpop.eup %11286  ;;  %v14309_v33 = vpop.f32.mrb[118].mxu1  ;;  %v3333_v17 = vadd.f32 1.0, %v11285_v43  ;;  %v3336_v45 = vmul.f32 -0.5, %v11285_v43  ;;  %v3339_v5 = vand.u32 2147483647, %v11285_v43 }
 0x93f   : > { %18247 = vst [vmem:[#allocation53_spill] sm:$0xff] %v14309_v33  ;;  %v11289_v27 = vpop.eup %11288  ;;  %v14315_v38 = vpop.f32.mrb[119].mxu1  ;;  %11298 = vlog2.f32 %v3324_v32  ;;  %v3342_v15 = vadd.f32 1.0, %v11287_v16  ;;  %v3328_v41 = vadd.f32 1.0, %v3327_v39  ;;  %v3345_v20 = vmul.f32 -0.5, %v11287_v16 }
 0x940   : > { %18248 = vst [vmem:[#allocation54_spill] sm:$0xff] %v14315_v38  ;;  %v11291_v18 = vpop.eup %11290  ;;  %11300 = vlog2.f32 %v3333_v17  ;;  %v3351_v21 = vadd.f32 1.0, %v11289_v27  ;;  %v3337_v32 = vadd.f32 1.0, %v3336_v45  ;;  %v3354_v38 = vmul.f32 -0.5, %v11289_v27 }
 0x941   : > { %11302 = vlog2.f32 %v3342_v15  ;;  %v11293_v49 = vpop.eup %11292  ;;  %vm14327_vm7 = vcmp.lt.f32.partialorder %v3330_v22, 0.0004427343  ;;  %v3360_v15 = vadd.f32 1.0, %v11291_v18  ;;  %v3363_v31 = vmul.f32 -0.5, %v11291_v18 }
 0x942   : > { %v14323_v33 = vpop.f32.mrb[120].mxu1  ;;  %v11295_v7 = vpop.eup %11294  ;;  %11304 = vlog2.f32 %v3351_v21  ;;  %v3329_v17 = vmul.f32 %v11283_v48, %v3328_v41  ;;  %vm14331_vm8 = vcmp.lt.f32.partialorder %v3339_v5, 0.0004427343  ;;  %v3348_v45 = vand.u32 2147483647, %v11287_v16 }
 0x943   : > { %18249 = vst [vmem:[#allocation55_spill] sm:$0xff] %v14323_v33  ;;  %v14325_v40 = vpop.f32.mrb[121].mxu1  ;;  %v3346_v33 = vadd.f32 1.0, %v3345_v20  ;;  %v3357_v1 = vand.u32 2147483647, %v11289_v27  ;;  %v14335_v6 = vpop.eup %11296  ;;  %v3355_v29 = vadd.f32 1.0, %v3354_v38  ;;  %11306 = vlog2.f32 %v3360_v15 }
 0x944   : > { %18250 = vst [vmem:[#allocation56_spill] sm:$0xff] %v14325_v40  ;;  %v3369_v40 = vadd.f32 1.0, %v11293_v49  ;;  %v3372_v22 = vmul.f32 -0.5, %v11293_v49  ;;  %v3338_v8 = vmul.f32 %v11285_v43, %v3337_v32  ;;  %v3364_v21 = vadd.f32 1.0, %v3363_v31 }
 0x945   : > { %v3366_v54 = vand.u32 2147483647, %v11291_v18  ;;  %v3378_v30 = vadd.f32 1.0, %v11295_v7  ;;  %v3375_v48 = vand.u32 2147483647, %v11293_v49  ;;  %v3381_v20 = vmul.f32 -0.5, %v11295_v7 }
 0x946   : > { %v14337_v57 = vpop.f32.mrb[122].mxu1  ;;  %11308 = vlog2.f32 %v3369_v40  ;;  %v3373_v5 = vadd.f32 1.0, %v3372_v22  ;;  %vm14341_vm9 = vcmp.lt.f32.partialorder %v3348_v45, 0.0004427343  ;;  %v3384_v38 = vand.u32 2147483647, %v11295_v7 }
 0x947   : > { %18255 = vst [vmem:[#allocation57_spill] sm:$0xff] %v14337_v57  ;;  %v14339_v41 = vpop.f32.mrb[123].mxu1  ;;  %11310 = vlog2.f32 %v3378_v30  ;;  %v3387_v15 = vadd.f32 1.0, %v14335_v6  ;;  %v3347_v57 = vmul.f32 %v11287_v16, %v3346_v33  ;;  %v3356_v43 = vmul.f32 %v11289_v27, %v3355_v29 }
 0x948   : > { %18256 = vst [vmem:[#allocation58_spill] sm:$0xff] %v14339_v41  ;;  %vm14346_vm10 = vcmp.lt.f32.partialorder %v3357_v1, 0.0004427343  ;;  %v3382_v31 = vadd.f32 1.0, %v3381_v20  ;;  %v3365_v45 = vmul.f32 %v11291_v18, %v3364_v21  ;;  %vm14352_vm11 = vcmp.lt.f32.partialorder %v3366_v54, 0.0004427343 }
 0x949   : > { %v11299_v28 = vpop.eup %11298  ;;  %11312 = vlog2.f32 %v3387_v15  ;;  %v3374_v16 = vmul.f32 %v11293_v49, %v3373_v5  ;;  %vm14358_vm12 = vcmp.lt.f32.partialorder %v3375_v48, 0.0004427343  ;;  %v3390_v27 = vmul.f32 -0.5, %v14335_v6 }
 0x94a   : > { %v11301_v40 = vpop.eup %11300  ;;  %v14350_v22 = vpop.f32.mrb[124].mxu1  ;;  %v3326_v41 = vmul.f32 0.6931472, %v11299_v28  ;;  %v3393_v29 = vand.u32 2147483647, %v14335_v6  ;;  %v18268_v49 = vmax.f32 %v14220_v11, 0.0 }
 0x94b   : > { %18261 = vst [vmem:[#allocation59_spill] sm:$0xff] %v14350_v22  ;;  %v11303_v30 = vpop.eup %11302  ;;  %v14356_v63 = vpop.f32.mrb[125].mxu1  ;;  %v3335_v33 = vmul.f32 0.6931472, %v11301_v40  ;;  %vm14366_vm13 = vcmp.lt.f32.partialorder %v3384_v38, 0.0004427343  ;;  %v3383_v40 = vmul.f32 %v11295_v7, %v3382_v31 }
 0x94c   : > { %v3332_v28 = vsel %vm14327_vm7, %v3329_v17, %v3326_v41  ;;  %v3344_v54 = vmul.f32 0.6931472, %v11303_v30  ;;  %v3308_v21 = vmul.f32 1.442695, %v3284_v24  ;;  %v3310_v20 = vmul.f32 1.442695, %v3285_v26  ;;  %v11305_v15 = vpop.eup %11304 }
 0x94d   : > { %v14372_v5 = vadd.f32 %v3332_v28, %v18268_v49  ;;  %v3341_v48 = vsel %vm14331_vm8, %v3338_v8, %v3335_v33  ;;  %v3312_v22 = vmul.f32 1.442695, %v3286_v53  ;;  %v18270_v17 = vmax.f32 %v14223_v58, 0.0  ;;  %v11307_v11 = vpop.eup %11306  ;;  %v12007_v7 = vld [vmem:[%s12479_s20 + $0x60] sm:$0xff] }
 0x94e   : > { %v14376_v39 = vpop.f32.mrb[126].mxu1  ;;  %v3350_v24 = vsel %vm14341_vm9, %v3347_v57, %v3344_v54  ;;  %v3353_v26 = vmul.f32 0.6931472, %v11305_v15  ;;  %11314 = vpow2.f32 %v3308_v21  ;;  %v18272_v8 = vmax.f32 %v14226_v13, 0.0 }
 0x94f   : > { %18269 = vst [vmem:[#allocation60_spill] sm:$0xff] %v14372_v5  ;;  %v14380_v41 = vadd.f32 %v3341_v48, %v18270_v17  ;;  %9810 = vmatprep.mubr.msk.f32.mxu0 %vm880_vm0, %v14372_v5  ;;  %v14386_v38 = vpop.f32.mrb[127].mxu1  ;;  %11316 = vpow2.f32 %v3310_v20  ;;  %v3271_v58 = vand.u32 2147483647, %v14313_v35  ;;  %v14395_v9 = vadd.f32 %v12007_v7, %v14321_v34 }
 0x950   : > { %v14390_v53 = vadd.f32 %v3350_v24, %v18272_v8  ;;  %v3359_v57 = vsel %vm14346_vm10, %v3356_v43, %v3353_v26  ;;  %v3362_v61 = vmul.f32 0.6931472, %v11307_v11  ;;  %11318 = vpow2.f32 %v3312_v22  ;;  %v11309_v31 = vpop.eup %11308 }
 0x951   : > { %18271 = vst [vmem:[#allocation61_spill] sm:$0xff] %v14380_v41  ;;  %9811 = vmatmul.mubr.msk.f32.vlgmr.msra.gmra.mrb[54].mxu0 %vm880_vm0, %v14380_v41  ;;  %v3225_v13 = vadd.f32 %v14188_v52, %v14318_v23  ;;  %v18274_v30 = vmax.f32 %v14229_v0, 0.0  ;;  %v3391_v33 = vadd.f32 1.0, %v3390_v27  ;;  %v3287_v28 = vsub.f32 0.0, %v3271_v58  ;;  %v11311_v21 = vpop.eup %11310  ;;  %v12008_v23 = vld [vmem:[%s12479_s20 + $0x68] sm:$0xff] }
 0x952   : > { %18273 = vst [vmem:[#allocation62_spill] sm:$0xff] %v14390_v53  ;;  %9813 = vmatprep.mubr.msk.f32.mxu0 %vm880_vm0, %v14390_v53  ;;  %v3272_v54 = vand.u32 2147483647, %v14395_v9  ;;  %v14410_v32 = vpop.f32.mrb[128].mxu1  ;;  %v3368_v43 = vsel %vm14352_vm11, %v3365_v45, %v3362_v61  ;;  %v3371_v22 = vmul.f32 0.6931472, %v11309_v31  ;;  %v3186_v15 = vmul.f32 %v14166_v36, %v14054_v55 }
 0x953   : > { %v14407_v34 = vadd.f32 %v3359_v57, %v18274_v30  ;;  %v14415_v20 = vadd.f32 %v12008_v23, %v3225_v13  ;;  %v14419_v0 = vpop.f32.mrb[129].mxu1  ;;  %v18276_v27 = vmax.f32 %v14234_v44, 0.0  ;;  %v3380_v48 = vmul.f32 0.6931472, %v11311_v21  ;;  %v11313_v26 = vpop.eup %11312 }
 0x954   : > { %v3314_v17 = vmul.f32 1.442695, %v3287_v28  ;;  %v3288_v24 = vsub.f32 0.0, %v3272_v54  ;;  %v3377_v37 = vsel %vm14358_vm12, %v3374_v16, %v3371_v22  ;;  %vm14429_vm14 = vcmp.lt.f32.partialorder %v3393_v29, 0.0004427343  ;;  %v12009_v54 = vld [vmem:[%s12479_s20 + $0x70] sm:$0xff] }
 0x955   : > { %18275 = vst [vmem:[#allocation63_spill] sm:$0xff] %v14407_v34  ;;  %v14423_v49 = vadd.f32 %v3368_v43, %v18276_v27  ;;  %9814 = vmatmul.mubr.msk.f32.gmra.mrb[56].mxu0 %vm880_vm0, %v14407_v34  ;;  %v3273_v55 = vand.u32 2147483647, %v14415_v20  ;;  %v3206_v44 = vmul.f32 %v14175_v46, %v3186_v15  ;;  %v3386_v11 = vsel %vm14366_vm13, %v3383_v40, %v3380_v48 }
 0x956   : > { %v3389_v8 = vmul.f32 0.6931472, %v11313_v26  ;;  %v3392_v58 = vmul.f32 %v14335_v6, %v3391_v33  ;;  %11320 = vpow2.f32 %v3314_v17  ;;  %v18280_v16 = vmax.f32 %v14237_v42, 0.0 }
 0x957   : > { %18277 = vst [vmem:[#allocation64_spill] sm:$0xff] %v14423_v49  ;;  %9816 = vmatprep.mubr.msk.f32.mxu0 %vm880_vm0, %v14423_v49  ;;  %v3316_v29 = vmul.f32 1.442695, %v3288_v24  ;;  %v3289_v7 = vsub.f32 0.0, %v3273_v55  ;;  %v3226_v57 = vadd.f32 %v14188_v52, %v3206_v44  ;;  %v18282_v61 = vmax.f32 %v14248_v25, 0.0 }
 0x958   : > { %v14442_v1 = vadd.f32 %v3377_v37, %v18280_v16  ;;  %v3251_v18 = vmax.f32 %v14254_v62, 0.0  ;;  %v3395_v40 = vsel %vm14429_vm14, %v3392_v58, %v3389_v8  ;;  %v3187_v6 = vmul.f32 %v14166_v36, %v14060_v59  ;;  %v11315_v42 = vpop.eup %11314  ;;  %v12010_v37 = vld [vmem:[%s12479_s20 + $0x78] sm:$0xff]  ;;  %s381_s20 = scalar_lea.vmem [#allocation5], %s8729_s15 }
 0x959   : > { %v14447_v13 = vadd.f32 %v3386_v11, %v18282_v61  ;;  %11322 = vpow2.f32 %v3316_v29  ;;  %v3318_v31 = vmul.f32 1.442695, %v3289_v7  ;;  %v11317_v30 = vpop.eup %11316  ;;  %v3396_v33 = vadd.f32 1.0, %v11315_v42  ;;  %s8603_s4 = sshll.u32 %s381_s20, 4  ;;  %s17898_s4 = int_to_ptr.vmem [resolvable:$true] %s8603_s4 }
 0x95a   : > { %18281 = vst [vmem:[#allocation65_spill] sm:$0xff] %v14442_v1  ;;  %9817 = vmatmul.mubr.msk.f32.gmra.mrb[58].mxu0 %vm880_vm0, %v14442_v1  ;;  %v14458_v25 = vadd.f32 %v3395_v40, %v3251_v18  ;;  %v11319_v62 = vpop.eup %11318  ;;  %v3405_v28 = vadd.f32 1.0, %v11317_v30  ;;  %v14461_v21 = vadd.f32 %v12009_v54, %v3226_v57  ;;  %v3207_v59 = vmul.f32 %v14175_v46, %v3187_v6  ;;  %s12233_s19 = scalar_lea.vmem %s17898_s4, 128 }
 0x95b   : > { %18283 = vst [vmem:[#allocation66_spill] sm:$0xff] %v14447_v13  ;;  %9819 = vmatprep.mubr.msk.f32.mxu0 %vm880_vm0, %v14447_v13  ;;  %11324 = vpow2.f32 %v3318_v31  ;;  %v3414_v36 = vadd.f32 1.0, %v11319_v62  ;;  %v3399_v43 = vmul.f32 -0.5, %v11315_v42  ;;  %v3408_v22 = vmul.f32 -0.5, %v11317_v30  ;;  %p12234_p6 = scmp.ne.s32.totalorder %s17898_s4, %s12233_s19 }
 0x95c   : > { %18284 = vst [vmem:[#allocation67_spill] sm:$0xff] %v14458_v25  ;;  %11326 = vlog2.f32 %v3396_v33  ;;  %v3274_v23 = vand.u32 2147483647, %v14461_v21  ;;  %v3227_v15 = vadd.f32 %v14188_v52, %v3207_v59  ;;  %v3402_v48 = vand.u32 2147483647, %v11315_v42 }
 0x95d   : > { %11328 = vlog2.f32 %v3405_v28  ;;  %v3417_v17 = vmul.f32 -0.5, %v11319_v62  ;;  %v3411_v26 = vand.u32 2147483647, %v11317_v30  ;;  %v3252_v44 = vmax.f32 %v14281_v12, 0.0  ;;  %p12235_p13 = pnand %p12234_p6, %p18701_p12 }
 0x95e   : > { %9820 = vmatmul.mubr.msk.f32.gmra.mrb[60].mxu0 %vm880_vm0, %v14458_v25  ;;  %11330 = vlog2.f32 %v3414_v36  ;;  %v3290_v46 = vsub.f32 0.0, %v3274_v23  ;;  %v14469_v45 = vadd.f32 %v12010_v37, %v3227_v15  ;;  %v3400_v11 = vadd.f32 1.0, %v3399_v43 }
 0x95f   : > { %v3409_v8 = vadd.f32 1.0, %v3408_v22  ;;  %v3253_v58 = vmax.f32 %v14285_v3, 0.0  ;;  %v3420_v16 = vand.u32 2147483647, %v11319_v62  ;;  %vm14476_vm15 = vcmp.lt.f32.partialorder %v3402_v48, 0.0004427343  ;;  %p12236_p8 = pneg %p12235_p13 }
 0x960   : > { %v11321_v27 = vpop.eup %11320  ;;  %v3320_v29 = vmul.f32 1.442695, %v3290_v46  ;;  %v3254_v61 = vmax.f32 %v14294_v19, 0.0  ;;  %v3418_v18 = vadd.f32 1.0, %v3417_v17  ;;  %v3275_v40 = vand.u32 2147483647, %v14469_v45 }
 0x961   : > { %v3423_v24 = vadd.f32 1.0, %v11321_v27  ;;  %vm14482_vm2 = vcmp.lt.f32.partialorder %v3411_v26, 0.0004427343  ;;  %v3426_v3 = vmul.f32 -0.5, %v11321_v27  ;;  %v3401_v54 = vmul.f32 %v11315_v42, %v3400_v11 }
 0x962   : > { %v3410_v59 = vmul.f32 %v11317_v30, %v3409_v8  ;;  %vm14486_vm3 = vcmp.lt.f32.partialorder %v3420_v16, 0.0004427343  ;;  %v3291_v22 = vsub.f32 0.0, %v3275_v40  ;;  %v3419_v48 = vmul.f32 %v11319_v62, %v3418_v18 }
 0x963   : > { %v14471_v55 = vpop.eup %11322  ;;  %11332 = vlog2.f32 %v3423_v24  ;;  %v3427_v30 = vadd.f32 1.0, %v3426_v3  ;;  %v3429_v11 = vand.u32 2147483647, %v11321_v27  ;;  %v3255_v57 = vmax.f32 %v14313_v35, 0.0 }
 0x964   : > { %v3432_v52 = vadd.f32 1.0, %v14471_v55  ;;  %v3435_v17 = vmul.f32 -0.5, %v14471_v55  ;;  %v3322_v26 = vmul.f32 1.442695, %v3291_v22  ;;  %v3257_v19 = vmax.f32 %v14415_v20, 0.0 }
 0x965   : > { %v11325_v7 = vpop.eup %11324  ;;  %vm3430_vm4 = vcmp.lt.f32.partialorder %v3429_v11, 0.0004427343 }
 0x966   : > { %v11327_v12 = vpop.eup %11326  ;;  %11334 = vlog2.f32 %v3432_v52  ;;  %v3441_v31 = vadd.f32 1.0, %v11325_v7  ;;  %v3444_v8 = vmul.f32 -0.5, %v11325_v7  ;;  %v3436_v16 = vadd.f32 1.0, %v3435_v17 }
 0x967   : > { %v11329_v33 = vpop.eup %11328  ;;  %v3398_v28 = vmul.f32 0.6931472, %v11327_v12  ;;  %11336 = vpow2.f32 %v3320_v29  ;;  %v3428_v52 = vmul.f32 %v11321_v27, %v3427_v30  ;;  %v3438_v29 = vand.u32 2147483647, %v14471_v55 }
 0x968   : > { %v11331_v36 = vpop.eup %11330  ;;  %v3407_v43 = vmul.f32 0.6931472, %v11329_v33  ;;  %11338 = vlog2.f32 %v3441_v31  ;;  %v3445_v18 = vadd.f32 1.0, %v3444_v8  ;;  %v3447_v12 = vand.u32 2147483647, %v11325_v7 }
 0x969   : > { %v3404_v23 = vsel %vm14476_vm15, %v3401_v54, %v3398_v28  ;;  %v3416_v15 = vmul.f32 0.6931472, %v11331_v36  ;;  %11340 = vpow2.f32 %v3322_v26  ;;  %v3437_v33 = vmul.f32 %v14471_v55, %v3436_v16 }
 0x96a   : > { %v14493_v24 = vadd.f32 %v3404_v23, %v3252_v44  ;;  %v3413_v42 = vsel %vm14482_vm2, %v3410_v59, %v3407_v43  ;;  %v3256_v54 = vmax.f32 %v14395_v9, 0.0  ;;  %vm3439_vm5 = vcmp.lt.f32.partialorder %v3438_v29, 0.0004427343 }
 0x96b   : > { %v14497_v46 = vadd.f32 %v3413_v42, %v3253_v58  ;;  %v3422_v37 = vsel %vm14486_vm3, %v3419_v48, %v3416_v15  ;;  %v3446_v36 = vmul.f32 %v11325_v7, %v3445_v18  ;;  %vm3448_vm7 = vcmp.lt.f32.partialorder %v3447_v12, 0.0004427343 }
 0x96c   : > { %18291 = vst [vmem:[#allocation68_spill] sm:$0xff] %v14493_v24  ;;  %9822 = vmatprep.mubr.msk.f32.mxu0 %vm880_vm0, %v14493_v24  ;;  %v14503_v62 = vadd.f32 %v3422_v37, %v3254_v61  ;;  %v3258_v26 = vmax.f32 %v14461_v21, 0.0  ;;  %v3259_v29 = vmax.f32 %v14469_v45, 0.0  ;;  %v12011_v21 = vld [vmem:[%s12465_s25 + $0x8] sm:$0xff] }
 0x96d   : > { %18292 = vst [vmem:[#allocation69_spill] sm:$0xff] %v14497_v46  ;;  %v11333_v44 = vpop.eup %11332  ;;  %9823 = vmatmul.mubr.msk.f32.gmra.mrb[62].mxu0 %vm880_vm0, %v14497_v46 }
 0x96e   : > { %18293 = vst [vmem:[#allocation70_spill] sm:$0xff] %v14503_v62  ;;  %9825 = vmatprep.mubr.msk.f32.mxu0 %vm880_vm0, %v14503_v62  ;;  %v3425_v58 = vmul.f32 0.6931472, %v11333_v44 }
 0x970   : > { %v11335_v40 = vpop.eup %11334  ;;  %v3431_v61 = vsel %vm3430_vm4, %v3428_v52, %v3425_v58 }
 0x971   : > { %v11337_v6 = vpop.eup %11336  ;;  %v14511_v3 = vadd.f32 %v3431_v61, %v3255_v57  ;;  %v3434_v31 = vmul.f32 0.6931472, %v11335_v40 }
 0x972   : > { %v11339_v28 = vpop.eup %11338  ;;  %v3450_v27 = vadd.f32 1.0, %v11337_v6  ;;  %v3453_v55 = vmul.f32 -0.5, %v11337_v6  ;;  %v3456_v48 = vand.u32 2147483647, %v11337_v6 }
 0x973   : > { %18294 = vst [vmem:[#allocation71_spill] sm:$0xff] %v14511_v3  ;;  %9826 = vmatmul.mubr.msk.f32.gmra.mrb[64].mxu0 %vm880_vm0, %v14511_v3  ;;  %v3440_v35 = vsel %vm3439_vm5, %v3437_v33, %v3434_v31  ;;  %v3443_v59 = vmul.f32 0.6931472, %v11339_v28  ;;  %v11341_v23 = vpop.eup %11340 }
 0x974   : > { %v14517_v43 = vadd.f32 %v3440_v35, %v3256_v54  ;;  %11342 = vlog2.f32 %v3450_v27  ;;  %v3459_v15 = vadd.f32 1.0, %v11341_v23  ;;  %v3454_v7 = vadd.f32 1.0, %v3453_v55 }
 0x975   : > { %v3449_v22 = vsel %vm3448_vm7, %v3446_v36, %v3443_v59  ;;  %v3462_v17 = vmul.f32 -0.5, %v11341_v23  ;;  %vm3457_vm8 = vcmp.lt.f32.partialorder %v3456_v48, 0.0004427343  ;;  %v3465_v8 = vand.u32 2147483647, %v11341_v23 }
 0x976   : > { %18295 = vst [vmem:[#allocation72_spill] sm:$0xff] %v14517_v43  ;;  %9828 = vmatprep.mubr.msk.f32.mxu0 %vm880_vm0, %v14517_v43  ;;  %v14522_v9 = vadd.f32 %v3449_v22, %v3257_v19  ;;  %11344 = vlog2.f32 %v3459_v15  ;;  %v3455_v30 = vmul.f32 %v11337_v6, %v3454_v7 }
 0x977   : > { %v3463_v37 = vadd.f32 1.0, %v3462_v17  ;;  %vm3466_vm9 = vcmp.lt.f32.partialorder %v3465_v8, 0.0004427343 }
 0x978   : > { %18296 = vst [vmem:[#allocation73_spill] sm:$0xff] %v14522_v9  ;;  %9829 = vmatmul.mubr.msk.f32.gmra.mrb[66].mxu0 %vm880_vm0, %v14522_v9 }
 0x979   : > { %v3464_v52 = vmul.f32 %v11341_v23, %v3463_v37 }
 0x97e   : > { %v11343_v42 = vpop.eup %11342 }
 0x97f   : > { %v3452_v20 = vmul.f32 0.6931472, %v11343_v42 }
 0x980   : > { %v11345_v16 = vpop.eup %11344 }
 0x981   : > { %v3458_v11 = vsel %vm3457_vm8, %v3455_v30, %v3452_v20  ;;  %v3461_v58 = vmul.f32 0.6931472, %v11345_v16 }
 0x982   : > { %v14527_v44 = vadd.f32 %v3458_v11, %v3258_v26 }
 0x983   : > { %v3467_v57 = vsel %vm3466_vm9, %v3464_v52, %v3461_v58 }
 0x984   : > { %18297 = vst [vmem:[#allocation74_spill] sm:$0xff] %v14527_v44  ;;  %9831 = vmatprep.mubr.msk.f32.mxu0 %vm880_vm0, %v14527_v44  ;;  %v14532_v18 = vadd.f32 %v3467_v57, %v3259_v29 }
 0x986   : > { %18298 = vst [vmem:[#allocation75_spill] sm:$0xff] %v14532_v18  ;;  %9832 = vmatmul.mubr.msk.f32.gmra.mrb[68].mxu0 %vm880_vm0, %v14532_v18 }
 0x987   : > { %4043 = vmatprep.mubr.f32.mxu0 %v12011_v21 }
 0xa24   : > { %v9812_v40 = vpop.f32.mrb[54].mxu0 }
 0xa25   : > { %v3608_v61 = vpop.f32.mrb[55].mxu0 }
 0xa26   : > { %v10878_v12 = vpack.i.bf16 %v9812_v40, %v3608_v61  ;;  %v10362_v6 = vpack.c.bf16 %v9812_v40, %v3608_v61 }
 0xa28   : > { %10879 = vrot.lane.b32.xlu0 %v10878_v12, %s12306_s12  ;;  %v9815_v31 = vpop.f32.mrb[56].mxu0  ;;  %10363 = vmatpush1.bf16.msra.mxu0 %v10362_v6 }
 0xa29   : > { %v3618_v33 = vpop.f32.mrb[57].mxu0  ;;  %10364 = vmatprep.subr.bf16.mxu0 %v18200_v14 }
 0xa2a   : > { %v10883_v45 = vpack.i.bf16 %v9815_v31, %v3618_v33  ;;  %v10365_v28 = vpack.c.bf16 %v9815_v31, %v3618_v33 }
 0xa2c   : > { %10884 = vrot.lane.b32.xlu1 %v10883_v45, %s12306_s12  ;;  %10366 = vmatpush1.bf16.msra.mxu0 %v10365_v28 }
 0xa2d   : > { %v9818_v54 = vpop.f32.mrb[58].mxu0  ;;  %10367 = vmatprep.subr.bf16.mxu0 %v18200_v14 }
 0xa2e   : > { %v3628_v27 = vpop.f32.mrb[59].mxu0 }
 0xa2f   : > { %v10888_v35 = vpack.i.bf16 %v9818_v54, %v3628_v27  ;;  %v10368_v59 = vpack.c.bf16 %v9818_v54, %v3628_v27 }
 0xa31   : > { %10889 = vrot.lane.b32.xlu0 %v10888_v35, %s12306_s12  ;;  %v9821_v36 = vpop.f32.mrb[60].mxu0  ;;  %10369 = vmatpush1.bf16.msra.mxu0 %v10368_v59 }
 0xa32   : > { %v3638_v19 = vpop.f32.mrb[61].mxu0  ;;  %10370 = vmatprep.subr.bf16.mxu0 %v18200_v14 }
 0xa33   : > { %v10893_v22 = vpack.i.bf16 %v9821_v36, %v3638_v19  ;;  %v10371_v23 = vpack.c.bf16 %v9821_v36, %v3638_v19 }
 0xa35   : > { %10894 = vrot.lane.b32.xlu1 %v10893_v22, %s12306_s12  ;;  %10372 = vmatpush1.bf16.msra.mxu0 %v10371_v23 }
 0xa36   : > { %10373 = vmatprep.subr.bf16.mxu0 %v18200_v14 }
 0xa40   : > { %v9824_v55 = vpop.f32.mrb[62].mxu0 }
 0xa41   : > { %v3648_v15 = vpop.f32.mrb[63].mxu0 }
 0xa42   : > { %v10898_v7 = vpack.i.bf16 %v9824_v55, %v3648_v15  ;;  %v10374_v48 = vpack.c.bf16 %v9824_v55, %v3648_v15 }
 0xa44   : > { %10899 = vrot.lane.b32.xlu0 %v10898_v7, %s12306_s12  ;;  %10375 = vmatpush1.bf16.msra.mxu0 %v10374_v48 }
 0xa45   : > { %10376 = vmatprep.subr.bf16.mxu0 %v18200_v14 }
 0xa46   : > { %v9827_v17 = vpop.f32.mrb[64].mxu0 }
 0xa47   : > { %v3658_v42 = vpop.f32.mrb[65].mxu0 }
 0xa48   : > { %v10903_v20 = vpack.i.bf16 %v9827_v17, %v3658_v42  ;;  %v10377_v30 = vpack.c.bf16 %v9827_v17, %v3658_v42 }
 0xa4a   : > { %10904 = vrot.lane.b32.xlu1 %v10903_v20, %s12306_s12  ;;  %10378 = vmatpush1.bf16.msra.mxu0 %v10377_v30 }
 0xa4b   : > { %v9830_v26 = vpop.f32.mrb[66].mxu0  ;;  %10379 = vmatprep.subr.bf16.mxu0 %v18200_v14 }
 0xa4c   : > { %v3668_v37 = vpop.f32.mrb[67].mxu0 }
 0xa4d   : > { %v10908_v11 = vpack.i.bf16 %v9830_v26, %v3668_v37  ;;  %v10380_v8 = vpack.c.bf16 %v9830_v26, %v3668_v37 }
 0xa4f   : > { %10909 = vrot.lane.b32.xlu0 %v10908_v11, %s12306_s12  ;;  %10381 = vmatpush1.bf16.msra.mxu0 %v10380_v8 }
 0xa50   : > { %10382 = vmatprep.subr.bf16.mxu0 %v18200_v14 }
 0xa59   : > { %v9833_v16 = vpop.f32.mrb[68].mxu0 }
 0xa5a   : > { %v3678_v58 = vpop.f32.mrb[69].mxu0 }
 0xa5b   : > { %v10913_v52 = vpack.i.bf16 %v9833_v16, %v3678_v58  ;;  %v10383_v29 = vpack.c.bf16 %v9833_v16, %v3678_v58 }
 0xa5d   : > { %10914 = vrot.lane.b32.xlu1 %v10913_v52, %s12306_s12  ;;  %10384 = vmatpush1.bf16.msra.mxu0 %v10383_v29  ;;  %v12012_v52 = vld [vmem:[%s12465_s25] sm:$0xff]  ;;  %v12013_v29 = vld [vmem:[%s12465_s25 + $0x18] sm:$0xff] }
 0xa5e   : > { %10385 = vmatprep.subr.bf16.mxu0 %v18200_v14 }
 0xa9a   : > { %v10880_v57 = vpop.permute.xlu0 %10879 }
 0xa9b   : > { %v10882_v21 = vunpack.i.h.bf16 %v10880_v57  ;;  %v10881_v40 = vunpack.i.l.bf16 %v10880_v57  ;;  %v12014_v57 = vld [vmem:[%s12465_s25 + $0x10] sm:$0xff] }
 0xa9d   : > { %v10386_v61 = vpack.c.bf16 %v10882_v21, %v10881_v40  ;;  %v12015_v21 = vld [vmem:[%s12465_s25 + $0x28] sm:$0xff]  ;;  %v12016_v40 = vld [vmem:[%s12465_s25 + $0x20] sm:$0xff] }
 0xa9e   : > { %v10885_v12 = vpop.permute.xlu1 %10884 }
 0xa9f   : > { %v10887_v6 = vunpack.i.h.bf16 %v10885_v12  ;;  %v10886_v31 = vunpack.i.l.bf16 %v10885_v12  ;;  %10387 = vmatpush1.bf16.msra.mxu0 %v10386_v61  ;;  %v12017_v61 = vld [vmem:[%s12465_s25 + $0x38] sm:$0xff]  ;;  %v12018_v12 = vld [vmem:[%s12465_s25 + $0x30] sm:$0xff] }
 0xaa0   : > { %10388 = vmatprep.subr.bf16.mxu0 %v18200_v14 }
 0xaa1   : > { %v10389_v33 = vpack.c.bf16 %v10887_v6, %v10886_v31  ;;  %v12019_v6 = vld [vmem:[%s12465_s25 + $0x48] sm:$0xff]  ;;  %v12020_v31 = vld [vmem:[%s12465_s25 + $0x40] sm:$0xff] }
 0xaa3   : > { %v10890_v45 = vpop.permute.xlu0 %10889  ;;  %10390 = vmatpush1.bf16.msra.mxu0 %v10389_v33  ;;  %v12021_v33 = vld [vmem:[%s12465_s25 + $0x58] sm:$0xff] }
 0xaa4   : > { %v10892_v28 = vunpack.i.h.bf16 %v10890_v45  ;;  %v10891_v54 = vunpack.i.l.bf16 %v10890_v45  ;;  %10391 = vmatprep.subr.bf16.mxu0 %v18200_v14  ;;  %v12022_v45 = vld [vmem:[%s12465_s25 + $0x50] sm:$0xff] }
 0xaa6   : > { %v10392_v27 = vpack.c.bf16 %v10892_v28, %v10891_v54  ;;  %v12023_v28 = vld [vmem:[%s12465_s25 + $0x68] sm:$0xff]  ;;  %v12024_v54 = vld [vmem:[%s12465_s25 + $0x60] sm:$0xff] }
 0xaa7   : > { %v10895_v35 = vpop.permute.xlu1 %10894 }
 0xaa8   : > { %v10897_v59 = vunpack.i.h.bf16 %v10895_v35  ;;  %v10896_v36 = vunpack.i.l.bf16 %v10895_v35  ;;  %10393 = vmatpush1.bf16.msra.mxu0 %v10392_v27  ;;  %v12025_v27 = vld [vmem:[%s12465_s25 + $0x78] sm:$0xff]  ;;  %v12026_v35 = vld [vmem:[%s12465_s25 + $0x70] sm:$0xff] }
 0xaa9   : > { %10394 = vmatprep.subr.bf16.mxu0 %v18200_v14 }
 0xaaa   : > { %v10395_v19 = vpack.c.bf16 %v10897_v59, %v10896_v36  ;;  %v12027_v59 = vld [vmem:[%s12465_s25 + $0x88] sm:$0xff]  ;;  %v12028_v36 = vld [vmem:[%s12465_s25 + $0x80] sm:$0xff] }
 0xaac   : > { %10396 = vmatpush1.bf16.msra.mxu0 %v10395_v19  ;;  %v12029_v19 = vld [vmem:[%s12465_s25 + $0x98] sm:$0xff] }
 0xaad   : > { %10397 = vmatprep.subr.bf16.mxu0 %v18200_v14 }
 0xab6   : > { %v10900_v22 = vpop.permute.xlu0 %10899 }
 0xab7   : > { %v10902_v23 = vunpack.i.h.bf16 %v10900_v22  ;;  %v10901_v55 = vunpack.i.l.bf16 %v10900_v22  ;;  %v12030_v22 = vld [vmem:[%s12465_s25 + $0x90] sm:$0xff] }
 0xab9   : > { %v10398_v15 = vpack.c.bf16 %v10902_v23, %v10901_v55  ;;  %v12031_v23 = vld [vmem:[%s12465_s25 + $0xa8] sm:$0xff]  ;;  %v12032_v55 = vld [vmem:[%s12465_s25 + $0xa0] sm:$0xff] }
 0xabb   : > { %10399 = vmatpush1.bf16.msra.mxu0 %v10398_v15  ;;  %v12033_v15 = vld [vmem:[%s12465_s25 + $0xb8] sm:$0xff] }
 0xabc   : > { %v10905_v7 = vpop.permute.xlu1 %10904  ;;  %10400 = vmatprep.subr.bf16.mxu0 %v18200_v14 }
 0xabd   : > { %v10907_v48 = vunpack.i.h.bf16 %v10905_v7  ;;  %v10906_v17 = vunpack.i.l.bf16 %v10905_v7  ;;  %v12034_v7 = vld [vmem:[%s12465_s25 + $0xb0] sm:$0xff] }
 0xabf   : > { %v10401_v42 = vpack.c.bf16 %v10907_v48, %v10906_v17  ;;  %v12035_v48 = vld [vmem:[%s12465_s25 + $0xc8] sm:$0xff]  ;;  %v12036_v17 = vld [vmem:[%s12465_s25 + $0xc0] sm:$0xff] }
 0xac1   : > { %v10910_v20 = vpop.permute.xlu0 %10909  ;;  %10402 = vmatpush1.bf16.msra.mxu0 %v10401_v42  ;;  %v12037_v42 = vld [vmem:[%s12465_s25 + $0xd8] sm:$0xff] }
 0xac2   : > { %v10912_v30 = vunpack.i.h.bf16 %v10910_v20  ;;  %v10911_v26 = vunpack.i.l.bf16 %v10910_v20  ;;  %10403 = vmatprep.subr.bf16.mxu0 %v18200_v14  ;;  %v12038_v20 = vld [vmem:[%s12465_s25 + $0xd0] sm:$0xff] }
 0xac4   : > { %v10404_v37 = vpack.c.bf16 %v10912_v30, %v10911_v26  ;;  %v12039_v30 = vld [vmem:[%s12465_s25 + $0xe8] sm:$0xff]  ;;  %v12040_v26 = vld [vmem:[%s12465_s25 + $0xe0] sm:$0xff] }
 0xac6   : > { %10405 = vmatpush1.bf16.msra.mxu0 %v10404_v37  ;;  %v12041_v37 = vld [vmem:[%s12465_s25 + $0xf8] sm:$0xff] }
 0xac7   : > { %10406 = vmatprep.subr.bf16.mxu0 %v18200_v14 }
 0xacf   : > { %v10915_v11 = vpop.permute.xlu1 %10914 }
 0xad0   : > { %v10917_v8 = vunpack.i.h.bf16 %v10915_v11  ;;  %v10916_v16 = vunpack.i.l.bf16 %v10915_v11  ;;  %v12042_v11 = vld [vmem:[%s12465_s25 + $0xf0] sm:$0xff] }
 0xad2   : > { %v10407_v58 = vpack.c.bf16 %v10917_v8, %v10916_v16  ;;  %v12043_v8 = vld [vmem:[%s12465_s25 + $0x108] sm:$0xff]  ;;  %v12044_v16 = vld [vmem:[%s12465_s25 + $0x100] sm:$0xff] }
 0xad4   : > { %10408 = vmatpush1.bf16.msra.mxu0 %v10407_v58  ;;  %v12045_v58 = vld [vmem:[%s12465_s25 + $0x118] sm:$0xff] }
 0xad5   : > { %10505 = vmatprep.subr.bf16.mxu0 %v18200_v14 }
 0xad7   : > { %4044 = vmatmul.mubr.f32.vlgmr.msra.gmra.mrb[70].mxu0 %v12012_v52  ;;  %v12046_v52 = vld [vmem:[%s12465_s25 + $0x110] sm:$0xff] }
 0xad8   : > { %4048 = vmatprep.mubr.f32.mxu0 %v12013_v29  ;;  %v12047_v29 = vld [vmem:[%s12465_s25 + $0x128] sm:$0xff] }
 0xadb   : > { %4049 = vmatmul.mubr.f32.gmra.mrb[72].mxu0 %v12014_v57  ;;  %v12048_v57 = vld [vmem:[%s12465_s25 + $0x120] sm:$0xff] }
 0xadc   : > { %4053 = vmatprep.mubr.f32.mxu0 %v12015_v21  ;;  %v12049_v21 = vld [vmem:[%s12465_s25 + $0x138] sm:$0xff] }
 0xadf   : > { %4054 = vmatmul.mubr.f32.gmra.mrb[74].mxu0 %v12016_v40  ;;  %v12050_v40 = vld [vmem:[%s12465_s25 + $0x130] sm:$0xff] }
 0xae0   : > { %4058 = vmatprep.mubr.f32.mxu0 %v12017_v61  ;;  %v12051_v61 = vld [vmem:[%s12465_s25 + $0x148] sm:$0xff] }
 0xae3   : > { %4059 = vmatmul.mubr.f32.gmra.mrb[76].mxu0 %v12018_v12  ;;  %v12052_v12 = vld [vmem:[%s12465_s25 + $0x140] sm:$0xff] }
 0xae4   : > { %4063 = vmatprep.mubr.f32.mxu0 %v12019_v6  ;;  %v12053_v6 = vld [vmem:[%s12465_s25 + $0x158] sm:$0xff] }
 0xae7   : > { %4064 = vmatmul.mubr.f32.gmra.mrb[78].mxu0 %v12020_v31  ;;  %v12054_v31 = vld [vmem:[%s12465_s25 + $0x150] sm:$0xff] }
 0xae8   : > { %4068 = vmatprep.mubr.f32.mxu0 %v12021_v33  ;;  %v12055_v33 = vld [vmem:[%s12465_s25 + $0x168] sm:$0xff] }
 0xaeb   : > { %4069 = vmatmul.mubr.f32.gmra.mrb[80].mxu0 %v12022_v45  ;;  %v12056_v45 = vld [vmem:[%s12465_s25 + $0x160] sm:$0xff] }
 0xaec   : > { %4073 = vmatprep.mubr.f32.mxu0 %v12023_v28  ;;  %v12057_v28 = vld [vmem:[%s12465_s25 + $0x178] sm:$0xff] }
 0xaef   : > { %4074 = vmatmul.mubr.f32.gmra.mrb[82].mxu0 %v12024_v54  ;;  %v12058_v54 = vld [vmem:[%s12465_s25 + $0x170] sm:$0xff] }
 0xaf0   : > { %4078 = vmatprep.mubr.f32.mxu0 %v12025_v27  ;;  %v12059_v27 = vld [vmem:[%s12465_s25 + $0x188] sm:$0xff] }
 0xaf3   : > { %4079 = vmatmul.mubr.f32.gmra.mrb[84].mxu0 %v12026_v35  ;;  %v12060_v35 = vld [vmem:[%s12465_s25 + $0x180] sm:$0xff] }
 0xaf4   : > { %4083 = vmatprep.mubr.f32.mxu0 %v12027_v59  ;;  %v12061_v59 = vld [vmem:[%s12465_s25 + $0x198] sm:$0xff] }
 0xaf7   : > { %4084 = vmatmul.mubr.f32.gmra.mrb[86].mxu0 %v12028_v36  ;;  %v12062_v36 = vld [vmem:[%s12465_s25 + $0x190] sm:$0xff] }
 0xaf8   : > { %4088 = vmatprep.mubr.f32.mxu0 %v12029_v19  ;;  %v12063_v19 = vld [vmem:[%s12465_s25 + $0x1a8] sm:$0xff] }
 0xafb   : > { %4089 = vmatmul.mubr.f32.gmra.mrb[88].mxu0 %v12030_v22  ;;  %v12064_v22 = vld [vmem:[%s12465_s25 + $0x1a0] sm:$0xff] }
 0xafc   : > { %4093 = vmatprep.mubr.f32.mxu0 %v12031_v23  ;;  %v12065_v23 = vld [vmem:[%s12465_s25 + $0x1b8] sm:$0xff] }
 0xaff   : > { %4094 = vmatmul.mubr.f32.gmra.mrb[90].mxu0 %v12032_v55  ;;  %v12066_v55 = vld [vmem:[%s12465_s25 + $0x1b0] sm:$0xff] }
 0xb00   : > { %4098 = vmatprep.mubr.f32.mxu0 %v12033_v15  ;;  %v12067_v15 = vld [vmem:[%s12465_s25 + $0x1c8] sm:$0xff] }
 0xb03   : > { %4099 = vmatmul.mubr.f32.gmra.mrb[92].mxu0 %v12034_v7  ;;  %v12068_v7 = vld [vmem:[%s12465_s25 + $0x1c0] sm:$0xff] }
 0xb04   : > { %4103 = vmatprep.mubr.f32.mxu0 %v12035_v48  ;;  %v12069_v48 = vld [vmem:[%s12465_s25 + $0x1d8] sm:$0xff] }
 0xb07   : > { %4104 = vmatmul.mubr.f32.gmra.mrb[94].mxu0 %v12036_v17  ;;  %v12070_v17 = vld [vmem:[%s12465_s25 + $0x1d0] sm:$0xff] }
 0xb08   : > { %4108 = vmatprep.mubr.f32.mxu0 %v12037_v42  ;;  %v12071_v42 = vld [vmem:[%s12465_s25 + $0x1e8] sm:$0xff] }
 0xb0b   : > { %4109 = vmatmul.mubr.f32.gmra.mrb[96].mxu0 %v12038_v20  ;;  %v12072_v20 = vld [vmem:[%s12465_s25 + $0x1e0] sm:$0xff] }
 0xb0c   : > { %4113 = vmatprep.mubr.f32.mxu0 %v12039_v30  ;;  %v12073_v30 = vld [vmem:[%s12465_s25 + $0x1f8] sm:$0xff] }
 0xb0f   : > { %4114 = vmatmul.mubr.f32.gmra.mrb[98].mxu0 %v12040_v26  ;;  %v12074_v26 = vld [vmem:[%s12465_s25 + $0x1f0] sm:$0xff] }
 0xb10   : > { %4118 = vmatprep.mubr.f32.mxu0 %v12041_v37  ;;  %v18299_v37 = vmov 0.0  }
 0xb13   : > { %4119 = vmatmul.mubr.f32.gmra.mrb[100].mxu0 %v12042_v11 }
 0xb14   : > { %4123 = vmatprep.mubr.f32.mxu0 %v12043_v8 }
 0xb17   : > { %4124 = vmatmul.mubr.f32.gmra.mrb[102].mxu0 %v12044_v16 }
 0xb18   : > { %4128 = vmatprep.mubr.f32.mxu0 %v12045_v58 }
 0xb1b   : > { %4129 = vmatmul.mubr.f32.gmra.mrb[104].mxu0 %v12046_v52 }
 0xb1c   : > { %4133 = vmatprep.mubr.f32.mxu0 %v12047_v29 }
 0xb1f   : > { %4134 = vmatmul.mubr.f32.gmra.mrb[106].mxu0 %v12048_v57 }
 0xb20   : > { %4138 = vmatprep.mubr.f32.mxu0 %v12049_v21 }
 0xb23   : > { %4139 = vmatmul.mubr.f32.gmra.mrb[108].mxu0 %v12050_v40 }
 0xb24   : > { %4143 = vmatprep.mubr.f32.mxu0 %v12051_v61 }
 0xb27   : > { %4144 = vmatmul.mubr.f32.gmra.mrb[110].mxu0 %v12052_v12 }
 0xb28   : > { %4148 = vmatprep.mubr.f32.mxu0 %v12053_v6 }
 0xb2b   : > { %4149 = vmatmul.mubr.f32.gmra.mrb[112].mxu0 %v12054_v31 }
 0xb2c   : > { %4153 = vmatprep.mubr.f32.mxu0 %v12055_v33 }
 0xb2f   : > { %4154 = vmatmul.mubr.f32.gmra.mrb[114].mxu0 %v12056_v45 }
 0xb30   : > { %4158 = vmatprep.mubr.f32.mxu0 %v12057_v28 }
 0xb33   : > { %4159 = vmatmul.mubr.f32.gmra.mrb[116].mxu0 %v12058_v54 }
 0xb34   : > { %4163 = vmatprep.mubr.f32.mxu0 %v12059_v27 }
 0xb37   : > { %4164 = vmatmul.mubr.f32.gmra.mrb[118].mxu0 %v12060_v35 }
 0xb38   : > { %4168 = vmatprep.mubr.f32.mxu0 %v12061_v59 }
 0xb3b   : > { %4169 = vmatmul.mubr.f32.gmra.mrb[120].mxu0 %v12062_v36 }
 0xb3c   : > { %4173 = vmatprep.mubr.f32.mxu0 %v12063_v19  ;;  %v18300_v19 = vld [vmem:[#allocation42_spill] sm:$0xff] }
 0xb3f   : > { %4174 = vmatmul.mubr.f32.gmra.mrb[122].mxu0 %v12064_v22 }
 0xb40   : > { %4178 = vmatprep.mubr.f32.mxu0 %v12065_v23 }
 0xb43   : > { %4179 = vmatmul.mubr.f32.gmra.mrb[124].mxu0 %v12066_v55  ;;  %v18301_v55 = vld [vmem:[#allocation41_spill] sm:$0xff] }
 0xb44   : > { %4183 = vmatprep.mubr.f32.mxu0 %v12067_v15 }
 0xb47   : > { %4184 = vmatmul.mubr.f32.gmra.mrb[126].mxu0 %v12068_v7 }
 0xb48   : > { %4188 = vmatprep.mubr.f32.mxu0 %v12069_v48  ;;  %v18302_v48 = vld [vmem:[#allocation44_spill] sm:$0xff] }
 0xb4b   : > { %4189 = vmatmul.mubr.f32.gmra.mrb[128].mxu0 %v12070_v17 }
 0xb4c   : > { %4193 = vmatprep.mubr.f32.mxu0 %v12071_v42 }
 0xb4f   : > { %4194 = vmatmul.mubr.f32.gmra.mrb[130].mxu0 %v12072_v20  ;;  %v18303_v20 = vld [vmem:[#allocation43_spill] sm:$0xff] }
 0xb50   : > { %4198 = vmatprep.mubr.f32.mxu0 %v12073_v30 }
 0xb53   : > { %4199 = vmatmul.mubr.f32.gmra.mrb[132].mxu0 %v12074_v26 }
 0xb54   : > { %9918 = vmatprep.mubr.msk.f32.mxu0 %vm12309_vm6, %v18299_v37 }
 0xbaa   : > { %v4045_v11 = vpop.f32.mrb[70].mxu0 }
 0xbab   : > { %v4046_v8 = vadd.f32 %v4045_v11, %v14155_v51  ;;  %v4047_v16 = vpop.f32.mrb[71].mxu0  ;;  %v18304_v11 = vld [vmem:[#allocation46_spill] sm:$0xff] }
 0xbae   : > { %v4050_v58 = vpop.f32.mrb[72].mxu0 }
 0xbaf   : > { %v4051_v52 = vadd.f32 %v14153_v2, %v4050_v58  ;;  %v4052_v29 = vpop.f32.mrb[73].mxu0 }
 0xbb2   : > { %v4055_v57 = vpop.f32.mrb[74].mxu0 }
 0xbb3   : > { %v14629_v21 = vadd.f32 %v4055_v57, %v14159_v47  ;;  %v4057_v40 = vpop.f32.mrb[75].mxu0  ;;  %v18305_v57 = vld [vmem:[#allocation45_spill] sm:$0xff] }
 0xbb6   : > { %v4060_v61 = vpop.f32.mrb[76].mxu0 }
 0xbb7   : > { %v4061_v12 = vadd.f32 %v14157_v10, %v4060_v61  ;;  %v4062_v6 = vpop.f32.mrb[77].mxu0 }
 0xbba   : > { %v4065_v31 = vpop.f32.mrb[78].mxu0 }
 0xbbb   : > { %v14633_v33 = vadd.f32 %v4065_v31, %v14163_v60  ;;  %v4067_v45 = vpop.f32.mrb[79].mxu0  ;;  %v18306_v31 = vld [vmem:[#allocation48_spill] sm:$0xff] }
 0xbbe   : > { %v4070_v51 = vpop.f32.mrb[80].mxu0 }
 0xbbf   : > { %v14636_v28 = vadd.f32 %v14161_v50, %v4070_v51  ;;  %v4072_v2 = vpop.f32.mrb[81].mxu0 }
 0xbc2   : > { %v4075_v54 = vpop.f32.mrb[82].mxu0 }
 0xbc3   : > { %v14639_v27 = vadd.f32 %v4075_v54, %v14170_v56  ;;  %v4077_v47 = vpop.f32.mrb[83].mxu0  ;;  %v18307_v54 = vld [vmem:[#allocation47_spill] sm:$0xff] }
 0xbc6   : > { %v4080_v35 = vpop.f32.mrb[84].mxu0 }
 0xbc7   : > { %v14642_v59 = vadd.f32 %v14168_v4, %v4080_v35  ;;  %v4082_v10 = vpop.f32.mrb[85].mxu0 }
 0xbca   : > { %v4085_v36 = vpop.f32.mrb[86].mxu0 }
 0xbcb   : > { %v14645_v60 = vadd.f32 %v4085_v36, %v18300_v19  ;;  %v4087_v22 = vpop.f32.mrb[87].mxu0  ;;  %v18308_v36 = vld [vmem:[#allocation50_spill] sm:$0xff] }
 0xbce   : > { %v4090_v23 = vpop.f32.mrb[88].mxu0 }
 0xbcf   : > { %v14648_v50 = vadd.f32 %v18301_v55, %v4090_v23  ;;  %v4092_v15 = vpop.f32.mrb[89].mxu0  ;;  %v14672_v55 = vld [vmem:[%s17941_s0 + $0x6] ss:$0 sm:$0xff] }
 0xbd0   : > { %v18309_v15 = vld [vmem:[#allocation49_spill] sm:$0xff] }
 0xbd2   : > { %v4095_v7 = vpop.f32.mrb[90].mxu0 }
 0xbd3   : > { %v14651_v56 = vadd.f32 %v4095_v7, %v18302_v48  ;;  %v4097_v17 = vpop.f32.mrb[91].mxu0 }
 0xbd4   : > { %v14676_v17 = vadd.f32 %v14672_v55, %v4051_v52 }
 0xbd6   : > { %v4100_v42 = vpop.f32.mrb[92].mxu0 }
 0xbd7   : > { %v14654_v4 = vadd.f32 %v18303_v20, %v4100_v42  ;;  %v4102_v30 = vpop.f32.mrb[93].mxu0 }
 0xbd8   : > { %v14685_v30 = vadd.f32 %v14672_v55, %v4046_v8 }
 0xbda   : > { %v4105_v26 = vpop.f32.mrb[94].mxu0  ;;  %v10411_v52 = vpack.c.bf16 %v14676_v17, %v14685_v30 }
 0xbdb   : > { %v14657_v16 = vadd.f32 %v4105_v26, %v18304_v11  ;;  %v4107_v58 = vpop.f32.mrb[95].mxu0  ;;  %v18310_v11 = vld [vmem:[#allocation52_spill] sm:$0xff] }
 0xbde   : > { %v4110_v29 = vpop.f32.mrb[96].mxu0 }
 0xbdf   : > { %v14660_v40 = vadd.f32 %v18305_v57, %v4110_v29  ;;  %v4112_v61 = vpop.f32.mrb[97].mxu0 }
 0xbe2   : > { %v4115_v6 = vpop.f32.mrb[98].mxu0 }
 0xbe3   : > { %v14663_v45 = vadd.f32 %v4115_v6, %v18306_v31  ;;  %v4117_v51 = vpop.f32.mrb[99].mxu0  ;;  %v18311_v6 = vld [vmem:[#allocation51_spill] sm:$0xff] }
 0xbe6   : > { %v4120_v2 = vpop.f32.mrb[100].mxu0 }
 0xbe7   : > { %v14666_v47 = vadd.f32 %v18307_v54, %v4120_v2  ;;  %v4122_v35 = vpop.f32.mrb[101].mxu0  ;;  %v14694_v2 = vadd.f32 %v14672_v55, %v4061_v12 }
 0xbe8   : > { %v14704_v35 = vadd.f32 %v14672_v55, %v14629_v21  ;;  %v14714_v21 = vadd.f32 %v14672_v55, %v14636_v28 }
 0xbea   : > { %v4125_v10 = vpop.f32.mrb[102].mxu0  ;;  %v10415_v12 = vpack.c.bf16 %v14694_v2, %v14704_v35 }
 0xbeb   : > { %v4126_v19 = vadd.f32 %v4125_v10, %v18308_v36  ;;  %v4127_v22 = vpop.f32.mrb[103].mxu0  ;;  %v18312_v36 = vld [vmem:[#allocation54_spill] sm:$0xff] }
 0xbed   : > { %v14679_v42 = vadd.f32 %v14672_v55, %v4126_v19 }
 0xbee   : > { %v4130_v23 = vpop.f32.mrb[104].mxu0 }
 0xbef   : > { %v4131_v7 = vadd.f32 %v18309_v15, %v4130_v23  ;;  %v4132_v48 = vpop.f32.mrb[105].mxu0 }
 0xbf1   : > { %v14682_v20 = vadd.f32 %v14672_v55, %v4131_v7  ;;  %v18313_v7 = vld [vmem:[#allocation53_spill] sm:$0xff] }
 0xbf2   : > { %v4135_v26 = vpop.f32.mrb[106].mxu0 }
 0xbf3   : > { %v4136_v58 = vadd.f32 %v4135_v26, %v18310_v11  ;;  %v4137_v29 = vpop.f32.mrb[107].mxu0  ;;  %v10409_v57 = vpack.c.bf16 %v14682_v20, %v14679_v42 }
 0xbf4   : > { %v14724_v29 = vadd.f32 %v14672_v55, %v14633_v33  ;;  %v14734_v33 = vadd.f32 %v14672_v55, %v14642_v59 }
 0xbf5   : > { %10410 = vmatprep.subr.bf16.mxu1 %v10409_v57  ;;  %v14697_v8 = vadd.f32 %v14672_v55, %v4136_v58 }
 0xbf6   : > { %v4140_v61 = vpop.f32.mrb[108].mxu0  ;;  %10412 = vmatpush3.bf16.msra.mxu1 %v10411_v52  ;;  %v18314_v52 = vld [vmem:[#allocation56_spill] sm:$0xff]  ;;  %v10419_v28 = vpack.c.bf16 %v14714_v21, %v14724_v29 }
 0xbf7   : > { %v4141_v31 = vadd.f32 %v18311_v6, %v4140_v61  ;;  %v4142_v51 = vpop.f32.mrb[109].mxu0 }
 0xbf9   : > { %v14700_v54 = vadd.f32 %v14672_v55, %v4141_v31 }
 0xbfa   : > { %v4145_v10 = vpop.f32.mrb[110].mxu0 }
 0xbfb   : > { %v4146_v19 = vadd.f32 %v4145_v10, %v18312_v36  ;;  %v4147_v22 = vpop.f32.mrb[111].mxu0  ;;  %v10413_v23 = vpack.c.bf16 %v14700_v54, %v14697_v8  ;;  %v18315_v10 = vld [vmem:[#allocation55_spill] sm:$0xff] }
 0xbfd   : > { %10414 = vmatprep.subr.bf16.mxu1 %v10413_v23  ;;  %v14717_v11 = vadd.f32 %v14672_v55, %v4146_v19 }
 0xbfe   : > { %v4150_v15 = vpop.f32.mrb[112].mxu0  ;;  %10416 = vmatpush3.bf16.msra.mxu1 %v10415_v12  ;;  %v14744_v12 = vadd.f32 %v14672_v55, %v14639_v27  ;;  %v14754_v27 = vadd.f32 %v14672_v55, %v14648_v50 }
 0xbff   : > { %v4151_v48 = vadd.f32 %v18313_v7, %v4150_v15  ;;  %v4152_v26 = vpop.f32.mrb[113].mxu0  ;;  %v18316_v7 = vld [vmem:[#allocation58_spill] sm:$0xff] }
 0xc00   : > { %v10423_v59 = vpack.c.bf16 %v14734_v33, %v14744_v12 }
 0xc01   : > { %v14720_v58 = vadd.f32 %v14672_v55, %v4151_v48 }
 0xc02   : > { %v4155_v57 = vpop.f32.mrb[114].mxu0 }
 0xc03   : > { %v4156_v61 = vadd.f32 %v4155_v57, %v18314_v52  ;;  %v4157_v6 = vpop.f32.mrb[115].mxu0  ;;  %v10417_v31 = vpack.c.bf16 %v14720_v58, %v14717_v11 }
 0xc05   : > { %10418 = vmatprep.subr.bf16.mxu1 %v10417_v31  ;;  %v14737_v22 = vadd.f32 %v14672_v55, %v4156_v61  ;;  %v18317_v61 = vld [vmem:[#allocation57_spill] sm:$0xff] }
 0xc06   : > { %v4160_v51 = vpop.f32.mrb[116].mxu0  ;;  %10420 = vmatpush3.bf16.msra.mxu1 %v10419_v28 }
 0xc07   : > { %v4161_v36 = vadd.f32 %v18315_v10, %v4160_v51  ;;  %v4162_v19 = vpop.f32.mrb[117].mxu0  ;;  %v14764_v10 = vadd.f32 %v14672_v55, %v14645_v60  ;;  %v14774_v60 = vadd.f32 %v14672_v55, %v14654_v4 }
 0xc09   : > { %v14740_v23 = vadd.f32 %v14672_v55, %v4161_v36  ;;  %v10427_v50 = vpack.c.bf16 %v14754_v27, %v14764_v10 }
 0xc0a   : > { %v4165_v15 = vpop.f32.mrb[118].mxu0 }
 0xc0b   : > { %v4166_v48 = vadd.f32 %v4165_v15, %v18316_v7  ;;  %v4167_v26 = vpop.f32.mrb[119].mxu0  ;;  %v10421_v57 = vpack.c.bf16 %v14740_v23, %v14737_v22 }
 0xc0c   : > { %v18318_v26 = vld [vmem:[#allocation59_spill] sm:$0xff] }
 0xc0d   : > { %10422 = vmatprep.subr.bf16.mxu1 %v10421_v57  ;;  %v14757_v28 = vadd.f32 %v14672_v55, %v4166_v48 }
 0xc0e   : > { %v4170_v52 = vpop.f32.mrb[120].mxu0  ;;  %10424 = vmatpush3.bf16.msra.mxu1 %v10423_v59 }
 0xc0f   : > { %v4171_v6 = vadd.f32 %v18317_v61, %v4170_v52  ;;  %v4172_v31 = vpop.f32.mrb[121].mxu0  ;;  %v14784_v61 = vadd.f32 %v14672_v55, %v14651_v56  ;;  %v14794_v56 = vadd.f32 %v14672_v55, %v14660_v40 }
 0xc11   : > { %v14760_v51 = vadd.f32 %v14672_v55, %v4171_v6  ;;  %v10431_v4 = vpack.c.bf16 %v14774_v60, %v14784_v61 }
 0xc12   : > { %v4175_v36 = vpop.f32.mrb[122].mxu0 }
 0xc13   : > { %v4176_v19 = vadd.f32 %v4175_v36, %v14356_v63  ;;  %v4177_v15 = vpop.f32.mrb[123].mxu0  ;;  %v10425_v7 = vpack.c.bf16 %v14760_v51, %v14757_v28 }
 0xc15   : > { %10426 = vmatprep.subr.bf16.mxu1 %v10425_v7  ;;  %v14777_v52 = vadd.f32 %v14672_v55, %v4176_v19 }
 0xc16   : > { %v4180_v48 = vpop.f32.mrb[124].mxu0  ;;  %10428 = vmatpush3.bf16.msra.mxu1 %v10427_v50 }
 0xc17   : > { %v4181_v57 = vadd.f32 %v18318_v26, %v4180_v48  ;;  %v4182_v59 = vpop.f32.mrb[125].mxu0  ;;  %v14804_v26 = vadd.f32 %v14672_v55, %v14657_v16  ;;  %v14814_v16 = vadd.f32 %v14672_v55, %v14666_v47  ;;  %v18319_v47 = vmov 1.0  }
 0xc19   : > { %v14780_v63 = vadd.f32 %v14672_v55, %v4181_v57  ;;  %v10435_v40 = vpack.c.bf16 %v14794_v56, %v14804_v26 }
 0xc1a   : > { %v4185_v6 = vpop.f32.mrb[126].mxu0 }
 0xc1b   : > { %v4186_v31 = vadd.f32 %v4185_v6, %v14386_v38  ;;  %v4187_v36 = vpop.f32.mrb[127].mxu0  ;;  %v10429_v15 = vpack.c.bf16 %v14780_v63, %v14777_v52 }
 0xc1d   : > { %10430 = vmatprep.subr.bf16.mxu1 %v10429_v15  ;;  %v14797_v48 = vadd.f32 %v14672_v55, %v4186_v31 }
 0xc1e   : > { %v4190_v19 = vpop.f32.mrb[128].mxu0  ;;  %10432 = vmatpush3.bf16.msra.mxu1 %v10431_v4 }
 0xc1f   : > { %v4191_v7 = vadd.f32 %v14376_v39, %v4190_v19  ;;  %v4192_v50 = vpop.f32.mrb[129].mxu0  ;;  %v14824_v19 = vadd.f32 %v14672_v55, %v14663_v45 }
 0xc21   : > { %v14800_v38 = vadd.f32 %v14672_v55, %v4191_v7 }
 0xc22   : > { %v4195_v57 = vpop.f32.mrb[130].mxu0 }
 0xc23   : > { %v4196_v59 = vadd.f32 %v4195_v57, %v14419_v0  ;;  %v4197_v6 = vpop.f32.mrb[131].mxu0  ;;  %v10433_v39 = vpack.c.bf16 %v14800_v38, %v14797_v48 }
 0xc25   : > { %10434 = vmatprep.subr.bf16.mxu1 %v10433_v39  ;;  %v14817_v4 = vadd.f32 %v14672_v55, %v4196_v59  ;;  %v18320_v39 = vld [vmem:[#allocation40_spill] sm:$0xff] }
 0xc26   : > { %v4200_v31 = vpop.f32.mrb[132].mxu0  ;;  %10436 = vmatpush3.bf16.msra.mxu1 %v10435_v40 }
 0xc27   : > { %v4201_v36 = vadd.f32 %v14410_v32, %v4200_v31  ;;  %v4202_v15 = vpop.f32.mrb[133].mxu0  ;;  %v10439_v32 = vpack.c.bf16 %v14814_v16, %v14824_v19 }
 0xc29   : > { %v14820_v0 = vadd.f32 %v14672_v55, %v4201_v36 }
 0xc2b   : > { %v10437_v7 = vpack.c.bf16 %v14820_v0, %v14817_v4 }
 0xc2d   : > { %10438 = vmatprep.subr.bf16.mxu1 %v10437_v7 }
 0xc2e   : > { %10440 = vmatpush3.bf16.msra.mxu1 %v10439_v32 }
 0xc31   : > { %4305 = vmatmul.mubr.f32.vlgmr.msra.gmra.mrb[130].mxu1 %v18319_v47 }
 0xc32   : > { %4443 = vmatprep.mubr.f32.mxu1 %v18319_v47 }
 0xd04   : > { %v9241_v50 = vpop.f32.mrb[130].mxu1 }
 0xd05   : > { %v9242_v57 = vpop.f32.mrb[131].mxu1 }
 0xd06   : > { %v9243_v59 = vadd.f32 %v9242_v57, %v9241_v50 }
 0xd08   : > { %v4310_v6 = vmul.f32 0.00390625, %v9243_v59 }
 0xd0a   : > { %v14833_v40 = vrot.slane %v4310_v6, %v18320_v39 }
 0xd0c   : > { %v14837_v45 = vsub.f32 %v14685_v30, %v14833_v40  ;;  %v14841_v55 = vsub.f32 %v14676_v17, %v14833_v40  ;;  %v14845_v31 = vsub.f32 %v14679_v42, %v14833_v40  ;;  %v14849_v36 = vsub.f32 %v14682_v20, %v14833_v40 }
 0xd0d   : > { %v14853_v15 = vsub.f32 %v14697_v8, %v14833_v40  ;;  %v14857_v30 = vsub.f32 %v14700_v54, %v14833_v40  ;;  %v14865_v42 = vsub.f32 %v14704_v35, %v14833_v40  ;;  %v14869_v20 = vsub.f32 %v14694_v2, %v14833_v40 }
 0xd0e   : > { %v4347_v17 = vmul.f32 %v14837_v45, %v14837_v45  ;;  %v4348_v7 = vmul.f32 %v14841_v55, %v14841_v55  ;;  %v14873_v8 = vsub.f32 %v14717_v11, %v14833_v40  ;;  %v14877_v54 = vsub.f32 %v14720_v58, %v14833_v40 }
 0xd0f   : > { %v4363_v32 = vmul.f32 %v14845_v31, %v14845_v31  ;;  %v4364_v50 = vmul.f32 %v14849_v36, %v14849_v36  ;;  %v4365_v35 = vmul.f32 %v14853_v15, %v14853_v15  ;;  %v4366_v2 = vmul.f32 %v14857_v30, %v14857_v30 }
 0xd10   : > { %v10443_v57 = vpack.c.bf16 %v4348_v7, %v4347_v17  ;;  %v14889_v11 = vsub.f32 %v14724_v29, %v14833_v40  ;;  %v14893_v58 = vsub.f32 %v14714_v21, %v14833_v40  ;;  %v14897_v6 = vsub.f32 %v14737_v22, %v14833_v40 }
 0xd11   : > { %v10441_v59 = vpack.c.bf16 %v4364_v50, %v4363_v32  ;;  %v4349_v18 = vmul.f32 %v14865_v42, %v14865_v42  ;;  %v4350_v17 = vmul.f32 %v14869_v20, %v14869_v20  ;;  %v14905_v7 = vsub.f32 %v14740_v23, %v14833_v40 }
 0xd12   : > { %v10445_v29 = vpack.c.bf16 %v4366_v2, %v4365_v35  ;;  %v4367_v21 = vmul.f32 %v14873_v8, %v14873_v8  ;;  %v4368_v32 = vmul.f32 %v14877_v54, %v14877_v54  ;;  %v14913_v22 = vsub.f32 %v14744_v12, %v14833_v40 }
 0xd13   : > { %10442 = vmatprep.subr.bf16.mxu1 %v10441_v59  ;;  %v14917_v50 = vsub.f32 %v14734_v33, %v14833_v40  ;;  %v14921_v23 = vsub.f32 %v14757_v28, %v14833_v40  ;;  %v4351_v35 = vmul.f32 %v14889_v11, %v14889_v11  ;;  %v4352_v2 = vmul.f32 %v14893_v58, %v14893_v58 }
 0xd14   : > { %10444 = vmatpush3.bf16.msra.mxu1 %v10443_v57  ;;  %v10447_v57 = vpack.c.bf16 %v4350_v17, %v4349_v18  ;;  %v14929_v12 = vsub.f32 %v14760_v51, %v14833_v40  ;;  %v10449_v59 = vpack.c.bf16 %v4368_v32, %v4367_v21  ;;  %v4369_v33 = vmul.f32 %v14897_v6, %v14897_v6 }
 0xd15   : > { %10446 = vmatprep.subr.bf16.mxu1 %v10445_v29  ;;  %v4370_v29 = vmul.f32 %v14905_v7, %v14905_v7  ;;  %v14937_v28 = vsub.f32 %v14764_v10, %v14833_v40  ;;  %v14941_v44 = vsub.f32 %v14754_v27, %v14833_v40  ;;  %v14945_v18 = vsub.f32 %v14777_v52, %v14833_v40 }
 0xd16   : > { %v4353_v51 = vmul.f32 %v14913_v22, %v14913_v22  ;;  %v4354_v17 = vmul.f32 %v14917_v50, %v14917_v50  ;;  %v10451_v21 = vpack.c.bf16 %v4352_v2, %v4351_v35  ;;  %v14953_v10 = vsub.f32 %v14780_v63, %v14833_v40 }
 0xd17   : > { %v10453_v32 = vpack.c.bf16 %v4370_v29, %v4369_v33  ;;  %v4371_v27 = vmul.f32 %v14921_v23, %v14921_v23  ;;  %v4325_v52 = vsub.f32 %v14784_v61, %v14833_v40  ;;  %v14965_v35 = vsub.f32 %v14797_v48, %v14833_v40 }
 0xd18   : > { %10448 = vmatpush3.bf16.msra.mxu1 %v10447_v57  ;;  %v4372_v57 = vmul.f32 %v14929_v12, %v14929_v12  ;;  %v4355_v63 = vmul.f32 %v14937_v28, %v14937_v28  ;;  %v4356_v2 = vmul.f32 %v14941_v44, %v14941_v44  ;;  %v10455_v33 = vpack.c.bf16 %v4354_v17, %v4353_v51 }
 0xd19   : > { %10450 = vmatprep.subr.bf16.mxu1 %v10449_v59  ;;  %v4326_v59 = vsub.f32 %v14774_v60, %v14833_v40  ;;  %v14973_v29 = vsub.f32 %v14800_v38, %v14833_v40  ;;  %v4373_v60 = vmul.f32 %v14945_v18, %v14945_v18  ;;  %v4327_v48 = vsub.f32 %v14804_v26, %v14833_v40 }
 0xd1a   : > { %v10457_v61 = vpack.c.bf16 %v4372_v57, %v4371_v27  ;;  %v14985_v51 = vsub.f32 %v14817_v4, %v14833_v40  ;;  %v4357_v38 = vmul.f32 %v4325_v52, %v4325_v52  ;;  %v10459_v27 = vpack.c.bf16 %v4356_v2, %v4355_v63 }
 0xd1b   : > { %v4358_v17 = vmul.f32 %v4326_v59, %v4326_v59  ;;  %v14989_v57 = vsub.f32 %v14820_v0, %v14833_v40  ;;  %v4376_v26 = vmul.f32 %v14973_v29, %v14973_v29  ;;  %v4330_v4 = vsub.f32 %v14814_v16, %v14833_v40 }
 0xd1c   : > { %10452 = vmatpush3.bf16.msra.mxu1 %v10451_v21  ;;  %v4374_v21 = vmul.f32 %v14953_v10, %v14953_v10  ;;  %v4359_v63 = vmul.f32 %v4327_v48, %v4327_v48 }
 0xd1d   : > { %10454 = vmatprep.subr.bf16.mxu1 %v10453_v32  ;;  %v4328_v32 = vsub.f32 %v14794_v56, %v14833_v40  ;;  %v4329_v56 = vsub.f32 %v14824_v19, %v14833_v40  ;;  %v10463_v0 = vpack.c.bf16 %v4358_v17, %v4357_v38  ;;  %v4362_v43 = vmul.f32 %v4330_v4, %v4330_v4  ;;  %v12075_v40 = vld [vmem:[%s13890_s21 + $0x8] sm:$0xff] }
 0xd1e   : > { %v10461_v9 = vpack.c.bf16 %v4374_v21, %v4373_v60  ;;  %v4377_v60 = vmul.f32 %v14985_v51, %v14985_v51  ;;  %v4378_v21 = vmul.f32 %v14989_v57, %v14989_v57 }
 0xd1f   : > { %v4360_v2 = vmul.f32 %v4328_v32, %v4328_v32 }
 0xd20   : > { %10456 = vmatpush3.bf16.msra.mxu1 %v10455_v33  ;;  %v4375_v33 = vmul.f32 %v14965_v35, %v14965_v35 }
 0xd21   : > { %10458 = vmatprep.subr.bf16.mxu1 %v10457_v61  ;;  %v10467_v19 = vpack.c.bf16 %v4360_v2, %v4359_v63 }
 0xd22   : > { %v10465_v61 = vpack.c.bf16 %v4376_v26, %v4375_v33 }
 0xd24   : > { %10460 = vmatpush3.bf16.msra.mxu1 %v10459_v27  ;;  %v4361_v27 = vmul.f32 %v4329_v56, %v4329_v56 }
 0xd25   : > { %10462 = vmatprep.subr.bf16.mxu1 %v10461_v9  ;;  %v10469_v9 = vpack.c.bf16 %v4378_v21, %v4377_v60 }
 0xd26   : > { %v10471_v16 = vpack.c.bf16 %v4362_v43, %v4361_v27  ;;  %v15013_v43 = vld [vmem:[%s17941_s0 + $0x7] ss:$0 sm:$0xff] }
 0xd28   : > { %10464 = vmatpush3.bf16.msra.mxu1 %v10463_v0 }
 0xd29   : > { %10466 = vmatprep.subr.bf16.mxu1 %v10465_v61 }
 0xd2c   : > { %10468 = vmatpush3.bf16.msra.mxu1 %v10467_v19  ;;  %v15029_v19 = vld [vmem:[%s17941_s0 + $0x8] ss:$0 sm:$0xff] }
 0xd2d   : > { %10470 = vmatprep.subr.bf16.mxu1 %v10469_v9 }
 0xd30   : > { %10472 = vmatpush3.bf16.msra.mxu1 %v10471_v16 }
 0xd33   : > { %4444 = vmatmul.mubr.f32.vlgmr.msra.gmra.mrb[132].mxu1 %v18319_v47 }
 0xd34   : > { %5424 = vmatprep.mubr.f32.mxu1 %v12075_v40 }
 0xe06   : > { %v9276_v38 = vpop.f32.mrb[132].mxu1 }
 0xe07   : > { %v9277_v17 = vpop.f32.mrb[133].mxu1 }
 0xe08   : > { %v9278_v33 = vadd.f32 %v9277_v17, %v9276_v38 }
 0xe0a   : > { %v4449_v26 = vmul.f32 0.00390625, %v9278_v33 }
 0xe0c   : > { %v4450_v3 = vadd.f32 1e-05, %v4449_v26 }
 0xe0e   : > { %11346 = vrsqrt.f32 %v4450_v3 }
 0xe18   : > { %v11347_v0 = vpop.eup %11346 }
 0xe19   : > { %v15006_v61 = vrot.slane %v11347_v0, %v18320_v39 }
 0xe1b   : > { %v4473_v63 = vmul.f32 %v15006_v61, %v14849_v36  ;;  %v4457_v2 = vmul.f32 %v15006_v61, %v14841_v55  ;;  %v4462_v60 = vmul.f32 %v15006_v61, %v14913_v22  ;;  %v4463_v3 = vmul.f32 %v15006_v61, %v14917_v50 }
 0xe1c   : > { %v4464_v21 = vmul.f32 %v15006_v61, %v14937_v28  ;;  %v4465_v36 = vmul.f32 %v15006_v61, %v14941_v44  ;;  %v4466_v27 = vmul.f32 %v15006_v61, %v4325_v52  ;;  %v4467_v55 = vmul.f32 %v15006_v61, %v4326_v59 }
 0xe1d   : > { %v4468_v22 = vmul.f32 %v15006_v61, %v4327_v48  ;;  %v4469_v9 = vmul.f32 %v15006_v61, %v4328_v32  ;;  %v4470_v50 = vmul.f32 %v15006_v61, %v4329_v56  ;;  %v4471_v28 = vmul.f32 %v15006_v61, %v4330_v4 }
 0xe1e   : > { %v4472_v44 = vmul.f32 %v15006_v61, %v14845_v31  ;;  %v4480_v52 = vmul.f32 %v15006_v61, %v14921_v23  ;;  %v4509_v16 = vmul.f32 %v15013_v43, %v4473_v63  ;;  %v4481_v40 = vmul.f32 %v15006_v61, %v14929_v12 }
 0xe1f   : > { %v4482_v59 = vmul.f32 %v15006_v61, %v14945_v18  ;;  %v4483_v48 = vmul.f32 %v15006_v61, %v14953_v10  ;;  %v15048_v32 = vmul.f32 %v15013_v43, %v4462_v60  ;;  %v15054_v31 = vmul.f32 %v15013_v43, %v4463_v3 }
 0xe20   : > { %v15051_v56 = vadd.f32 %v15029_v19, %v4509_v16  ;;  %v4500_v23 = vmul.f32 %v15013_v43, %v4464_v21  ;;  %v4501_v4 = vmul.f32 %v15013_v43, %v4465_v36  ;;  %v4502_v12 = vmul.f32 %v15013_v43, %v4466_v27 }
 0xe21   : > { %v4503_v18 = vmul.f32 %v15013_v43, %v4467_v55  ;;  %v4504_v38 = vmul.f32 %v15013_v43, %v4468_v22  ;;  %v4505_v10 = vmul.f32 %v15013_v43, %v4469_v9  ;;  %v4484_v17 = vmul.f32 %v15006_v61, %v14965_v35 }
 0xe22   : > { %18321 = vst [vmem:[#allocation42_spill] sm:$0xff] %v15051_v56  ;;  %v4485_v33 = vmul.f32 %v15006_v61, %v14973_v29  ;;  %v4769_v26 = vand.u32 2147483647, %v15051_v56  ;;  %v4506_v0 = vmul.f32 %v15013_v43, %v4470_v50  ;;  %v4486_v63 = vmul.f32 %v15006_v61, %v14985_v51 }
 0xe23   : > { %v4487_v60 = vmul.f32 %v15006_v61, %v14989_v57  ;;  %v4507_v3 = vmul.f32 %v15013_v43, %v4471_v28  ;;  %v4508_v21 = vmul.f32 %v15013_v43, %v4472_v44  ;;  %v4493_v35 = vmul.f32 %v15013_v43, %v4457_v2 }
 0xe24   : > { %v4801_v36 = vsub.f32 0.0, %v4769_v26  ;;  %v15076_v27 = vmul.f32 %v15013_v43, %v4480_v52  ;;  %v15079_v29 = vmul.f32 %v15013_v43, %v4481_v40  ;;  %v4518_v55 = vmul.f32 %v15013_v43, %v4482_v59 }
 0xe25   : > { %v4519_v51 = vmul.f32 %v15013_v43, %v4483_v48  ;;  %v4520_v57 = vmul.f32 %v15013_v43, %v4484_v17  ;;  %v4521_v9 = vmul.f32 %v15013_v43, %v4485_v33  ;;  %v4522_v50 = vmul.f32 %v15013_v43, %v4486_v63 }
 0xe26   : > { %v4850_v22 = vmul.f32 1.442695, %v4801_v36  ;;  %v4523_v28 = vmul.f32 %v15013_v43, %v4487_v60  ;;  %v15088_v2 = vadd.f32 %v15029_v19, %v4508_v21  ;;  %v15091_v44 = vadd.f32 %v15029_v19, %v4500_v23 }
 0xe27   : > { %v15094_v52 = vadd.f32 %v15029_v19, %v4501_v4  ;;  %v15097_v16 = vadd.f32 %v15029_v19, %v4502_v12  ;;  %v15100_v40 = vadd.f32 %v15029_v19, %v4503_v18  ;;  %v15104_v48 = vadd.f32 %v15029_v19, %v4504_v38 }
 0xe28   : > { %18322 = vst [vmem:[#allocation41_spill] sm:$0xff] %v15088_v2  ;;  %11348 = vpow2.f32 %v4850_v22  ;;  %v4768_v59 = vand.u32 2147483647, %v15088_v2  ;;  %v15107_v17 = vadd.f32 %v15029_v19, %v4505_v10  ;;  %v15110_v23 = vadd.f32 %v15029_v19, %v4506_v0 }
 0xe29   : > { %18323 = vst [vmem:[#allocation44_spill] sm:$0xff] %v15104_v48  ;;  %v15113_v4 = vadd.f32 %v15029_v19, %v4507_v3  ;;  %v15116_v12 = vadd.f32 %v15029_v19, %v4518_v55  ;;  %v15119_v18 = vadd.f32 %v15029_v19, %v4519_v51  ;;  %v15122_v26 = vadd.f32 %v15029_v19, %v4520_v57 }
 0xe2a   : > { %18324 = vst [vmem:[#allocation43_spill] sm:$0xff] %v15107_v17  ;;  %18325 = vst [vmem:[#allocation46_spill] sm:$0xff] %v15110_v23  ;;  %v4800_v33 = vsub.f32 0.0, %v4768_v59  ;;  %v15125_v38 = vadd.f32 %v15029_v19, %v4521_v9  ;;  %v4456_v10 = vmul.f32 %v15006_v61, %v14837_v45  ;;  %v15130_v0 = vadd.f32 %v15029_v19, %v4522_v50 }
 0xe2b   : > { %18326 = vst [vmem:[#allocation45_spill] sm:$0xff] %v15113_v4  ;;  %18327 = vst [vmem:[#allocation48_spill] sm:$0xff] %v15122_v26  ;;  %v15133_v63 = vadd.f32 %v15029_v19, %v4523_v28  ;;  %v15136_v60 = vadd.f32 %v15029_v19, %v4493_v35  ;;  %v4458_v45 = vmul.f32 %v15006_v61, %v14865_v42  ;;  %v4763_v46 = vand.u32 2147483647, %v15100_v40 }
 0xe2c   : > { %18328 = vst [vmem:[#allocation47_spill] sm:$0xff] %v15125_v38  ;;  %18329 = vst [vmem:[#allocation50_spill] sm:$0xff] %v15130_v0  ;;  %v4848_v3 = vmul.f32 1.442695, %v4800_v33  ;;  %v4492_v36 = vmul.f32 %v15013_v43, %v4456_v10  ;;  %v4459_v57 = vmul.f32 %v15006_v61, %v14869_v20  ;;  %v4460_v9 = vmul.f32 %v15006_v61, %v14889_v11 }
 0xe2d   : > { %18330 = vst [vmem:[#allocation49_spill] sm:$0xff] %v15133_v63  ;;  %v4753_v21 = vand.u32 2147483647, %v15136_v60  ;;  %v4461_v50 = vmul.f32 %v15006_v61, %v14893_v58  ;;  %v4475_v28 = vmul.f32 %v15006_v61, %v14857_v30  ;;  %v4474_v42 = vmul.f32 %v15006_v61, %v14853_v15 }
 0xe2e   : > { %11350 = vpow2.f32 %v4848_v3  ;;  %v15151_v59 = vadd.f32 %v15029_v19, %v4492_v36  ;;  %v4476_v20 = vmul.f32 %v15006_v61, %v14873_v8  ;;  %v4477_v11 = vmul.f32 %v15006_v61, %v14877_v54 }
 0xe2f   : > { %v4785_v55 = vsub.f32 0.0, %v4753_v21  ;;  %v4478_v58 = vmul.f32 %v15006_v61, %v14897_v6  ;;  %v4479_v30 = vmul.f32 %v15006_v61, %v14905_v7  ;;  %v15164_v33 = vmul.f32 %v15013_v43, %v4458_v45 }
 0xe30   : > { %v15167_v10 = vmul.f32 %v15013_v43, %v4459_v57  ;;  %v15170_v15 = vmul.f32 %v15013_v43, %v4460_v9  ;;  %v15173_v3 = vmul.f32 %v15013_v43, %v4461_v50  ;;  %v4511_v54 = vmul.f32 %v15013_v43, %v4475_v28 }
 0xe31   : > { %v4818_v51 = vmul.f32 1.442695, %v4785_v55  ;;  %v4752_v6 = vand.u32 2147483647, %v15151_v59  ;;  %v4737_v7 = vmax.f32 %v15051_v56, 0.0  ;;  %v4510_v36 = vmul.f32 %v15013_v43, %v4474_v42 }
 0xe32   : > { %v11349_v22 = vpop.eup %11348  ;;  %v15183_v55 = vmul.f32 %v15013_v43, %v4476_v20  ;;  %v15189_v45 = vmul.f32 %v15013_v43, %v4478_v58  ;;  %v4760_v61 = vand.u32 2147483647, %v15091_v44  ;;  %v15196_v62 = vadd.f32 %v15029_v19, %v4511_v54 }
 0xe33   : > { %v5033_v35 = vadd.f32 1.0, %v11349_v22  ;;  %11352 = vpow2.f32 %v4818_v51  ;;  %v5036_v8 = vmul.f32 -0.5, %v11349_v22  ;;  %v15186_v51 = vmul.f32 %v15013_v43, %v4477_v11 }
 0xe34   : > { %v4784_v9 = vsub.f32 0.0, %v4752_v6  ;;  %18331 = vst [vmem:[#allocation52_spill] sm:$0xff] %v15196_v62  ;;  %v15199_v11 = vmul.f32 %v15013_v43, %v4479_v30  ;;  %v4761_v58 = vand.u32 2147483647, %v15094_v52  ;;  %v4762_v6 = vand.u32 2147483647, %v15097_v16 }
 0xe35   : > { %11354 = vlog2.f32 %v5033_v35  ;;  %v5039_v35 = vand.u32 2147483647, %v11349_v22  ;;  %v5037_v42 = vadd.f32 1.0, %v5036_v8  ;;  %v4764_v28 = vand.u32 2147483647, %v15104_v48 }
 0xe36   : > { %v4816_v20 = vmul.f32 1.442695, %v4784_v9  ;;  %v4765_v8 = vand.u32 2147483647, %v15107_v17  ;;  %v4767_v24 = vand.u32 2147483647, %v15113_v4 }
 0xe37   : > { %vm15209_vm10 = vcmp.lt.f32.partialorder %v5039_v35, 0.0004427343  ;;  %v5038_v13 = vmul.f32 %v11349_v22, %v5037_v42  ;;  %v4778_v1 = vand.u32 2147483647, %v15116_v12  ;;  %v4771_v49 = vand.u32 2147483647, %v15196_v62 }
 0xe38   : > { %v15177_v21 = vpop.eup %11350  ;;  %v4780_v35 = vand.u32 2147483647, %v15122_v26  ;;  %v4781_v34 = vand.u32 2147483647, %v15125_v38  ;;  %v4782_v41 = vand.u32 2147483647, %v15130_v0 }
 0xe39   : > { %v5024_v57 = vadd.f32 1.0, %v15177_v21  ;;  %v5027_v43 = vmul.f32 -0.5, %v15177_v21  ;;  %v5030_v47 = vand.u32 2147483647, %v15177_v21  ;;  %v4721_v37 = vmax.f32 %v15136_v60, 0.0 }
 0xe3a   : > { %v4794_v5 = vsub.f32 0.0, %v4762_v6  ;;  %v15235_v14 = vsub.f32 0.0, %v4778_v1  ;;  %v15250_v1 = vadd.f32 %v15029_v19, %v15164_v33  ;;  %v15259_v33 = vsub.f32 0.0, %v4781_v34 }
 0xe3b   : > { %11356 = vlog2.f32 %v5024_v57  ;;  %v4766_v57 = vand.u32 2147483647, %v15110_v23  ;;  %v5028_v42 = vadd.f32 1.0, %v5027_v43  ;;  %v4797_v43 = vsub.f32 0.0, %v4765_v8 }
 0xe3c   : > { %11358 = vpow2.f32 %v4816_v20  ;;  %v4779_v20 = vand.u32 2147483647, %v15119_v18  ;;  %vm5031_vm11 = vcmp.lt.f32.partialorder %v5030_v47, 0.0004427343  ;;  %v15246_v8 = vsub.f32 0.0, %v4780_v35 }
 0xe3d   : > { %v15204_v50 = vpop.eup %11352  ;;  %v4798_v23 = vsub.f32 0.0, %v4766_v57  ;;  %v5029_v4 = vmul.f32 %v15177_v21, %v5028_v42  ;;  %v18336_v21 = vmax.f32 %v15088_v2, 0.0  ;;  %v15257_v35 = vadd.f32 %v15029_v19, %v15186_v51 }
 0xe3e   : > { %v4889_v30 = vadd.f32 1.0, %v15204_v50  ;;  %v4892_v39 = vmul.f32 -0.5, %v15204_v50  ;;  %v15242_v6 = vsub.f32 0.0, %v4779_v20 }
 0xe3f   : > { %v11355_v54 = vpop.eup %11354 }
 0xe40   : > { %v5035_v25 = vmul.f32 0.6931472, %v11355_v54  ;;  %11360 = vlog2.f32 %v4889_v30  ;;  %v4803_v54 = vsub.f32 0.0, %v4771_v49  ;;  %v15227_v30 = vadd.f32 %v15029_v19, %v4510_v36 }
 0xe41   : > { %v4795_v49 = vsub.f32 0.0, %v4763_v46  ;;  %v4893_v0 = vadd.f32 1.0, %v4892_v39 }
 0xe42   : > { %v5041_v53 = vsel %vm15209_vm10, %v5038_v13, %v5035_v25  ;;  %18334 = vst [vmem:[#allocation51_spill] sm:$0xff] %v15227_v30  ;;  %v4854_v9 = vmul.f32 1.442695, %v4803_v54  ;;  %v4792_v13 = vsub.f32 0.0, %v4760_v61  ;;  %v4793_v25 = vsub.f32 0.0, %v4761_v58 }
 0xe43   : > { %v5185_v22 = vadd.f32 %v5041_v53, %v4737_v7  ;;  %v4796_v7 = vsub.f32 0.0, %v4764_v28  ;;  %v4770_v56 = vand.u32 2147483647, %v15227_v30  ;;  %v4799_v54 = vsub.f32 0.0, %v4767_v24 }
 0xe44   : > { %11362 = vpow2.f32 %v4854_v9  ;;  %v15239_v61 = vadd.f32 %v15029_v19, %v15167_v10  ;;  %v4895_v28 = vand.u32 2147483647, %v15204_v50  ;;  %v4894_v47 = vmul.f32 %v15204_v50, %v4893_v0 }
 0xe45   : > { %5266 = vrot.lane.b32.xlu1 %v5185_v22, %s18335_s16  ;;  %v11357_v53 = vpop.eup %11356  ;;  %v4802_v57 = vsub.f32 0.0, %v4770_v56  ;;  %v4834_v10 = vmul.f32 1.442695, %v4793_v25  ;;  %v4836_v9 = vmul.f32 1.442695, %v4794_v5  ;;  %v15262_v25 = vsub.f32 0.0, %v4782_v41 }
 0xe46   : > { %v5026_v36 = vmul.f32 0.6931472, %v11357_v53  ;;  %v11359_v48 = vpop.eup %11358  ;;  %v4755_v42 = vand.u32 2147483647, %v15239_v61  ;;  %vm4896_vm12 = vcmp.lt.f32.partialorder %v4895_v28, 0.0004427343 }
 0xe47   : > { %v4880_v58 = vadd.f32 1.0, %v11359_v48  ;;  %v4852_v22 = vmul.f32 1.442695, %v4802_v57  ;;  %v4883_v56 = vmul.f32 -0.5, %v11359_v48  ;;  %v4838_v0 = vmul.f32 1.442695, %v4795_v49 }
 0xe48   : > { %v5032_v46 = vsel %vm5031_vm11, %v5029_v4, %v5026_v36  ;;  %v4832_v4 = vmul.f32 1.442695, %v4792_v13  ;;  %v4754_v50 = vand.u32 2147483647, %v15250_v1  ;;  %v4840_v36 = vmul.f32 1.442695, %v4796_v7 }
 0xe49   : > { %v5184_v39 = vadd.f32 %v5032_v46, %v18336_v21  ;;  %11364 = vlog2.f32 %v4880_v58  ;;  %v4886_v58 = vand.u32 2147483647, %v11359_v48  ;;  %v4787_v51 = vsub.f32 0.0, %v4755_v42 }
 0xe4a   : > { %v11361_v24 = vpop.eup %11360  ;;  %11366 = vpow2.f32 %v4852_v22  ;;  %v4773_v28 = vand.u32 2147483647, %v15257_v35  ;;  %v4884_v5 = vadd.f32 1.0, %v4883_v56  ;;  %v4842_v49 = vmul.f32 1.442695, %v4797_v43 }
 0xe4b   : > { %5264 = vrot.lane.b32.xlu0 %v5184_v39, %s18335_s16  ;;  %v4891_v20 = vmul.f32 0.6931472, %v11361_v24  ;;  %11368 = vpow2.f32 %v4832_v4  ;;  %v4844_v21 = vmul.f32 1.442695, %v4798_v23  ;;  %v4786_v41 = vsub.f32 0.0, %v4754_v50 }
 0xe4c   : > { %11370 = vpow2.f32 %v4834_v10  ;;  %v4846_v7 = vmul.f32 1.442695, %v4799_v54  ;;  %v4805_v39 = vsub.f32 0.0, %v4773_v28  ;;  %v15275_v57 = vadd.f32 %v15029_v19, %v15173_v3 }
 0xe4d   : > { %v4897_v53 = vsel %vm4896_vm12, %v4894_v47, %v4891_v20  ;;  %11372 = vpow2.f32 %v4836_v9  ;;  %vm15277_vm13 = vcmp.lt.f32.partialorder %v4886_v58, 0.0004427343  ;;  %v18339_v43 = vand.u32 2147483647, %v15133_v63 }
 0xe4e   : > { %v5169_v13 = vadd.f32 %v4897_v53, %v4721_v37  ;;  %v15264_v46 = vpop.eup %11362  ;;  %11374 = vpow2.f32 %v4838_v0  ;;  %v15271_v37 = vadd.f32 %v15029_v19, %v15183_v55  ;;  %v4822_v47 = vmul.f32 1.442695, %v4787_v51 }
 0xe4f   : > { %v5051_v34 = vadd.f32 1.0, %v15264_v46  ;;  %v15283_v23 = vsub.f32 0.0, %v18339_v43  ;;  %v4885_v55 = vmul.f32 %v11359_v48, %v4884_v5  ;;  %v5054_v10 = vmul.f32 -0.5, %v15264_v46 }
 0xe50   : > { %5234 = vrot.lane.b32.xlu1 %v5169_v13, %s18335_s16  ;;  %v4772_v54 = vand.u32 2147483647, %v15271_v37  ;;  %v4820_v3 = vmul.f32 1.442695, %v4786_v41  ;;  %v4757_v22 = vand.u32 2147483647, %v15275_v57  ;;  %v15295_v50 = vadd.f32 %v15029_v19, %v15170_v15 }
 0xe51   : > { %11376 = vlog2.f32 %v5051_v34  ;;  %v5057_v42 = vand.u32 2147483647, %v15264_v46  ;;  %v4858_v56 = vmul.f32 1.442695, %v4805_v39  ;;  %v5055_v51 = vadd.f32 1.0, %v5054_v10 }
 0xe52   : > { %11378 = vpow2.f32 %v4840_v36  ;;  %v4804_v9 = vsub.f32 0.0, %v4772_v54  ;;  %v4789_v0 = vsub.f32 0.0, %v4757_v22  ;;  %v18340_v36 = vmax.f32 %v15151_v59, 0.0 }
 0xe53   : > { %v11365_v4 = vpop.eup %11364  ;;  %11380 = vpow2.f32 %v4842_v49  ;;  %v15304_v5 = vadd.f32 %v15029_v19, %v15199_v11  ;;  %v4739_v49 = vmax.f32 %v15196_v62, 0.0  ;;  %v4870_v39 = vmul.f32 1.442695, %v15242_v6 }
 0xe54   : > { %v4882_v20 = vmul.f32 0.6931472, %v11365_v4  ;;  %11382 = vpow2.f32 %v4844_v21  ;;  %v15289_v53 = vpop.eup %11366  ;;  %v4856_v21 = vmul.f32 1.442695, %v4804_v9  ;;  %v4826_v15 = vmul.f32 1.442695, %v4789_v0 }
 0xe55   : > { %11384 = vpow2.f32 %v4846_v7  ;;  %v15297_v13 = vpop.eup %11368  ;;  %v5042_v28 = vadd.f32 1.0, %v15289_v53  ;;  %v4868_v7 = vmul.f32 1.442695, %v15235_v14  ;;  %v15316_v11 = vadd.f32 %v15029_v19, %v15189_v45 }
 0xe56   : > { %v4888_v48 = vsel %vm15277_vm13, %v4885_v55, %v4882_v20  ;;  %11386 = vpow2.f32 %v4822_v47  ;;  %v15306_v34 = vpop.eup %11370  ;;  %v15321_v43 = vmul.f32 1.442695, %v15246_v8  ;;  %v15324_v47 = vmul.f32 1.442695, %v15259_v33 }
 0xe57   : > { %v5168_v58 = vadd.f32 %v4888_v48, %v18340_v36  ;;  %11388 = vpow2.f32 %v4820_v3  ;;  %v15309_v41 = vpop.eup %11372  ;;  %v4756_v4 = vand.u32 2147483647, %v15295_v50  ;;  %v5056_v14 = vmul.f32 %v15264_v46, %v5055_v51 }
 0xe58   : > { %11390 = vlog2.f32 %v5042_v28  ;;  %v15318_v24 = vpop.eup %11374  ;;  %vm15328_vm14 = vcmp.lt.f32.partialorder %v5057_v42, 0.0004427343  ;;  %v4775_v45 = vand.u32 2147483647, %v15304_v5  ;;  %v5045_v54 = vmul.f32 -0.5, %v15289_v53 }
 0xe59   : > { %5232 = vrot.lane.b32.xlu0 %v5168_v58, %s18335_s16  ;;  %11392 = vpow2.f32 %v4858_v56  ;;  %v4788_v33 = vsub.f32 0.0, %v4756_v4  ;;  %v4774_v22 = vand.u32 2147483647, %v15316_v11  ;;  %v15341_v46 = vadd.f32 %v15029_v19, %v15054_v31 }
 0xe5a   : > { %11394 = vpow2.f32 %v4856_v21  ;;  %v4807_v3 = vsub.f32 0.0, %v4775_v45  ;;  %v15345_v42 = vadd.f32 %v15029_v19, %v15048_v32  ;;  %v15353_v0 = vadd.f32 %v15029_v19, %v15079_v29 }
 0xe5b   : > { %v11377_v55 = vpop.eup %11376  ;;  %11396 = vpow2.f32 %v4826_v15  ;;  %v4824_v48 = vmul.f32 1.442695, %v4788_v33  ;;  %v15357_v36 = vadd.f32 %v15029_v19, %v15076_v27  ;;  %v4806_v51 = vsub.f32 0.0, %v4774_v22 }
 0xe5c   : > { %v15333_v10 = vpop.eup %11378  ;;  %v5053_v8 = vmul.f32 0.6931472, %v11377_v55  ;;  %11398 = vpow2.f32 %v4868_v7  ;;  %v4862_v32 = vmul.f32 1.442695, %v4807_v3  ;;  %v15362_v21 = vmul.f32 1.442695, %v15262_v25 }
 0xe5d   : > { %18343 = vst [vmem:[#allocation54_spill] sm:$0xff] %v15333_v10  ;;  %v15336_v20 = vpop.eup %11380  ;;  %v4738_v15 = vmax.f32 %v15227_v30, 0.0  ;;  %v5046_v4 = vadd.f32 1.0, %v5045_v54  ;;  %11400 = vpow2.f32 %v4824_v48  ;;  %v5048_v29 = vand.u32 2147483647, %v15289_v53 }
 0xe5e   : > { %v15347_v56 = vpop.eup %11382  ;;  %v5059_v9 = vsel %vm15328_vm14, %v5056_v14, %v5053_v8  ;;  %11402 = vpow2.f32 %v4862_v32  ;;  %v4860_v25 = vmul.f32 1.442695, %v4806_v51  ;;  %v4759_v55 = vand.u32 2147483647, %v15341_v46 }
 0xe5f   : > { %18344 = vst [vmem:[#allocation53_spill] sm:$0xff] %v15347_v56  ;;  %v15359_v31 = vpop.eup %11384  ;;  %v5187_v58 = vadd.f32 %v5059_v9, %v4739_v49  ;;  %11404 = vpow2.f32 %v4870_v39  ;;  %v5047_v3 = vmul.f32 %v15289_v53, %v5046_v4  ;;  %vm5049_vm15 = vcmp.lt.f32.partialorder %v5048_v29, 0.0004427343 }
 0xe60   : > { %18345 = vst [vmem:[#allocation56_spill] sm:$0xff] %v15359_v31  ;;  %v11387_v28 = vpop.eup %11386 }
 0xe61   : > { %5270 = vrot.lane.b32.xlu1 %v5187_v58, %s18335_s16  ;;  %v4907_v27 = vadd.f32 1.0, %v11387_v28  ;;  %v11389_v49 = vpop.eup %11388  ;;  %v4910_v6 = vmul.f32 -0.5, %v11387_v28  ;;  %v4913_v51 = vand.u32 2147483647, %v11387_v28 }
 0xe62   : > { %v11391_v14 = vpop.eup %11390  ;;  %v4898_v45 = vadd.f32 1.0, %v11389_v49  ;;  %v4901_v22 = vmul.f32 -0.5, %v11389_v49  ;;  %v4904_v53 = vand.u32 2147483647, %v11389_v49 }
 0xe63   : > { %11406 = vlog2.f32 %v4907_v27  ;;  %v11393_v54 = vpop.eup %11392  ;;  %v5044_v33 = vmul.f32 0.6931472, %v11391_v14  ;;  %v4911_v8 = vadd.f32 1.0, %v4910_v6  ;;  %vm15378_vm2 = vcmp.lt.f32.partialorder %v4913_v51, 0.0004427343 }
 0xe64   : > { %11408 = vpow2.f32 %v4860_v25  ;;  %v11395_v9 = vpop.eup %11394  ;;  %v5069_v39 = vadd.f32 1.0, %v11393_v54  ;;  %v5072_v27 = vmul.f32 -0.5, %v11393_v54  ;;  %v4902_v19 = vadd.f32 1.0, %v4901_v22 }
 0xe65   : > { %11410 = vlog2.f32 %v4898_v45  ;;  %v11397_v58 = vpop.eup %11396  ;;  %v5050_v32 = vsel %vm5049_vm15, %v5047_v3, %v5044_v33  ;;  %v5060_v14 = vadd.f32 1.0, %v11395_v9  ;;  %v5063_v4 = vmul.f32 -0.5, %v11395_v9 }
 0xe66   : > { %v5186_v7 = vadd.f32 %v5050_v32, %v4738_v15  ;;  %11412 = vlog2.f32 %v5069_v39  ;;  %v15375_v29 = vpop.eup %11398  ;;  %v5075_v45 = vand.u32 2147483647, %v11393_v54  ;;  %v4925_v33 = vadd.f32 1.0, %v11397_v58 }
 0xe67   : > { %11414 = vlog2.f32 %v5060_v14  ;;  %v4928_v3 = vmul.f32 -0.5, %v11397_v58  ;;  %v11401_v48 = vpop.eup %11400  ;;  %v5073_v15 = vadd.f32 1.0, %v5072_v27  ;;  %v4791_v6 = vsub.f32 0.0, %v4759_v55 }
 0xe68   : > { %5268 = vrot.lane.b32.xlu0 %v5186_v7, %s18335_s16  ;;  %v4758_v22 = vand.u32 2147483647, %v15345_v42  ;;  %v15383_v39 = vpop.eup %11402  ;;  %v4912_v32 = vmul.f32 %v11387_v28, %v4911_v8  ;;  %v5066_v25 = vand.u32 2147483647, %v11395_v9  ;;  %11416 = vlog2.f32 %v4925_v33 }
 0xe69   : > { %v4916_v62 = vadd.f32 1.0, %v11401_v48  ;;  %v15385_v7 = vpop.eup %11404  ;;  %vm15387_vm3 = vcmp.lt.f32.partialorder %v4904_v53, 0.0004427343  ;;  %v5064_v51 = vadd.f32 1.0, %v5063_v4  ;;  %v4931_v63 = vand.u32 2147483647, %v11397_v58 }
 0xe6a   : > { %v5087_v2 = vadd.f32 1.0, %v15383_v39  ;;  %v4903_v55 = vmul.f32 %v11389_v49, %v4902_v19  ;;  %vm15392_vm4 = vcmp.lt.f32.partialorder %v5075_v45, 0.0004427343  ;;  %v4929_v28 = vadd.f32 1.0, %v4928_v3 }
 0xe6b   : > { %11418 = vlog2.f32 %v4916_v62  ;;  %v5074_v31 = vmul.f32 %v11393_v54, %v5073_v15  ;;  %v4919_v53 = vmul.f32 -0.5, %v11401_v48  ;;  %vm15398_vm5 = vcmp.lt.f32.partialorder %v5066_v25, 0.0004427343 }
 0xe6c   : > { %11420 = vlog2.f32 %v5087_v2  ;;  %v4922_v26 = vand.u32 2147483647, %v11401_v48  ;;  %v4790_v49 = vsub.f32 0.0, %v4758_v22  ;;  %v5065_v62 = vmul.f32 %v11395_v9, %v5064_v51 }
 0xe6d   : > { %v11407_v27 = vpop.eup %11406  ;;  %vm15405_vm7 = vcmp.lt.f32.partialorder %v4931_v63, 0.0004427343  ;;  %v18356_v2 = vmax.f32 %v15239_v61, 0.0  ;;  %v4930_v15 = vmul.f32 %v11397_v58, %v4929_v28  ;;  %v4920_v30 = vadd.f32 1.0, %v4919_v53 }
 0xe6e   : > { %v15396_v8 = vpop.eup %11408  ;;  %v4909_v33 = vmul.f32 0.6931472, %v11407_v27  ;;  %v5090_v27 = vmul.f32 -0.5, %v15383_v39  ;;  %v18357_v63 = vmax.f32 %v15250_v1, 0.0  ;;  %vm15417_vm8 = vcmp.lt.f32.partialorder %v4922_v26, 0.0004427343 }
 0xe6f   : > { %v11411_v17 = vpop.eup %11410  ;;  %v5078_v19 = vadd.f32 1.0, %v15396_v8  ;;  %v5093_v58 = vand.u32 2147483647, %v15383_v39  ;;  %v4828_v28 = vmul.f32 1.442695, %v4790_v49  ;;  %v18360_v53 = vmax.f32 %v15257_v35, 0.0 }
 0xe70   : > { %v4915_v45 = vsel %vm15378_vm2, %v4912_v32, %v4909_v33  ;;  %v4900_v3 = vmul.f32 0.6931472, %v11411_v17  ;;  %v11413_v54 = vpop.eup %11412  ;;  %v4830_v32 = vmul.f32 1.442695, %v4791_v6  ;;  %v5081_v33 = vmul.f32 -0.5, %v15396_v8 }
 0xe71   : > { %v5171_v25 = vadd.f32 %v4915_v45, %v18356_v2  ;;  %11422 = vlog2.f32 %v5078_v19  ;;  %v5071_v38 = vmul.f32 0.6931472, %v11413_v54  ;;  %v11415_v17 = vpop.eup %11414  ;;  %v5091_v26 = vadd.f32 1.0, %v5090_v27 }
 0xe72   : > { %v4906_v22 = vsel %vm15387_vm3, %v4903_v55, %v4900_v3  ;;  %v5062_v55 = vmul.f32 0.6931472, %v11415_v17  ;;  %11424 = vpow2.f32 %v4830_v32  ;;  %v11417_v6 = vpop.eup %11416  ;;  %v4777_v45 = vand.u32 2147483647, %v15353_v0 }
 0xe73   : > { %5238 = vrot.lane.b32.xlu1 %v5171_v25, %s18335_s16  ;;  %v5170_v9 = vadd.f32 %v4906_v22, %v18357_v63  ;;  %v5077_v14 = vsel %vm15392_vm4, %v5074_v31, %v5071_v38  ;;  %11426 = vpow2.f32 %v4828_v28  ;;  %v4927_v3 = vmul.f32 0.6931472, %v11417_v6 }
 0xe74   : > { %v5189_v19 = vadd.f32 %v5077_v14, %v18360_v53  ;;  %v5068_v49 = vsel %vm15398_vm5, %v5065_v62, %v5062_v55  ;;  %v4921_v56 = vmul.f32 %v11401_v48, %v4920_v30  ;;  %v4776_v38 = vand.u32 2147483647, %v15357_v36 }
 0xe75   : > { %5236 = vrot.lane.b32.xlu0 %v5170_v9, %s18335_s16  ;;  %v11419_v31 = vpop.eup %11418  ;;  %v18361_v54 = vmax.f32 %v15271_v37, 0.0  ;;  %v5084_v25 = vand.u32 2147483647, %v15396_v8  ;;  %v4809_v22 = vsub.f32 0.0, %v4777_v45  ;;  %v4961_v27 = vadd.f32 1.0, %v15306_v34 }
 0xe76   : > { %v11421_v32 = vpop.eup %11420  ;;  %v4933_v4 = vsel %vm15405_vm7, %v4930_v15, %v4927_v3  ;;  %v4918_v62 = vmul.f32 0.6931472, %v11419_v31  ;;  %v5082_v17 = vadd.f32 1.0, %v5081_v33  ;;  %v4808_v48 = vsub.f32 0.0, %v4776_v38 }
 0xe77   : > { %5274 = vrot.lane.b32.xlu1 %v5189_v19, %s18335_s16  ;;  %v5188_v2 = vadd.f32 %v5068_v49, %v18361_v54  ;;  %v18362_v30 = vmax.f32 %v15275_v57, 0.0  ;;  %v5089_v9 = vmul.f32 0.6931472, %v11421_v32  ;;  %v5092_v28 = vmul.f32 %v15383_v39, %v5091_v26 }
 0xe78   : > { %v4866_v14 = vmul.f32 1.442695, %v4809_v22  ;;  %v4924_v55 = vsel %vm15417_vm8, %v4921_v56, %v4918_v62  ;;  %vm5094_vm9 = vcmp.lt.f32.partialorder %v5093_v58, 0.0004427343  ;;  %v4864_v6 = vmul.f32 1.442695, %v4808_v48 }
 0xe79   : > { %5272 = vrot.lane.b32.xlu0 %v5188_v2, %s18335_s16  ;;  %v5173_v63 = vadd.f32 %v4933_v4, %v18362_v30  ;;  %11428 = vlog2.f32 %v4961_v27  ;;  %v18363_v15 = vmax.f32 %v15295_v50, 0.0  ;;  %v4743_v53 = vmax.f32 %v15304_v5, 0.0 }
 0xe7a   : > { %v5095_v19 = vsel %vm5094_vm9, %v5092_v28, %v5089_v9  ;;  %11430 = vpow2.f32 %v4866_v14  ;;  %v4878_v45 = vmul.f32 1.442695, %v15283_v23  ;;  %v5083_v26 = vmul.f32 %v15396_v8, %v5082_v17 }
 0xe7b   : > { %v11423_v10 = vpop.eup %11422  ;;  %5242 = vrot.lane.b32.xlu1 %v5173_v63, %s18335_s16  ;;  %v5172_v33 = vadd.f32 %v4924_v55, %v18363_v15  ;;  %11432 = vpow2.f32 %v4864_v6  ;;  %v5191_v51 = vadd.f32 %v5095_v19, %v4743_v53  ;;  %v4742_v58 = vmax.f32 %v15316_v11, 0.0 }
 0xe7c   : > { %v5080_v39 = vmul.f32 0.6931472, %v11423_v10  ;;  %11434 = vpow2.f32 %v15321_v43  ;;  %vm5085_vm10 = vcmp.lt.f32.partialorder %v5084_v25, 0.0004427343  ;;  %v11425_v49 = vpop.eup %11424  ;;  %v4964_v23 = vmul.f32 -0.5, %v15306_v34 }
 0xe7d   : > { %5240 = vrot.lane.b32.xlu0 %v5172_v33, %s18335_s16  ;;  %11436 = vpow2.f32 %v15324_v47  ;;  %v15457_v38 = vpop.eup %11426  ;;  %v4943_v31 = vadd.f32 1.0, %v11425_v49  ;;  %v4727_v54 = vmax.f32 %v15341_v46, 0.0  ;;  %v4952_v47 = vadd.f32 1.0, %v15297_v13 }
 0xe7e   : > { %v5086_v56 = vsel %vm5085_vm10, %v5083_v26, %v5080_v39  ;;  %11438 = vpow2.f32 %v15362_v21  ;;  %v4934_v2 = vadd.f32 1.0, %v15457_v38  ;;  %v4946_v25 = vmul.f32 -0.5, %v11425_v49 }
 0xe7f   : > { %5278 = vrot.lane.b32.xlu1 %v5191_v51, %s18335_s16  ;;  %v5190_v43 = vadd.f32 %v5086_v56, %v4742_v58  ;;  %11440 = vpow2.f32 %v4878_v45  ;;  %v4955_v22 = vmul.f32 -0.5, %v15297_v13  ;;  %v5123_v27 = vadd.f32 1.0, %v15385_v7 }
 0xe80   : > { %11442 = vlog2.f32 %v4943_v31  ;;  %v4726_v21 = vmax.f32 %v15345_v42, 0.0  ;;  %v4965_v32 = vadd.f32 1.0, %v4964_v23  ;;  %v4967_v4 = vand.u32 2147483647, %v15306_v34 }
 0xe81   : > { %5276 = vrot.lane.b32.xlu0 %v5190_v43, %s18335_s16  ;;  %11444 = vlog2.f32 %v4934_v2  ;;  %v4745_v62 = vmax.f32 %v15353_v0, 0.0  ;;  %v4744_v17 = vmax.f32 %v15357_v36, 0.0  ;;  %v4729_v48 = vmax.f32 %v15094_v52, 0.0 }
 0xe82   : > { %v4949_v9 = vand.u32 2147483647, %v11425_v49  ;;  %v4937_v28 = vmul.f32 -0.5, %v15457_v38  ;;  %v4940_v14 = vand.u32 2147483647, %v15457_v38  ;;  %11446 = vlog2.f32 %v4952_v47 }
 0xe83   : > { %v11429_v63 = vpop.eup %11428  ;;  %v4947_v6 = vadd.f32 1.0, %v4946_v25  ;;  %v4956_v10 = vadd.f32 1.0, %v4955_v22  ;;  %11448 = vlog2.f32 %v5123_v27  ;;  %v5126_v15 = vmul.f32 -0.5, %v15385_v7 }
 0xe84   : > { %v15476_v55 = vpop.eup %11430  ;;  %v4966_v19 = vmul.f32 %v15306_v34, %v4965_v32  ;;  %vm15483_vm11 = vcmp.lt.f32.partialorder %v4967_v4, 0.0004427343  ;;  %v5114_v39 = vadd.f32 1.0, %v15375_v29  ;;  %v4963_v58 = vmul.f32 0.6931472, %v11429_v63 }
 0xe85   : > { %v15479_v33 = vpop.eup %11432  ;;  %v5105_v53 = vadd.f32 1.0, %v15476_v55  ;;  %v4958_v56 = vand.u32 2147483647, %v15297_v13  ;;  %vm15495_vm12 = vcmp.lt.f32.partialorder %v4949_v9, 0.0004427343  ;;  %v4938_v34 = vadd.f32 1.0, %v4937_v28 }
 0xe86   : > { %v15488_v26 = vpop.eup %11434  ;;  %v5096_v51 = vadd.f32 1.0, %v15479_v33  ;;  %vm15499_vm13 = vcmp.lt.f32.partialorder %v4940_v14, 0.0004427343  ;;  %v4948_v25 = vmul.f32 %v11425_v49, %v4947_v6  ;;  %v15506_v22 = vmul.f32 %v15297_v13, %v4956_v10 }
 0xe87   : > { %v15493_v43 = vpop.eup %11436  ;;  %11450 = vlog2.f32 %v5105_v53  ;;  %v5127_v27 = vadd.f32 1.0, %v5126_v15  ;;  %v5108_v4 = vmul.f32 -0.5, %v15476_v55  ;;  %v5129_v63 = vand.u32 2147483647, %v15385_v7 }
 0xe88   : > { %v15503_v47 = vpop.eup %11438  ;;  %11452 = vlog2.f32 %v5096_v51  ;;  %v5099_v14 = vmul.f32 -0.5, %v15479_v33  ;;  %v4969_v49 = vsel %vm15483_vm11, %v4966_v19, %v4963_v58  ;;  %v5117_v6 = vmul.f32 -0.5, %v15375_v29 }
 0xe89   : > { %v15508_v32 = vpop.eup %11440  ;;  %11454 = vlog2.f32 %v5114_v39  ;;  %v4979_v13 = vadd.f32 1.0, %v15318_v24  ;;  %v4939_v53 = vmul.f32 %v15457_v38, %v4938_v34  ;;  %v5111_v51 = vand.u32 2147483647, %v15476_v55 }
 0xe8a   : > { %v11443_v28 = vpop.eup %11442  ;;  %vm15520_vm14 = vcmp.lt.f32.partialorder %v4958_v56, 0.0004427343  ;;  %v5120_v39 = vand.u32 2147483647, %v15375_v29  ;;  %v5102_v45 = vand.u32 2147483647, %v15479_v33  ;;  %v5128_v19 = vmul.f32 %v15385_v7, %v5127_v27 }
 0xe8b   : > { %v11445_v10 = vpop.eup %11444  ;;  %v4945_v15 = vmul.f32 0.6931472, %v11443_v28  ;;  %v4970_v58 = vadd.f32 1.0, %v15309_v41  ;;  %v5109_v38 = vadd.f32 1.0, %v5108_v4  ;;  %v15530_v34 = vadd.f32 %v4969_v49, %v4729_v48 }
 0xe8c   : > { %v4936_v3 = vmul.f32 0.6931472, %v11445_v10  ;;  %v11447_v9 = vpop.eup %11446  ;;  %11456 = vlog2.f32 %v4979_v13  ;;  %v5100_v30 = vadd.f32 1.0, %v5099_v14  ;;  %vm15538_vm15 = vcmp.lt.f32.partialorder %v5111_v51, 0.0004427343 }
 0xe8d   : > { %v4951_v28 = vsel %vm15495_vm12, %v4948_v25, %v4945_v15  ;;  %v11449_v56 = vpop.eup %11448  ;;  %11458 = vlog2.f32 %v4970_v58  ;;  %vm15542_vm2 = vcmp.lt.f32.partialorder %v5129_v63, 0.0004427343  ;;  %v5118_v31 = vadd.f32 1.0, %v5117_v6 }
 0xe8e   : > { %v5175_v23 = vadd.f32 %v4951_v28, %v4727_v54  ;;  %v4942_v10 = vsel %vm15499_vm13, %v4939_v53, %v4936_v3  ;;  %vm15547_vm3 = vcmp.lt.f32.partialorder %v5102_v45, 0.0004427343  ;;  %v4954_v3 = vmul.f32 0.6931472, %v11447_v9 }
 0xe8f   : > { %v5174_v7 = vadd.f32 %v4942_v10, %v4726_v21  ;;  %v4982_v2 = vmul.f32 -0.5, %v15318_v24  ;;  %v5141_v21 = vadd.f32 1.0, %v15493_v43  ;;  %v5110_v4 = vmul.f32 %v15476_v55, %v5109_v38 }
 0xe90   : > { %5246 = vrot.lane.b32.xlu1 %v5175_v23, %s18335_s16  ;;  %v5125_v63 = vmul.f32 0.6931472, %v11449_v56  ;;  %vm15555_vm4 = vcmp.lt.f32.partialorder %v5120_v39, 0.0004427343  ;;  %v4731_v23 = vmax.f32 %v15100_v40, 0.0  ;;  %v5101_v9 = vmul.f32 %v15479_v33, %v5100_v30 }
 0xe91   : > { %v11451_v25 = vpop.eup %11450  ;;  %5244 = vrot.lane.b32.xlu0 %v5174_v7, %s18335_s16  ;;  %11460 = vlog2.f32 %v5141_v21  ;;  %v5132_v13 = vadd.f32 1.0, %v15488_v26  ;;  %v5119_v51 = vmul.f32 %v15375_v29, %v5118_v31  ;;  %v4985_v55 = vand.u32 2147483647, %v15318_v24  ;;  %v18384_v21 = vld [vmem:[#allocation47_spill] sm:$0xff] }
 0xe92   : > { %v11453_v49 = vpop.eup %11452  ;;  %v5107_v6 = vmul.f32 0.6931472, %v11451_v25  ;;  %v4973_v39 = vmul.f32 -0.5, %v15309_v41  ;;  %v4960_v58 = vsel %vm15520_vm14, %v15506_v22, %v4954_v3  ;;  %v4983_v28 = vadd.f32 1.0, %v4982_v2 }
 0xe93   : > { %v11455_v15 = vpop.eup %11454  ;;  %v5098_v53 = vmul.f32 0.6931472, %v11453_v49  ;;  %11462 = vlog2.f32 %v5132_v13  ;;  %v5131_v29 = vsel %vm15542_vm2, %v5128_v19, %v5125_v63  ;;  %v5144_v38 = vmul.f32 -0.5, %v15493_v43 }
 0xe94   : > { %v5113_v45 = vsel %vm15538_vm15, %v5110_v4, %v5107_v6  ;;  %v5116_v10 = vmul.f32 0.6931472, %v11455_v15  ;;  %v4730_v8 = vmax.f32 %v15097_v16, 0.0  ;;  %v4976_v22 = vand.u32 2147483647, %v15309_v41  ;;  %v18385_v6 = vld [vmem:[#allocation54_spill] sm:$0xff] }
 0xe95   : > { %v5193_v30 = vadd.f32 %v5113_v45, %v4745_v62  ;;  %v5104_v33 = vsel %vm15547_vm3, %v5101_v9, %v5098_v53  ;;  %v18380_v62 = vmax.f32 %v15091_v44, 0.0  ;;  %vm15584_vm5 = vcmp.lt.f32.partialorder %v4985_v55, 0.0004427343  ;;  %v18388_v55 = vld [vmem:[#allocation48_spill] sm:$0xff] }
 0xe96   : > { %v5192_v56 = vadd.f32 %v5104_v33, %v4744_v17  ;;  %v11457_v7 = vpop.eup %11456  ;;  %v4974_v19 = vadd.f32 1.0, %v4973_v39  ;;  %v4997_v48 = vadd.f32 1.0, %v15336_v20  ;;  %v18383_v17 = vmax.f32 %v15119_v18, 0.0 }
 0xe97   : > { %5282 = vrot.lane.b32.xlu1 %v5193_v30, %s18335_s16  ;;  %v5176_v27 = vadd.f32 %v4960_v58, %v18380_v62  ;;  %v11459_v54 = vpop.eup %11458  ;;  %v4984_v2 = vmul.f32 %v15318_v24, %v4983_v28  ;;  %v4749_v25 = vmax.f32 %v18384_v21, 0.0  ;;  %v5147_v4 = vand.u32 2147483647, %v15493_v43 }
 0xe98   : > { %5280 = vrot.lane.b32.xlu0 %v5192_v56, %s18335_s16  ;;  %v5195_v3 = vadd.f32 %v5131_v29, %v18383_v17  ;;  %v5145_v63 = vadd.f32 1.0, %v5144_v38  ;;  %v5135_v49 = vmul.f32 -0.5, %v15488_v26  ;;  %11464 = vlog2.f32 %v4997_v48  ;;  %v18392_v48 = vld [vmem:[#allocation43_spill] sm:$0xff] }
 0xe99   : > { %v4988_v9 = vadd.f32 1.0, %v18385_v6  ;;  %v5122_v13 = vsel %vm15555_vm4, %v5119_v51, %v5116_v10  ;;  %v4981_v15 = vmul.f32 0.6931472, %v11457_v7  ;;  %vm15599_vm7 = vcmp.lt.f32.partialorder %v4976_v22, 0.0004427343 }
 0xe9a   : > { %v4748_v24 = vmax.f32 %v18388_v55, 0.0  ;;  %v4972_v39 = vmul.f32 0.6931472, %v11459_v54  ;;  %v4975_v45 = vmul.f32 %v15309_v41, %v4974_v19  ;;  %v5000_v58 = vmul.f32 -0.5, %v15336_v20 }
 0xe9b   : > { %5250 = vrot.lane.b32.xlu1 %v15530_v34, %s18335_s16  ;;  %11466 = vlog2.f32 %v4988_v9  ;;  %v11461_v28 = vpop.eup %11460  ;;  %vm15609_vm8 = vcmp.lt.f32.partialorder %v5147_v4, 0.0004427343  ;;  %v5138_v51 = vand.u32 2147483647, %v15488_v26  ;;  %v4991_v30 = vmul.f32 -0.5, %v18385_v6 }
 0xe9c   : > { %5248 = vrot.lane.b32.xlu0 %v5176_v27, %s18335_s16  ;;  %v5159_v33 = vadd.f32 1.0, %v15508_v32  ;;  %v18391_v34 = vmax.f32 %v15116_v12, 0.0  ;;  %v5146_v41 = vmul.f32 %v15493_v43, %v5145_v63  ;;  %v5136_v38 = vadd.f32 1.0, %v5135_v49  ;;  %v18397_v49 = vld [vmem:[#allocation44_spill] sm:$0xff] }
 0xe9d   : > { %v5003_v56 = vand.u32 2147483647, %v15336_v20  ;;  %v11463_v10 = vpop.eup %11462  ;;  %v4987_v22 = vsel %vm15584_vm5, %v4984_v2, %v4981_v15  ;;  %v5143_v7 = vmul.f32 0.6931472, %v11461_v28  ;;  %v5150_v62 = vadd.f32 1.0, %v15503_v47 }
 0xe9e   : > { %v5194_v29 = vadd.f32 %v5122_v13, %v18391_v34  ;;  %11468 = vlog2.f32 %v5159_v33  ;;  %v4978_v27 = vsel %vm15599_vm7, %v4975_v45, %v4972_v39  ;;  %v5134_v19 = vmul.f32 0.6931472, %v11463_v10  ;;  %v18398_v39 = vld [vmem:[#allocation56_spill] sm:$0xff] }
 0xe9f   : > { %5286 = vrot.lane.b32.xlu1 %v5195_v3, %s18335_s16  ;;  %v4733_v54 = vmax.f32 %v18392_v48, 0.0  ;;  %v5001_v43 = vadd.f32 1.0, %v5000_v58  ;;  %vm15628_vm9 = vcmp.lt.f32.partialorder %v5138_v51, 0.0004427343  ;;  %v4992_v31 = vadd.f32 1.0, %v4991_v30  ;;  %v18399_v51 = vld [vmem:[#allocation53_spill] sm:$0xff] }
 0xea0   : > { %5284 = vrot.lane.b32.xlu0 %v5194_v29, %s18335_s16  ;;  %v5162_v2 = vmul.f32 -0.5, %v15508_v32  ;;  %11470 = vlog2.f32 %v5150_v62  ;;  %v5179_v3 = vadd.f32 %v4987_v22, %v4731_v23  ;;  %v5137_v4 = vmul.f32 %v15488_v26, %v5136_v38  ;;  %v18400_v38 = vld [vmem:[#allocation42_spill] sm:$0xff] }
 0xea1   : > { %vm15636_vm10 = vcmp.lt.f32.partialorder %v5003_v56, 0.0004427343  ;;  %v4732_v9 = vmax.f32 %v18397_v49, 0.0  ;;  %v5178_v13 = vadd.f32 %v4978_v27, %v4730_v8  ;;  %v5149_v15 = vsel %vm15609_vm8, %v5146_v41, %v5143_v7  ;;  %v18402_v27 = vld [vmem:[#allocation41_spill] sm:$0xff] }
 0xea2   : > { %v5153_v53 = vmul.f32 -0.5, %v15503_v47  ;;  %v5015_v45 = vadd.f32 1.0, %v18398_v39  ;;  %v11465_v58 = vpop.eup %11464  ;;  %v5140_v26 = vsel %vm15628_vm9, %v5137_v4, %v5134_v19  ;;  %v5002_v23 = vmul.f32 %v15336_v20, %v5001_v43 }
 0xea3   : > { %5254 = vrot.lane.b32.xlu1 %v5179_v3, %s18335_s16  ;;  %v4994_v28 = vand.u32 2147483647, %v18385_v6  ;;  %v5006_v30 = vadd.f32 1.0, %v18399_v51  ;;  %v4999_v8 = vmul.f32 0.6931472, %v11465_v58  ;;  %v4993_v14 = vmul.f32 %v18385_v6, %v4992_v31 }
 0xea4   : > { %5252 = vrot.lane.b32.xlu0 %v5178_v13, %s18335_s16  ;;  %v5163_v33 = vadd.f32 1.0, %v5162_v2  ;;  %11472 = vlog2.f32 %v5015_v45  ;;  %v5197_v29 = vadd.f32 %v5149_v15, %v4749_v25  ;;  %v5165_v41 = vand.u32 2147483647, %v15508_v32  ;;  %v18405_v45 = vld [vmem:[#allocation49_spill] sm:$0xff] }
 0xea5   : > { %v11467_v34 = vpop.eup %11466  ;;  %11474 = vlog2.f32 %v5006_v30  ;;  %v18401_v56 = vsub.f32 0.0, %v18400_v38  ;;  %v5196_v20 = vadd.f32 %v5140_v26, %v4748_v24  ;;  %v5005_v22 = vsel %vm15636_vm10, %v5002_v23, %v4999_v8  ;;  %v18407_v8 = vld [vmem:[#allocation50_spill] sm:$0xff] }
 0xea6   : > { %v4990_v7 = vmul.f32 0.6931472, %v11467_v34  ;;  %v5154_v62 = vadd.f32 1.0, %v5153_v53  ;;  %vm4995_vm11 = vcmp.lt.f32.partialorder %v4994_v28, 0.0004427343  ;;  %v5018_v6 = vmul.f32 -0.5, %v18398_v39 }
 0xea7   : > { %v4626_v10 = vmul.f32 1.442695, %v18401_v56  ;;  %5290 = vrot.lane.b32.xlu1 %v5197_v29, %s18335_s16  ;;  %v18403_v25 = vsub.f32 0.0, %v18402_v27  ;;  %v5164_v24 = vmul.f32 %v15508_v32, %v5163_v33  ;;  %v5156_v31 = vand.u32 2147483647, %v15503_v47  ;;  %v18409_v27 = vld [vmem:[#allocation46_spill] sm:$0xff] }
 0xea8   : > { %v11469_v43 = vpop.eup %11468  ;;  %5288 = vrot.lane.b32.xlu0 %v5196_v20, %s18335_s16  ;;  %v4996_v17 = vsel %vm4995_vm11, %v4993_v14, %v4990_v7  ;;  %v5009_v2 = vmul.f32 -0.5, %v18399_v51  ;;  %v5181_v3 = vadd.f32 %v5005_v22, %v4733_v54  ;;  %v18404_v63 = vsub.f32 0.0, %v15136_v60 }
 0xea9   : > { %11476 = vpow2.f32 %v4626_v10  ;;  %v4624_v19 = vmul.f32 1.442695, %v18403_v25  ;;  %v5161_v4 = vmul.f32 0.6931472, %v11469_v43  ;;  %v5180_v53 = vadd.f32 %v4996_v17, %v4732_v9  ;;  %v18408_v10 = vld [vmem:[#allocation45_spill] sm:$0xff] }
 0xeaa   : > { %v4594_v13 = vmul.f32 1.442695, %v18404_v63  ;;  %v11471_v15 = vpop.eup %11470  ;;  %v4751_v58 = vmax.f32 %v18405_v45, 0.0  ;;  %vm5166_vm12 = vcmp.lt.f32.partialorder %v5165_v41, 0.0004427343  ;;  %v5155_v26 = vmul.f32 %v15503_v47, %v5154_v62 }
 0xeab   : > { %11478 = vpow2.f32 %v4624_v19  ;;  %5258 = vrot.lane.b32.xlu1 %v5181_v3, %s18335_s16  ;;  %v5167_v32 = vsel %vm5166_vm12, %v5164_v24, %v5161_v4  ;;  %v5152_v23 = vmul.f32 0.6931472, %v11471_v15  ;;  %v5019_v28 = vadd.f32 1.0, %v5018_v6  ;;  %v18411_v4 = vld [vmem:[#allocation51_spill] sm:$0xff] }
 0xeac   : > { %v18406_v30 = vsub.f32 0.0, %v15151_v59  ;;  %5256 = vrot.lane.b32.xlu0 %v5180_v53, %s18335_s16  ;;  %v4750_v60 = vmax.f32 %v18407_v8, 0.0  ;;  %vm5157_vm13 = vcmp.lt.f32.partialorder %v5156_v31, 0.0004427343  ;;  %v5021_v9 = vand.u32 2147483647, %v18398_v39 }
 0xead   : > { %v5010_v14 = vadd.f32 1.0, %v5009_v2  ;;  %v5199_v33 = vadd.f32 %v5167_v32, %v4751_v58  ;;  %v5158_v34 = vsel %vm5157_vm13, %v5155_v26, %v5152_v23  ;;  %v5012_v47 = vand.u32 2147483647, %v18399_v51  ;;  %v18410_v2 = vld [vmem:[#allocation52_spill] sm:$0xff] }
 0xeae   : > { %v4592_v54 = vmul.f32 1.442695, %v18406_v30  ;;  %11480 = vpow2.f32 %v4594_v13  ;;  %v11473_v29 = vpop.eup %11472  ;;  %v5198_v41 = vadd.f32 %v5158_v34, %v4750_v60  ;;  %v5020_v56 = vmul.f32 %v18398_v39, %v5019_v28 }
 0xeaf   : > { %v11475_v38 = vpop.eup %11474  ;;  %5294 = vrot.lane.b32.xlu1 %v5199_v33, %s18335_s16  ;;  %v5017_v59 = vmul.f32 0.6931472, %v11473_v29  ;;  %v4735_v20 = vmax.f32 %v18408_v10, 0.0  ;;  %vm5022_vm14 = vcmp.lt.f32.partialorder %v5021_v9, 0.0004427343  ;;  %v5011_v7 = vmul.f32 %v18399_v51, %v5010_v14 }
 0xeb0   : > { %11482 = vpow2.f32 %v4592_v54  ;;  %5292 = vrot.lane.b32.xlu0 %v5198_v41, %s18335_s16  ;;  %v5008_v22 = vmul.f32 0.6931472, %v11475_v38  ;;  %v4734_v25 = vmax.f32 %v18409_v27, 0.0  ;;  %vm5013_vm15 = vcmp.lt.f32.partialorder %v5012_v47, 0.0004427343 }
 0xeb1   : > { %v5023_v6 = vsel %vm5022_vm14, %v5020_v56, %v5017_v59  ;;  %v4579_v3 = vsub.f32 0.0, %v18410_v2  ;;  %v4578_v63 = vsub.f32 0.0, %v18411_v4  ;;  %v4563_v60 = vsub.f32 0.0, %v15239_v61 }
 0xeb2   : > { %v5183_v19 = vadd.f32 %v5023_v6, %v4735_v20  ;;  %v5014_v43 = vsel %vm5013_vm15, %v5011_v7, %v5008_v22  ;;  %v4562_v14 = vsub.f32 0.0, %v15250_v1  ;;  %v4581_v34 = vsub.f32 0.0, %v15257_v35 }
 0xeb3   : > { %v11477_v62 = vpop.eup %11476  ;;  %v5182_v31 = vadd.f32 %v5014_v43, %v4734_v25  ;;  %v4630_v15 = vmul.f32 1.442695, %v4579_v3  ;;  %v4628_v58 = vmul.f32 1.442695, %v4578_v63  ;;  %v4598_v47 = vmul.f32 1.442695, %v4563_v60 }
 0xeb4   : > { %v4673_v17 = vadd.f32 1.0, %v11477_v62  ;;  %5262 = vrot.lane.b32.xlu1 %v5183_v19, %s18335_s16  ;;  %v4580_v38 = vsub.f32 0.0, %v15271_v37  ;;  %v4596_v59 = vmul.f32 1.442695, %v4562_v14  ;;  %v4565_v22 = vsub.f32 0.0, %v15275_v57 }
 0xeb5   : > { %v11479_v24 = vpop.eup %11478  ;;  %5260 = vrot.lane.b32.xlu0 %v5182_v31, %s18335_s16  ;;  %v4634_v61 = vmul.f32 1.442695, %v4581_v34  ;;  %v4564_v25 = vsub.f32 0.0, %v15295_v50  ;;  %v4583_v43 = vsub.f32 0.0, %v15304_v5  ;;  %v4582_v57 = vsub.f32 0.0, %v15316_v11 }
 0xeb6   : > { %11484 = vrcp.f32 %v4673_v17  ;;  %v4672_v39 = vadd.f32 1.0, %v11479_v24  ;;  %v4632_v19 = vmul.f32 1.442695, %v4580_v38  ;;  %v4602_v24 = vmul.f32 1.442695, %v4565_v22 }
 0xeb7   : > { %v5267_v26 = vpop.permute.xlu1 %5266  ;;  %v4600_v31 = vmul.f32 1.442695, %v4564_v25  ;;  %v4636_v50 = vmul.f32 1.442695, %v4582_v57 }
 0xeb8   : > { %11486 = vrcp.f32 %v4672_v39  ;;  %v11481_v51 = vpop.eup %11480  ;;  %v4638_v39 = vmul.f32 1.442695, %v4583_v43 }
 0xeb9   : > { %v4657_v53 = vadd.f32 1.0, %v11481_v51  ;;  %11488 = vpow2.f32 %v4630_v15 }
 0xeba   : > { %v11483_v13 = vpop.eup %11482 }
 0xebb   : > { %v4656_v32 = vadd.f32 1.0, %v11483_v13  ;;  %11490 = vrcp.f32 %v4657_v53 }
 0xebc   : > { %11492 = vpow2.f32 %v4628_v58 }
 0xebd   : > { %v5265_v28 = vpop.permute.xlu0 %5264  ;;  %11494 = vrcp.f32 %v4656_v32 }
 0xebe   : > { %11496 = vpow2.f32 %v4598_v47 }
 0xebf   : > { %11498 = vpow2.f32 %v4596_v59 }
 0xec0   : > { %v11485_v23 = vpop.eup %11484  ;;  %11500 = vpow2.f32 %v4634_v61 }
 0xec1   : > { %v5345_v30 = vmul.f32 %v11485_v23, %v5267_v26 }
 0xec2   : > { %v11487_v54 = vpop.eup %11486  ;;  %v5235_v29 = vpop.permute.xlu1 %5234 }
 0xec3   : > { %v5344_v9 = vmul.f32 %v11487_v54, %v5265_v28  ;;  %v11489_v41 = vpop.eup %11488 }
 0xec4   : > { %v4675_v1 = vadd.f32 1.0, %v11489_v41 }
 0xec5   : > { %v10473_v33 = vpack.c.bf16 %v5345_v30, %v5344_v9  ;;  %v11491_v56 = vpop.eup %11490  ;;  %v4567_v9 = vsub.f32 0.0, %v15341_v46  ;;  %v4585_v46 = vsub.f32 0.0, %v15353_v0 }
 0xec6   : > { %v11493_v20 = vpop.eup %11492  ;;  %v5329_v7 = vmul.f32 %v11491_v56, %v5235_v29  ;;  %11502 = vrcp.f32 %v4675_v1  ;;  %v4569_v1 = vsub.f32 0.0, %v15094_v52 }
 0xec7   : > { %10474 = vmatprep.subr.bf16.mxu1 %v10473_v33  ;;  %v11495_v62 = vpop.eup %11494  ;;  %v4674_v17 = vadd.f32 1.0, %v11493_v20  ;;  %11504 = vpow2.f32 %v4632_v19  ;;  %v4566_v33 = vsub.f32 0.0, %v15345_v42  ;;  %v4606_v41 = vmul.f32 1.442695, %v4567_v9 }
 0xec8   : > { %v11497_v2 = vpop.eup %11496  ;;  %v4584_v42 = vsub.f32 0.0, %v15357_v36  ;;  %v4587_v36 = vsub.f32 0.0, %v15119_v18 }
 0xec9   : > { %11506 = vrcp.f32 %v4674_v17  ;;  %v11499_v3 = vpop.eup %11498  ;;  %v4659_v5 = vadd.f32 1.0, %v11497_v2  ;;  %v4604_v38 = vmul.f32 1.442695, %v4566_v33  ;;  %v4610_v2 = vmul.f32 1.442695, %v4569_v1 }
 0xeca   : > { %11508 = vpow2.f32 %v4602_v24  ;;  %v11501_v4 = vpop.eup %11500  ;;  %v4658_v13 = vadd.f32 1.0, %v11499_v3  ;;  %v4568_v24 = vsub.f32 0.0, %v15091_v44  ;;  %v4640_v0 = vmul.f32 1.442695, %v4584_v42 }
 0xecb   : > { %v5233_v6 = vpop.permute.xlu0 %5232  ;;  %11510 = vpow2.f32 %v4600_v31  ;;  %v4677_v26 = vadd.f32 1.0, %v11501_v4  ;;  %v4570_v44 = vsub.f32 0.0, %v15097_v16  ;;  %v4588_v33 = vsub.f32 0.0, %v18388_v55 }
 0xecc   : > { %v5328_v35 = vmul.f32 %v11495_v62, %v5233_v6  ;;  %11512 = vpow2.f32 %v4638_v39 }
 0xecd   : > { %11514 = vpow2.f32 %v4636_v50  ;;  %v4586_v50 = vsub.f32 0.0, %v15116_v12 }
 0xece   : > { %v10475_v37 = vpack.c.bf16 %v5329_v7, %v5328_v35  ;;  %11516 = vrcp.f32 %v4659_v5  ;;  %v4571_v5 = vsub.f32 0.0, %v15100_v40 }
 0xecf   : > { %11518 = vrcp.f32 %v4658_v13 }
 0xed0   : > { %10476 = vmatpush3.bf16.msra.mxu1 %v10475_v37  ;;  %v11503_v63 = vpop.eup %11502  ;;  %11520 = vrcp.f32 %v4677_v26  ;;  %v4642_v37 = vmul.f32 1.442695, %v4585_v46  ;;  %v4614_v40 = vmul.f32 1.442695, %v4571_v5  ;;  %v4591_v46 = vsub.f32 0.0, %v18405_v45 }
 0xed1   : > { %v11505_v15 = vpop.eup %11504  ;;  %v4575_v45 = vsub.f32 0.0, %v18408_v10 }
 0xed2   : > { %v4676_v28 = vadd.f32 1.0, %v11505_v15  ;;  %v4608_v15 = vmul.f32 1.442695, %v4568_v24 }
 0xed3   : > { %v5271_v51 = vpop.permute.xlu1 %5270  ;;  %v11507_v11 = vpop.eup %11506 }
 0xed4   : > { %v5347_v53 = vmul.f32 %v11503_v63, %v5271_v51  ;;  %v11509_v32 = vpop.eup %11508  ;;  %11522 = vrcp.f32 %v4676_v28 }
 0xed5   : > { %v11511_v30 = vpop.eup %11510  ;;  %v4661_v14 = vadd.f32 1.0, %v11509_v32  ;;  %v4644_v32 = vmul.f32 1.442695, %v4586_v50 }
 0xed6   : > { %v11513_v60 = vpop.eup %11512  ;;  %v4660_v34 = vadd.f32 1.0, %v11511_v30 }
 0xed7   : > { %v11515_v47 = vpop.eup %11514  ;;  %v4679_v29 = vadd.f32 1.0, %v11513_v60  ;;  %11524 = vrcp.f32 %v4661_v14  ;;  %v4589_v60 = vsub.f32 0.0, %v18384_v21 }
 0xed8   : > { %v11517_v59 = vpop.eup %11516  ;;  %11526 = vrcp.f32 %v4660_v34  ;;  %v4678_v20 = vadd.f32 1.0, %v11515_v47 }
 0xed9   : > { %11528 = vrcp.f32 %v4679_v29  ;;  %v11519_v7 = vpop.eup %11518  ;;  %v4650_v29 = vmul.f32 1.442695, %v4589_v60 }
 0xeda   : > { %v5269_v58 = vpop.permute.xlu0 %5268  ;;  %11530 = vpow2.f32 %v4606_v41  ;;  %v11521_v6 = vpop.eup %11520 }
 0xedb   : > { %v5346_v23 = vmul.f32 %v11507_v11, %v5269_v58  ;;  %11532 = vpow2.f32 %v4604_v38  ;;  %v4646_v11 = vmul.f32 1.442695, %v4587_v36  ;;  %v4573_v38 = vsub.f32 0.0, %v18392_v48 }
 0xedc   : > { %11534 = vrcp.f32 %v4678_v20 }
 0xedd   : > { %v10477_v54 = vpack.c.bf16 %v5347_v53, %v5346_v23  ;;  %11536 = vpow2.f32 %v4642_v37 }
 0xede   : > { %v11523_v43 = vpop.eup %11522  ;;  %11538 = vpow2.f32 %v4640_v0 }
 0xedf   : > { %10478 = vmatprep.subr.bf16.mxu1 %v10477_v54  ;;  %11540 = vpow2.f32 %v4610_v2  ;;  %v4612_v54 = vmul.f32 1.442695, %v4570_v44 }
 0xee0   : > { %11542 = vpow2.f32 %v4608_v15 }
 0xee1   : > { %v11525_v31 = vpop.eup %11524  ;;  %11544 = vpow2.f32 %v4646_v11 }
 0xee2   : > { %v11527_v51 = vpop.eup %11526  ;;  %11546 = vpow2.f32 %v4644_v32 }
 0xee3   : > { %v11529_v63 = vpop.eup %11528  ;;  %11548 = vpow2.f32 %v4614_v40 }
 0xee4   : > { %v11531_v53 = vpop.eup %11530  ;;  %11550 = vpow2.f32 %v4612_v54 }
 0xee5   : > { %v5239_v56 = vpop.permute.xlu1 %5238  ;;  %v11533_v58 = vpop.eup %11532  ;;  %v4663_v16 = vadd.f32 1.0, %v11531_v53 }
 0xee6   : > { %v5331_v22 = vmul.f32 %v11517_v59, %v5239_v56  ;;  %v11535_v23 = vpop.eup %11534  ;;  %v4662_v14 = vadd.f32 1.0, %v11533_v58  ;;  %v4648_v59 = vmul.f32 1.442695, %v4588_v33  ;;  %v4572_v56 = vsub.f32 0.0, %v18397_v49 }
 0xee7   : > { %v5237_v61 = vpop.permute.xlu0 %5236  ;;  %v11537_v34 = vpop.eup %11536  ;;  %11552 = vrcp.f32 %v4663_v16 }
 0xee8   : > { %v5330_v62 = vmul.f32 %v11519_v7, %v5237_v61  ;;  %v11539_v47 = vpop.eup %11538  ;;  %11554 = vrcp.f32 %v4662_v14  ;;  %v4681_v21 = vadd.f32 1.0, %v11537_v34  ;;  %v4618_v61 = vmul.f32 1.442695, %v4573_v38 }
 0xee9   : > { %v5275_v25 = vpop.permute.xlu1 %5274  ;;  %v11541_v41 = vpop.eup %11540  ;;  %v4680_v20 = vadd.f32 1.0, %v11539_v47  ;;  %11556 = vpow2.f32 %v4650_v29 }
 0xeea   : > { %v10479_v35 = vpack.c.bf16 %v5331_v22, %v5330_v62  ;;  %v5349_v19 = vmul.f32 %v11521_v6, %v5275_v25  ;;  %v11543_v22 = vpop.eup %11542  ;;  %v4665_v7 = vadd.f32 1.0, %v11541_v41  ;;  %11558 = vpow2.f32 %v4648_v59 }
 0xeeb   : > { %v5273_v17 = vpop.permute.xlu0 %5272  ;;  %v11545_v55 = vpop.eup %11544  ;;  %v4590_v62 = vsub.f32 0.0, %v18407_v8  ;;  %11560 = vrcp.f32 %v4681_v21  ;;  %v4616_v6 = vmul.f32 1.442695, %v4572_v56  ;;  %v4664_v48 = vadd.f32 1.0, %v11543_v22 }
 0xeec   : > { %v5348_v57 = vmul.f32 %v11523_v43, %v5273_v17  ;;  %10480 = vmatpush3.bf16.msra.mxu1 %v10479_v35  ;;  %v11547_v42 = vpop.eup %11546  ;;  %11562 = vrcp.f32 %v4680_v20  ;;  %v4683_v49 = vadd.f32 1.0, %v11545_v55  ;;  %v4654_v43 = vmul.f32 1.442695, %v4591_v46 }
 0xeed   : > { %v5243_v39 = vpop.permute.xlu1 %5242  ;;  %v11549_v1 = vpop.eup %11548  ;;  %11564 = vrcp.f32 %v4665_v7  ;;  %v4574_v8 = vsub.f32 0.0, %v18409_v27 }
 0xeee   : > { %v10481_v52 = vpack.c.bf16 %v5349_v19, %v5348_v57  ;;  %v5333_v3 = vmul.f32 %v11525_v31, %v5243_v39  ;;  %v11551_v25 = vpop.eup %11550  ;;  %11566 = vpow2.f32 %v4618_v61  ;;  %v4652_v57 = vmul.f32 1.442695, %v4590_v62 }
 0xeef   : > { %v5241_v4 = vpop.permute.xlu0 %5240  ;;  %11568 = vpow2.f32 %v4616_v6  ;;  %v4682_v31 = vadd.f32 1.0, %v11547_v42  ;;  %v4667_v36 = vadd.f32 1.0, %v11549_v1  ;;  %v4666_v2 = vadd.f32 1.0, %v11551_v25 }
 0xef0   : > { %v5332_v13 = vmul.f32 %v11527_v51, %v5241_v4  ;;  %10482 = vmatprep.subr.bf16.mxu1 %v10481_v52  ;;  %11570 = vrcp.f32 %v4664_v48  ;;  %v4622_v52 = vmul.f32 1.442695, %v4575_v45  ;;  %v4620_v10 = vmul.f32 1.442695, %v4574_v8 }
 0xef1   : > { %v5279_v18 = vpop.permute.xlu1 %5278  ;;  %v11553_v35 = vpop.eup %11552  ;;  %11572 = vrcp.f32 %v4683_v49 }
 0xef2   : > { %v10483_v12 = vpack.c.bf16 %v5333_v3, %v5332_v13  ;;  %v5351_v26 = vmul.f32 %v11529_v63, %v5279_v18  ;;  %v11555_v17 = vpop.eup %11554  ;;  %11574 = vpow2.f32 %v4654_v43 }
 0xef3   : > { %v5277_v28 = vpop.permute.xlu0 %5276  ;;  %v11557_v50 = vpop.eup %11556  ;;  %11576 = vpow2.f32 %v4652_v57 }
 0xef4   : > { %v5350_v30 = vmul.f32 %v11535_v23, %v5277_v28  ;;  %10484 = vmatpush3.bf16.msra.mxu1 %v10483_v12  ;;  %v11559_v3 = vpop.eup %11558  ;;  %11578 = vrcp.f32 %v4682_v31  ;;  %v4685_v15 = vadd.f32 1.0, %v11557_v50 }
 0xef5   : > { %v11561_v51 = vpop.eup %11560  ;;  %11580 = vrcp.f32 %v4667_v36  ;;  %v4684_v18 = vadd.f32 1.0, %v11559_v3 }
 0xef6   : > { %v10485_v9 = vpack.c.bf16 %v5351_v26, %v5350_v30  ;;  %v11563_v4 = vpop.eup %11562  ;;  %11582 = vrcp.f32 %v4666_v2 }
 0xef7   : > { %v11565_v44 = vpop.eup %11564  ;;  %11584 = vpow2.f32 %v4622_v52 }
 0xef8   : > { %10486 = vmatprep.subr.bf16.mxu1 %v10485_v9  ;;  %v11567_v53 = vpop.eup %11566  ;;  %11586 = vpow2.f32 %v4620_v10 }
 0xef9   : > { %v11569_v11 = vpop.eup %11568  ;;  %11588 = vrcp.f32 %v4685_v15  ;;  %v4669_v30 = vadd.f32 1.0, %v11567_v53  ;;  %v12076_v15 = vld [vmem:[%s13890_s21] sm:$0xff]  ;;  %v12077_v53 = vld [vmem:[%s13890_s21 + $0x18] sm:$0xff] }
 0xefa   : > { %v11571_v26 = vpop.eup %11570  ;;  %11590 = vrcp.f32 %v4684_v18  ;;  %v4668_v16 = vadd.f32 1.0, %v11569_v11  ;;  %v12078_v18 = vld [vmem:[%s13890_s21 + $0x10] sm:$0xff]  ;;  %v12079_v11 = vld [vmem:[%s13890_s21 + $0x28] sm:$0xff] }
 0xefb   : > { %v11573_v28 = vpop.eup %11572  ;;  %11592 = vrcp.f32 %v4669_v30  ;;  %v12087_v30 = vld [vmem:[%s13890_s21 + $0x68] sm:$0xff] }
 0xefc   : > { %v11575_v54 = vpop.eup %11574  ;;  %11594 = vrcp.f32 %v4668_v16  ;;  %v12089_v16 = vld [vmem:[%s13890_s21 + $0x78] sm:$0xff] }
 0xefd   : > { %v11577_v60 = vpop.eup %11576  ;;  %v4687_v38 = vadd.f32 1.0, %v11575_v54  ;;  %v12088_v54 = vld [vmem:[%s13890_s21 + $0x60] sm:$0xff] }
 0xefe   : > { %v11579_v33 = vpop.eup %11578  ;;  %v4686_v56 = vadd.f32 1.0, %v11577_v60  ;;  %v12090_v60 = vld [vmem:[%s13890_s21 + $0x70] sm:$0xff] }
 0xeff   : > { %v11581_v29 = vpop.eup %11580  ;;  %11596 = vrcp.f32 %v4687_v38  ;;  %v12098_v38 = vld [vmem:[%s13890_s21 + $0xb0] sm:$0xff] }
 0xf00   : > { %v11583_v59 = vpop.eup %11582  ;;  %11598 = vrcp.f32 %v4686_v56  ;;  %v12100_v56 = vld [vmem:[%s13890_s21 + $0xc0] sm:$0xff] }
 0xf01   : > { %v11585_v21 = vpop.eup %11584 }
 0xf02   : > { %v5247_v19 = vpop.permute.xlu1 %5246  ;;  %v11587_v7 = vpop.eup %11586  ;;  %v4671_v42 = vadd.f32 1.0, %v11585_v21  ;;  %v12101_v21 = vld [vmem:[%s13890_s21 + $0xd8] sm:$0xff] }
 0xf03   : > { %v5335_v37 = vmul.f32 %v11553_v35, %v5247_v19  ;;  %v5245_v24 = vpop.permute.xlu0 %5244  ;;  %v11589_v62 = vpop.eup %11588  ;;  %v4670_v48 = vadd.f32 1.0, %v11587_v7  ;;  %v12104_v7 = vld [vmem:[%s13890_s21 + $0xe0] sm:$0xff] }
 0xf04   : > { %v5334_v0 = vmul.f32 %v11555_v17, %v5245_v24  ;;  %v11591_v25 = vpop.eup %11590  ;;  %11600 = vrcp.f32 %v4671_v42 }
 0xf05   : > { %v11593_v43 = vpop.eup %11592  ;;  %11602 = vrcp.f32 %v4670_v48 }
 0xf06   : > { %v10487_v39 = vpack.c.bf16 %v5335_v37, %v5334_v0  ;;  %v11595_v37 = vpop.eup %11594 }
 0xf08   : > { %10488 = vmatpush3.bf16.msra.mxu1 %v10487_v39 }
 0xf09   : > { %v5283_v5 = vpop.permute.xlu1 %5282  ;;  %v11597_v0 = vpop.eup %11596 }
 0xf0a   : > { %v5353_v27 = vmul.f32 %v11561_v51, %v5283_v5  ;;  %v5281_v63 = vpop.permute.xlu0 %5280  ;;  %v11599_v39 = vpop.eup %11598 }
 0xf0b   : > { %v5352_v13 = vmul.f32 %v11563_v4, %v5281_v63 }
 0xf0d   : > { %v10489_v58 = vpack.c.bf16 %v5353_v27, %v5352_v13  ;;  %v5251_v12 = vpop.permute.xlu1 %5250  ;;  %v18412_v13 = vmov 0.0|0.0  }
 0xf0e   : > { %v5337_v32 = vmul.f32 %v11565_v44, %v5251_v12  ;;  %v5249_v23 = vpop.permute.xlu0 %5248  ;;  %v11601_v10 = vpop.eup %11600  ;;  %v12081_v12 = vld [vmem:[%s13890_s21 + $0x38] sm:$0xff] }
 0xf0f   : > { %v5336_v40 = vmul.f32 %v11571_v26, %v5249_v23  ;;  %10490 = vmatprep.subr.bf16.mxu1 %v10489_v58  ;;  %v11603_v5 = vpop.eup %11602  ;;  %v12080_v58 = vld [vmem:[%s13890_s21 + $0x20] sm:$0xff]  ;;  %v12082_v26 = vld [vmem:[%s13890_s21 + $0x30] sm:$0xff] }
 0xf10   : > { %v12084_v23 = vld [vmem:[%s13890_s21 + $0x40] sm:$0xff] }
 0xf11   : > { %v10491_v9 = vpack.c.bf16 %v5337_v32, %v5336_v40  ;;  %v5287_v14 = vpop.permute.xlu1 %5286  ;;  %v12083_v32 = vld [vmem:[%s13890_s21 + $0x48] sm:$0xff]  ;;  %v12086_v40 = vld [vmem:[%s13890_s21 + $0x50] sm:$0xff] }
 0xf12   : > { %v5355_v34 = vmul.f32 %v11573_v28, %v5287_v14  ;;  %v5285_v47 = vpop.permute.xlu0 %5284  ;;  %v12085_v28 = vld [vmem:[%s13890_s21 + $0x58] sm:$0xff]  ;;  %v12092_v14 = vld [vmem:[%s13890_s21 + $0x80] sm:$0xff] }
 0xf13   : > { %v5354_v41 = vmul.f32 %v11579_v33, %v5285_v47  ;;  %10492 = vmatpush3.bf16.msra.mxu1 %v10491_v9  ;;  %v12091_v9 = vld [vmem:[%s13890_s21 + $0x88] sm:$0xff]  ;;  %v12093_v33 = vld [vmem:[%s13890_s21 + $0x98] sm:$0xff] }
 0xf14   : > { %v12095_v47 = vld [vmem:[%s13890_s21 + $0xa8] sm:$0xff] }
 0xf15   : > { %v10493_v20 = vpack.c.bf16 %v5355_v34, %v5354_v41  ;;  %v5255_v22 = vpop.permute.xlu1 %5254  ;;  %v12094_v34 = vld [vmem:[%s13890_s21 + $0x90] sm:$0xff]  ;;  %v12097_v41 = vld [vmem:[%s13890_s21 + $0xb8] sm:$0xff] }
 0xf16   : > { %v5339_v55 = vmul.f32 %v11581_v29, %v5255_v22  ;;  %v5253_v46 = vpop.permute.xlu0 %5252  ;;  %v12096_v29 = vld [vmem:[%s13890_s21 + $0xa0] sm:$0xff]  ;;  %v12103_v22 = vld [vmem:[%s13890_s21 + $0xe8] sm:$0xff] }
 0xf17   : > { %v5338_v61 = vmul.f32 %v11583_v59, %v5253_v46  ;;  %10494 = vmatprep.subr.bf16.mxu1 %v10493_v20  ;;  %v12099_v59 = vld [vmem:[%s13890_s21 + $0xc8] sm:$0xff]  ;;  %v12102_v20 = vld [vmem:[%s13890_s21 + $0xd0] sm:$0xff] }
 0xf18   : > { %v12106_v46 = vld [vmem:[%s13890_s21 + $0xf0] sm:$0xff] }
 0xf19   : > { %v10495_v6 = vpack.c.bf16 %v5339_v55, %v5338_v61  ;;  %v5291_v1 = vpop.permute.xlu1 %5290  ;;  %v12105_v55 = vld [vmem:[%s13890_s21 + $0xf8] sm:$0xff]  ;;  %v18413_v61 = vmov 0.0  }
 0xf1a   : > { %v5357_v49 = vmul.f32 %v11589_v62, %v5291_v1  ;;  %v5289_v35 = vpop.permute.xlu0 %5288 }
 0xf1b   : > { %v5356_v19 = vmul.f32 %v11591_v25, %v5289_v35  ;;  %10496 = vmatpush3.bf16.msra.mxu1 %v10495_v6 }
 0xf1d   : > { %v10497_v17 = vpack.c.bf16 %v5357_v49, %v5356_v19  ;;  %v5259_v45 = vpop.permute.xlu1 %5258 }
 0xf1e   : > { %v5341_v24 = vmul.f32 %v11593_v43, %v5259_v45  ;;  %v5257_v57 = vpop.permute.xlu0 %5256 }
 0xf1f   : > { %v5340_v8 = vmul.f32 %v11595_v37, %v5257_v57  ;;  %10498 = vmatprep.subr.bf16.mxu1 %v10497_v17 }
 0xf21   : > { %v10499_v31 = vpack.c.bf16 %v5341_v24, %v5340_v8  ;;  %v5295_v36 = vpop.permute.xlu1 %5294 }
 0xf22   : > { %v5359_v2 = vmul.f32 %v11597_v0, %v5295_v36  ;;  %v5293_v50 = vpop.permute.xlu0 %5292 }
 0xf23   : > { %v5358_v52 = vmul.f32 %v11599_v39, %v5293_v50  ;;  %10500 = vmatpush3.bf16.msra.mxu1 %v10499_v31 }
 0xf25   : > { %v10501_v3 = vpack.c.bf16 %v5359_v2, %v5358_v52 }
 0xf26   : > { %v5263_v51 = vpop.permute.xlu1 %5262 }
 0xf27   : > { %v5343_v4 = vmul.f32 %v11601_v10, %v5263_v51  ;;  %v5261_v27 = vpop.permute.xlu0 %5260  ;;  %10502 = vmatprep.subr.bf16.mxu1 %v10501_v3 }
 0xf28   : > { %v5342_v63 = vmul.f32 %v11603_v5, %v5261_v27 }
 0xf2a   : > { %v10503_v44 = vpack.c.bf16 %v5343_v4, %v5342_v63 }
 0xf2c   : > { %10504 = vmatpush3.bf16.msra.mxu1 %v10503_v44 }
 0xf2d   : > { %10529 = vmatprep.subr.bf16.mxu1 %v18412_v13 }
 0xf2f   : > { %5425 = vmatmul.mubr.f32.vlgmr.msra.gmra.mrb[134].mxu1 %v12076_v15 }
 0xf30   : > { %5429 = vmatprep.mubr.f32.mxu1 %v12077_v53 }
 0xf33   : > { %5430 = vmatmul.mubr.f32.gmra.mrb[136].mxu1 %v12078_v18 }
 0xf34   : > { %5434 = vmatprep.mubr.f32.mxu1 %v12079_v11 }
 0xf37   : > { %5435 = vmatmul.mubr.f32.gmra.mrb[138].mxu1 %v12080_v58 }
 0xf38   : > { %5439 = vmatprep.mubr.f32.mxu1 %v12081_v12 }
 0xf3b   : > { %5440 = vmatmul.mubr.f32.gmra.mrb[140].mxu1 %v12082_v26 }
 0xf3c   : > { %5444 = vmatprep.mubr.f32.mxu1 %v12083_v32 }
 0xf3f   : > { %5445 = vmatmul.mubr.f32.gmra.mrb[142].mxu1 %v12084_v23 }
 0xf40   : > { %5449 = vmatprep.mubr.f32.mxu1 %v12085_v28 }
 0xf43   : > { %5450 = vmatmul.mubr.f32.gmra.mrb[144].mxu1 %v12086_v40 }
 0xf44   : > { %5454 = vmatprep.mubr.f32.mxu1 %v12087_v30 }
 0xf47   : > { %5455 = vmatmul.mubr.f32.gmra.mrb[146].mxu1 %v12088_v54 }
 0xf48   : > { %5459 = vmatprep.mubr.f32.mxu1 %v12089_v16 }
 0xf4b   : > { %5460 = vmatmul.mubr.f32.gmra.mrb[148].mxu1 %v12090_v60 }
 0xf4c   : > { %5464 = vmatprep.mubr.f32.mxu1 %v12091_v9 }
 0xf4f   : > { %5465 = vmatmul.mubr.f32.gmra.mrb[150].mxu1 %v12092_v14 }
 0xf50   : > { %5469 = vmatprep.mubr.f32.mxu1 %v12093_v33 }
 0xf53   : > { %5470 = vmatmul.mubr.f32.gmra.mrb[152].mxu1 %v12094_v34 }
 0xf54   : > { %5474 = vmatprep.mubr.f32.mxu1 %v12095_v47 }
 0xf57   : > { %5475 = vmatmul.mubr.f32.gmra.mrb[154].mxu1 %v12096_v29 }
 0xf58   : > { %5479 = vmatprep.mubr.f32.mxu1 %v12097_v41 }
 0xf5b   : > { %5480 = vmatmul.mubr.f32.gmra.mrb[156].mxu1 %v12098_v38 }
 0xf5c   : > { %5484 = vmatprep.mubr.f32.mxu1 %v12099_v59 }
 0xf5f   : > { %5485 = vmatmul.mubr.f32.gmra.mrb[158].mxu1 %v12100_v56 }
 0xf60   : > { %5489 = vmatprep.mubr.f32.mxu1 %v12101_v21  ;;  %v18414_v21 = vmov 1.0  }
 0xf63   : > { %5490 = vmatmul.mubr.f32.gmra.mrb[160].mxu1 %v12102_v20 }
 0xf64   : > { %5494 = vmatprep.mubr.f32.mxu1 %v12103_v22 }
 0xf67   : > { %5495 = vmatmul.mubr.f32.gmra.mrb[162].mxu1 %v12104_v7 }
 0xf68   : > { %5499 = vmatprep.mubr.f32.mxu1 %v12105_v55  ;;  %v18415_v55 = vld [vmem:[#allocation40_spill] sm:$0xff] }
 0xf6b   : > { %5500 = vmatmul.mubr.f32.gmra.mrb[164].mxu1 %v12106_v46 }
 0xf6c   : > { %9953 = vmatprep.mubr.msk.f32.mxu1 %vm12309_vm6, %v18413_v61 }
0x1002   : > { %v9311_v42 = vpop.f32.mrb[134].mxu1 }
0x1003   : > { %v9312_v62 = vpop.f32.mrb[135].mxu1 }
0x1004   : > { %v15747_v6 = vadd.f32 %v9312_v62, %v9311_v42 }
0x1006   : > { %v9314_v1 = vpop.f32.mrb[136].mxu1 }
0x1007   : > { %v9315_v48 = vpop.f32.mrb[137].mxu1 }
0x1008   : > { %v15749_v25 = vadd.f32 %v9315_v48, %v9314_v1 }
0x100a   : > { %v10506_v49 = vpack.c.bf16 %v15749_v25, %v15747_v6  ;;  %v9317_v35 = vpop.f32.mrb[138].mxu1 }
0x100b   : > { %v9318_v19 = vpop.f32.mrb[139].mxu1 }
0x100c   : > { %10507 = vmatpush3.bf16.msra.mxu0 %v10506_v49  ;;  %v15753_v43 = vadd.f32 %v9318_v19, %v9317_v35 }
0x100d   : > { %10508 = vmatprep.subr.bf16.mxu0 %v18412_v13 }
0x100e   : > { %v9320_v17 = vpop.f32.mrb[140].mxu1 }
0x100f   : > { %v9321_v45 = vpop.f32.mrb[141].mxu1 }
0x1010   : > { %v15756_v37 = vadd.f32 %v9321_v45, %v9320_v17 }
0x1012   : > { %v10509_v24 = vpack.c.bf16 %v15756_v37, %v15753_v43  ;;  %v9323_v57 = vpop.f32.mrb[142].mxu1 }
0x1013   : > { %v9324_v8 = vpop.f32.mrb[143].mxu1 }
0x1014   : > { %v15760_v0 = vadd.f32 %v9324_v8, %v9323_v57  ;;  %10510 = vmatpush3.bf16.msra.mxu0 %v10509_v24 }
0x1015   : > { %10511 = vmatprep.subr.bf16.mxu0 %v18412_v13 }
0x1016   : > { %v9326_v31 = vpop.f32.mrb[144].mxu1 }
0x1017   : > { %v9327_v36 = vpop.f32.mrb[145].mxu1 }
0x1018   : > { %v15763_v39 = vadd.f32 %v9327_v36, %v9326_v31 }
0x101a   : > { %v10512_v2 = vpack.c.bf16 %v15763_v39, %v15760_v0  ;;  %v9329_v50 = vpop.f32.mrb[146].mxu1 }
0x101b   : > { %v9330_v52 = vpop.f32.mrb[147].mxu1 }
0x101c   : > { %v9331_v3 = vadd.f32 %v9330_v52, %v9329_v50  ;;  %10513 = vmatpush3.bf16.msra.mxu0 %v10512_v2 }
0x101d   : > { %10514 = vmatprep.subr.bf16.mxu0 %v18412_v13 }
0x101e   : > { %v9332_v10 = vpop.f32.mrb[148].mxu1 }
0x101f   : > { %v9333_v51 = vpop.f32.mrb[149].mxu1 }
0x1020   : > { %v9334_v5 = vadd.f32 %v9333_v51, %v9332_v10 }
0x1022   : > { %v10515_v4 = vpack.c.bf16 %v9334_v5, %v9331_v3  ;;  %v9335_v27 = vpop.f32.mrb[150].mxu1 }
0x1023   : > { %v9336_v63 = vpop.f32.mrb[151].mxu1 }
0x1024   : > { %v15768_v44 = vadd.f32 %v9336_v63, %v9335_v27  ;;  %10516 = vmatpush3.bf16.msra.mxu0 %v10515_v4 }
0x1025   : > { %10517 = vmatprep.subr.bf16.mxu0 %v18412_v13 }
0x1026   : > { %v9338_v15 = vpop.f32.mrb[152].mxu1 }
0x1027   : > { %v9339_v53 = vpop.f32.mrb[153].mxu1 }
0x1028   : > { %v9340_v18 = vadd.f32 %v9339_v53, %v9338_v15 }
0x102a   : > { %v10518_v11 = vpack.c.bf16 %v9340_v18, %v15768_v44  ;;  %v9341_v58 = vpop.f32.mrb[154].mxu1 }
0x102b   : > { %v9342_v12 = vpop.f32.mrb[155].mxu1 }
0x102c   : > { %v9343_v26 = vadd.f32 %v9342_v12, %v9341_v58  ;;  %10519 = vmatpush3.bf16.msra.mxu0 %v10518_v11 }
0x102d   : > { %10520 = vmatprep.subr.bf16.mxu0 %v18412_v13 }
0x102e   : > { %v9344_v32 = vpop.f32.mrb[156].mxu1 }
0x102f   : > { %v9345_v23 = vpop.f32.mrb[157].mxu1 }
0x1030   : > { %v9346_v28 = vadd.f32 %v9345_v23, %v9344_v32  ;;  %v8870_v23 = vld [vmem:[%s17943_s2 + $0x20] sm:$0xff] }
0x1032   : > { %v10521_v40 = vpack.c.bf16 %v9346_v28, %v9343_v26  ;;  %v9347_v30 = vpop.f32.mrb[158].mxu1 }
0x1033   : > { %v9348_v54 = vpop.f32.mrb[159].mxu1 }
0x1034   : > { %v9349_v16 = vadd.f32 %v9348_v54, %v9347_v30  ;;  %10522 = vmatpush3.bf16.msra.mxu0 %v10521_v40  ;;  %v18416_v54 = vld [vmem:[#allocation8_spill] sm:$0xff] }
0x1035   : > { %10523 = vmatprep.subr.bf16.mxu0 %v18412_v13 }
0x1036   : > { %v9350_v60 = vpop.f32.mrb[160].mxu1 }
0x1037   : > { %v9351_v9 = vpop.f32.mrb[161].mxu1 }
0x1038   : > { %v9352_v14 = vadd.f32 %v9351_v9, %v9350_v60  ;;  %v18418_v60 = vld [vmem:[#allocation9_spill] sm:$0xff]  ;;  %v18419_v9 = vld [vmem:[#allocation11_spill] sm:$0xff] }
0x103a   : > { %v10524_v33 = vpack.c.bf16 %v9352_v14, %v9349_v16  ;;  %v9353_v34 = vpop.f32.mrb[162].mxu1 }
0x103b   : > { %v9354_v47 = vpop.f32.mrb[163].mxu1 }
0x103c   : > { %v9355_v29 = vadd.f32 %v9354_v47, %v9353_v34  ;;  %10525 = vmatpush3.bf16.msra.mxu0 %v10524_v33  ;;  %v18421_v33 = vld [vmem:[#allocation13_spill] sm:$0xff]  ;;  %v18422_v34 = vld [vmem:[#allocation14_spill] sm:$0xff]  ;;  %v18423_v47 = vld [vmem:[#allocation15_spill] sm:$0xff] }
0x103d   : > { %10526 = vmatprep.subr.bf16.mxu0 %v18412_v13 }
0x103e   : > { %v9356_v41 = vpop.f32.mrb[164].mxu1 }
0x103f   : > { %v9357_v38 = vpop.f32.mrb[165].mxu1 }
0x1040   : > { %v9358_v59 = vadd.f32 %v9357_v38, %v9356_v41  ;;  %v18425_v41 = vld [vmem:[#allocation17_spill] sm:$0xff]  ;;  %v18426_v38 = vld [vmem:[#allocation18_spill] sm:$0xff] }
0x1042   : > { %v10527_v56 = vpack.c.bf16 %v9358_v59, %v9355_v29 }
0x1044   : > { %10528 = vmatpush3.bf16.msra.mxu0 %v10527_v56  ;;  %v18428_v56 = vld [vmem:[#allocation20_spill] sm:$0xff] }
0x1047   : > { %9919 = vmatmul.mubr.f32.vlgmr.msra.gmra.mrb[134].mxu0 %v18414_v21 }
0x111a   : > { %v5571_v20 = vpop.f32.mrb[134].mxu0 }
0x111b   : > { %v5575_v22 = vmul.f32 0.0078125, %v5571_v20  ;;  %v9920_v7 = vpop.f32.mrb[135].mxu0  ;;  %v18429_v20 = vld [vmem:[#allocation21_spill] sm:$0xff] }
0x111c   : > { %v18431_v7 = vld [vmem:[#allocation23_spill] sm:$0xff] }
0x111d   : > { %v5579_v46 = vrot.slane %v5575_v22, %v18415_v55  ;;  %v18430_v22 = vld [vmem:[#allocation22_spill] sm:$0xff] }
0x111f   : > { %v15778_v42 = vsub.f32 %v15747_v6, %v5579_v46  ;;  %v15781_v62 = vsub.f32 %v15749_v25, %v5579_v46  ;;  %v15784_v1 = vsub.f32 %v15753_v43, %v5579_v46  ;;  %v15787_v48 = vsub.f32 %v15756_v37, %v5579_v46 }
0x1120   : > { %v15794_v19 = vsub.f32 %v15760_v0, %v5579_v46  ;;  %v15801_v17 = vsub.f32 %v15763_v39, %v5579_v46  ;;  %v15804_v45 = vsub.f32 %v9331_v3, %v5579_v46  ;;  %v15806_v37 = vsub.f32 %v9334_v5, %v5579_v46 }
0x1121   : > { %v5596_v49 = vmul.f32 %v15778_v42, %v15778_v42  ;;  %v5597_v35 = vmul.f32 %v15781_v62, %v15781_v62  ;;  %v5598_v25 = vmul.f32 %v15784_v1, %v15784_v1  ;;  %v5599_v43 = vmul.f32 %v15787_v48, %v15787_v48 }
0x1122   : > { %v5600_v57 = vmul.f32 %v15794_v19, %v15794_v19  ;;  %v5601_v8 = vmul.f32 %v15801_v17, %v15801_v17  ;;  %v5602_v0 = vmul.f32 %v15804_v45, %v15804_v45  ;;  %v5603_v31 = vmul.f32 %v15806_v37, %v15806_v37 }
0x1123   : > { %v10530_v6 = vpack.c.bf16 %v5597_v35, %v5596_v49  ;;  %v10533_v24 = vpack.c.bf16 %v5599_v43, %v5598_v25  ;;  %v15818_v39 = vsub.f32 %v15768_v44, %v5579_v46  ;;  %v15820_v2 = vsub.f32 %v9340_v18, %v5579_v46  ;;  %v18433_v49 = vld [vmem:[#allocation25_spill] sm:$0xff]  ;;  %v18434_v35 = vld [vmem:[#allocation26_spill] sm:$0xff]  ;;  %v18436_v25 = vld [vmem:[#allocation28_spill] sm:$0xff] }
0x1124   : > { %v10536_v36 = vpack.c.bf16 %v5601_v8, %v5600_v57  ;;  %v10539_v50 = vpack.c.bf16 %v5603_v31, %v5602_v0  ;;  %v15827_v10 = vsub.f32 %v9343_v26, %v5579_v46  ;;  %v15829_v51 = vsub.f32 %v9346_v28, %v5579_v46  ;;  %v8871_v28 = vld [vmem:[%s17943_s2 + $0x28] sm:$0xff]  ;;  %v18437_v43 = vld [vmem:[#allocation29_spill] sm:$0xff]  ;;  %v18440_v8 = vld [vmem:[#allocation32_spill] sm:$0xff] }
0x1125   : > { %10531 = vmatpush3.bf16.msra.mxu1 %v10530_v6  ;;  %v5604_v52 = vmul.f32 %v15818_v39, %v15818_v39  ;;  %v5605_v3 = vmul.f32 %v15820_v2, %v15820_v2  ;;  %v15832_v5 = vsub.f32 %v9349_v16, %v5579_v46  ;;  %v15838_v44 = vsub.f32 %v9352_v14, %v5579_v46  ;;  %v18417_v16 = vld [vmem:[#allocation10_spill] sm:$0xff]  ;;  %v18420_v14 = vld [vmem:[#allocation12_spill] sm:$0xff]  ;;  %v18435_v6 = vld [vmem:[#allocation27_spill] sm:$0xff] }
0x1126   : > { %10532 = vmatprep.subr.bf16.mxu1 %v18412_v13  ;;  %v5606_v27 = vmul.f32 %v15827_v10, %v15827_v10  ;;  %v5607_v63 = vmul.f32 %v15829_v51, %v15829_v51  ;;  %v15841_v15 = vsub.f32 %v9355_v29, %v5579_v46  ;;  %v15847_v58 = vsub.f32 %v9358_v59, %v5579_v46  ;;  %v18424_v29 = vld [vmem:[#allocation16_spill] sm:$0xff]  ;;  %v18427_v59 = vld [vmem:[#allocation19_spill] sm:$0xff]  ;;  %v18441_v0 = vld [vmem:[#allocation33_spill] sm:$0xff] }
0x1127   : > { %v10542_v4 = vpack.c.bf16 %v5605_v3, %v5604_v52  ;;  %v5608_v18 = vmul.f32 %v15832_v5, %v15832_v5  ;;  %v5609_v11 = vmul.f32 %v15838_v44, %v15838_v44  ;;  %v10561_v40 = vpack.c.bf16 %v8871_v28, %v8870_v23  ;;  %v18432_v46 = vld [vmem:[#allocation24_spill] sm:$0xff]  ;;  %v18439_v57 = vld [vmem:[#allocation31_spill] sm:$0xff]  ;;  %v18442_v31 = vld [vmem:[#allocation34_spill] sm:$0xff] }
0x1128   : > { %v10545_v53 = vpack.c.bf16 %v5607_v63, %v5606_v27  ;;  %v5610_v26 = vmul.f32 %v15841_v15, %v15841_v15  ;;  %v5611_v32 = vmul.f32 %v15847_v58, %v15847_v58  ;;  %v18445_v52 = vld [vmem:[#allocation37_spill] sm:$0xff]  ;;  %v18446_v3 = vld [vmem:[#allocation38_spill] sm:$0xff]  ;;  %v8851_v63 = vld [vmem:[%s17942_s1 + $0x48] sm:$0xff] }
0x1129   : > { %10534 = vmatpush3.bf16.msra.mxu1 %v10533_v24  ;;  %v10548_v12 = vpack.c.bf16 %v5609_v11, %v5608_v18  ;;  %v18438_v24 = vld [vmem:[#allocation30_spill] sm:$0xff]  ;;  %v8852_v18 = vld [vmem:[%s17942_s1 + $0x50] sm:$0xff]  ;;  %v8853_v11 = vld [vmem:[%s17942_s1 + $0x58] sm:$0xff] }
0x112a   : > { %10535 = vmatprep.subr.bf16.mxu1 %v18412_v13  ;;  %v10551_v30 = vpack.c.bf16 %v5611_v32, %v5610_v26  ;;  %v8850_v27 = vld [vmem:[%s17942_s1 + $0x40] sm:$0xff] }
0x112d   : > { %10537 = vmatpush3.bf16.msra.mxu1 %v10536_v36  ;;  %v18443_v36 = vld [vmem:[#allocation35_spill] sm:$0xff] }
0x112e   : > { %10538 = vmatprep.subr.bf16.mxu1 %v18412_v13 }
0x1131   : > { %10540 = vmatpush3.bf16.msra.mxu1 %v10539_v50  ;;  %v18444_v50 = vld [vmem:[#allocation36_spill] sm:$0xff] }
0x1132   : > { %10541 = vmatprep.subr.bf16.mxu1 %v18412_v13 }
0x1135   : > { %10543 = vmatpush3.bf16.msra.mxu1 %v10542_v4  ;;  %v18447_v4 = vld [vmem:[#allocation39_spill] sm:$0xff] }
0x1136   : > { %10544 = vmatprep.subr.bf16.mxu1 %v18412_v13 }
0x1139   : > { %10546 = vmatpush3.bf16.msra.mxu1 %v10545_v53  ;;  %v10553_v53 = vpack.c.bf16 %v8851_v63, %v8850_v27  ;;  %v18454_v27 = vld [vmem:[#allocation62_spill] sm:$0xff] }
0x113a   : > { %10547 = vmatprep.subr.bf16.mxu1 %v18412_v13 }
0x113b   : > { %10554 = vmatprep.subr.bf16.mxu0 %v10553_v53 }
0x113c   : > { %10556 = vmatpush3.bf16.msra.mxu0 %v10553_v53  ;;  %v18455_v53 = vld [vmem:[#allocation63_spill] sm:$0xff] }
0x113d   : > { %10549 = vmatpush3.bf16.msra.mxu1 %v10548_v12  ;;  %v10557_v12 = vpack.c.bf16 %v8853_v11, %v8852_v18 }
0x113e   : > { %10550 = vmatprep.subr.bf16.mxu1 %v18412_v13 }
0x113f   : > { %10558 = vmatprep.subr.bf16.mxu0 %v10557_v12 }
0x1140   : > { %10560 = vmatpush3.bf16.msra.mxu0 %v10557_v12  ;;  %v18457_v12 = vld [vmem:[#allocation64_spill] sm:$0xff] }
0x1141   : > { %10552 = vmatpush3.bf16.msra.mxu1 %v10551_v30  ;;  %10565 = vmatprep.subr.bf16.mxu0 %v18412_v13 }
0x1142   : > { %10562 = vmatprep.subr.bf16.mxu1 %v10561_v40 }
0x1144   : > { %9954 = vmatmul.mubr.f32.vlgmr.msra.gmra.mrb[166].mxu1 %v18414_v21 }
0x1145   : > { %10564 = vmatpush3.bf16.msra.mxu1 %v10561_v40  ;;  %9992 = vmatprep.mubr.msk.f32.mxu1 %vm1140_vm1, %v18416_v54 }
0x1148   : > { %9993 = vmatmul.mubr.msk.f32.vlgmr.msra.gmra.mrb[168].mxu1 %vm1140_vm1, %v18417_v16 }
0x1149   : > { %9995 = vmatprep.mubr.msk.f32.mxu1 %vm1140_vm1, %v18418_v60 }
0x114c   : > { %9996 = vmatmul.mubr.msk.f32.gmra.mrb[170].mxu1 %vm1140_vm1, %v18419_v9 }
0x114d   : > { %9998 = vmatprep.mubr.msk.f32.mxu1 %vm1140_vm1, %v18420_v14 }
0x1150   : > { %9999 = vmatmul.mubr.msk.f32.gmra.mrb[172].mxu1 %vm1140_vm1, %v18421_v33 }
0x1151   : > { %10001 = vmatprep.mubr.msk.f32.mxu1 %vm1140_vm1, %v18422_v34 }
0x1154   : > { %10002 = vmatmul.mubr.msk.f32.gmra.mrb[174].mxu1 %vm1140_vm1, %v18423_v47 }
0x1155   : > { %10004 = vmatprep.mubr.msk.f32.mxu1 %vm1140_vm1, %v18424_v29  ;;  %v15962_v29 = vld [vmem:[%s17941_s0 + $0x9] ss:$0 sm:$0xff] }
0x1158   : > { %10005 = vmatmul.mubr.msk.f32.gmra.mrb[176].mxu1 %vm1140_vm1, %v18425_v41 }
0x1159   : > { %10007 = vmatprep.mubr.msk.f32.mxu1 %vm1140_vm1, %v18426_v38 }
0x115c   : > { %10008 = vmatmul.mubr.msk.f32.gmra.mrb[178].mxu1 %vm1140_vm1, %v18427_v59 }
0x115d   : > { %10010 = vmatprep.mubr.msk.f32.mxu1 %vm1140_vm1, %v18428_v56 }
0x1160   : > { %10011 = vmatmul.mubr.msk.f32.gmra.mrb[180].mxu1 %vm1140_vm1, %v18429_v20  ;;  %v15975_v20 = vld [vmem:[%s17941_s0 + $0xa] ss:$0 sm:$0xff] }
0x1161   : > { %10013 = vmatprep.mubr.msk.f32.mxu1 %vm1140_vm1, %v18430_v22 }
0x1164   : > { %10014 = vmatmul.mubr.msk.f32.gmra.mrb[182].mxu1 %vm1140_vm1, %v18431_v7 }
0x1165   : > { %10016 = vmatprep.mubr.msk.f32.mxu1 %vm1140_vm1, %v18432_v46 }
0x1168   : > { %10017 = vmatmul.mubr.msk.f32.gmra.mrb[184].mxu1 %vm1140_vm1, %v18433_v49 }
0x1169   : > { %10019 = vmatprep.mubr.msk.f32.mxu1 %vm1140_vm1, %v18434_v35 }
0x116c   : > { %10020 = vmatmul.mubr.msk.f32.gmra.mrb[186].mxu1 %vm1140_vm1, %v18435_v6 }
0x116d   : > { %10022 = vmatprep.mubr.msk.f32.mxu1 %vm1140_vm1, %v18436_v25 }
0x1170   : > { %10023 = vmatmul.mubr.msk.f32.gmra.mrb[188].mxu1 %vm1140_vm1, %v18437_v43 }
0x1171   : > { %10025 = vmatprep.mubr.msk.f32.mxu1 %vm1140_vm1, %v18438_v24 }
0x1174   : > { %10026 = vmatmul.mubr.msk.f32.gmra.mrb[190].mxu1 %vm1140_vm1, %v18439_v57 }
0x1175   : > { %10028 = vmatprep.mubr.msk.f32.mxu1 %vm1140_vm1, %v18440_v8 }
0x1178   : > { %10029 = vmatmul.mubr.msk.f32.gmra.mrb[192].mxu1 %vm1140_vm1, %v18441_v0 }
0x1179   : > { %10031 = vmatprep.mubr.msk.f32.mxu1 %vm1140_vm1, %v18442_v31 }
0x117c   : > { %10032 = vmatmul.mubr.msk.f32.gmra.mrb[194].mxu1 %vm1140_vm1, %v18443_v36 }
0x117d   : > { %10034 = vmatprep.mubr.msk.f32.mxu1 %vm1140_vm1, %v18444_v50  ;;  %v18452_v50 = vld [vmem:[#allocation60_spill] sm:$0xff] }
0x1180   : > { %10035 = vmatmul.mubr.msk.f32.gmra.mrb[196].mxu1 %vm1140_vm1, %v18445_v52 }
0x1181   : > { %10037 = vmatprep.mubr.msk.f32.mxu1 %vm1140_vm1, %v18446_v3  ;;  %v18453_v3 = vld [vmem:[#allocation61_spill] sm:$0xff] }
0x1184   : > { %10038 = vmatmul.mubr.msk.f32.gmra.mrb[198].mxu1 %vm1140_vm1, %v18447_v4 }
0x1185   : > { %6821 = vmatprep.mubr.f32.mxu1 %v18414_v21 }
0x1217   : > { %v5678_v26 = vpop.f32.mrb[166].mxu1 }
0x1218   : > { %v5682_v32 = vmul.f32 0.0078125, %v5678_v26  ;;  %v9955_v23 = vpop.f32.mrb[167].mxu1 }
0x121a   : > { %v5683_v28 = vadd.f32 1e-05, %v5682_v32  ;;  %v18458_v32 = vld [vmem:[#allocation65_spill] sm:$0xff] }
0x121b   : > { %v15940_v40 = vpop.f32.mrb[168].mxu1 }
0x121c   : > { %11604 = vrsqrt.f32 %v5683_v28  ;;  %v15942_v30 = vpop.f32.mrb[169].mxu1 }
0x121f   : > { %v15944_v54 = vpop.f32.mrb[170].mxu1 }
0x1220   : > { %v15946_v16 = vpop.f32.mrb[171].mxu1 }
0x1223   : > { %v15948_v60 = vpop.f32.mrb[172].mxu1 }
0x1224   : > { %v15950_v9 = vpop.f32.mrb[173].mxu1 }
0x1226   : > { %v11605_v14 = vpop.eup %11604 }
0x1227   : > { %v15953_v33 = vrot.slane %v11605_v14, %v18415_v55  ;;  %v15955_v34 = vpop.f32.mrb[174].mxu1 }
0x1228   : > { %18448 = vst [vmem:[#allocation55_spill] sm:$0xff] %v15955_v34  ;;  %v15957_v47 = vpop.f32.mrb[175].mxu1 }
0x1229   : > { %v5689_v41 = vmul.f32 %v15953_v33, %v15778_v42  ;;  %v5690_v38 = vmul.f32 %v15953_v33, %v15781_v62  ;;  %v5691_v59 = vmul.f32 %v15953_v33, %v15784_v1  ;;  %v5692_v56 = vmul.f32 %v15953_v33, %v15787_v48 }
0x122a   : > { %v5693_v22 = vmul.f32 %v15953_v33, %v15794_v19  ;;  %v5694_v42 = vmul.f32 %v15953_v33, %v15801_v17  ;;  %v5695_v62 = vmul.f32 %v15953_v33, %v15804_v45  ;;  %v5696_v1 = vmul.f32 %v15953_v33, %v15806_v37 }
0x122b   : > { %v15985_v7 = vpop.f32.mrb[176].mxu1  ;;  %v5709_v48 = vmul.f32 %v15962_v29, %v5689_v41  ;;  %v5710_v46 = vmul.f32 %v15962_v29, %v5690_v38  ;;  %v5711_v49 = vmul.f32 %v15962_v29, %v5691_v59  ;;  %v5712_v35 = vmul.f32 %v15962_v29, %v5692_v56 }
0x122c   : > { %18449 = vst [vmem:[#allocation58_spill] sm:$0xff] %v15985_v7  ;;  %v15991_v19 = vpop.f32.mrb[177].mxu1  ;;  %v5713_v17 = vmul.f32 %v15962_v29, %v5693_v22  ;;  %v5714_v6 = vmul.f32 %v15962_v29, %v5694_v42  ;;  %v5715_v45 = vmul.f32 %v15962_v29, %v5695_v62  ;;  %v5716_v37 = vmul.f32 %v15962_v29, %v5696_v1  ;;  %v18460_v1 = vld [vmem:[#allocation66_spill] sm:$0xff] }
0x122d   : > { %18450 = vst [vmem:[#allocation57_spill] sm:$0xff] %v15991_v19  ;;  %v5729_v25 = vadd.f32 %v15975_v20, %v5709_v48  ;;  %v5730_v43 = vadd.f32 %v15975_v20, %v5710_v46  ;;  %v5731_v24 = vadd.f32 %v15975_v20, %v5711_v49  ;;  %v5732_v57 = vadd.f32 %v15975_v20, %v5712_v35 }
0x122e   : > { %v5733_v8 = vadd.f32 %v15975_v20, %v5713_v17  ;;  %v5734_v0 = vadd.f32 %v15975_v20, %v5714_v6  ;;  %v5735_v31 = vadd.f32 %v15975_v20, %v5715_v45  ;;  %v5736_v28 = vadd.f32 %v15975_v20, %v5716_v37  ;;  %v18462_v6 = vld [vmem:[#allocation67_spill] sm:$0xff] }
0x122f   : > { %v16004_v36 = vpop.f32.mrb[178].mxu1  ;;  %v16007_v52 = vadd.f32 %v5729_v25, %v18452_v50  ;;  %v16010_v4 = vadd.f32 %v5730_v43, %v18453_v3  ;;  %v16013_v63 = vadd.f32 %v5731_v24, %v18454_v27  ;;  %v16016_v18 = vadd.f32 %v5732_v57, %v18455_v53 }
0x1230   : > { %18451 = vst [vmem:[#allocation59_spill] sm:$0xff] %v16004_v36  ;;  %v16018_v11 = vpop.f32.mrb[179].mxu1  ;;  %v16021_v26 = vadd.f32 %v5733_v8, %v18457_v12  ;;  %v16024_v23 = vadd.f32 %v5734_v0, %v18458_v32  ;;  %v16035_v48 = vadd.f32 %v5735_v31, %v18460_v1  ;;  %v16041_v45 = vadd.f32 %v5736_v28, %v18462_v6 }
0x1231   : > { %18456 = vst [vmem:[#allocation47_spill] sm:$0xff] %v16018_v11  ;;  %v5777_v14 = vand.u32 2147483647, %v16007_v52  ;;  %v5778_v41 = vand.u32 2147483647, %v16010_v4  ;;  %v5697_v3 = vmul.f32 %v15953_v33, %v15818_v39  ;;  %v5698_v32 = vmul.f32 %v15953_v33, %v15820_v2 }
0x1232   : > { %v5779_v38 = vand.u32 2147483647, %v16013_v63  ;;  %v5780_v59 = vand.u32 2147483647, %v16016_v18  ;;  %v5781_v62 = vand.u32 2147483647, %v16021_v26 }
0x1233   : > { %v16031_v56 = vpop.f32.mrb[180].mxu1  ;;  %v5793_v22 = vsub.f32 0.0, %v5777_v14  ;;  %v5794_v42 = vsub.f32 0.0, %v5778_v41  ;;  %v5782_v17 = vand.u32 2147483647, %v16024_v23  ;;  %v5717_v14 = vmul.f32 %v15962_v29, %v5697_v3 }
0x1234   : > { %18459 = vst [vmem:[#allocation54_spill] sm:$0xff] %v16031_v56  ;;  %v16037_v46 = vpop.f32.mrb[181].mxu1  ;;  %v5795_v49 = vsub.f32 0.0, %v5779_v38  ;;  %v5796_v35 = vsub.f32 0.0, %v5780_v59  ;;  %v5797_v43 = vsub.f32 0.0, %v5781_v62  ;;  %v5699_v41 = vmul.f32 %v15953_v33, %v15827_v10 }
0x1235   : > { %18461 = vst [vmem:[#allocation48_spill] sm:$0xff] %v16037_v46  ;;  %v5809_v37 = vmul.f32 1.442695, %v5793_v22  ;;  %v5811_v25 = vmul.f32 1.442695, %v5794_v42  ;;  %v5798_v8 = vsub.f32 0.0, %v5782_v17  ;;  %v5718_v39 = vmul.f32 %v15962_v29, %v5698_v32 }
0x1236   : > { %v5813_v24 = vmul.f32 1.442695, %v5795_v49  ;;  %v5815_v57 = vmul.f32 1.442695, %v5796_v35  ;;  %v5817_v31 = vmul.f32 1.442695, %v5797_v43  ;;  %v5700_v59 = vmul.f32 %v15953_v33, %v15829_v51 }
0x1237   : > { %v16043_v0 = vpop.f32.mrb[182].mxu1  ;;  %11606 = vpow2.f32 %v5809_v37  ;;  %v5783_v50 = vand.u32 2147483647, %v16035_v48  ;;  %v5819_v53 = vmul.f32 1.442695, %v5798_v8  ;;  %v5737_v2 = vadd.f32 %v15975_v20, %v5717_v14  ;;  %v18467_v17 = vld [vmem:[#allocation68_spill] sm:$0xff] }
0x1238   : > { %18463 = vst [vmem:[#allocation43_spill] sm:$0xff] %v16043_v0  ;;  %v16048_v27 = vpop.f32.mrb[183].mxu1  ;;  %11608 = vpow2.f32 %v5811_v25  ;;  %v5784_v12 = vand.u32 2147483647, %v16041_v45  ;;  %v5719_v62 = vmul.f32 %v15962_v29, %v5699_v41  ;;  %v5738_v10 = vadd.f32 %v15975_v20, %v5718_v39  ;;  %v18468_v37 = vld [vmem:[#allocation69_spill] sm:$0xff] }
0x1239   : > { %18464 = vst [vmem:[#allocation44_spill] sm:$0xff] %v16048_v27  ;;  %11610 = vpow2.f32 %v5813_v24  ;;  %v5799_v28 = vsub.f32 0.0, %v5783_v50  ;;  %v5720_v35 = vmul.f32 %v15962_v29, %v5700_v59  ;;  %v16068_v6 = vadd.f32 %v5737_v2, %v18467_v17 }
0x123a   : > { %11612 = vpow2.f32 %v5815_v57  ;;  %v5800_v38 = vsub.f32 0.0, %v5784_v12  ;;  %v5739_v51 = vadd.f32 %v15975_v20, %v5719_v62  ;;  %v16072_v25 = vadd.f32 %v5738_v10, %v18468_v37  ;;  %v18473_v37 = vld [vmem:[#allocation71_spill] sm:$0xff] }
0x123b   : > { %v16059_v22 = vpop.f32.mrb[184].mxu1  ;;  %11614 = vpow2.f32 %v5817_v31  ;;  %v5821_v42 = vmul.f32 1.442695, %v5799_v28  ;;  %v5701_v43 = vmul.f32 %v15953_v33, %v15832_v5  ;;  %v18470_v31 = vld [vmem:[#allocation70_spill] sm:$0xff]  ;;  %v5740_v3 = vadd.f32 %v15975_v20, %v5720_v35 }
0x123c   : > { %18465 = vst [vmem:[#allocation56_spill] sm:$0xff] %v16059_v22  ;;  %v16063_v1 = vpop.f32.mrb[185].mxu1  ;;  %v5823_v49 = vmul.f32 1.442695, %v5800_v38  ;;  %11616 = vpow2.f32 %v5819_v53  ;;  %v16081_v50 = vadd.f32 %v5739_v51, %v18470_v31  ;;  %v5702_v5 = vmul.f32 %v15953_v33, %v15838_v44 }
0x123d   : > { %18466 = vst [vmem:[#allocation53_spill] sm:$0xff] %v16063_v1  ;;  %11618 = vpow2.f32 %v5821_v42  ;;  %v5785_v39 = vand.u32 2147483647, %v16068_v6  ;;  %v5786_v62 = vand.u32 2147483647, %v16072_v25  ;;  %v5721_v10 = vmul.f32 %v15962_v29, %v5701_v43 }
0x123e   : > { %11620 = vpow2.f32 %v5823_v49  ;;  %v5787_v51 = vand.u32 2147483647, %v16081_v50  ;;  %v16100_v31 = vadd.f32 %v5740_v3, %v18473_v37  ;;  %v16105_v12 = vmul.f32 %v15962_v29, %v5702_v5 }
0x123f   : > { %v16076_v24 = vpop.f32.mrb[186].mxu1  ;;  %v16108_v3 = vadd.f32 %v15975_v20, %v5721_v10 }
0x1240   : > { %18469 = vst [vmem:[#allocation42_spill] sm:$0xff] %v16076_v24  ;;  %v16084_v53 = vpop.f32.mrb[187].mxu1  ;;  %v5803_v22 = vsub.f32 0.0, %v5787_v51 }
0x1241   : > { %18471 = vst [vmem:[#allocation41_spill] sm:$0xff] %v16084_v53  ;;  %v11607_v28 = vpop.eup %11606  ;;  %v5802_v53 = vsub.f32 0.0, %v5786_v62 }
0x1242   : > { %v11609_v59 = vpop.eup %11608  ;;  %v5841_v42 = vadd.f32 1.0, %v11607_v28  ;;  %v5844_v2 = vmul.f32 -0.5, %v11607_v28  ;;  %v5847_v14 = vand.u32 2147483647, %v11607_v28 }
0x1243   : > { %v11611_v49 = vpop.eup %11610  ;;  %v16096_v35 = vpop.f32.mrb[188].mxu1  ;;  %v5850_v44 = vadd.f32 1.0, %v11609_v59  ;;  %v5853_v17 = vmul.f32 -0.5, %v11609_v59  ;;  %v5856_v57 = vand.u32 2147483647, %v11609_v59 }
0x1244   : > { %18472 = vst [vmem:[#allocation49_spill] sm:$0xff] %v16096_v35  ;;  %v11613_v38 = vpop.eup %11612  ;;  %v16102_v41 = vpop.f32.mrb[189].mxu1  ;;  %11622 = vlog2.f32 %v5841_v42  ;;  %v5859_v32 = vadd.f32 1.0, %v11611_v49  ;;  %v5845_v8 = vadd.f32 1.0, %v5844_v2  ;;  %v5862_v55 = vmul.f32 -0.5, %v11611_v49 }
0x1245   : > { %18474 = vst [vmem:[#allocation50_spill] sm:$0xff] %v16102_v41  ;;  %v11615_v43 = vpop.eup %11614  ;;  %11624 = vlog2.f32 %v5850_v44  ;;  %v5868_v21 = vadd.f32 1.0, %v11613_v38  ;;  %v5801_v35 = vsub.f32 0.0, %v5785_v39  ;;  %v5854_v42 = vadd.f32 1.0, %v5853_v17 }
0x1246   : > { %11626 = vlog2.f32 %v5859_v32  ;;  %v11617_v37 = vpop.eup %11616  ;;  %v5871_v41 = vmul.f32 -0.5, %v11613_v38  ;;  %vm16114_vm1 = vcmp.lt.f32.partialorder %v5847_v14, 0.0004427343  ;;  %v5877_v32 = vadd.f32 1.0, %v11615_v43 }
0x1247   : > { %v16110_v24 = vpop.f32.mrb[190].mxu1  ;;  %v11619_v5 = vpop.eup %11618  ;;  %11628 = vlog2.f32 %v5868_v21  ;;  %v5880_v39 = vmul.f32 -0.5, %v11615_v43  ;;  %v5846_v44 = vmul.f32 %v11607_v28, %v5845_v8  ;;  %vm16118_vm2 = vcmp.lt.f32.partialorder %v5856_v57, 0.0004427343 }
0x1248   : > { %18475 = vst [vmem:[#allocation45_spill] sm:$0xff] %v16110_v24  ;;  %v16112_v1 = vpop.f32.mrb[191].mxu1  ;;  %v5863_v24 = vadd.f32 1.0, %v5862_v55  ;;  %v5865_v17 = vand.u32 2147483647, %v11611_v49  ;;  %v16122_v62 = vpop.eup %11620  ;;  %v5872_v51 = vadd.f32 1.0, %v5871_v41  ;;  %11630 = vlog2.f32 %v5877_v32 }
0x1249   : > { %18476 = vst [vmem:[#allocation46_spill] sm:$0xff] %v16112_v1  ;;  %v5874_v0 = vand.u32 2147483647, %v11613_v38  ;;  %v5886_v1 = vadd.f32 1.0, %v11617_v37  ;;  %v5889_v14 = vmul.f32 -0.5, %v11617_v37  ;;  %v5855_v56 = vmul.f32 %v11609_v59, %v5854_v42 }
0x124a   : > { %v5881_v21 = vadd.f32 1.0, %v5880_v39  ;;  %v5883_v46 = vand.u32 2147483647, %v11615_v43  ;;  %v5895_v36 = vadd.f32 1.0, %v11619_v5  ;;  %v5892_v28 = vand.u32 2147483647, %v11617_v37 }
0x124b   : > { %v16124_v27 = vpop.f32.mrb[192].mxu1  ;;  %11632 = vlog2.f32 %v5886_v1  ;;  %v5890_v57 = vadd.f32 1.0, %v5889_v14  ;;  %v5898_v55 = vmul.f32 -0.5, %v11619_v5  ;;  %vm16128_vm3 = vcmp.lt.f32.partialorder %v5865_v17, 0.0004427343 }
0x124c   : > { %18481 = vst [vmem:[#allocation52_spill] sm:$0xff] %v16124_v27  ;;  %v16126_v8 = vpop.f32.mrb[193].mxu1  ;;  %11634 = vlog2.f32 %v5895_v36  ;;  %v5901_v41 = vand.u32 2147483647, %v11619_v5  ;;  %v5904_v32 = vadd.f32 1.0, %v16122_v62  ;;  %v5864_v27 = vmul.f32 %v11611_v49, %v5863_v24 }
0x124d   : > { %18482 = vst [vmem:[#allocation51_spill] sm:$0xff] %v16126_v8  ;;  %v5873_v59 = vmul.f32 %v11613_v38, %v5872_v51  ;;  %vm16133_vm4 = vcmp.lt.f32.partialorder %v5874_v0, 0.0004427343  ;;  %v5899_v39 = vadd.f32 1.0, %v5898_v55  ;;  %v5882_v17 = vmul.f32 %v11615_v43, %v5881_v21 }
0x124e   : > { %v11623_v7 = vpop.eup %11622  ;;  %vm16139_vm5 = vcmp.lt.f32.partialorder %v5883_v46, 0.0004427343  ;;  %11636 = vlog2.f32 %v5904_v32  ;;  %v5891_v38 = vmul.f32 %v11617_v37, %v5890_v57  ;;  %vm16145_vm7 = vcmp.lt.f32.partialorder %v5892_v28, 0.0004427343 }
0x124f   : > { %v11625_v1 = vpop.eup %11624  ;;  %v16137_v14 = vpop.f32.mrb[194].mxu1  ;;  %v5843_v8 = vmul.f32 0.6931472, %v11623_v7  ;;  %v5907_v49 = vmul.f32 -0.5, %v16122_v62  ;;  %v5910_v51 = vand.u32 2147483647, %v16122_v62 }
0x1250   : > { %18487 = vst [vmem:[#allocation8_spill] sm:$0xff] %v16137_v14  ;;  %v11627_v36 = vpop.eup %11626  ;;  %v16143_v34 = vpop.f32.mrb[195].mxu1  ;;  %v5852_v24 = vmul.f32 0.6931472, %v11625_v1  ;;  %vm16153_vm8 = vcmp.lt.f32.partialorder %v5901_v41, 0.0004427343  ;;  %v5900_v1 = vmul.f32 %v11619_v5, %v5899_v39 }
0x1251   : > { %18490 = vst [vmem:[#allocation10_spill] sm:$0xff] %v16143_v34  ;;  %v5849_v7 = vsel %vm16114_vm1, %v5846_v44, %v5843_v8  ;;  %v5861_v46 = vmul.f32 0.6931472, %v11627_v36  ;;  %v5825_v21 = vmul.f32 1.442695, %v5801_v35  ;;  %v11629_v32 = vpop.eup %11628  ;;  %v18495_v37 = vmax.f32 %v16007_v52, 0.0 }
0x1252   : > { %v5827_v55 = vmul.f32 1.442695, %v5802_v53  ;;  %v5858_v28 = vsel %vm16118_vm2, %v5855_v56, %v5852_v24  ;;  %v5829_v14 = vmul.f32 1.442695, %v5803_v22  ;;  %v18497_v2 = vmax.f32 %v16010_v4, 0.0  ;;  %v11631_v8 = vpop.eup %11630  ;;  %v18501_v5 = vld [vmem:[#allocation72_spill] sm:$0xff] }
0x1253   : > { %v16159_v57 = vadd.f32 %v5849_v7, %v18495_v37  ;;  %v16163_v34 = vpop.f32.mrb[196].mxu1  ;;  %v5867_v35 = vsel %vm16128_vm3, %v5864_v27, %v5861_v46  ;;  %v5870_v53 = vmul.f32 0.6931472, %v11629_v32  ;;  %11638 = vpow2.f32 %v5825_v21 }
0x1254   : > { %v16167_v44 = vadd.f32 %v5858_v28, %v18497_v2  ;;  %v16173_v52 = vpop.f32.mrb[197].mxu1  ;;  %v18499_v56 = vmax.f32 %v16013_v63, 0.0  ;;  %11640 = vpow2.f32 %v5827_v55  ;;  %v5788_v4 = vand.u32 2147483647, %v16100_v31 }
0x1255   : > { %18496 = vst [vmem:[#allocation9_spill] sm:$0xff] %v16159_v57  ;;  %9964 = vmatprep.mubr.msk.f32.mxu0 %vm880_vm0, %v16159_v57  ;;  %v16182_v10 = vadd.f32 %v16108_v3, %v18501_v5  ;;  %v5876_v11 = vsel %vm16133_vm4, %v5873_v59, %v5870_v53  ;;  %v5879_v27 = vmul.f32 0.6931472, %v11631_v8  ;;  %11642 = vpow2.f32 %v5829_v14  ;;  %v11633_v41 = vpop.eup %11632 }
0x1256   : > { %18498 = vst [vmem:[#allocation11_spill] sm:$0xff] %v16167_v44  ;;  %v16177_v22 = vadd.f32 %v5867_v35, %v18499_v56  ;;  %9965 = vmatmul.mubr.msk.f32.vlgmr.msra.gmra.mrb[136].mxu0 %vm880_vm0, %v16167_v44  ;;  %v5742_v63 = vadd.f32 %v15975_v20, %v16105_v12  ;;  %v18502_v39 = vmax.f32 %v16016_v18, 0.0  ;;  %v5908_v3 = vadd.f32 1.0, %v5907_v49  ;;  %v11635_v46 = vpop.eup %11634  ;;  %v18504_v12 = vld [vmem:[#allocation73_spill] sm:$0xff] }
0x1257   : > { %v5804_v24 = vsub.f32 0.0, %v5788_v4  ;;  %v5789_v7 = vand.u32 2147483647, %v16182_v10  ;;  %v16197_v42 = vpop.f32.mrb[198].mxu1  ;;  %v5885_v59 = vsel %vm16139_vm5, %v5882_v17, %v5879_v27  ;;  %v5888_v14 = vmul.f32 0.6931472, %v11633_v41 }
0x1258   : > { %18500 = vst [vmem:[#allocation12_spill] sm:$0xff] %v16177_v22  ;;  %9967 = vmatprep.mubr.msk.f32.mxu0 %vm880_vm0, %v16177_v22  ;;  %v16194_v36 = vadd.f32 %v5876_v11, %v18502_v39  ;;  %v16202_v21 = vadd.f32 %v5742_v63, %v18504_v12  ;;  %v5703_v55 = vmul.f32 %v15953_v33, %v15841_v15  ;;  %v16206_v18 = vpop.f32.mrb[199].mxu1  ;;  %v18505_v49 = vmax.f32 %v16021_v26, 0.0  ;;  %v11637_v35 = vpop.eup %11636 }
0x1259   : > { %v5897_v37 = vmul.f32 0.6931472, %v11635_v46  ;;  %v5831_v28 = vmul.f32 1.442695, %v5804_v24  ;;  %v5805_v2 = vsub.f32 0.0, %v5789_v7  ;;  %v5894_v19 = vsel %vm16145_vm7, %v5891_v38, %v5888_v14  ;;  %v18514_v24 = vld [vmem:[#allocation74_spill] sm:$0xff] }
0x125a   : > { %18503 = vst [vmem:[#allocation13_spill] sm:$0xff] %v16194_v36  ;;  %v16210_v32 = vadd.f32 %v5885_v59, %v18505_v49  ;;  %9968 = vmatmul.mubr.msk.f32.gmra.mrb[138].mxu0 %vm880_vm0, %v16194_v36  ;;  %vm16216_vm9 = vcmp.lt.f32.partialorder %v5910_v51, 0.0004427343  ;;  %v5790_v15 = vand.u32 2147483647, %v16202_v21  ;;  %v5723_v26 = vmul.f32 %v15962_v29, %v5703_v55 }
0x125b   : > { %v5903_v53 = vsel %vm16153_vm8, %v5900_v1, %v5897_v37  ;;  %v5906_v8 = vmul.f32 0.6931472, %v11637_v35  ;;  %v5909_v56 = vmul.f32 %v16122_v62, %v5908_v3  ;;  %11644 = vpow2.f32 %v5831_v28 }
0x125c   : > { %18506 = vst [vmem:[#allocation14_spill] sm:$0xff] %v16210_v32  ;;  %9970 = vmatprep.mubr.msk.f32.mxu0 %vm880_vm0, %v16210_v32  ;;  %v18509_v38 = vmax.f32 %v16024_v23, 0.0  ;;  %v5833_v51 = vmul.f32 1.442695, %v5805_v2  ;;  %v5806_v4 = vsub.f32 0.0, %v5790_v15  ;;  %v5743_v5 = vadd.f32 %v15975_v20, %v5723_v26 }
0x125d   : > { %v18511_v11 = vmax.f32 %v16035_v48, 0.0  ;;  %v5768_v63 = vmax.f32 %v16041_v45, 0.0  ;;  %v5912_v43 = vsel %vm16216_vm9, %v5909_v56, %v5906_v8  ;;  %v5704_v62 = vmul.f32 %v15953_v33, %v15847_v58  ;;  %v11639_v1 = vpop.eup %11638 }
0x125e   : > { %v16229_v0 = vadd.f32 %v5894_v19, %v18509_v38  ;;  %11646 = vpow2.f32 %v5833_v51  ;;  %v5835_v23 = vmul.f32 1.442695, %v5806_v4  ;;  %v11641_v41 = vpop.eup %11640  ;;  %v5913_v39 = vadd.f32 1.0, %v11639_v1 }
0x125f   : > { %v16234_v27 = vadd.f32 %v5903_v53, %v18511_v11  ;;  %v16245_v48 = vadd.f32 %v5912_v43, %v5768_v63  ;;  %v11643_v45 = vpop.eup %11642  ;;  %v5922_v3 = vadd.f32 1.0, %v11641_v41  ;;  %v16248_v7 = vadd.f32 %v5743_v5, %v18514_v24 }
0x1260   : > { %18510 = vst [vmem:[#allocation15_spill] sm:$0xff] %v16229_v0  ;;  %9971 = vmatmul.mubr.msk.f32.gmra.mrb[140].mxu0 %vm880_vm0, %v16229_v0  ;;  %11648 = vpow2.f32 %v5835_v23  ;;  %v5724_v58 = vmul.f32 %v15962_v29, %v5704_v62  ;;  %v5931_v33 = vadd.f32 1.0, %v11643_v45  ;;  %v5916_v46 = vmul.f32 -0.5, %v11639_v1  ;;  %v18515_v29 = vld [vmem:[#allocation75_spill] sm:$0xff] }
0x1261   : > { %18512 = vst [vmem:[#allocation16_spill] sm:$0xff] %v16234_v27  ;;  %9973 = vmatprep.mubr.msk.f32.mxu0 %vm880_vm0, %v16234_v27  ;;  %18513 = vst [vmem:[#allocation17_spill] sm:$0xff] %v16245_v48  ;;  %11650 = vlog2.f32 %v5913_v39  ;;  %v5925_v59 = vmul.f32 -0.5, %v11641_v41  ;;  %v5791_v14 = vand.u32 2147483647, %v16248_v7  ;;  %v5934_v37 = vmul.f32 -0.5, %v11643_v45 }
0x1262   : > { %11652 = vlog2.f32 %v5922_v3  ;;  %v5744_v12 = vadd.f32 %v15975_v20, %v5724_v58  ;;  %v5919_v49 = vand.u32 2147483647, %v11639_v1  ;;  %v5928_v2 = vand.u32 2147483647, %v11641_v41 }
0x1263   : > { %11654 = vlog2.f32 %v5931_v33  ;;  %v5807_v35 = vsub.f32 0.0, %v5791_v14  ;;  %v5769_v15 = vmax.f32 %v16068_v6, 0.0  ;;  %v5917_v26 = vadd.f32 1.0, %v5916_v46 }
0x1264   : > { %9974 = vmatmul.mubr.msk.f32.gmra.mrb[142].mxu0 %vm880_vm0, %v16245_v48  ;;  %v16256_v19 = vadd.f32 %v5744_v12, %v18515_v29  ;;  %v5926_v53 = vadd.f32 1.0, %v5925_v59  ;;  %v5770_v8 = vmax.f32 %v16072_v25, 0.0  ;;  %v5937_v56 = vand.u32 2147483647, %v11643_v45 }
0x1265   : > { %v11645_v55 = vpop.eup %11644  ;;  %v5837_v38 = vmul.f32 1.442695, %v5807_v35  ;;  %vm16263_vm10 = vcmp.lt.f32.partialorder %v5919_v49, 0.0004427343  ;;  %v5771_v5 = vmax.f32 %v16081_v50, 0.0  ;;  %v5935_v11 = vadd.f32 1.0, %v5934_v37 }
0x1266   : > { %v5940_v28 = vadd.f32 1.0, %v11645_v55  ;;  %v5792_v63 = vand.u32 2147483647, %v16256_v19  ;;  %vm16269_vm11 = vcmp.lt.f32.partialorder %v5928_v2, 0.0004427343  ;;  %v5943_v25 = vmul.f32 -0.5, %v11645_v55 }
0x1267   : > { %v5918_v3 = vmul.f32 %v11639_v1, %v5917_v26  ;;  %v5927_v24 = vmul.f32 %v11641_v41, %v5926_v53  ;;  %vm16273_vm12 = vcmp.lt.f32.partialorder %v5937_v56, 0.0004427343  ;;  %v5936_v12 = vmul.f32 %v11643_v45, %v5935_v11 }
0x1268   : > { %v16258_v17 = vpop.eup %11646  ;;  %11656 = vlog2.f32 %v5940_v28  ;;  %v5808_v46 = vsub.f32 0.0, %v5792_v63  ;;  %v5944_v41 = vadd.f32 1.0, %v5943_v25  ;;  %v5946_v29 = vand.u32 2147483647, %v11645_v55 }
0x1269   : > { %v5949_v20 = vadd.f32 1.0, %v16258_v17  ;;  %v5952_v49 = vmul.f32 -0.5, %v16258_v17 }
0x126a   : > { %v11649_v51 = vpop.eup %11648  ;;  %v5839_v28 = vmul.f32 1.442695, %v5808_v46  ;;  %v5945_v56 = vmul.f32 %v11645_v55, %v5944_v41  ;;  %vm5947_vm13 = vcmp.lt.f32.partialorder %v5946_v29, 0.0004427343  ;;  %v5775_v41 = vmax.f32 %v16248_v7, 0.0  ;;  %v12107_v7 = vld [vmem:[%s12465_s25 + $0x8] sm:$0xff] }
0x126b   : > { %v11651_v6 = vpop.eup %11650  ;;  %11658 = vlog2.f32 %v5949_v20  ;;  %v5958_v62 = vadd.f32 1.0, %v11649_v51  ;;  %v5961_v26 = vmul.f32 -0.5, %v11649_v51  ;;  %v5953_v53 = vadd.f32 1.0, %v5952_v49 }
0x126c   : > { %v11653_v23 = vpop.eup %11652  ;;  %v5915_v39 = vmul.f32 0.6931472, %v11651_v6  ;;  %11660 = vpow2.f32 %v5837_v38  ;;  %v5955_v20 = vand.u32 2147483647, %v16258_v17  ;;  %v5772_v38 = vmax.f32 %v16100_v31, 0.0 }
0x126d   : > { %v11655_v58 = vpop.eup %11654  ;;  %v5924_v33 = vmul.f32 0.6931472, %v11653_v23  ;;  %11662 = vlog2.f32 %v5958_v62  ;;  %v5962_v4 = vadd.f32 1.0, %v5961_v26  ;;  %v5964_v63 = vand.u32 2147483647, %v11649_v51 }
0x126e   : > { %v5921_v59 = vsel %vm16263_vm10, %v5918_v3, %v5915_v39  ;;  %v5933_v14 = vmul.f32 0.6931472, %v11655_v58  ;;  %11664 = vpow2.f32 %v5839_v28  ;;  %v5954_v62 = vmul.f32 %v16258_v17, %v5953_v53 }
0x126f   : > { %v16280_v37 = vadd.f32 %v5921_v59, %v5769_v15  ;;  %v5930_v1 = vsel %vm16269_vm11, %v5927_v24, %v5924_v33  ;;  %v5773_v39 = vmax.f32 %v16182_v10, 0.0  ;;  %vm5956_vm14 = vcmp.lt.f32.partialorder %v5955_v20, 0.0004427343 }
0x1270   : > { %v16284_v2 = vadd.f32 %v5930_v1, %v5770_v8  ;;  %v5939_v35 = vsel %vm16273_vm12, %v5936_v12, %v5933_v14  ;;  %v5963_v24 = vmul.f32 %v11649_v51, %v5962_v4  ;;  %v5774_v33 = vmax.f32 %v16202_v21, 0.0 }
0x1271   : > { %18522 = vst [vmem:[#allocation18_spill] sm:$0xff] %v16280_v37  ;;  %9976 = vmatprep.mubr.msk.f32.mxu0 %vm880_vm0, %v16280_v37  ;;  %v16290_v45 = vadd.f32 %v5939_v35, %v5771_v5  ;;  %vm5965_vm15 = vcmp.lt.f32.partialorder %v5964_v63, 0.0004427343 }
0x1272   : > { %18523 = vst [vmem:[#allocation19_spill] sm:$0xff] %v16284_v2  ;;  %v11657_v15 = vpop.eup %11656  ;;  %9977 = vmatmul.mubr.msk.f32.gmra.mrb[144].mxu0 %vm880_vm0, %v16284_v2 }
0x1273   : > { %18524 = vst [vmem:[#allocation20_spill] sm:$0xff] %v16290_v45  ;;  %9979 = vmatprep.mubr.msk.f32.mxu0 %vm880_vm0, %v16290_v45  ;;  %v5942_v8 = vmul.f32 0.6931472, %v11657_v15 }
0x1275   : > { %v11659_v11 = vpop.eup %11658  ;;  %v5948_v5 = vsel %vm5947_vm13, %v5945_v56, %v5942_v8  ;;  %v5776_v56 = vmax.f32 %v16256_v19, 0.0 }
0x1276   : > { %v11661_v6 = vpop.eup %11660  ;;  %v16298_v43 = vadd.f32 %v5948_v5, %v5772_v38  ;;  %v5951_v25 = vmul.f32 0.6931472, %v11659_v11 }
0x1277   : > { %v11663_v23 = vpop.eup %11662  ;;  %v5967_v55 = vadd.f32 1.0, %v11661_v6  ;;  %v5970_v17 = vmul.f32 -0.5, %v11661_v6  ;;  %v5973_v14 = vand.u32 2147483647, %v11661_v6 }
0x1278   : > { %18525 = vst [vmem:[#allocation21_spill] sm:$0xff] %v16298_v43  ;;  %9980 = vmatmul.mubr.msk.f32.gmra.mrb[146].mxu0 %vm880_vm0, %v16298_v43  ;;  %v5957_v31 = vsel %vm5956_vm14, %v5954_v62, %v5951_v25  ;;  %v5960_v3 = vmul.f32 0.6931472, %v11663_v23  ;;  %v11665_v46 = vpop.eup %11664 }
0x1279   : > { %v16304_v58 = vadd.f32 %v5957_v31, %v5773_v39  ;;  %11666 = vlog2.f32 %v5967_v55  ;;  %v5976_v59 = vadd.f32 1.0, %v11665_v46  ;;  %v5971_v51 = vadd.f32 1.0, %v5970_v17 }
0x127a   : > { %v5966_v50 = vsel %vm5965_vm15, %v5963_v24, %v5960_v3  ;;  %v5979_v12 = vmul.f32 -0.5, %v11665_v46  ;;  %vm5974_vm1 = vcmp.lt.f32.partialorder %v5973_v14, 0.0004427343  ;;  %v5982_v29 = vand.u32 2147483647, %v11665_v46 }
0x127b   : > { %18526 = vst [vmem:[#allocation22_spill] sm:$0xff] %v16304_v58  ;;  %9982 = vmatprep.mubr.msk.f32.mxu0 %vm880_vm0, %v16304_v58  ;;  %v16309_v10 = vadd.f32 %v5966_v50, %v5774_v33  ;;  %11668 = vlog2.f32 %v5976_v59  ;;  %v5972_v1 = vmul.f32 %v11661_v6, %v5971_v51 }
0x127c   : > { %v5980_v28 = vadd.f32 1.0, %v5979_v12  ;;  %vm5983_vm2 = vcmp.lt.f32.partialorder %v5982_v29, 0.0004427343 }
0x127d   : > { %18527 = vst [vmem:[#allocation23_spill] sm:$0xff] %v16309_v10  ;;  %9983 = vmatmul.mubr.msk.f32.gmra.mrb[148].mxu0 %vm880_vm0, %v16309_v10 }
0x127e   : > { %v5981_v8 = vmul.f32 %v11665_v46, %v5980_v28 }
0x1283   : > { %v11667_v49 = vpop.eup %11666 }
0x1284   : > { %v5969_v21 = vmul.f32 0.6931472, %v11667_v49 }
0x1285   : > { %v11669_v15 = vpop.eup %11668 }
0x1286   : > { %v5975_v35 = vsel %vm5974_vm1, %v5972_v1, %v5969_v21  ;;  %v5978_v53 = vmul.f32 0.6931472, %v11669_v15 }
0x1287   : > { %v16314_v26 = vadd.f32 %v5975_v35, %v5775_v41 }
0x1288   : > { %v5984_v20 = vsel %vm5983_vm2, %v5981_v8, %v5978_v53 }
0x1289   : > { %18528 = vst [vmem:[#allocation24_spill] sm:$0xff] %v16314_v26  ;;  %9985 = vmatprep.mubr.msk.f32.mxu0 %vm880_vm0, %v16314_v26  ;;  %v16319_v38 = vadd.f32 %v5984_v20, %v5776_v56 }
0x128b   : > { %18529 = vst [vmem:[#allocation25_spill] sm:$0xff] %v16319_v38  ;;  %9986 = vmatmul.mubr.msk.f32.gmra.mrb[150].mxu0 %vm880_vm0, %v16319_v38 }
0x128c   : > { %6560 = vmatprep.mubr.f32.mxu0 %v12107_v7 }
0x1329   : > { %v9966_v4 = vpop.f32.mrb[136].mxu0 }
0x132a   : > { %v6125_v11 = vpop.f32.mrb[137].mxu0 }
0x132b   : > { %v10918_v5 = vpack.i.bf16 %v9966_v4, %v6125_v11  ;;  %v10566_v63 = vpack.c.bf16 %v9966_v4, %v6125_v11 }
0x132d   : > { %10919 = vrot.lane.b32.xlu0 %v10918_v5, %s12306_s12  ;;  %v9969_v6 = vpop.f32.mrb[138].mxu0  ;;  %10567 = vmatpush1.bf16.msra.mxu0 %v10566_v63 }
0x132e   : > { %v6135_v25 = vpop.f32.mrb[139].mxu0  ;;  %10568 = vmatprep.subr.bf16.mxu0 %v18412_v13 }
0x132f   : > { %v10923_v19 = vpack.i.bf16 %v9969_v6, %v6135_v25  ;;  %v10569_v62 = vpack.c.bf16 %v9969_v6, %v6135_v25 }
0x1331   : > { %10924 = vrot.lane.b32.xlu1 %v10923_v19, %s12306_s12  ;;  %10570 = vmatpush1.bf16.msra.mxu0 %v10569_v62 }
0x1332   : > { %10571 = vmatprep.subr.bf16.mxu0 %v18412_v13 }
0x1333   : > { %v9972_v23 = vpop.f32.mrb[140].mxu0 }
0x1334   : > { %v6145_v39 = vpop.f32.mrb[141].mxu0 }
0x1335   : > { %v10928_v55 = vpack.i.bf16 %v9972_v23, %v6145_v39  ;;  %v10572_v31 = vpack.c.bf16 %v9972_v23, %v6145_v39 }
0x1337   : > { %10929 = vrot.lane.b32.xlu0 %v10928_v55, %s12306_s12  ;;  %v9975_v3 = vpop.f32.mrb[142].mxu0  ;;  %10573 = vmatpush1.bf16.msra.mxu0 %v10572_v31 }
0x1338   : > { %v6155_v24 = vpop.f32.mrb[143].mxu0  ;;  %10574 = vmatprep.subr.bf16.mxu0 %v18412_v13 }
0x1339   : > { %v10933_v33 = vpack.i.bf16 %v9975_v3, %v6155_v24  ;;  %v10575_v50 = vpack.c.bf16 %v9975_v3, %v6155_v24 }
0x133b   : > { %10934 = vrot.lane.b32.xlu1 %v10933_v33, %s12306_s12  ;;  %10576 = vmatpush1.bf16.msra.mxu0 %v10575_v50 }
0x133c   : > { %10577 = vmatprep.subr.bf16.mxu0 %v18412_v13 }
0x1345   : > { %v9978_v46 = vpop.f32.mrb[144].mxu0 }
0x1346   : > { %v6165_v17 = vpop.f32.mrb[145].mxu0 }
0x1347   : > { %v10938_v59 = vpack.i.bf16 %v9978_v46, %v6165_v17  ;;  %v10578_v51 = vpack.c.bf16 %v9978_v46, %v6165_v17 }
0x1349   : > { %10939 = vrot.lane.b32.xlu0 %v10938_v59, %s12306_s12  ;;  %10579 = vmatpush1.bf16.msra.mxu0 %v10578_v51 }
0x134a   : > { %10580 = vmatprep.subr.bf16.mxu0 %v18412_v13 }
0x134b   : > { %v9981_v14 = vpop.f32.mrb[146].mxu0 }
0x134c   : > { %v6175_v12 = vpop.f32.mrb[147].mxu0 }
0x134d   : > { %v10943_v49 = vpack.i.bf16 %v9981_v14, %v6175_v12  ;;  %v10581_v21 = vpack.c.bf16 %v9981_v14, %v6175_v12 }
0x134f   : > { %10944 = vrot.lane.b32.xlu1 %v10943_v49, %s12306_s12  ;;  %10582 = vmatpush1.bf16.msra.mxu0 %v10581_v21 }
0x1350   : > { %v9984_v1 = vpop.f32.mrb[148].mxu0  ;;  %10583 = vmatprep.subr.bf16.mxu0 %v18412_v13 }
0x1351   : > { %v6185_v41 = vpop.f32.mrb[149].mxu0 }
0x1352   : > { %v10948_v28 = vpack.i.bf16 %v9984_v1, %v6185_v41  ;;  %v10584_v35 = vpack.c.bf16 %v9984_v1, %v6185_v41 }
0x1354   : > { %10949 = vrot.lane.b32.xlu0 %v10948_v28, %s12306_s12  ;;  %10585 = vmatpush1.bf16.msra.mxu0 %v10584_v35 }
0x1355   : > { %10586 = vmatprep.subr.bf16.mxu0 %v18412_v13 }
0x135e   : > { %v9987_v29 = vpop.f32.mrb[150].mxu0 }
0x135f   : > { %v6195_v15 = vpop.f32.mrb[151].mxu0 }
0x1360   : > { %v10953_v53 = vpack.i.bf16 %v9987_v29, %v6195_v15  ;;  %v10587_v8 = vpack.c.bf16 %v9987_v29, %v6195_v15  ;;  %v12108_v15 = vld [vmem:[%s12465_s25] sm:$0xff] }
0x1362   : > { %10954 = vrot.lane.b32.xlu1 %v10953_v53, %s12306_s12  ;;  %10588 = vmatpush1.bf16.msra.mxu0 %v10587_v8  ;;  %v12109_v53 = vld [vmem:[%s12465_s25 + $0x18] sm:$0xff]  ;;  %v12110_v8 = vld [vmem:[%s12465_s25 + $0x10] sm:$0xff]  ;;  %s400_s12 = scalar_lea.vmem %s17948_s7, %s8736_s26  ;;  %s12237_s26 = sshll.u32 %s12311_s9, 4  ;;  %s12238_s26 = int_to_ptr.vmem [resolvable:$false] %s12237_s26 }
0x1363   : > { %10589 = vmatprep.subr.bf16.mxu0 %v18412_v13  ;;  %s12239_s10 = scalar_lea.vmem %s12238_s26, 256  ;;  %p12240_p10 = scmp.lt.s32.totalorder %s17898_s4, %s12238_s26 }
0x1364   : > { %p12241_p0 = scmp.lt.s32.totalorder %s12239_s10, %s12233_s19 }
0x1366   : > { %p12242_p2 = por %p12241_p0, %p12240_p10 }
0x1368   : > { %p12243_p4 = pnand %p12242_p2, %p12236_p8 }
0x139f   : > { %v10920_v56 = vpop.permute.xlu0 %10919 }
0x13a0   : > { %v10922_v20 = vunpack.i.h.bf16 %v10920_v56  ;;  %v10921_v7 = vunpack.i.l.bf16 %v10920_v56  ;;  %v12111_v56 = vld [vmem:[%s12465_s25 + $0x28] sm:$0xff] }
0x13a2   : > { %v10590_v4 = vpack.c.bf16 %v10922_v20, %v10921_v7  ;;  %v12112_v20 = vld [vmem:[%s12465_s25 + $0x20] sm:$0xff]  ;;  %v12113_v7 = vld [vmem:[%s12465_s25 + $0x38] sm:$0xff] }
0x13a3   : > { %v10925_v11 = vpop.permute.xlu1 %10924 }
0x13a4   : > { %v10927_v5 = vunpack.i.h.bf16 %v10925_v11  ;;  %v10926_v63 = vunpack.i.l.bf16 %v10925_v11  ;;  %10591 = vmatpush1.bf16.msra.mxu0 %v10590_v4  ;;  %v12114_v4 = vld [vmem:[%s12465_s25 + $0x30] sm:$0xff]  ;;  %v12115_v11 = vld [vmem:[%s12465_s25 + $0x48] sm:$0xff] }
0x13a5   : > { %10592 = vmatprep.subr.bf16.mxu0 %v18412_v13 }
0x13a6   : > { %v10593_v6 = vpack.c.bf16 %v10927_v5, %v10926_v63  ;;  %v12116_v5 = vld [vmem:[%s12465_s25 + $0x40] sm:$0xff]  ;;  %v12117_v63 = vld [vmem:[%s12465_s25 + $0x58] sm:$0xff] }
0x13a8   : > { %10594 = vmatpush1.bf16.msra.mxu0 %v10593_v6  ;;  %v12118_v6 = vld [vmem:[%s12465_s25 + $0x50] sm:$0xff] }
0x13a9   : > { %v10930_v25 = vpop.permute.xlu0 %10929  ;;  %10595 = vmatprep.subr.bf16.mxu0 %v18412_v13 }
0x13aa   : > { %v10932_v19 = vunpack.i.h.bf16 %v10930_v25  ;;  %v10931_v62 = vunpack.i.l.bf16 %v10930_v25  ;;  %v12119_v25 = vld [vmem:[%s12465_s25 + $0x68] sm:$0xff] }
0x13ac   : > { %v10596_v23 = vpack.c.bf16 %v10932_v19, %v10931_v62  ;;  %v12120_v19 = vld [vmem:[%s12465_s25 + $0x60] sm:$0xff]  ;;  %v12121_v62 = vld [vmem:[%s12465_s25 + $0x78] sm:$0xff] }
0x13ad   : > { %v10935_v39 = vpop.permute.xlu1 %10934 }
0x13ae   : > { %v10937_v55 = vunpack.i.h.bf16 %v10935_v39  ;;  %v10936_v31 = vunpack.i.l.bf16 %v10935_v39  ;;  %10597 = vmatpush1.bf16.msra.mxu0 %v10596_v23  ;;  %v12122_v23 = vld [vmem:[%s12465_s25 + $0x70] sm:$0xff]  ;;  %v12123_v39 = vld [vmem:[%s12465_s25 + $0x88] sm:$0xff] }
0x13af   : > { %10598 = vmatprep.subr.bf16.mxu0 %v18412_v13 }
0x13b0   : > { %v10599_v3 = vpack.c.bf16 %v10937_v55, %v10936_v31  ;;  %v12124_v55 = vld [vmem:[%s12465_s25 + $0x80] sm:$0xff]  ;;  %v12125_v31 = vld [vmem:[%s12465_s25 + $0x98] sm:$0xff] }
0x13b2   : > { %10600 = vmatpush1.bf16.msra.mxu0 %v10599_v3  ;;  %v12126_v3 = vld [vmem:[%s12465_s25 + $0x90] sm:$0xff] }
0x13b3   : > { %10601 = vmatprep.subr.bf16.mxu0 %v18412_v13 }
0x13bb   : > { %v10940_v24 = vpop.permute.xlu0 %10939 }
0x13bc   : > { %v10942_v33 = vunpack.i.h.bf16 %v10940_v24  ;;  %v10941_v50 = vunpack.i.l.bf16 %v10940_v24  ;;  %v12127_v24 = vld [vmem:[%s12465_s25 + $0xa8] sm:$0xff] }
0x13be   : > { %v10602_v46 = vpack.c.bf16 %v10942_v33, %v10941_v50  ;;  %v12128_v33 = vld [vmem:[%s12465_s25 + $0xa0] sm:$0xff]  ;;  %v12129_v50 = vld [vmem:[%s12465_s25 + $0xb8] sm:$0xff] }
0x13c0   : > { %10603 = vmatpush1.bf16.msra.mxu0 %v10602_v46  ;;  %v12130_v46 = vld [vmem:[%s12465_s25 + $0xb0] sm:$0xff] }
0x13c1   : > { %v10945_v17 = vpop.permute.xlu1 %10944  ;;  %10604 = vmatprep.subr.bf16.mxu0 %v18412_v13 }
0x13c2   : > { %v10947_v59 = vunpack.i.h.bf16 %v10945_v17  ;;  %v10946_v51 = vunpack.i.l.bf16 %v10945_v17  ;;  %v12131_v17 = vld [vmem:[%s12465_s25 + $0xc8] sm:$0xff] }
0x13c4   : > { %v10605_v14 = vpack.c.bf16 %v10947_v59, %v10946_v51  ;;  %v12132_v59 = vld [vmem:[%s12465_s25 + $0xc0] sm:$0xff]  ;;  %v12133_v51 = vld [vmem:[%s12465_s25 + $0xd8] sm:$0xff] }
0x13c6   : > { %v10950_v12 = vpop.permute.xlu0 %10949  ;;  %10606 = vmatpush1.bf16.msra.mxu0 %v10605_v14  ;;  %v12134_v14 = vld [vmem:[%s12465_s25 + $0xd0] sm:$0xff] }
0x13c7   : > { %v10952_v49 = vunpack.i.h.bf16 %v10950_v12  ;;  %v10951_v21 = vunpack.i.l.bf16 %v10950_v12  ;;  %10607 = vmatprep.subr.bf16.mxu0 %v18412_v13  ;;  %v12135_v12 = vld [vmem:[%s12465_s25 + $0xe8] sm:$0xff] }
0x13c9   : > { %v10608_v1 = vpack.c.bf16 %v10952_v49, %v10951_v21  ;;  %v12136_v49 = vld [vmem:[%s12465_s25 + $0xe0] sm:$0xff]  ;;  %v12137_v21 = vld [vmem:[%s12465_s25 + $0xf8] sm:$0xff] }
0x13cb   : > { %10609 = vmatpush1.bf16.msra.mxu0 %v10608_v1  ;;  %v12138_v1 = vld [vmem:[%s12465_s25 + $0xf0] sm:$0xff] }
0x13cc   : > { %10610 = vmatprep.subr.bf16.mxu0 %v18412_v13 }
0x13d4   : > { %v10955_v41 = vpop.permute.xlu1 %10954 }
0x13d5   : > { %v10957_v28 = vunpack.i.h.bf16 %v10955_v41  ;;  %v10956_v35 = vunpack.i.l.bf16 %v10955_v41  ;;  %v12139_v41 = vld [vmem:[%s12465_s25 + $0x108] sm:$0xff] }
0x13d7   : > { %v10611_v29 = vpack.c.bf16 %v10957_v28, %v10956_v35  ;;  %v12140_v28 = vld [vmem:[%s12465_s25 + $0x100] sm:$0xff]  ;;  %v12141_v35 = vld [vmem:[%s12465_s25 + $0x118] sm:$0xff] }
0x13d9   : > { %10612 = vmatpush1.bf16.msra.mxu0 %v10611_v29  ;;  %v12142_v29 = vld [vmem:[%s12465_s25 + $0x110] sm:$0xff] }
0x13da   : > { %10709 = vmatprep.subr.bf16.mxu0 %v18412_v13 }
0x13dc   : > { %6561 = vmatmul.mubr.f32.vlgmr.msra.gmra.mrb[152].mxu0 %v12108_v15  ;;  %v12143_v15 = vld [vmem:[%s12465_s25 + $0x128] sm:$0xff] }
0x13dd   : > { %6565 = vmatprep.mubr.f32.mxu0 %v12109_v53  ;;  %v12144_v53 = vld [vmem:[%s12465_s25 + $0x120] sm:$0xff] }
0x13e0   : > { %6566 = vmatmul.mubr.f32.gmra.mrb[154].mxu0 %v12110_v8  ;;  %v12145_v8 = vld [vmem:[%s12465_s25 + $0x138] sm:$0xff] }
0x13e1   : > { %6570 = vmatprep.mubr.f32.mxu0 %v12111_v56  ;;  %v12146_v56 = vld [vmem:[%s12465_s25 + $0x130] sm:$0xff] }
0x13e4   : > { %6571 = vmatmul.mubr.f32.gmra.mrb[156].mxu0 %v12112_v20  ;;  %v12147_v20 = vld [vmem:[%s12465_s25 + $0x148] sm:$0xff] }
0x13e5   : > { %6575 = vmatprep.mubr.f32.mxu0 %v12113_v7  ;;  %v12148_v7 = vld [vmem:[%s12465_s25 + $0x140] sm:$0xff] }
0x13e8   : > { %6576 = vmatmul.mubr.f32.gmra.mrb[158].mxu0 %v12114_v4  ;;  %v12149_v4 = vld [vmem:[%s12465_s25 + $0x158] sm:$0xff] }
0x13e9   : > { %6580 = vmatprep.mubr.f32.mxu0 %v12115_v11  ;;  %v12150_v11 = vld [vmem:[%s12465_s25 + $0x150] sm:$0xff] }
0x13ec   : > { %6581 = vmatmul.mubr.f32.gmra.mrb[160].mxu0 %v12116_v5  ;;  %v12151_v5 = vld [vmem:[%s12465_s25 + $0x168] sm:$0xff] }
0x13ed   : > { %6585 = vmatprep.mubr.f32.mxu0 %v12117_v63  ;;  %v12152_v63 = vld [vmem:[%s12465_s25 + $0x160] sm:$0xff] }
0x13f0   : > { %6586 = vmatmul.mubr.f32.gmra.mrb[162].mxu0 %v12118_v6  ;;  %v12153_v6 = vld [vmem:[%s12465_s25 + $0x178] sm:$0xff] }
0x13f1   : > { %6590 = vmatprep.mubr.f32.mxu0 %v12119_v25  ;;  %v12154_v25 = vld [vmem:[%s12465_s25 + $0x170] sm:$0xff] }
0x13f4   : > { %6591 = vmatmul.mubr.f32.gmra.mrb[164].mxu0 %v12120_v19  ;;  %v12155_v19 = vld [vmem:[%s12465_s25 + $0x188] sm:$0xff] }
0x13f5   : > { %6595 = vmatprep.mubr.f32.mxu0 %v12121_v62  ;;  %v12156_v62 = vld [vmem:[%s12465_s25 + $0x180] sm:$0xff] }
0x13f8   : > { %6596 = vmatmul.mubr.f32.gmra.mrb[166].mxu0 %v12122_v23  ;;  %v12157_v23 = vld [vmem:[%s12465_s25 + $0x198] sm:$0xff] }
0x13f9   : > { %6600 = vmatprep.mubr.f32.mxu0 %v12123_v39  ;;  %v12158_v39 = vld [vmem:[%s12465_s25 + $0x190] sm:$0xff] }
0x13fc   : > { %6601 = vmatmul.mubr.f32.gmra.mrb[168].mxu0 %v12124_v55  ;;  %v12159_v55 = vld [vmem:[%s12465_s25 + $0x1a8] sm:$0xff] }
0x13fd   : > { %6605 = vmatprep.mubr.f32.mxu0 %v12125_v31  ;;  %v12160_v31 = vld [vmem:[%s12465_s25 + $0x1a0] sm:$0xff] }
0x1400   : > { %6606 = vmatmul.mubr.f32.gmra.mrb[170].mxu0 %v12126_v3  ;;  %v12161_v3 = vld [vmem:[%s12465_s25 + $0x1b8] sm:$0xff] }
0x1401   : > { %6610 = vmatprep.mubr.f32.mxu0 %v12127_v24  ;;  %v12162_v24 = vld [vmem:[%s12465_s25 + $0x1b0] sm:$0xff] }
0x1404   : > { %6611 = vmatmul.mubr.f32.gmra.mrb[172].mxu0 %v12128_v33  ;;  %v12163_v33 = vld [vmem:[%s12465_s25 + $0x1c8] sm:$0xff] }
0x1405   : > { %6615 = vmatprep.mubr.f32.mxu0 %v12129_v50  ;;  %v12164_v50 = vld [vmem:[%s12465_s25 + $0x1c0] sm:$0xff] }
0x1408   : > { %6616 = vmatmul.mubr.f32.gmra.mrb[174].mxu0 %v12130_v46  ;;  %v12165_v46 = vld [vmem:[%s12465_s25 + $0x1d8] sm:$0xff] }
0x1409   : > { %6620 = vmatprep.mubr.f32.mxu0 %v12131_v17  ;;  %v12166_v17 = vld [vmem:[%s12465_s25 + $0x1d0] sm:$0xff] }
0x140c   : > { %6621 = vmatmul.mubr.f32.gmra.mrb[176].mxu0 %v12132_v59  ;;  %v12167_v59 = vld [vmem:[%s12465_s25 + $0x1e8] sm:$0xff] }
0x140d   : > { %6625 = vmatprep.mubr.f32.mxu0 %v12133_v51  ;;  %v12168_v51 = vld [vmem:[%s12465_s25 + $0x1e0] sm:$0xff] }
0x1410   : > { %6626 = vmatmul.mubr.f32.gmra.mrb[178].mxu0 %v12134_v14  ;;  %v12169_v14 = vld [vmem:[%s12465_s25 + $0x1f8] sm:$0xff] }
0x1411   : > { %6630 = vmatprep.mubr.f32.mxu0 %v12135_v12  ;;  %v12170_v12 = vld [vmem:[%s12465_s25 + $0x1f0] sm:$0xff] }
0x1414   : > { %6631 = vmatmul.mubr.f32.gmra.mrb[180].mxu0 %v12136_v49 }
0x1415   : > { %6635 = vmatprep.mubr.f32.mxu0 %v12137_v21 }
0x1418   : > { %6636 = vmatmul.mubr.f32.gmra.mrb[182].mxu0 %v12138_v1 }
0x1419   : > { %6640 = vmatprep.mubr.f32.mxu0 %v12139_v41 }
0x141c   : > { %6641 = vmatmul.mubr.f32.gmra.mrb[184].mxu0 %v12140_v28 }
0x141d   : > { %6645 = vmatprep.mubr.f32.mxu0 %v12141_v35 }
0x1420   : > { %6646 = vmatmul.mubr.f32.gmra.mrb[186].mxu0 %v12142_v29 }
0x1421   : > { %6650 = vmatprep.mubr.f32.mxu0 %v12143_v15 }
0x1424   : > { %6651 = vmatmul.mubr.f32.gmra.mrb[188].mxu0 %v12144_v53 }
0x1425   : > { %6655 = vmatprep.mubr.f32.mxu0 %v12145_v8 }
0x1428   : > { %6656 = vmatmul.mubr.f32.gmra.mrb[190].mxu0 %v12146_v56 }
0x1429   : > { %6660 = vmatprep.mubr.f32.mxu0 %v12147_v20 }
0x142c   : > { %6661 = vmatmul.mubr.f32.gmra.mrb[192].mxu0 %v12148_v7 }
0x142d   : > { %6665 = vmatprep.mubr.f32.mxu0 %v12149_v4 }
0x1430   : > { %6666 = vmatmul.mubr.f32.gmra.mrb[194].mxu0 %v12150_v11 }
0x1431   : > { %6670 = vmatprep.mubr.f32.mxu0 %v12151_v5 }
0x1434   : > { %6671 = vmatmul.mubr.f32.gmra.mrb[196].mxu0 %v12152_v63 }
0x1435   : > { %6675 = vmatprep.mubr.f32.mxu0 %v12153_v6 }
0x1438   : > { %6676 = vmatmul.mubr.f32.gmra.mrb[198].mxu0 %v12154_v25 }
0x1439   : > { %6680 = vmatprep.mubr.f32.mxu0 %v12155_v19  ;;  %v18530_v19 = vld [vmem:[#allocation55_spill] sm:$0xff] }
0x143c   : > { %6681 = vmatmul.mubr.f32.gmra.mrb[200].mxu0 %v12156_v62 }
0x143d   : > { %6685 = vmatprep.mubr.f32.mxu0 %v12157_v23 }
0x1440   : > { %6686 = vmatmul.mubr.f32.gmra.mrb[202].mxu0 %v12158_v39  ;;  %v18531_v39 = vld [vmem:[#allocation57_spill] sm:$0xff] }
0x1441   : > { %6690 = vmatprep.mubr.f32.mxu0 %v12159_v55 }
0x1444   : > { %6691 = vmatmul.mubr.f32.gmra.mrb[204].mxu0 %v12160_v31 }
0x1445   : > { %6695 = vmatprep.mubr.f32.mxu0 %v12161_v3  ;;  %v18532_v3 = vld [vmem:[#allocation58_spill] sm:$0xff] }
0x1448   : > { %6696 = vmatmul.mubr.f32.gmra.mrb[206].mxu0 %v12162_v24 }
0x1449   : > { %6700 = vmatprep.mubr.f32.mxu0 %v12163_v33 }
0x144c   : > { %6701 = vmatmul.mubr.f32.gmra.mrb[208].mxu0 %v12164_v50  ;;  %v18533_v50 = vld [vmem:[#allocation47_spill] sm:$0xff] }
0x144d   : > { %6705 = vmatprep.mubr.f32.mxu0 %v12165_v46 }
0x1450   : > { %6706 = vmatmul.mubr.f32.gmra.mrb[210].mxu0 %v12166_v17 }
0x1451   : > { %6710 = vmatprep.mubr.f32.mxu0 %v12167_v59  ;;  %v18534_v59 = vld [vmem:[#allocation59_spill] sm:$0xff] }
0x1454   : > { %6711 = vmatmul.mubr.f32.gmra.mrb[212].mxu0 %v12168_v51 }
0x1455   : > { %6715 = vmatprep.mubr.f32.mxu0 %v12169_v14 }
0x1458   : > { %6716 = vmatmul.mubr.f32.gmra.mrb[214].mxu0 %v12170_v12 }
0x1459   : > { %10072 = vmatprep.mubr.msk.f32.mxu0 %vm12309_vm6, %v18413_v61 }
0x14af   : > { %v6562_v49 = vpop.f32.mrb[152].mxu0 }
0x14b0   : > { %v6563_v21 = vadd.f32 %v6562_v49, %v15942_v30  ;;  %v6564_v1 = vpop.f32.mrb[153].mxu0  ;;  %v18535_v49 = vld [vmem:[#allocation48_spill] sm:$0xff] }
0x14b3   : > { %v6567_v41 = vpop.f32.mrb[154].mxu0 }
0x14b4   : > { %v6568_v28 = vadd.f32 %v15940_v40, %v6567_v41  ;;  %v6569_v35 = vpop.f32.mrb[155].mxu0 }
0x14b7   : > { %v6572_v29 = vpop.f32.mrb[156].mxu0 }
0x14b8   : > { %v16416_v15 = vadd.f32 %v6572_v29, %v15946_v16  ;;  %v6574_v53 = vpop.f32.mrb[157].mxu0  ;;  %v18536_v29 = vld [vmem:[#allocation54_spill] sm:$0xff] }
0x14bb   : > { %v6577_v8 = vpop.f32.mrb[158].mxu0 }
0x14bc   : > { %v6578_v56 = vadd.f32 %v15944_v54, %v6577_v8  ;;  %v6579_v20 = vpop.f32.mrb[159].mxu0 }
0x14bf   : > { %v6582_v7 = vpop.f32.mrb[160].mxu0 }
0x14c0   : > { %v16420_v4 = vadd.f32 %v6582_v7, %v15950_v9  ;;  %v6584_v11 = vpop.f32.mrb[161].mxu0  ;;  %v18537_v7 = vld [vmem:[#allocation44_spill] sm:$0xff] }
0x14c3   : > { %v6587_v30 = vpop.f32.mrb[162].mxu0 }
0x14c4   : > { %v16423_v5 = vadd.f32 %v15948_v60, %v6587_v30  ;;  %v6589_v40 = vpop.f32.mrb[163].mxu0 }
0x14c7   : > { %v6592_v63 = vpop.f32.mrb[164].mxu0 }
0x14c8   : > { %v16426_v6 = vadd.f32 %v6592_v63, %v15957_v47  ;;  %v6594_v16 = vpop.f32.mrb[165].mxu0  ;;  %v18538_v63 = vld [vmem:[#allocation43_spill] sm:$0xff] }
0x14cb   : > { %v6597_v25 = vpop.f32.mrb[166].mxu0 }
0x14cc   : > { %v16429_v62 = vadd.f32 %v18530_v19, %v6597_v25  ;;  %v6599_v54 = vpop.f32.mrb[167].mxu0 }
0x14cd   : > { %v18539_v54 = vld [vmem:[#allocation53_spill] sm:$0xff] }
0x14cf   : > { %v6602_v23 = vpop.f32.mrb[168].mxu0 }
0x14d0   : > { %v16432_v9 = vadd.f32 %v6602_v23, %v18531_v39  ;;  %v6604_v55 = vpop.f32.mrb[169].mxu0 }
0x14d3   : > { %v6607_v31 = vpop.f32.mrb[170].mxu0 }
0x14d4   : > { %v16435_v60 = vadd.f32 %v18532_v3, %v6607_v31  ;;  %v6609_v24 = vpop.f32.mrb[171].mxu0  ;;  %v16459_v31 = vld [vmem:[%s17941_s0 + $0xb] ss:$0 sm:$0xff]  ;;  %v18540_v3 = vld [vmem:[#allocation56_spill] sm:$0xff] }
0x14d7   : > { %v6612_v33 = vpop.f32.mrb[172].mxu0 }
0x14d8   : > { %v16438_v47 = vadd.f32 %v6612_v33, %v18533_v50  ;;  %v6614_v46 = vpop.f32.mrb[173].mxu0  ;;  %v16463_v50 = vadd.f32 %v16459_v31, %v6568_v28 }
0x14db   : > { %v6617_v17 = vpop.f32.mrb[174].mxu0 }
0x14dc   : > { %v16441_v51 = vadd.f32 %v18534_v59, %v6617_v17  ;;  %v6619_v14 = vpop.f32.mrb[175].mxu0  ;;  %v16472_v59 = vadd.f32 %v16459_v31, %v6563_v21 }
0x14de   : > { %v10615_v28 = vpack.c.bf16 %v16463_v50, %v16472_v59 }
0x14df   : > { %v6622_v12 = vpop.f32.mrb[176].mxu0 }
0x14e0   : > { %v16444_v1 = vadd.f32 %v6622_v12, %v18535_v49  ;;  %v6624_v41 = vpop.f32.mrb[177].mxu0  ;;  %v18541_v12 = vld [vmem:[#allocation41_spill] sm:$0xff] }
0x14e3   : > { %v6627_v35 = vpop.f32.mrb[178].mxu0 }
0x14e4   : > { %v16447_v53 = vadd.f32 %v18536_v29, %v6627_v35  ;;  %v6629_v8 = vpop.f32.mrb[179].mxu0 }
0x14e5   : > { %v18542_v8 = vld [vmem:[#allocation42_spill] sm:$0xff] }
0x14e7   : > { %v6632_v20 = vpop.f32.mrb[180].mxu0 }
0x14e8   : > { %v16450_v11 = vadd.f32 %v6632_v20, %v18537_v7  ;;  %v6634_v30 = vpop.f32.mrb[181].mxu0 }
0x14e9   : > { %v16481_v30 = vadd.f32 %v16459_v31, %v6578_v56 }
0x14eb   : > { %v6637_v40 = vpop.f32.mrb[182].mxu0 }
0x14ec   : > { %v16453_v16 = vadd.f32 %v18538_v63, %v6637_v40  ;;  %v6639_v25 = vpop.f32.mrb[183].mxu0  ;;  %v16491_v63 = vadd.f32 %v16459_v31, %v16416_v15  ;;  %v16501_v15 = vadd.f32 %v16459_v31, %v16423_v5 }
0x14ee   : > { %v10619_v56 = vpack.c.bf16 %v16481_v30, %v16491_v63 }
0x14ef   : > { %v6642_v19 = vpop.f32.mrb[184].mxu0 }
0x14f0   : > { %v6643_v23 = vadd.f32 %v6642_v19, %v18539_v54  ;;  %v6644_v39 = vpop.f32.mrb[185].mxu0  ;;  %v18543_v19 = vld [vmem:[#allocation50_spill] sm:$0xff] }
0x14f2   : > { %v16466_v46 = vadd.f32 %v16459_v31, %v6643_v23 }
0x14f3   : > { %v6647_v55 = vpop.f32.mrb[186].mxu0 }
0x14f4   : > { %v6648_v24 = vadd.f32 %v18540_v3, %v6647_v55  ;;  %v6649_v33 = vpop.f32.mrb[187].mxu0  ;;  %v18544_v3 = vld [vmem:[#allocation49_spill] sm:$0xff] }
0x14f6   : > { %v16469_v17 = vadd.f32 %v16459_v31, %v6648_v24 }
0x14f7   : > { %v6652_v14 = vpop.f32.mrb[188].mxu0 }
0x14f8   : > { %v6653_v49 = vadd.f32 %v6652_v14, %v18541_v12  ;;  %v6654_v41 = vpop.f32.mrb[189].mxu0  ;;  %v10613_v35 = vpack.c.bf16 %v16469_v17, %v16466_v46 }
0x14fa   : > { %10614 = vmatprep.subr.bf16.mxu1 %v10613_v35  ;;  %v16484_v21 = vadd.f32 %v16459_v31, %v6653_v49  ;;  %v16511_v49 = vadd.f32 %v16459_v31, %v16420_v4  ;;  %v18545_v35 = vld [vmem:[#allocation46_spill] sm:$0xff]  ;;  %v16521_v4 = vadd.f32 %v16459_v31, %v16429_v62 }
0x14fb   : > { %v6657_v29 = vpop.f32.mrb[190].mxu0  ;;  %10616 = vmatpush3.bf16.msra.mxu1 %v10615_v28 }
0x14fc   : > { %v6658_v20 = vadd.f32 %v18542_v8, %v6657_v29  ;;  %v6659_v7 = vpop.f32.mrb[191].mxu0  ;;  %v10623_v5 = vpack.c.bf16 %v16501_v15, %v16511_v49 }
0x14fd   : > { %v18546_v7 = vld [vmem:[#allocation45_spill] sm:$0xff] }
0x14fe   : > { %v16487_v40 = vadd.f32 %v16459_v31, %v6658_v20 }
0x14ff   : > { %v6662_v25 = vpop.f32.mrb[192].mxu0 }
0x1500   : > { %v6663_v54 = vadd.f32 %v6662_v25, %v18543_v19  ;;  %v6664_v23 = vpop.f32.mrb[193].mxu0  ;;  %v10617_v39 = vpack.c.bf16 %v16487_v40, %v16484_v21 }
0x1502   : > { %10618 = vmatprep.subr.bf16.mxu1 %v10617_v39  ;;  %v16504_v14 = vadd.f32 %v16459_v31, %v6663_v54  ;;  %v16531_v39 = vadd.f32 %v16459_v31, %v16426_v6  ;;  %v16541_v6 = vadd.f32 %v16459_v31, %v16435_v60 }
0x1503   : > { %v6667_v55 = vpop.f32.mrb[194].mxu0  ;;  %10620 = vmatpush3.bf16.msra.mxu1 %v10619_v56 }
0x1504   : > { %v6668_v24 = vadd.f32 %v18544_v3, %v6667_v55  ;;  %v6669_v33 = vpop.f32.mrb[195].mxu0  ;;  %v18547_v55 = vld [vmem:[#allocation51_spill] sm:$0xff]  ;;  %v10627_v62 = vpack.c.bf16 %v16521_v4, %v16531_v39 }
0x1506   : > { %v16507_v12 = vadd.f32 %v16459_v31, %v6668_v24 }
0x1507   : > { %v6672_v41 = vpop.f32.mrb[196].mxu0 }
0x1508   : > { %v6673_v28 = vadd.f32 %v6672_v41, %v18545_v35  ;;  %v6674_v29 = vpop.f32.mrb[197].mxu0  ;;  %v10621_v8 = vpack.c.bf16 %v16507_v12, %v16504_v14  ;;  %v18548_v35 = vld [vmem:[#allocation52_spill] sm:$0xff] }
0x150a   : > { %10622 = vmatprep.subr.bf16.mxu1 %v10621_v8  ;;  %v16524_v54 = vadd.f32 %v16459_v31, %v6673_v28 }
0x150b   : > { %v6677_v20 = vpop.f32.mrb[198].mxu0  ;;  %10624 = vmatpush3.bf16.msra.mxu1 %v10623_v5 }
0x150c   : > { %v6678_v25 = vadd.f32 %v18546_v7, %v6677_v20  ;;  %v6679_v19 = vpop.f32.mrb[199].mxu0  ;;  %v16551_v20 = vadd.f32 %v16459_v31, %v16432_v9  ;;  %v16561_v9 = vadd.f32 %v16459_v31, %v16441_v51 }
0x150e   : > { %v16527_v23 = vadd.f32 %v16459_v31, %v6678_v25  ;;  %v18549_v25 = vld [vmem:[#allocation10_spill] sm:$0xff]  ;;  %v10631_v60 = vpack.c.bf16 %v16541_v6, %v16551_v20 }
0x150f   : > { %v6682_v56 = vpop.f32.mrb[200].mxu0 }
0x1510   : > { %v6683_v3 = vadd.f32 %v6682_v56, %v18547_v55  ;;  %v6684_v24 = vpop.f32.mrb[201].mxu0  ;;  %v10625_v33 = vpack.c.bf16 %v16527_v23, %v16524_v54 }
0x1511   : > { %v18550_v24 = vld [vmem:[#allocation8_spill] sm:$0xff] }
0x1512   : > { %10626 = vmatprep.subr.bf16.mxu1 %v10625_v33  ;;  %v16544_v8 = vadd.f32 %v16459_v31, %v6683_v3 }
0x1513   : > { %v6687_v41 = vpop.f32.mrb[202].mxu0  ;;  %10628 = vmatpush3.bf16.msra.mxu1 %v10627_v62 }
0x1514   : > { %v6688_v28 = vadd.f32 %v18548_v35, %v6687_v41  ;;  %v6689_v29 = vpop.f32.mrb[203].mxu0 }
0x1516   : > { %v16547_v5 = vadd.f32 %v16459_v31, %v6688_v28  ;;  %v16571_v28 = vadd.f32 %v16459_v31, %v16438_v47  ;;  %v16581_v47 = vadd.f32 %v16459_v31, %v16447_v53 }
0x1517   : > { %v6692_v7 = vpop.f32.mrb[204].mxu0 }
0x1518   : > { %v6693_v19 = vadd.f32 %v6692_v7, %v18549_v25  ;;  %v6694_v56 = vpop.f32.mrb[205].mxu0  ;;  %v10629_v55 = vpack.c.bf16 %v16547_v5, %v16544_v8  ;;  %v10635_v51 = vpack.c.bf16 %v16561_v9, %v16571_v28 }
0x151a   : > { %10630 = vmatprep.subr.bf16.mxu1 %v10629_v55  ;;  %v16564_v41 = vadd.f32 %v16459_v31, %v6693_v19 }
0x151b   : > { %v6697_v3 = vpop.f32.mrb[206].mxu0  ;;  %10632 = vmatpush3.bf16.msra.mxu1 %v10631_v60 }
0x151c   : > { %v6698_v33 = vadd.f32 %v18550_v24, %v6697_v3  ;;  %v6699_v62 = vpop.f32.mrb[207].mxu0  ;;  %v16591_v24 = vadd.f32 %v16459_v31, %v16444_v1  ;;  %v16601_v1 = vadd.f32 %v16459_v31, %v16453_v16  ;;  %v18551_v16 = vmov 1.0  }
0x151e   : > { %v16567_v35 = vadd.f32 %v16459_v31, %v6698_v33  ;;  %v10639_v53 = vpack.c.bf16 %v16581_v47, %v16591_v24 }
0x151f   : > { %v6702_v29 = vpop.f32.mrb[208].mxu0 }
0x1520   : > { %v6703_v7 = vadd.f32 %v6702_v29, %v16173_v52  ;;  %v6704_v25 = vpop.f32.mrb[209].mxu0  ;;  %v10633_v56 = vpack.c.bf16 %v16567_v35, %v16564_v41 }
0x1522   : > { %10634 = vmatprep.subr.bf16.mxu1 %v10633_v56  ;;  %v16584_v3 = vadd.f32 %v16459_v31, %v6703_v7 }
0x1523   : > { %v6707_v19 = vpop.f32.mrb[210].mxu0  ;;  %10636 = vmatpush3.bf16.msra.mxu1 %v10635_v51 }
0x1524   : > { %v6708_v55 = vadd.f32 %v16163_v34, %v6707_v19  ;;  %v6709_v60 = vpop.f32.mrb[211].mxu0  ;;  %v16611_v19 = vadd.f32 %v16459_v31, %v16450_v11 }
0x1526   : > { %v16587_v52 = vadd.f32 %v16459_v31, %v6708_v55 }
0x1527   : > { %v6712_v33 = vpop.f32.mrb[212].mxu0 }
0x1528   : > { %v6713_v62 = vadd.f32 %v6712_v33, %v16206_v18  ;;  %v6714_v29 = vpop.f32.mrb[213].mxu0  ;;  %v10637_v34 = vpack.c.bf16 %v16587_v52, %v16584_v3 }
0x152a   : > { %10638 = vmatprep.subr.bf16.mxu1 %v10637_v34  ;;  %v16604_v51 = vadd.f32 %v16459_v31, %v6713_v62  ;;  %v18552_v34 = vld [vmem:[#allocation40_spill] sm:$0xff] }
0x152b   : > { %v6717_v7 = vpop.f32.mrb[214].mxu0  ;;  %10640 = vmatpush3.bf16.msra.mxu1 %v10639_v53 }
0x152c   : > { %v6718_v25 = vadd.f32 %v16197_v42, %v6717_v7  ;;  %v6719_v56 = vpop.f32.mrb[215].mxu0  ;;  %v10643_v42 = vpack.c.bf16 %v16601_v1, %v16611_v19 }
0x152e   : > { %v16607_v18 = vadd.f32 %v16459_v31, %v6718_v25 }
0x1530   : > { %v10641_v55 = vpack.c.bf16 %v16607_v18, %v16604_v51 }
0x1532   : > { %10642 = vmatprep.subr.bf16.mxu1 %v10641_v55 }
0x1533   : > { %10644 = vmatpush3.bf16.msra.mxu1 %v10643_v42 }
0x1536   : > { %6822 = vmatmul.mubr.f32.vlgmr.msra.gmra.mrb[200].mxu1 %v18551_v16 }
0x1537   : > { %6960 = vmatprep.mubr.f32.mxu1 %v18551_v16 }
0x1609   : > { %v9479_v60 = vpop.f32.mrb[200].mxu1 }
0x160a   : > { %v9480_v33 = vpop.f32.mrb[201].mxu1 }
0x160b   : > { %v9481_v62 = vadd.f32 %v9480_v33, %v9479_v60 }
0x160d   : > { %v6827_v29 = vmul.f32 0.00390625, %v9481_v62 }
0x160f   : > { %v16620_v53 = vrot.slane %v6827_v29, %v18552_v34 }
0x1611   : > { %v16624_v11 = vsub.f32 %v16472_v59, %v16620_v53  ;;  %v16628_v31 = vsub.f32 %v16463_v50, %v16620_v53  ;;  %v16632_v7 = vsub.f32 %v16466_v46, %v16620_v53  ;;  %v16636_v25 = vsub.f32 %v16469_v17, %v16620_v53 }
0x1612   : > { %v16640_v56 = vsub.f32 %v16484_v21, %v16620_v53  ;;  %v16644_v59 = vsub.f32 %v16487_v40, %v16620_v53  ;;  %v16652_v46 = vsub.f32 %v16491_v63, %v16620_v53  ;;  %v16656_v17 = vsub.f32 %v16481_v30, %v16620_v53 }
0x1613   : > { %v6864_v50 = vmul.f32 %v16624_v11, %v16624_v11  ;;  %v6865_v55 = vmul.f32 %v16628_v31, %v16628_v31  ;;  %v16660_v21 = vsub.f32 %v16504_v14, %v16620_v53  ;;  %v16664_v40 = vsub.f32 %v16507_v12, %v16620_v53 }
0x1614   : > { %v6880_v42 = vmul.f32 %v16632_v7, %v16632_v7  ;;  %v6881_v60 = vmul.f32 %v16636_v25, %v16636_v25  ;;  %v6882_v63 = vmul.f32 %v16640_v56, %v16640_v56  ;;  %v6883_v30 = vmul.f32 %v16644_v59, %v16644_v59 }
0x1615   : > { %v10647_v33 = vpack.c.bf16 %v6865_v55, %v6864_v50  ;;  %v16676_v14 = vsub.f32 %v16511_v49, %v16620_v53  ;;  %v16680_v12 = vsub.f32 %v16501_v15, %v16620_v53  ;;  %v16684_v29 = vsub.f32 %v16524_v54, %v16620_v53 }
0x1616   : > { %v10645_v62 = vpack.c.bf16 %v6881_v60, %v6880_v42  ;;  %v6866_v38 = vmul.f32 %v16652_v46, %v16652_v46  ;;  %v6867_v50 = vmul.f32 %v16656_v17, %v16656_v17  ;;  %v16692_v55 = vsub.f32 %v16527_v23, %v16620_v53 }
0x1617   : > { %v10649_v49 = vpack.c.bf16 %v6883_v30, %v6882_v63  ;;  %v6884_v15 = vmul.f32 %v16660_v21, %v16660_v21  ;;  %v6885_v42 = vmul.f32 %v16664_v40, %v16664_v40  ;;  %v16700_v54 = vsub.f32 %v16531_v39, %v16620_v53 }
0x1618   : > { %10646 = vmatprep.subr.bf16.mxu1 %v10645_v62  ;;  %v16704_v60 = vsub.f32 %v16521_v4, %v16620_v53  ;;  %v16708_v23 = vsub.f32 %v16544_v8, %v16620_v53  ;;  %v6868_v63 = vmul.f32 %v16676_v14, %v16676_v14  ;;  %v6869_v30 = vmul.f32 %v16680_v12, %v16680_v12 }
0x1619   : > { %10648 = vmatpush3.bf16.msra.mxu1 %v10647_v33  ;;  %v10651_v33 = vpack.c.bf16 %v6867_v50, %v6866_v38  ;;  %v16716_v39 = vsub.f32 %v16547_v5, %v16620_v53  ;;  %v10653_v62 = vpack.c.bf16 %v6885_v42, %v6884_v15  ;;  %v6886_v4 = vmul.f32 %v16684_v29, %v16684_v29 }
0x161a   : > { %10650 = vmatprep.subr.bf16.mxu1 %v10649_v49  ;;  %v6887_v49 = vmul.f32 %v16692_v55, %v16692_v55  ;;  %v16724_v8 = vsub.f32 %v16551_v20, %v16620_v53  ;;  %v16728_v26 = vsub.f32 %v16541_v6, %v16620_v53  ;;  %v16732_v38 = vsub.f32 %v16564_v41, %v16620_v53 }
0x161b   : > { %v6870_v5 = vmul.f32 %v16700_v54, %v16700_v54  ;;  %v6871_v50 = vmul.f32 %v16704_v60, %v16704_v60  ;;  %v10655_v15 = vpack.c.bf16 %v6869_v30, %v6868_v63  ;;  %v16740_v20 = vsub.f32 %v16567_v35, %v16620_v53 }
0x161c   : > { %v10657_v42 = vpack.c.bf16 %v6887_v49, %v6886_v4  ;;  %v6888_v6 = vmul.f32 %v16708_v23, %v16708_v23  ;;  %v6842_v41 = vsub.f32 %v16571_v28, %v16620_v53  ;;  %v16752_v63 = vsub.f32 %v16584_v3, %v16620_v53 }
0x161d   : > { %10652 = vmatpush3.bf16.msra.mxu1 %v10651_v33  ;;  %v6889_v33 = vmul.f32 %v16716_v39, %v16716_v39  ;;  %v6872_v35 = vmul.f32 %v16724_v8, %v16724_v8  ;;  %v6873_v30 = vmul.f32 %v16728_v26, %v16728_v26  ;;  %v10659_v4 = vpack.c.bf16 %v6871_v50, %v6870_v5 }
0x161e   : > { %10654 = vmatprep.subr.bf16.mxu1 %v10653_v62  ;;  %v6843_v62 = vsub.f32 %v16561_v9, %v16620_v53  ;;  %v16760_v49 = vsub.f32 %v16587_v52, %v16620_v53  ;;  %v6890_v9 = vmul.f32 %v16732_v38, %v16732_v38  ;;  %v6844_v3 = vsub.f32 %v16591_v24, %v16620_v53 }
0x161f   : > { %v10661_v28 = vpack.c.bf16 %v6889_v33, %v6888_v6  ;;  %v16772_v5 = vsub.f32 %v16604_v51, %v16620_v53  ;;  %v6874_v52 = vmul.f32 %v6842_v41, %v6842_v41  ;;  %v10663_v6 = vpack.c.bf16 %v6873_v30, %v6872_v35 }
0x1620   : > { %v6875_v50 = vmul.f32 %v6843_v62, %v6843_v62  ;;  %v16776_v33 = vsub.f32 %v16607_v18, %v16620_v53  ;;  %v6893_v24 = vmul.f32 %v16760_v49, %v16760_v49  ;;  %v6847_v51 = vsub.f32 %v16601_v1, %v16620_v53 }
0x1621   : > { %10656 = vmatpush3.bf16.msra.mxu1 %v10655_v15  ;;  %v6891_v15 = vmul.f32 %v16740_v20, %v16740_v20  ;;  %v6876_v35 = vmul.f32 %v6844_v3, %v6844_v3 }
0x1622   : > { %10658 = vmatprep.subr.bf16.mxu1 %v10657_v42  ;;  %v6845_v42 = vsub.f32 %v16581_v47, %v16620_v53  ;;  %v6846_v47 = vsub.f32 %v16611_v19, %v16620_v53  ;;  %v10667_v18 = vpack.c.bf16 %v6875_v50, %v6874_v52  ;;  %v6879_v58 = vmul.f32 %v6847_v51, %v6847_v51  ;;  %v12171_v53 = vld [vmem:[%s13890_s21 + $0x8] sm:$0xff] }
0x1623   : > { %v10665_v10 = vpack.c.bf16 %v6891_v15, %v6890_v9  ;;  %v6894_v9 = vmul.f32 %v16772_v5, %v16772_v5  ;;  %v6895_v15 = vmul.f32 %v16776_v33, %v16776_v33 }
0x1624   : > { %v6877_v30 = vmul.f32 %v6845_v42, %v6845_v42 }
0x1625   : > { %10660 = vmatpush3.bf16.msra.mxu1 %v10659_v4  ;;  %v6892_v4 = vmul.f32 %v16752_v63, %v16752_v63 }
0x1626   : > { %10662 = vmatprep.subr.bf16.mxu1 %v10661_v28  ;;  %v10671_v19 = vpack.c.bf16 %v6877_v30, %v6876_v35 }
0x1627   : > { %v10669_v28 = vpack.c.bf16 %v6893_v24, %v6892_v4 }
0x1629   : > { %10664 = vmatpush3.bf16.msra.mxu1 %v10663_v6  ;;  %v6878_v6 = vmul.f32 %v6846_v47, %v6846_v47 }
0x162a   : > { %10666 = vmatprep.subr.bf16.mxu1 %v10665_v10  ;;  %v10673_v10 = vpack.c.bf16 %v6895_v15, %v6894_v9 }
0x162b   : > { %v10675_v1 = vpack.c.bf16 %v6879_v58, %v6878_v6 }
0x162d   : > { %10668 = vmatpush3.bf16.msra.mxu1 %v10667_v18 }
0x162e   : > { %10670 = vmatprep.subr.bf16.mxu1 %v10669_v28 }
0x1631   : > { %10672 = vmatpush3.bf16.msra.mxu1 %v10671_v19 }
0x1632   : > { %10674 = vmatprep.subr.bf16.mxu1 %v10673_v10 }
0x1635   : > { %10676 = vmatpush3.bf16.msra.mxu1 %v10675_v1 }
0x1638   : > { %6961 = vmatmul.mubr.f32.vlgmr.msra.gmra.mrb[202].mxu1 %v18551_v16 }
0x1639   : > { %7941 = vmatprep.mubr.f32.mxu1 %v12171_v53 }
0x170b   : > { %v9514_v52 = vpop.f32.mrb[202].mxu1 }
0x170c   : > { %v9515_v50 = vpop.f32.mrb[203].mxu1 }
0x170d   : > { %v9516_v4 = vadd.f32 %v9515_v50, %v9514_v52 }
0x170f   : > { %v6966_v24 = vmul.f32 0.00390625, %v9516_v4 }
0x1711   : > { %v6967_v43 = vadd.f32 1e-05, %v6966_v24 }
0x1713   : > { %11670 = vrsqrt.f32 %v6967_v43 }
0x171d   : > { %v11671_v18 = vpop.eup %11670 }
0x171e   : > { %v16793_v28 = vrot.slane %v11671_v18, %v18552_v34 }
0x1720   : > { %v6975_v35 = vmul.f32 %v16793_v28, %v16652_v46  ;;  %v6976_v58 = vmul.f32 %v16793_v28, %v16656_v17  ;;  %v6977_v30 = vmul.f32 %v16793_v28, %v16676_v14  ;;  %v6978_v9 = vmul.f32 %v16793_v28, %v16680_v12 }
0x1721   : > { %v6979_v15 = vmul.f32 %v16793_v28, %v16700_v54  ;;  %v6980_v43 = vmul.f32 %v16793_v28, %v16704_v60  ;;  %v6981_v6 = vmul.f32 %v16793_v28, %v16724_v8  ;;  %v6982_v46 = vmul.f32 %v16793_v28, %v16728_v26  ;;  %v16819_v54 = vld [vmem:[%s17941_s0 + $0xc] ss:$0 sm:$0xff] }
0x1722   : > { %v6983_v17 = vmul.f32 %v16793_v28, %v6842_v41  ;;  %v6984_v19 = vmul.f32 %v16793_v28, %v6843_v62  ;;  %v6985_v14 = vmul.f32 %v16793_v28, %v6844_v3  ;;  %v6990_v12 = vmul.f32 %v16793_v28, %v16636_v25 }
0x1723   : > { %v6986_v60 = vmul.f32 %v16793_v28, %v6845_v42  ;;  %v6987_v8 = vmul.f32 %v16793_v28, %v6846_v47  ;;  %v6988_v26 = vmul.f32 %v16793_v28, %v6847_v51  ;;  %v6989_v41 = vmul.f32 %v16793_v28, %v16632_v7  ;;  %v16837_v42 = vld [vmem:[%s17941_s0 + $0xd] ss:$0 sm:$0xff] }
0x1724   : > { %v6993_v62 = vmul.f32 %v16793_v28, %v16660_v21  ;;  %v6994_v25 = vmul.f32 %v16793_v28, %v16664_v40  ;;  %v6995_v3 = vmul.f32 %v16793_v28, %v16684_v29  ;;  %v6996_v10 = vmul.f32 %v16793_v28, %v16692_v55 }
0x1725   : > { %v6997_v7 = vmul.f32 %v16793_v28, %v16708_v23  ;;  %v6998_v21 = vmul.f32 %v16793_v28, %v16716_v39  ;;  %v6999_v40 = vmul.f32 %v16793_v28, %v16732_v38  ;;  %v7000_v29 = vmul.f32 %v16793_v28, %v16740_v20 }
0x1726   : > { %v7001_v55 = vmul.f32 %v16793_v28, %v16752_v63  ;;  %v7002_v47 = vmul.f32 %v16793_v28, %v16760_v49  ;;  %v7026_v51 = vmul.f32 %v16819_v54, %v6990_v12  ;;  %v7011_v1 = vmul.f32 %v16819_v54, %v6975_v35 }
0x1727   : > { %v7012_v23 = vmul.f32 %v16819_v54, %v6976_v58  ;;  %v7013_v39 = vmul.f32 %v16819_v54, %v6977_v30  ;;  %v7014_v53 = vmul.f32 %v16819_v54, %v6978_v9  ;;  %v7015_v38 = vmul.f32 %v16819_v54, %v6979_v15 }
0x1728   : > { %v16858_v20 = vadd.f32 %v16837_v42, %v7026_v51  ;;  %v7016_v63 = vmul.f32 %v16819_v54, %v6980_v43  ;;  %v7017_v52 = vmul.f32 %v16819_v54, %v6981_v6  ;;  %v7018_v49 = vmul.f32 %v16819_v54, %v6982_v46 }
0x1729   : > { %v7019_v50 = vmul.f32 %v16819_v54, %v6983_v17  ;;  %v7020_v4 = vmul.f32 %v16819_v54, %v6984_v19  ;;  %v7021_v24 = vmul.f32 %v16819_v54, %v6985_v14  ;;  %v7022_v18 = vmul.f32 %v16819_v54, %v6986_v60 }
0x172a   : > { %18553 = vst [vmem:[#allocation26_spill] sm:$0xff] %v16858_v20  ;;  %v7003_v35 = vmul.f32 %v16793_v28, %v16772_v5  ;;  %v7286_v58 = vand.u32 2147483647, %v16858_v20  ;;  %v7023_v30 = vmul.f32 %v16819_v54, %v6987_v8  ;;  %v7024_v9 = vmul.f32 %v16819_v54, %v6988_v26 }
0x172b   : > { %v6974_v15 = vmul.f32 %v16793_v28, %v16628_v31  ;;  %v7004_v43 = vmul.f32 %v16793_v28, %v16776_v33  ;;  %v7025_v6 = vmul.f32 %v16819_v54, %v6989_v41  ;;  %v7029_v46 = vmul.f32 %v16819_v54, %v6993_v62 }
0x172c   : > { %v7318_v17 = vsub.f32 0.0, %v7286_v58  ;;  %v7030_v19 = vmul.f32 %v16819_v54, %v6994_v25  ;;  %v7031_v5 = vmul.f32 %v16819_v54, %v6995_v3  ;;  %v7032_v14 = vmul.f32 %v16819_v54, %v6996_v10 }
0x172d   : > { %v7033_v12 = vmul.f32 %v16819_v54, %v6997_v7  ;;  %v7034_v60 = vmul.f32 %v16819_v54, %v6998_v21  ;;  %v7035_v31 = vmul.f32 %v16819_v54, %v6999_v40  ;;  %v7036_v8 = vmul.f32 %v16819_v54, %v7000_v29 }
0x172e   : > { %v7367_v33 = vmul.f32 1.442695, %v7318_v17  ;;  %v7037_v26 = vmul.f32 %v16819_v54, %v7001_v55  ;;  %v7038_v41 = vmul.f32 %v16819_v54, %v7002_v47  ;;  %v7039_v62 = vmul.f32 %v16819_v54, %v7003_v35 }
0x172f   : > { %v7040_v25 = vmul.f32 %v16819_v54, %v7004_v43  ;;  %v16890_v3 = vadd.f32 %v16837_v42, %v7025_v6  ;;  %v16893_v10 = vadd.f32 %v16837_v42, %v7011_v1  ;;  %v16896_v7 = vadd.f32 %v16837_v42, %v7012_v23 }
0x1730   : > { %11672 = vpow2.f32 %v7367_v33  ;;  %v7010_v21 = vmul.f32 %v16819_v54, %v6974_v15  ;;  %v16901_v29 = vadd.f32 %v16837_v42, %v7013_v39  ;;  %v16904_v55 = vadd.f32 %v16837_v42, %v7014_v53 }
0x1731   : > { %18554 = vst [vmem:[#allocation27_spill] sm:$0xff] %v16890_v3  ;;  %v7285_v40 = vand.u32 2147483647, %v16890_v3  ;;  %v16907_v47 = vadd.f32 %v16837_v42, %v7015_v38  ;;  %v16910_v51 = vadd.f32 %v16837_v42, %v7016_v63  ;;  %v16913_v1 = vadd.f32 %v16837_v42, %v7017_v52 }
0x1732   : > { %v16916_v23 = vadd.f32 %v16837_v42, %v7018_v49  ;;  %v16919_v58 = vadd.f32 %v16837_v42, %v7019_v50  ;;  %v16922_v39 = vadd.f32 %v16837_v42, %v7020_v4  ;;  %v16925_v53 = vadd.f32 %v16837_v42, %v7021_v24 }
0x1733   : > { %v7317_v35 = vsub.f32 0.0, %v7285_v40  ;;  %v16928_v38 = vadd.f32 %v16837_v42, %v7022_v18  ;;  %v16931_v63 = vadd.f32 %v16837_v42, %v7023_v30  ;;  %v16934_v52 = vadd.f32 %v16837_v42, %v7024_v9 }
0x1734   : > { %18555 = vst [vmem:[#allocation28_spill] sm:$0xff] %v16919_v58  ;;  %18556 = vst [vmem:[#allocation29_spill] sm:$0xff] %v16922_v39  ;;  %v16937_v15 = vadd.f32 %v16837_v42, %v7010_v21  ;;  %v16940_v50 = vadd.f32 %v16837_v42, %v7029_v46  ;;  %v16943_v4 = vadd.f32 %v16837_v42, %v7030_v19  ;;  %v7280_v0 = vand.u32 2147483647, %v16922_v39 }
0x1735   : > { %18557 = vst [vmem:[#allocation30_spill] sm:$0xff] %v16925_v53  ;;  %18558 = vst [vmem:[#allocation31_spill] sm:$0xff] %v16928_v38  ;;  %v7365_v49 = vmul.f32 1.442695, %v7317_v35  ;;  %v16946_v24 = vadd.f32 %v16837_v42, %v7031_v5  ;;  %v16949_v18 = vadd.f32 %v16837_v42, %v7032_v14  ;;  %v16952_v30 = vadd.f32 %v16837_v42, %v7033_v12 }
0x1736   : > { %18559 = vst [vmem:[#allocation32_spill] sm:$0xff] %v16931_v63  ;;  %18560 = vst [vmem:[#allocation33_spill] sm:$0xff] %v16934_v52  ;;  %v16955_v9 = vadd.f32 %v16837_v42, %v7034_v60  ;;  %v16958_v43 = vadd.f32 %v16837_v42, %v7035_v31  ;;  %v16961_v6 = vadd.f32 %v16837_v42, %v7036_v8  ;;  %v7270_v14 = vand.u32 2147483647, %v16937_v15 }
0x1737   : > { %18561 = vst [vmem:[#allocation34_spill] sm:$0xff] %v16937_v15  ;;  %11674 = vpow2.f32 %v7365_v49  ;;  %v16964_v46 = vadd.f32 %v16837_v42, %v7037_v26  ;;  %v16967_v17 = vadd.f32 %v16837_v42, %v7038_v41  ;;  %v16970_v19 = vadd.f32 %v16837_v42, %v7039_v62 }
0x1738   : > { %18562 = vst [vmem:[#allocation35_spill] sm:$0xff] %v16958_v43  ;;  %18563 = vst [vmem:[#allocation36_spill] sm:$0xff] %v16961_v6  ;;  %v16973_v5 = vadd.f32 %v16837_v42, %v7040_v25  ;;  %v7302_v31 = vsub.f32 0.0, %v7270_v14  ;;  %v6973_v33 = vmul.f32 %v16793_v28, %v16624_v11  ;;  %v6991_v25 = vmul.f32 %v16793_v28, %v16640_v56 }
0x1739   : > { %18564 = vst [vmem:[#allocation37_spill] sm:$0xff] %v16964_v46  ;;  %18565 = vst [vmem:[#allocation38_spill] sm:$0xff] %v16967_v17  ;;  %v6992_v35 = vmul.f32 %v16793_v28, %v16644_v59  ;;  %v7253_v28 = vmax.f32 %v16890_v3, 0.0  ;;  %v7281_v32 = vand.u32 2147483647, %v16925_v53 }
0x173a   : > { %18566 = vst [vmem:[#allocation39_spill] sm:$0xff] %v16970_v19  ;;  %18567 = vst [vmem:[#allocation60_spill] sm:$0xff] %v16973_v5  ;;  %v11673_v12 = vpop.eup %11672  ;;  %v7335_v8 = vmul.f32 1.442695, %v7302_v31  ;;  %v7009_v62 = vmul.f32 %v16819_v54, %v6973_v33  ;;  %v7254_v33 = vmax.f32 %v16858_v20, 0.0 }
0x173b   : > { %v7550_v60 = vadd.f32 1.0, %v11673_v12  ;;  %v7553_v26 = vmul.f32 -0.5, %v11673_v12  ;;  %v7556_v49 = vand.u32 2147483647, %v11673_v12  ;;  %v7028_v56 = vmul.f32 %v16819_v54, %v6992_v35 }
0x173c   : > { %v16984_v11 = vadd.f32 %v16837_v42, %v7009_v62  ;;  %v7274_v35 = vand.u32 2147483647, %v16904_v55  ;;  %v7282_v36 = vand.u32 2147483647, %v16928_v38  ;;  %v7284_v22 = vand.u32 2147483647, %v16934_v52 }
0x173d   : > { %11676 = vlog2.f32 %v7550_v60  ;;  %v7554_v40 = vadd.f32 1.0, %v7553_v26  ;;  %vm7557_vm3 = vcmp.lt.f32.partialorder %v7556_v49, 0.0004427343  ;;  %v7027_v26 = vmul.f32 %v16819_v54, %v6991_v25 }
0x173e   : > { %11678 = vpow2.f32 %v7335_v8  ;;  %18568 = vst [vmem:[#allocation61_spill] sm:$0xff] %v16984_v11  ;;  %v7272_v25 = vand.u32 2147483647, %v16896_v7  ;;  %v7275_v49 = vand.u32 2147483647, %v16907_v47  ;;  %v7238_v38 = vmax.f32 %v16937_v15, 0.0 }
0x173f   : > { %v7555_v45 = vmul.f32 %v11673_v12, %v7554_v40  ;;  %v7269_v12 = vand.u32 2147483647, %v16984_v11  ;;  %v7271_v40 = vand.u32 2147483647, %v16893_v10  ;;  %v17001_v54 = vadd.f32 %v16837_v42, %v7027_v26 }
0x1740   : > { %v7279_v26 = vand.u32 2147483647, %v16919_v58  ;;  %v7289_v16 = vand.u32 2147483647, %v16940_v50  ;;  %v7290_v62 = vand.u32 2147483647, %v16943_v4 }
0x1741   : > { %v11675_v41 = vpop.eup %11674  ;;  %18571 = vst [vmem:[#allocation62_spill] sm:$0xff] %v17001_v54  ;;  %v7301_v44 = vsub.f32 0.0, %v7269_v12  ;;  %v7293_v12 = vand.u32 2147483647, %v16952_v30  ;;  %v7298_v20 = vand.u32 2147483647, %v16967_v17 }
0x1742   : > { %v7541_v21 = vadd.f32 1.0, %v11675_v41  ;;  %v7544_v60 = vmul.f32 -0.5, %v11675_v41  ;;  %v7547_v31 = vand.u32 2147483647, %v11675_v41  ;;  %v7303_v53 = vsub.f32 0.0, %v7271_v40 }
0x1743   : > { %v7333_v61 = vmul.f32 1.442695, %v7301_v44  ;;  %v7296_v44 = vand.u32 2147483647, %v16961_v6  ;;  %v7299_v58 = vand.u32 2147483647, %v16970_v19 }
0x1744   : > { %11680 = vlog2.f32 %v7541_v21  ;;  %v7545_v27 = vadd.f32 1.0, %v7544_v60  ;;  %vm16991_vm4 = vcmp.lt.f32.partialorder %v7547_v31, 0.0004427343  ;;  %v7300_v39 = vand.u32 2147483647, %v16973_v5 }
0x1745   : > { %v7337_v15 = vmul.f32 1.442695, %v7303_v53  ;;  %v7311_v19 = vsub.f32 0.0, %v7279_v26  ;;  %v7312_v5 = vsub.f32 0.0, %v7280_v0  ;;  %v7313_v34 = vsub.f32 0.0, %v7281_v32 }
0x1746   : > { %v7316_v3 = vsub.f32 0.0, %v7284_v22  ;;  %v7328_v26 = vsub.f32 0.0, %v7296_v44  ;;  %v7330_v22 = vsub.f32 0.0, %v7298_v20 }
0x1747   : > { %v11677_v14 = vpop.eup %11676 }
0x1748   : > { %v7552_v8 = vmul.f32 0.6931472, %v11677_v14  ;;  %v11679_v2 = vpop.eup %11678  ;;  %v7276_v14 = vand.u32 2147483647, %v16910_v51 }
0x1749   : > { %v7406_v37 = vadd.f32 1.0, %v11679_v2  ;;  %v7409_v31 = vmul.f32 -0.5, %v11679_v2  ;;  %v7412_v59 = vand.u32 2147483647, %v11679_v2 }
0x174a   : > { %v7558_v21 = vsel %vm7557_vm3, %v7555_v45, %v7552_v8  ;;  %v7273_v45 = vand.u32 2147483647, %v16901_v29  ;;  %v7277_v8 = vand.u32 2147483647, %v16913_v1 }
0x174b   : > { %v7702_v48 = vadd.f32 %v7558_v21, %v7254_v33  ;;  %11682 = vlog2.f32 %v7406_v37  ;;  %v17007_v37 = vadd.f32 %v16837_v42, %v7028_v56  ;;  %v7278_v33 = vand.u32 2147483647, %v16916_v23 }
0x174c   : > { %v7283_v56 = vand.u32 2147483647, %v16931_v63  ;;  %vm17021_vm5 = vcmp.lt.f32.partialorder %v7412_v59, 0.0004427343  ;;  %v7295_v59 = vand.u32 2147483647, %v16958_v43  ;;  %11684 = vpow2.f32 %v7333_v61 }
0x174d   : > { %7783 = vrot.lane.b32.xlu1 %v7702_v48, %s18335_s16  ;;  %18572 = vst [vmem:[#allocation63_spill] sm:$0xff] %v17007_v37  ;;  %v7546_v48 = vmul.f32 %v11675_v41, %v7545_v27  ;;  %v7287_v27 = vand.u32 2147483647, %v17001_v54  ;;  %v7288_v41 = vand.u32 2147483647, %v17007_v37  ;;  %v7304_v61 = vsub.f32 0.0, %v7272_v25 }
0x174e   : > { %v11681_v60 = vpop.eup %11680  ;;  %v7305_v43 = vsub.f32 0.0, %v7273_v45  ;;  %v7309_v17 = vsub.f32 0.0, %v7277_v8  ;;  %v7310_v40 = vsub.f32 0.0, %v7278_v33  ;;  %v7321_v45 = vsub.f32 0.0, %v7289_v16 }
0x174f   : > { %v7543_v21 = vmul.f32 0.6931472, %v11681_v60  ;;  %v7410_v60 = vadd.f32 1.0, %v7409_v31  ;;  %v7294_v31 = vand.u32 2147483647, %v16955_v9  ;;  %v7320_v13 = vsub.f32 0.0, %v7288_v41 }
0x1750   : > { %v7319_v6 = vsub.f32 0.0, %v7287_v27  ;;  %v7339_v25 = vmul.f32 1.442695, %v7304_v61  ;;  %v7341_v8 = vmul.f32 1.442695, %v7305_v43  ;;  %v7327_v0 = vsub.f32 0.0, %v7295_v59 }
0x1751   : > { %v7549_v42 = vsel %vm16991_vm4, %v7546_v48, %v7543_v21  ;;  %v7291_v21 = vand.u32 2147483647, %v16946_v24  ;;  %v7411_v52 = vmul.f32 %v11679_v2, %v7410_v60  ;;  %v7308_v2 = vsub.f32 0.0, %v7276_v14 }
0x1752   : > { %v7701_v57 = vadd.f32 %v7549_v42, %v7253_v28  ;;  %v7292_v28 = vand.u32 2147483647, %v16949_v18  ;;  %v7371_v60 = vmul.f32 1.442695, %v7320_v13  ;;  %v7325_v13 = vsub.f32 0.0, %v7293_v12 }
0x1753   : > { %v7369_v33 = vmul.f32 1.442695, %v7319_v6  ;;  %v7326_v27 = vsub.f32 0.0, %v7294_v31  ;;  %v7347_v32 = vmul.f32 1.442695, %v7308_v2  ;;  %v7256_v43 = vmax.f32 %v17007_v37, 0.0 }
0x1754   : > { %7781 = vrot.lane.b32.xlu0 %v7701_v57, %s18335_s16  ;;  %v7297_v57 = vand.u32 2147483647, %v16964_v46  ;;  %v7306_v46 = vsub.f32 0.0, %v7274_v35  ;;  %11686 = vpow2.f32 %v7371_v60  ;;  %v7322_v35 = vsub.f32 0.0, %v7290_v62 }
0x1755   : > { %v11683_v48 = vpop.eup %11682  ;;  %11688 = vpow2.f32 %v7337_v15  ;;  %v7349_v62 = vmul.f32 1.442695, %v7309_v17  ;;  %v7351_v15 = vmul.f32 1.442695, %v7310_v40  ;;  %v7357_v31 = vmul.f32 1.442695, %v7313_v34 }
0x1756   : > { %v7408_v63 = vmul.f32 0.6931472, %v11683_v48  ;;  %v7307_v48 = vsub.f32 0.0, %v7275_v49  ;;  %v7324_v49 = vsub.f32 0.0, %v7292_v28  ;;  %v11685_v14 = vpop.eup %11684  ;;  %11690 = vpow2.f32 %v7339_v25 }
0x1757   : > { %v7397_v53 = vadd.f32 1.0, %v11685_v14  ;;  %11692 = vpow2.f32 %v7369_v33  ;;  %v7400_v16 = vmul.f32 -0.5, %v11685_v14  ;;  %v7403_v6 = vand.u32 2147483647, %v11685_v14 }
0x1758   : > { %v7414_v42 = vsel %vm17021_vm5, %v7411_v52, %v7408_v63  ;;  %v7314_v63 = vsub.f32 0.0, %v7282_v36  ;;  %v7315_v52 = vsub.f32 0.0, %v7283_v56  ;;  %v7345_v61 = vmul.f32 1.442695, %v7307_v48 }
0x1759   : > { %v7686_v41 = vadd.f32 %v7414_v42, %v7238_v38  ;;  %v7323_v38 = vsub.f32 0.0, %v7291_v21  ;;  %v7343_v42 = vmul.f32 1.442695, %v7306_v46  ;;  %11694 = vlog2.f32 %v7397_v53 }
0x175a   : > { %v7329_v36 = vsub.f32 0.0, %v7297_v57  ;;  %v7331_v56 = vsub.f32 0.0, %v7299_v58  ;;  %11696 = vpow2.f32 %v7341_v8  ;;  %v7332_v21 = vsub.f32 0.0, %v7300_v39 }
0x175b   : > { %7751 = vrot.lane.b32.xlu1 %v7686_v41, %s18335_s16  ;;  %11698 = vpow2.f32 %v7343_v42  ;;  %v7353_v46 = vmul.f32 1.442695, %v7311_v19  ;;  %v7355_v28 = vmul.f32 1.442695, %v7312_v5  ;;  %v7359_v59 = vmul.f32 1.442695, %v7314_v63 }
0x175c   : > { %11700 = vpow2.f32 %v7345_v61  ;;  %v7361_v44 = vmul.f32 1.442695, %v7315_v52  ;;  %v7401_v20 = vadd.f32 1.0, %v7400_v16  ;;  %v7363_v17 = vmul.f32 1.442695, %v7316_v3 }
0x175d   : > { %11702 = vpow2.f32 %v7347_v32  ;;  %v7373_v39 = vmul.f32 1.442695, %v7321_v45  ;;  %v7375_v57 = vmul.f32 1.442695, %v7322_v35  ;;  %v7377_v41 = vmul.f32 1.442695, %v7323_v38 }
0x175e   : > { %v17045_v12 = vpop.eup %11686  ;;  %11704 = vpow2.f32 %v7349_v62  ;;  %vm17050_vm7 = vcmp.lt.f32.partialorder %v7403_v6, 0.0004427343  ;;  %v7379_v5 = vmul.f32 1.442695, %v7324_v49  ;;  %v7381_v2 = vmul.f32 1.442695, %v7325_v13 }
0x175f   : > { %v7568_v58 = vadd.f32 1.0, %v17045_v12  ;;  %11706 = vpow2.f32 %v7351_v15  ;;  %v17048_v48 = vpop.eup %11688  ;;  %v17056_v40 = vmul.f32 1.442695, %v7326_v27  ;;  %v17058_v25 = vmul.f32 1.442695, %v7327_v0 }
0x1760   : > { %v17054_v60 = vpop.eup %11690  ;;  %v17060_v3 = vmul.f32 1.442695, %v7328_v26  ;;  %v7402_v63 = vmul.f32 %v11685_v14, %v7401_v20  ;;  %v7571_v52 = vmul.f32 -0.5, %v17045_v12  ;;  %v17065_v45 = vmul.f32 1.442695, %v7329_v36 }
0x1761   : > { %11708 = vlog2.f32 %v7568_v58  ;;  %v17062_v34 = vpop.eup %11692  ;;  %v17067_v38 = vmul.f32 1.442695, %v7330_v22  ;;  %v17069_v49 = vmul.f32 1.442695, %v7331_v56  ;;  %v17074_v53 = vmul.f32 1.442695, %v7332_v21 }
0x1762   : > { %11710 = vpow2.f32 %v7353_v46  ;;  %v7559_v13 = vadd.f32 1.0, %v17062_v34  ;;  %v7255_v14 = vmax.f32 %v17001_v54, 0.0  ;;  %v7574_v42 = vand.u32 2147483647, %v17045_v12 }
0x1763   : > { %11712 = vpow2.f32 %v7355_v28  ;;  %v11695_v35 = vpop.eup %11694  ;;  %v7572_v22 = vadd.f32 1.0, %v7571_v52  ;;  %v7418_v32 = vmul.f32 -0.5, %v17048_v48  ;;  %v18577_v56 = vmax.f32 %v16984_v11, 0.0 }
0x1764   : > { %11714 = vpow2.f32 %v7357_v31  ;;  %v17072_v8 = vpop.eup %11696  ;;  %v7399_v33 = vmul.f32 0.6931472, %v11695_v35  ;;  %v7562_v21 = vmul.f32 -0.5, %v17062_v34  ;;  %v7427_v15 = vmul.f32 -0.5, %v17054_v60 }
0x1765   : > { %11716 = vpow2.f32 %v7359_v59  ;;  %v17077_v27 = vpop.eup %11698  ;;  %vm17101_vm8 = vcmp.lt.f32.partialorder %v7574_v42, 0.0004427343  ;;  %v7415_v20 = vadd.f32 1.0, %v17048_v48  ;;  %v7421_v58 = vand.u32 2147483647, %v17048_v48 }
0x1766   : > { %11718 = vlog2.f32 %v7559_v13  ;;  %v17082_v61 = vpop.eup %11700  ;;  %v7405_v36 = vsel %vm17050_vm7, %v7402_v63, %v7399_v33  ;;  %v7565_v19 = vand.u32 2147483647, %v17062_v34  ;;  %v7419_v63 = vadd.f32 1.0, %v7418_v32 }
0x1767   : > { %11720 = vpow2.f32 %v7361_v44  ;;  %v17087_v16 = vpop.eup %11702  ;;  %v7685_v62 = vadd.f32 %v7405_v36, %v18577_v56  ;;  %v7563_v13 = vadd.f32 1.0, %v7562_v21  ;;  %v7428_v33 = vadd.f32 1.0, %v7427_v15 }
0x1768   : > { %11722 = vpow2.f32 %v7363_v17  ;;  %v17093_v6 = vpop.eup %11704  ;;  %v7445_v36 = vmul.f32 -0.5, %v17077_v27  ;;  %v7436_v56 = vmul.f32 -0.5, %v17072_v8  ;;  %vm17127_vm9 = vcmp.lt.f32.partialorder %v7565_v19, 0.0004427343 }
0x1769   : > { %11724 = vpow2.f32 %v7373_v39  ;;  %v17098_v59 = vpop.eup %11706  ;;  %7749 = vrot.lane.b32.xlu0 %v7685_v62, %s18335_s16  ;;  %v7573_v39 = vmul.f32 %v17045_v12, %v7572_v22  ;;  %v7430_v22 = vand.u32 2147483647, %v17054_v60  ;;  %v17133_v21 = vmul.f32 %v17048_v48, %v7419_v63 }
0x176a   : > { %11726 = vpow2.f32 %v7375_v57  ;;  %v7424_v57 = vadd.f32 1.0, %v17054_v60  ;;  %v17138_v44 = vmul.f32 %v17054_v60, %v7428_v33  ;;  %v7437_v19 = vadd.f32 1.0, %v7436_v56 }
0x176b   : > { %v11709_v17 = vpop.eup %11708  ;;  %11728 = vpow2.f32 %v7377_v41  ;;  %v7433_v60 = vadd.f32 1.0, %v17072_v8  ;;  %vm17183_vm10 = vcmp.lt.f32.partialorder %v7430_v22, 0.0004427343  ;;  %v7451_v31 = vadd.f32 1.0, %v17082_v61 }
0x176c   : > { %v17109_v52 = vpop.eup %11710  ;;  %v7570_v35 = vmul.f32 0.6931472, %v11709_v17  ;;  %11730 = vpow2.f32 %v7379_v5  ;;  %v7442_v17 = vadd.f32 1.0, %v17077_v27  ;;  %vm17194_vm11 = vcmp.lt.f32.partialorder %v7421_v58, 0.0004427343 }
0x176d   : > { %v17111_v42 = vpop.eup %11712  ;;  %11732 = vpow2.f32 %v7381_v2 }
0x176e   : > { %v17116_v12 = vpop.eup %11714  ;;  %v7576_v41 = vsel %vm17101_vm8, %v7573_v39, %v7570_v35  ;;  %11734 = vpow2.f32 %v17056_v40  ;;  %v7564_v40 = vmul.f32 %v17062_v34, %v7563_v13 }
0x176f   : > { %v17123_v32 = vpop.eup %11716  ;;  %v7704_v2 = vadd.f32 %v7576_v41, %v7256_v43  ;;  %11736 = vpow2.f32 %v17058_v25  ;;  %v7446_v25 = vadd.f32 1.0, %v7445_v36  ;;  %v7463_v41 = vmul.f32 -0.5, %v17087_v16 }
0x1770   : > { %v11719_v15 = vpop.eup %11718  ;;  %11738 = vpow2.f32 %v17060_v3 }
0x1771   : > { %v17141_v43 = vpop.eup %11720  ;;  %7787 = vrot.lane.b32.xlu1 %v7704_v2, %s18335_s16  ;;  %v7561_v39 = vmul.f32 0.6931472, %v11719_v15  ;;  %11740 = vpow2.f32 %v17065_v45  ;;  %v17163_v15 = vmul.f32 %v17077_v27, %v7446_v25 }
0x1772   : > { %18582 = vst [vmem:[#allocation64_spill] sm:$0xff] %v17141_v43  ;;  %v17145_v63 = vpop.eup %11722  ;;  %11742 = vpow2.f32 %v17067_v38 }
0x1773   : > { %18583 = vst [vmem:[#allocation65_spill] sm:$0xff] %v17145_v63  ;;  %v11725_v35 = vpop.eup %11724  ;;  %v7567_v13 = vsel %vm17127_vm9, %v7564_v40, %v7561_v39  ;;  %11744 = vpow2.f32 %v17069_v49  ;;  %v17166_v49 = vmul.f32 %v17072_v8, %v7437_v19  ;;  %v7460_v39 = vadd.f32 1.0, %v17087_v16 }
0x1774   : > { %v11727_v36 = vpop.eup %11726  ;;  %v7703_v38 = vadd.f32 %v7567_v13, %v7255_v14  ;;  %11746 = vpow2.f32 %v17074_v53  ;;  %v7577_v56 = vadd.f32 1.0, %v11725_v35  ;;  %v7580_v14 = vmul.f32 -0.5, %v11725_v35 }
0x1775   : > { %v17160_v2 = vpop.eup %11728  ;;  %11748 = vlog2.f32 %v7424_v57  ;;  %v7586_v62 = vadd.f32 1.0, %v11727_v36  ;;  %v7589_v57 = vmul.f32 -0.5, %v11727_v36  ;;  %v7583_v33 = vand.u32 2147483647, %v11725_v35 }
0x1776   : > { %v17168_v40 = vpop.eup %11730  ;;  %7785 = vrot.lane.b32.xlu0 %v7703_v38, %s18335_s16  ;;  %11750 = vlog2.f32 %v7415_v20  ;;  %v7595_v45 = vadd.f32 1.0, %v17160_v2  ;;  %v7464_v38 = vadd.f32 1.0, %v7463_v41  ;;  %v7454_v20 = vmul.f32 -0.5, %v17082_v61 }
0x1777   : > { %v17173_v13 = vpop.eup %11732  ;;  %11752 = vlog2.f32 %v7586_v62  ;;  %v7604_v25 = vadd.f32 1.0, %v17168_v40  ;;  %v7592_v41 = vand.u32 2147483647, %v11727_v36  ;;  %v7581_v22 = vadd.f32 1.0, %v7580_v14 }
0x1778   : > { %v17177_v19 = vpop.eup %11734  ;;  %11754 = vlog2.f32 %v7577_v56  ;;  %v7607_v48 = vmul.f32 -0.5, %v17168_v40  ;;  %v17206_v58 = vmul.f32 %v17087_v16, %v7464_v38  ;;  %v7455_v34 = vadd.f32 1.0, %v7454_v20 }
0x1779   : > { %v17181_v5 = vpop.eup %11736  ;;  %11756 = vlog2.f32 %v7442_v17  ;;  %v7590_v17 = vadd.f32 1.0, %v7589_v57  ;;  %v7622_v28 = vadd.f32 1.0, %v17177_v19  ;;  %v7613_v57 = vadd.f32 1.0, %v17173_v13 }
0x177a   : > { %v17190_v46 = vpop.eup %11738  ;;  %11758 = vlog2.f32 %v7433_v60  ;;  %vm17215_vm12 = vcmp.lt.f32.partialorder %v7592_v41, 0.0004427343  ;;  %vm17219_vm13 = vcmp.lt.f32.partialorder %v7583_v33, 0.0004427343  ;;  %v18594_v60 = vand.u32 2147483647, %v17077_v27 }
0x177b   : > { %v17198_v26 = vpop.eup %11740  ;;  %11760 = vlog2.f32 %v7604_v25  ;;  %v7610_v25 = vand.u32 2147483647, %v17168_v40  ;;  %v7478_v41 = vadd.f32 1.0, %v17098_v59  ;;  %v18597_v33 = vand.u32 2147483647, %v17072_v8 }
0x177c   : > { %v17202_v0 = vpop.eup %11742  ;;  %11762 = vlog2.f32 %v7595_v45  ;;  %v7582_v45 = vmul.f32 %v11725_v35, %v7581_v22  ;;  %vm17225_vm14 = vcmp.lt.f32.partialorder %v18594_v60, 0.0004427343  ;;  %v7598_v27 = vmul.f32 -0.5, %v17160_v2 }
0x177d   : > { %v17208_v14 = vpop.eup %11744  ;;  %11764 = vlog2.f32 %v7460_v39  ;;  %v7591_v39 = vmul.f32 %v11727_v36, %v7590_v17  ;;  %vm17233_vm15 = vcmp.lt.f32.partialorder %v18597_v33, 0.0004427343  ;;  %v7601_v60 = vand.u32 2147483647, %v17160_v2 }
0x177e   : > { %18588 = vst [vmem:[#allocation66_spill] sm:$0xff] %v17208_v14  ;;  %v17213_v62 = vpop.eup %11746  ;;  %11766 = vlog2.f32 %v7451_v31  ;;  %v7608_v31 = vadd.f32 1.0, %v7607_v48  ;;  %v7625_v33 = vmul.f32 -0.5, %v17177_v19  ;;  %v7616_v48 = vmul.f32 -0.5, %v17173_v13 }
0x177f   : > { %18589 = vst [vmem:[#allocation67_spill] sm:$0xff] %v17213_v62  ;;  %v11749_v20 = vpop.eup %11748  ;;  %11768 = vlog2.f32 %v7622_v28  ;;  %v17240_v28 = vmul.f32 %v17082_v61, %v7455_v34  ;;  %v18601_v53 = vmax.f32 %v16893_v10, 0.0  ;;  %vm17257_vm1 = vcmp.lt.f32.partialorder %v7610_v25, 0.0004427343 }
0x1780   : > { %v11751_v37 = vpop.eup %11750  ;;  %v7426_v35 = vmul.f32 0.6931472, %v11749_v20  ;;  %11770 = vlog2.f32 %v7613_v57  ;;  %v18600_v57 = vmax.f32 %v16896_v7, 0.0  ;;  %v7609_v3 = vmul.f32 %v17168_v40, %v7608_v31 }
0x1781   : > { %v11753_v36 = vpop.eup %11752  ;;  %v7417_v17 = vmul.f32 0.6931472, %v11751_v37  ;;  %11772 = vlog2.f32 %v7478_v41  ;;  %v7481_v41 = vmul.f32 -0.5, %v17098_v59  ;;  %v18610_v40 = vmax.f32 %v16943_v4, 0.0 }
0x1782   : > { %v11755_v11 = vpop.eup %11754  ;;  %v7432_v8 = vsel %vm17183_vm10, %v17138_v44, %v7426_v35  ;;  %v7588_v20 = vmul.f32 0.6931472, %v11753_v36  ;;  %v7617_v31 = vadd.f32 1.0, %v7616_v48  ;;  %vm17292_vm4 = vcmp.lt.f32.partialorder %v7601_v60, 0.0004427343 }
0x1783   : > { %v11757_v43 = vpop.eup %11756  ;;  %v7688_v37 = vadd.f32 %v7432_v8, %v18600_v57  ;;  %v7423_v34 = vsel %vm17194_vm11, %v17133_v21, %v7417_v17  ;;  %v7579_v63 = vmul.f32 0.6931472, %v11755_v11  ;;  %v18604_v8 = vand.u32 2147483647, %v17087_v16 }
0x1784   : > { %v11759_v14 = vpop.eup %11758  ;;  %v7687_v44 = vadd.f32 %v7423_v34, %v18601_v53  ;;  %v7594_v35 = vsel %vm17215_vm12, %v7591_v39, %v7588_v20  ;;  %v7444_v36 = vmul.f32 0.6931472, %v11757_v43  ;;  %v7599_v43 = vadd.f32 1.0, %v7598_v27 }
0x1785   : > { %vm17263_vm2 = vcmp.lt.f32.partialorder %v18604_v8, 0.0004427343  ;;  %v11761_v11 = vpop.eup %11760  ;;  %7755 = vrot.lane.b32.xlu1 %v7688_v37, %s18335_s16  ;;  %v7585_v21 = vsel %vm17219_vm13, %v7582_v45, %v7579_v63  ;;  %v7435_v17 = vmul.f32 0.6931472, %v11759_v14  ;;  %v18607_v39 = vand.u32 2147483647, %v17082_v61 }
0x1786   : > { %v11763_v25 = vpop.eup %11762  ;;  %7753 = vrot.lane.b32.xlu0 %v7687_v44, %s18335_s16  ;;  %v7626_v20 = vadd.f32 1.0, %v7625_v33  ;;  %v7628_v57 = vand.u32 2147483647, %v17177_v19  ;;  %v7619_v37 = vand.u32 2147483647, %v17173_v13  ;;  %v7469_v63 = vadd.f32 1.0, %v17093_v6 }
0x1787   : > { %vm17274_vm3 = vcmp.lt.f32.partialorder %v18607_v39, 0.0004427343  ;;  %v11765_v14 = vpop.eup %11764  ;;  %v7706_v45 = vadd.f32 %v7594_v35, %v18610_v40  ;;  %v7606_v38 = vmul.f32 0.6931472, %v11761_v11  ;;  %v7482_v27 = vadd.f32 1.0, %v7481_v41 }
0x1788   : > { %v11767_v34 = vpop.eup %11766  ;;  %v18611_v61 = vmax.f32 %v16940_v50, 0.0  ;;  %v7450_v33 = vsel %vm17225_vm14, %v17163_v15, %v7444_v36  ;;  %v7597_v44 = vmul.f32 0.6931472, %v11763_v25  ;;  %11774 = vlog2.f32 %v7469_v63 }
0x1789   : > { %v11769_v8 = vpop.eup %11768  ;;  %7791 = vrot.lane.b32.xlu1 %v7706_v45, %s18335_s16  ;;  %v7441_v35 = vsel %vm17233_vm15, %v17166_v49, %v7435_v17  ;;  %v7462_v41 = vmul.f32 0.6931472, %v11765_v14  ;;  %v7472_v11 = vmul.f32 -0.5, %v17093_v6  ;;  %v7600_v54 = vmul.f32 %v17160_v2, %v7599_v43 }
0x178a   : > { %v7705_v53 = vadd.f32 %v7585_v21, %v18611_v61  ;;  %v11771_v21 = vpop.eup %11770  ;;  %v7627_v15 = vmul.f32 %v17177_v19, %v7626_v20  ;;  %vm17300_vm5 = vcmp.lt.f32.partialorder %v7628_v57, 0.0004427343  ;;  %v7484_v49 = vand.u32 2147483647, %v17098_v59 }
0x178b   : > { %v11773_v22 = vpop.eup %11772  ;;  %v18616_v60 = vmax.f32 %v16904_v55, 0.0  ;;  %v7612_v25 = vsel %vm17257_vm1, %v7609_v3, %v7606_v38  ;;  %v7453_v39 = vmul.f32 0.6931472, %v11767_v34  ;;  %vm17309_vm7 = vcmp.lt.f32.partialorder %v7619_v37, 0.0004427343 }
0x178c   : > { %7789 = vrot.lane.b32.xlu0 %v7705_v53, %s18335_s16  ;;  %v18619_v2 = vmax.f32 %v16901_v29, 0.0  ;;  %v7603_v43 = vsel %vm17292_vm4, %v7600_v54, %v7597_v44  ;;  %v7618_v20 = vmul.f32 %v17173_v13, %v7617_v31  ;;  %v7483_v57 = vmul.f32 %v17098_v59, %v7482_v27 }
0x178d   : > { %v7690_v17 = vadd.f32 %v7450_v33, %v18616_v60  ;;  %v7468_v62 = vsel %vm17263_vm2, %v17206_v58, %v7462_v41  ;;  %v7624_v3 = vmul.f32 0.6931472, %v11769_v8  ;;  %v7473_v37 = vadd.f32 1.0, %v7472_v11 }
0x178e   : > { %v7689_v19 = vadd.f32 %v7441_v35, %v18619_v2  ;;  %v7640_v14 = vadd.f32 1.0, %v17190_v46  ;;  %v18620_v40 = vmax.f32 %v16949_v18, 0.0  ;;  %v7615_v38 = vmul.f32 0.6931472, %v11771_v21 }
0x178f   : > { %7759 = vrot.lane.b32.xlu1 %v7690_v17, %s18335_s16  ;;  %v7480_v34 = vmul.f32 0.6931472, %v11773_v22  ;;  %vm17327_vm8 = vcmp.lt.f32.partialorder %v7484_v49, 0.0004427343  ;;  %v7459_v59 = vsel %vm17274_vm3, %v17240_v28, %v7453_v39  ;;  %v7475_v58 = vand.u32 2147483647, %v17093_v6 }
0x1790   : > { %7757 = vrot.lane.b32.xlu0 %v7689_v19, %s18335_s16  ;;  %v7708_v45 = vadd.f32 %v7612_v25, %v18620_v40  ;;  %11776 = vlog2.f32 %v7640_v14  ;;  %v7631_v56 = vadd.f32 1.0, %v17181_v5  ;;  %v18623_v31 = vmax.f32 %v16946_v24, 0.0 }
0x1791   : > { %v18624_v61 = vmax.f32 %v16910_v51, 0.0  ;;  %v7245_v33 = vmax.f32 %v16913_v1, 0.0  ;;  %v7643_v44 = vmul.f32 -0.5, %v17190_v46  ;;  %v7630_v28 = vsel %vm17300_vm5, %v7627_v15, %v7624_v3 }
0x1792   : > { %v7707_v27 = vadd.f32 %v7603_v43, %v18623_v31  ;;  %v7474_v16 = vmul.f32 %v17093_v6, %v7473_v37  ;;  %11778 = vlog2.f32 %v7631_v56  ;;  %v7496_v8 = vadd.f32 1.0, %v17111_v42  ;;  %v11775_v35 = vpop.eup %11774 }
0x1793   : > { %v7692_v53 = vadd.f32 %v7468_v62, %v18624_v61  ;;  %7795 = vrot.lane.b32.xlu1 %v7708_v45, %s18335_s16  ;;  %v18625_v48 = vmax.f32 %v16907_v47, 0.0  ;;  %v7621_v11 = vsel %vm17309_vm7, %v7618_v20, %v7615_v38  ;;  %v7486_v21 = vsel %vm17327_vm8, %v7483_v57, %v7480_v34  ;;  %v18631_v20 = vld [vmem:[#allocation36_spill] sm:$0xff]  ;;  %v18632_v62 = vld [vmem:[#allocation35_spill] sm:$0xff]  ;;  %v18635_v45 = vld [vmem:[#allocation29_spill] sm:$0xff] }
0x1794   : > { %7793 = vrot.lane.b32.xlu0 %v7707_v27, %s18335_s16  ;;  %v7634_v54 = vmul.f32 -0.5, %v17181_v5  ;;  %vm17355_vm9 = vcmp.lt.f32.partialorder %v7475_v58, 0.0004427343  ;;  %v7646_v6 = vand.u32 2147483647, %v17190_v46  ;;  %11780 = vlog2.f32 %v7496_v8  ;;  %v18638_v61 = vld [vmem:[#allocation28_spill] sm:$0xff] }
0x1795   : > { %v7691_v41 = vadd.f32 %v7459_v59, %v18625_v48  ;;  %v7499_v36 = vmul.f32 -0.5, %v17111_v42  ;;  %v18628_v49 = vmax.f32 %v16955_v9, 0.0  ;;  %v7644_v60 = vadd.f32 1.0, %v7643_v44 }
0x1796   : > { %v7637_v17 = vand.u32 2147483647, %v17181_v5  ;;  %v7487_v25 = vadd.f32 1.0, %v17109_v52  ;;  %v18629_v39 = vmax.f32 %v16952_v30, 0.0  ;;  %v18630_v2 = vmax.f32 %v16916_v23, 0.0 }
0x1797   : > { %v7710_v22 = vadd.f32 %v7630_v28, %v18628_v49  ;;  %7763 = vrot.lane.b32.xlu1 %v7692_v53, %s18335_s16  ;;  %v7471_v43 = vmul.f32 0.6931472, %v11775_v35  ;;  %v7264_v57 = vmax.f32 %v18631_v20, 0.0  ;;  %v7263_v3 = vmax.f32 %v18632_v62, 0.0  ;;  %v18641_v49 = vld [vmem:[#allocation38_spill] sm:$0xff] }
0x1798   : > { %v7709_v63 = vadd.f32 %v7621_v11, %v18629_v39  ;;  %v7694_v19 = vadd.f32 %v7486_v21, %v18630_v2  ;;  %7761 = vrot.lane.b32.xlu0 %v7691_v41, %s18335_s16  ;;  %v7635_v37 = vadd.f32 1.0, %v7634_v54  ;;  %11782 = vlog2.f32 %v7487_v25 }
0x1799   : > { %v7658_v14 = vadd.f32 1.0, %v17202_v0  ;;  %vm17374_vm10 = vcmp.lt.f32.partialorder %v7646_v6, 0.0004427343  ;;  %v7248_v38 = vmax.f32 %v18635_v45, 0.0  ;;  %v7500_v34 = vadd.f32 1.0, %v7499_v36 }
0x179a   : > { %v7502_v13 = vand.u32 2147483647, %v17111_v42  ;;  %v7645_v59 = vmul.f32 %v17190_v46, %v7644_v60  ;;  %vm17381_vm11 = vcmp.lt.f32.partialorder %v7637_v17, 0.0004427343  ;;  %v7649_v56 = vadd.f32 1.0, %v17198_v26  ;;  %v11777_v31 = vpop.eup %11776 }
0x179b   : > { %11784 = vlog2.f32 %v7658_v14  ;;  %7799 = vrot.lane.b32.xlu1 %v7710_v22, %s18335_s16  ;;  %v7477_v27 = vsel %vm17355_vm9, %v7474_v16, %v7471_v43  ;;  %v7247_v53 = vmax.f32 %v18638_v61, 0.0  ;;  %v7490_v44 = vmul.f32 -0.5, %v17109_v52 }
0x179c   : > { %v7661_v28 = vmul.f32 -0.5, %v17202_v0  ;;  %7797 = vrot.lane.b32.xlu0 %v7709_v63, %s18335_s16  ;;  %v7642_v46 = vmul.f32 0.6931472, %v11777_v31  ;;  %v7636_v8 = vmul.f32 %v17181_v5, %v7635_v37  ;;  %11786 = vlog2.f32 %v7649_v56  ;;  %v11779_v48 = vpop.eup %11778 }
0x179d   : > { %v7514_v35 = vadd.f32 1.0, %v17123_v32  ;;  %v7501_v41 = vmul.f32 %v17111_v42, %v7500_v34  ;;  %vm17396_vm12 = vcmp.lt.f32.partialorder %v7502_v13, 0.0004427343  ;;  %v7493_v16 = vand.u32 2147483647, %v17109_v52  ;;  %v18645_v13 = vld [vmem:[#allocation67_spill] sm:$0xff] }
0x179e   : > { %v7652_v21 = vmul.f32 -0.5, %v17198_v26  ;;  %v7693_v54 = vadd.f32 %v7477_v27, %v7245_v33  ;;  %v7648_v15 = vsel %vm17374_vm10, %v7645_v59, %v7642_v46  ;;  %v7633_v6 = vmul.f32 0.6931472, %v11779_v48  ;;  %v11781_v5 = vpop.eup %11780 }
0x179f   : > { %11788 = vlog2.f32 %v7514_v35  ;;  %7767 = vrot.lane.b32.xlu1 %v7694_v19, %s18335_s16  ;;  %v7491_v36 = vadd.f32 1.0, %v7490_v44  ;;  %v7266_v42 = vmax.f32 %v18641_v49, 0.0  ;;  %v7662_v22 = vadd.f32 1.0, %v7661_v28  ;;  %v18644_v19 = vld [vmem:[#allocation37_spill] sm:$0xff]  ;;  %v18648_v35 = vld [vmem:[#allocation66_spill] sm:$0xff] }
0x17a0   : > { %v7664_v60 = vand.u32 2147483647, %v17202_v0  ;;  %7765 = vrot.lane.b32.xlu0 %v7693_v54, %s18335_s16  ;;  %v7639_v17 = vsel %vm17381_vm11, %v7636_v8, %v7633_v6  ;;  %v7498_v33 = vmul.f32 0.6931472, %v11781_v5  ;;  %v7517_v25 = vmul.f32 -0.5, %v17123_v32 }
0x17a1   : > { %v7505_v39 = vadd.f32 1.0, %v17116_v12  ;;  %v7712_v63 = vadd.f32 %v7648_v15, %v7264_v57  ;;  %vm17412_vm13 = vcmp.lt.f32.partialorder %v7493_v16, 0.0004427343  ;;  %v7265_v43 = vmax.f32 %v18644_v19, 0.0 }
0x17a2   : > { %v7653_v37 = vadd.f32 1.0, %v7652_v21  ;;  %v11783_v14 = vpop.eup %11782  ;;  %v7711_v40 = vadd.f32 %v7639_v17, %v7263_v3  ;;  %v7504_v34 = vsel %vm17396_vm12, %v7501_v41, %v7498_v33  ;;  %v7676_v59 = vadd.f32 1.0, %v18645_v13  ;;  %v18649_v21 = vld [vmem:[#allocation31_spill] sm:$0xff]  ;;  %v18650_v33 = vld [vmem:[#allocation65_spill] sm:$0xff] }
0x17a3   : > { %11790 = vlog2.f32 %v7505_v39  ;;  %7803 = vrot.lane.b32.xlu1 %v7712_v63, %s18335_s16  ;;  %v7489_v58 = vmul.f32 0.6931472, %v11783_v14  ;;  %v7492_v57 = vmul.f32 %v17109_v52, %v7491_v36  ;;  %vm17422_vm14 = vcmp.lt.f32.partialorder %v7664_v60, 0.0004427343  ;;  %v18651_v63 = vld [vmem:[#allocation30_spill] sm:$0xff] }
0x17a4   : > { %v7655_v31 = vand.u32 2147483647, %v17198_v26  ;;  %7801 = vrot.lane.b32.xlu0 %v7711_v40, %s18335_s16  ;;  %v7663_v3 = vmul.f32 %v17202_v0, %v7662_v22  ;;  %v7518_v44 = vadd.f32 1.0, %v7517_v25  ;;  %v7508_v28 = vmul.f32 -0.5, %v17116_v12 }
0x17a5   : > { %v11785_v27 = vpop.eup %11784  ;;  %11792 = vlog2.f32 %v7676_v59  ;;  %v7696_v46 = vadd.f32 %v7504_v34, %v7248_v38  ;;  %v7495_v8 = vsel %vm17412_vm13, %v7492_v57, %v7489_v58  ;;  %v7667_v48 = vadd.f32 1.0, %v18648_v35 }
0x17a6   : > { %v7660_v52 = vmul.f32 0.6931472, %v11785_v27  ;;  %v11787_v41 = vpop.eup %11786  ;;  %v7695_v11 = vadd.f32 %v7495_v8, %v7247_v53  ;;  %v7654_v16 = vmul.f32 %v17198_v26, %v7653_v37  ;;  %v7250_v54 = vmax.f32 %v18649_v21, 0.0 }
0x17a7   : > { %v7520_v15 = vand.u32 2147483647, %v17123_v32  ;;  %7771 = vrot.lane.b32.xlu1 %v7696_v46, %s18335_s16  ;;  %v7651_v38 = vmul.f32 0.6931472, %v11787_v41  ;;  %v7679_v6 = vmul.f32 -0.5, %v18645_v13  ;;  %11794 = vlog2.f32 %v7667_v48  ;;  %v18658_v48 = vld [vmem:[#allocation27_spill] sm:$0xff] }
0x17a8   : > { %v7666_v0 = vsel %vm17422_vm14, %v7663_v3, %v7660_v52  ;;  %7769 = vrot.lane.b32.xlu0 %v7695_v11, %s18335_s16  ;;  %vm7656_vm15 = vcmp.lt.f32.partialorder %v7655_v31, 0.0004427343  ;;  %v7519_v53 = vmul.f32 %v17123_v32, %v7518_v44  ;;  %v7509_v26 = vadd.f32 1.0, %v7508_v28  ;;  %v18652_v32 = vld [vmem:[#allocation64_spill] sm:$0xff]  ;;  %v18656_v3 = vld [vmem:[#allocation26_spill] sm:$0xff] }
0x17a9   : > { %v11789_v5 = vpop.eup %11788  ;;  %v7511_v36 = vand.u32 2147483647, %v17116_v12  ;;  %v7714_v22 = vadd.f32 %v7666_v0, %v7266_v42  ;;  %v7657_v60 = vsel %vm7656_vm15, %v7654_v16, %v7651_v38  ;;  %v7532_v25 = vadd.f32 1.0, %v18650_v33 }
0x17aa   : > { %v7516_v17 = vmul.f32 0.6931472, %v11789_v5  ;;  %v7713_v39 = vadd.f32 %v7657_v60, %v7265_v43  ;;  %vm7521_vm1 = vcmp.lt.f32.partialorder %v7520_v15, 0.0004427343  ;;  %v7249_v2 = vmax.f32 %v18651_v63, 0.0  ;;  %v18655_v43 = vld [vmem:[#allocation60_spill] sm:$0xff] }
0x17ab   : > { %v7670_v37 = vmul.f32 -0.5, %v18648_v35  ;;  %7807 = vrot.lane.b32.xlu1 %v7714_v22, %s18335_s16  ;;  %v7680_v40 = vadd.f32 1.0, %v7679_v6  ;;  %11796 = vlog2.f32 %v7532_v25  ;;  %v7523_v34 = vadd.f32 1.0, %v18652_v32  ;;  %v18660_v60 = vld [vmem:[#allocation39_spill] sm:$0xff] }
0x17ac   : > { %v7522_v14 = vsel %vm7521_vm1, %v7519_v53, %v7516_v17  ;;  %7805 = vrot.lane.b32.xlu0 %v7713_v39, %s18335_s16  ;;  %v7510_v42 = vmul.f32 %v17116_v12, %v7509_v26  ;;  %vm17450_vm2 = vcmp.lt.f32.partialorder %v7511_v36, 0.0004427343  ;;  %v7268_v57 = vmax.f32 %v18655_v43, 0.0 }
0x17ad   : > { %v11791_v59 = vpop.eup %11790  ;;  %v7682_v56 = vand.u32 2147483647, %v18645_v13  ;;  %v7698_v31 = vadd.f32 %v7522_v14, %v7250_v54  ;;  %11798 = vlog2.f32 %v7523_v34  ;;  %v18657_v44 = vsub.f32 0.0, %v18656_v3 }
0x17ae   : > { %v7507_v27 = vmul.f32 0.6931472, %v11791_v59  ;;  %v7671_v8 = vadd.f32 1.0, %v7670_v37  ;;  %v7673_v52 = vand.u32 2147483647, %v18648_v35  ;;  %v7535_v12 = vmul.f32 -0.5, %v18650_v33 }
0x17af   : > { %v7143_v28 = vmul.f32 1.442695, %v18657_v44  ;;  %v11793_v46 = vpop.eup %11792  ;;  %v18659_v41 = vsub.f32 0.0, %v18658_v48  ;;  %7775 = vrot.lane.b32.xlu1 %v7698_v31, %s18335_s16  ;;  %v7681_v15 = vmul.f32 %v18645_v13, %v7680_v40  ;;  %vm7683_vm3 = vcmp.lt.f32.partialorder %v7682_v56, 0.0004427343 }
0x17b0   : > { %v7513_v16 = vsel %vm17450_vm2, %v7510_v42, %v7507_v27  ;;  %v7678_v54 = vmul.f32 0.6931472, %v11793_v46  ;;  %v7526_v38 = vmul.f32 -0.5, %v18652_v32  ;;  %v7672_v36 = vmul.f32 %v18648_v35, %v7671_v8  ;;  %v18661_v35 = vld [vmem:[#allocation33_spill] sm:$0xff]  ;;  %v18662_v27 = vld [vmem:[#allocation34_spill] sm:$0xff] }
0x17b1   : > { %v7141_v11 = vmul.f32 1.442695, %v18659_v41  ;;  %11800 = vpow2.f32 %v7143_v28  ;;  %v7697_v0 = vadd.f32 %v7513_v16, %v7249_v2  ;;  %v11795_v6 = vpop.eup %11794  ;;  %v7536_v22 = vadd.f32 1.0, %v7535_v12  ;;  %v18663_v28 = vld [vmem:[#allocation32_spill] sm:$0xff]  ;;  %v18664_v12 = vld [vmem:[#allocation61_spill] sm:$0xff] }
0x17b2   : > { %v7684_v5 = vsel %vm7683_vm3, %v7681_v15, %v7678_v54  ;;  %v7669_v26 = vmul.f32 0.6931472, %v11795_v6  ;;  %v7267_v17 = vmax.f32 %v18660_v60, 0.0  ;;  %vm7674_vm4 = vcmp.lt.f32.partialorder %v7673_v52, 0.0004427343  ;;  %v18665_v15 = vld [vmem:[#allocation63_spill] sm:$0xff] }
0x17b3   : > { %11802 = vpow2.f32 %v7141_v11  ;;  %7773 = vrot.lane.b32.xlu0 %v7697_v0, %s18335_s16  ;;  %v7716_v53 = vadd.f32 %v7684_v5, %v7268_v57  ;;  %v7538_v13 = vand.u32 2147483647, %v18650_v33  ;;  %v7527_v39 = vadd.f32 1.0, %v7526_v38 }
0x17b4   : > { %v7675_v25 = vsel %vm7674_vm4, %v7672_v36, %v7669_v26  ;;  %v7529_v14 = vand.u32 2147483647, %v18652_v32  ;;  %v7537_v34 = vmul.f32 %v18650_v33, %v7536_v22  ;;  %v7252_v42 = vmax.f32 %v18661_v35, 0.0 }
0x17b5   : > { %7811 = vrot.lane.b32.xlu1 %v7716_v53, %s18335_s16  ;;  %v11797_v2 = vpop.eup %11796  ;;  %v7715_v37 = vadd.f32 %v7675_v25, %v7267_v17  ;;  %vm7539_vm5 = vcmp.lt.f32.partialorder %v7538_v13, 0.0004427343  ;;  %v7528_v56 = vmul.f32 %v18652_v32, %v7527_v39  ;;  %v7078_v3 = vsub.f32 0.0, %v18662_v27  ;;  %v18666_v53 = vld [vmem:[#allocation62_spill] sm:$0xff] }
0x17b6   : > { %v7534_v40 = vmul.f32 0.6931472, %v11797_v2  ;;  %v7251_v46 = vmax.f32 %v18663_v28, 0.0  ;;  %vm7530_vm7 = vcmp.lt.f32.partialorder %v7529_v14, 0.0004427343  ;;  %v7077_v48 = vsub.f32 0.0, %v18664_v12 }
0x17b7   : > { %v11799_v59 = vpop.eup %11798  ;;  %7809 = vrot.lane.b32.xlu0 %v7715_v37, %s18335_s16  ;;  %v7111_v32 = vmul.f32 1.442695, %v7078_v3  ;;  %v7096_v0 = vsub.f32 0.0, %v18665_v15  ;;  %v7095_v26 = vsub.f32 0.0, %v18666_v53  ;;  %v7084_v15 = vsub.f32 0.0, %v16910_v51 }
0x17b8   : > { %v7540_v58 = vsel %vm7539_vm5, %v7537_v34, %v7534_v40  ;;  %v7525_v57 = vmul.f32 0.6931472, %v11799_v59  ;;  %v7109_v16 = vmul.f32 1.442695, %v7077_v48  ;;  %v7080_v40 = vsub.f32 0.0, %v16896_v7 }
0x17b9   : > { %v7700_v44 = vadd.f32 %v7540_v58, %v7252_v42  ;;  %v7147_v17 = vmul.f32 1.442695, %v7096_v0  ;;  %v7145_v39 = vmul.f32 1.442695, %v7095_v26  ;;  %v7079_v34 = vsub.f32 0.0, %v16893_v10 }
0x17ba   : > { %v7531_v52 = vsel %vm7530_vm7, %v7528_v56, %v7525_v57  ;;  %v7098_v59 = vsub.f32 0.0, %v16943_v4  ;;  %v7097_v58 = vsub.f32 0.0, %v16940_v50  ;;  %v7115_v57 = vmul.f32 1.442695, %v7080_v40 }
0x17bb   : > { %v11801_v31 = vpop.eup %11800  ;;  %7779 = vrot.lane.b32.xlu1 %v7700_v44, %s18335_s16  ;;  %v7699_v41 = vadd.f32 %v7531_v52, %v7251_v46  ;;  %v7113_v56 = vmul.f32 1.442695, %v7079_v34  ;;  %v7082_v46 = vsub.f32 0.0, %v16904_v55  ;;  %v7081_v10 = vsub.f32 0.0, %v16901_v29 }
0x17bc   : > { %v7190_v33 = vadd.f32 1.0, %v11801_v31  ;;  %v7151_v27 = vmul.f32 1.442695, %v7098_v59  ;;  %v7100_v50 = vsub.f32 0.0, %v16949_v18  ;;  %v7083_v18 = vsub.f32 0.0, %v16907_v47 }
0x17bd   : > { %v11803_v8 = vpop.eup %11802  ;;  %7777 = vrot.lane.b32.xlu0 %v7699_v41, %s18335_s16  ;;  %v7119_v41 = vmul.f32 1.442695, %v7082_v46  ;;  %v7117_v55 = vmul.f32 1.442695, %v7081_v10 }
0x17be   : > { %v7189_v11 = vadd.f32 1.0, %v11803_v8  ;;  %11804 = vrcp.f32 %v7190_v33  ;;  %v7149_v8 = vmul.f32 1.442695, %v7097_v58  ;;  %v7121_v51 = vmul.f32 1.442695, %v7083_v18 }
0x17bf   : > { %v7784_v54 = vpop.permute.xlu1 %7783 }
0x17c0   : > { %11806 = vrcp.f32 %v7189_v11 }
0x17c1   : > { %11808 = vpow2.f32 %v7111_v32  ;;  %v7099_v32 = vsub.f32 0.0, %v16946_v24 }
0x17c2   : > { %11810 = vpow2.f32 %v7109_v16  ;;  %v7155_v16 = vmul.f32 1.442695, %v7100_v50 }
0x17c3   : > { %11812 = vpow2.f32 %v7147_v17  ;;  %v7102_v17 = vsub.f32 0.0, %v16955_v9  ;;  %v7085_v9 = vsub.f32 0.0, %v16913_v1 }
0x17c4   : > { %11814 = vpow2.f32 %v7145_v39  ;;  %v7101_v39 = vsub.f32 0.0, %v16952_v30 }
0x17c5   : > { %v7159_v59 = vmul.f32 1.442695, %v7102_v17 }
0x17c6   : > { %v7782_v38 = vpop.permute.xlu0 %7781  ;;  %v7157_v58 = vmul.f32 1.442695, %v7101_v39  ;;  %v7089_v39 = vsub.f32 0.0, %v18651_v63 }
0x17c8   : > { %v11805_v6 = vpop.eup %11804 }
0x17c9   : > { %v7862_v36 = vmul.f32 %v11805_v6, %v7784_v54  ;;  %v7153_v6 = vmul.f32 1.442695, %v7099_v32 }
0x17ca   : > { %v11807_v5 = vpop.eup %11806 }
0x17cb   : > { %v7861_v22 = vmul.f32 %v11807_v5, %v7782_v38  ;;  %v11809_v25 = vpop.eup %11808 }
0x17cc   : > { %v11811_v2 = vpop.eup %11810  ;;  %v7174_v37 = vadd.f32 1.0, %v11809_v25  ;;  %v7123_v25 = vmul.f32 1.442695, %v7084_v15 }
0x17cd   : > { %v10677_v13 = vpack.c.bf16 %v7862_v36, %v7861_v22  ;;  %v7173_v14 = vadd.f32 1.0, %v11811_v2  ;;  %v11813_v42 = vpop.eup %11812  ;;  %v7752_v3 = vpop.permute.xlu1 %7751 }
0x17ce   : > { %11816 = vrcp.f32 %v7174_v37  ;;  %v11815_v31 = vpop.eup %11814  ;;  %v7192_v44 = vadd.f32 1.0, %v11813_v42 }
0x17cf   : > { %10678 = vmatprep.subr.bf16.mxu1 %v10677_v13  ;;  %11818 = vrcp.f32 %v7173_v14  ;;  %v7191_v7 = vadd.f32 1.0, %v11815_v31  ;;  %v7086_v14 = vsub.f32 0.0, %v16916_v23  ;;  %v7103_v23 = vsub.f32 0.0, %v18632_v62 }
0x17d0   : > { %11820 = vpow2.f32 %v7115_v57 }
0x17d1   : > { %11822 = vpow2.f32 %v7113_v56  ;;  %v7104_v56 = vsub.f32 0.0, %v18631_v20  ;;  %v7127_v31 = vmul.f32 1.442695, %v7086_v14  ;;  %v7106_v20 = vsub.f32 0.0, %v18641_v49 }
0x17d2   : > { %11824 = vpow2.f32 %v7151_v27  ;;  %v7161_v10 = vmul.f32 1.442695, %v7103_v23  ;;  %v7107_v23 = vsub.f32 0.0, %v18660_v60 }
0x17d3   : > { %11826 = vrcp.f32 %v7192_v44  ;;  %v7125_v44 = vmul.f32 1.442695, %v7085_v9  ;;  %v7167_v32 = vmul.f32 1.442695, %v7106_v20  ;;  %v7108_v9 = vsub.f32 0.0, %v18655_v43 }
0x17d4   : > { %11828 = vpow2.f32 %v7149_v8  ;;  %v7087_v8 = vsub.f32 0.0, %v18638_v61  ;;  %v7105_v61 = vsub.f32 0.0, %v18644_v19 }
0x17d5   : > { %11830 = vrcp.f32 %v7191_v7  ;;  %v7171_v43 = vmul.f32 1.442695, %v7108_v9 }
0x17d6   : > { %11832 = vpow2.f32 %v7119_v41  ;;  %v7165_v19 = vmul.f32 1.442695, %v7105_v61 }
0x17d7   : > { %11834 = vpow2.f32 %v7117_v55 }
0x17d8   : > { %v11817_v52 = vpop.eup %11816  ;;  %11836 = vpow2.f32 %v7155_v16 }
0x17d9   : > { %v7846_v33 = vmul.f32 %v11817_v52, %v7752_v3  ;;  %v11819_v4 = vpop.eup %11818  ;;  %11838 = vpow2.f32 %v7153_v6  ;;  %v7088_v3 = vsub.f32 0.0, %v18635_v45  ;;  %v7163_v52 = vmul.f32 1.442695, %v7104_v56 }
0x17da   : > { %v11821_v54 = vpop.eup %11820  ;;  %v7133_v56 = vmul.f32 1.442695, %v7089_v39 }
0x17db   : > { %v7750_v12 = vpop.permute.xlu0 %7749  ;;  %v11823_v29 = vpop.eup %11822  ;;  %v7176_v53 = vadd.f32 1.0, %v11821_v54  ;;  %v7131_v62 = vmul.f32 1.442695, %v7088_v3 }
0x17dc   : > { %v7845_v48 = vmul.f32 %v11819_v4, %v7750_v12  ;;  %v11825_v38 = vpop.eup %11824  ;;  %v7175_v22 = vadd.f32 1.0, %v11823_v29 }
0x17dd   : > { %v11827_v5 = vpop.eup %11826  ;;  %11840 = vrcp.f32 %v7176_v53  ;;  %v7194_v37 = vadd.f32 1.0, %v11825_v38 }
0x17de   : > { %v10679_v11 = vpack.c.bf16 %v7846_v33, %v7845_v48  ;;  %v11829_v26 = vpop.eup %11828  ;;  %11842 = vrcp.f32 %v7175_v22  ;;  %v7129_v48 = vmul.f32 1.442695, %v7087_v8 }
0x17df   : > { %v11831_v24 = vpop.eup %11830  ;;  %v7193_v34 = vadd.f32 1.0, %v11829_v26  ;;  %11844 = vpow2.f32 %v7123_v25 }
0x17e0   : > { %10680 = vmatpush3.bf16.msra.mxu1 %v10679_v11  ;;  %v11833_v47 = vpop.eup %11832  ;;  %11846 = vpow2.f32 %v7121_v51 }
0x17e1   : > { %v11835_v42 = vpop.eup %11834  ;;  %11848 = vrcp.f32 %v7194_v37  ;;  %v7178_v30 = vadd.f32 1.0, %v11833_v47 }
0x17e2   : > { %v11837_v57 = vpop.eup %11836  ;;  %11850 = vrcp.f32 %v7193_v34  ;;  %v7177_v27 = vadd.f32 1.0, %v11835_v42 }
0x17e3   : > { %v7788_v0 = vpop.permute.xlu1 %7787  ;;  %11852 = vpow2.f32 %v7159_v59  ;;  %v7196_v1 = vadd.f32 1.0, %v11837_v57  ;;  %v11839_v46 = vpop.eup %11838 }
0x17e4   : > { %v7864_v36 = vmul.f32 %v11827_v5, %v7788_v0  ;;  %11854 = vpow2.f32 %v7157_v58  ;;  %v7195_v45 = vadd.f32 1.0, %v11839_v46 }
0x17e5   : > { %11856 = vrcp.f32 %v7178_v30 }
0x17e6   : > { %11858 = vpow2.f32 %v7127_v31 }
0x17e7   : > { %v11841_v7 = vpop.eup %11840  ;;  %11860 = vrcp.f32 %v7177_v27 }
0x17e8   : > { %v7786_v13 = vpop.permute.xlu0 %7785  ;;  %v11843_v33 = vpop.eup %11842  ;;  %11862 = vpow2.f32 %v7125_v44 }
0x17e9   : > { %v7863_v2 = vmul.f32 %v11831_v24, %v7786_v13  ;;  %v11845_v4 = vpop.eup %11844  ;;  %11864 = vrcp.f32 %v7196_v1 }
0x17ea   : > { %v11847_v12 = vpop.eup %11846  ;;  %11866 = vpow2.f32 %v7163_v52  ;;  %v7180_v54 = vadd.f32 1.0, %v11845_v4 }
0x17eb   : > { %v10681_v40 = vpack.c.bf16 %v7864_v36, %v7863_v2  ;;  %v11849_v41 = vpop.eup %11848  ;;  %11868 = vpow2.f32 %v7161_v10  ;;  %v7179_v15 = vadd.f32 1.0, %v11847_v12  ;;  %v7090_v36 = vsub.f32 0.0, %v18649_v21 }
0x17ec   : > { %v11851_v49 = vpop.eup %11850  ;;  %11870 = vpow2.f32 %v7131_v62  ;;  %v7092_v62 = vsub.f32 0.0, %v18661_v35 }
0x17ed   : > { %10682 = vmatprep.subr.bf16.mxu1 %v10681_v40  ;;  %v11853_v29 = vpop.eup %11852  ;;  %11872 = vrcp.f32 %v7195_v45  ;;  %v7135_v21 = vmul.f32 1.442695, %v7090_v36  ;;  %v7169_v45 = vmul.f32 1.442695, %v7107_v23 }
0x17ee   : > { %v11855_v0 = vpop.eup %11854  ;;  %11874 = vpow2.f32 %v7129_v48  ;;  %v7198_v24 = vadd.f32 1.0, %v11853_v29  ;;  %v7139_v29 = vmul.f32 1.442695, %v7092_v62 }
0x17ef   : > { %v11857_v6 = vpop.eup %11856  ;;  %11876 = vpow2.f32 %v7167_v32  ;;  %v7197_v13 = vadd.f32 1.0, %v11855_v0 }
0x17f0   : > { %v11859_v26 = vpop.eup %11858  ;;  %11878 = vrcp.f32 %v7180_v54 }
0x17f1   : > { %v11861_v17 = vpop.eup %11860  ;;  %11880 = vrcp.f32 %v7179_v15  ;;  %v7182_v40 = vadd.f32 1.0, %v11859_v26 }
0x17f2   : > { %v11863_v25 = vpop.eup %11862  ;;  %11882 = vpow2.f32 %v7165_v19 }
0x17f3   : > { %v11865_v37 = vpop.eup %11864  ;;  %11884 = vrcp.f32 %v7198_v24  ;;  %v7181_v58 = vadd.f32 1.0, %v11863_v25 }
0x17f4   : > { %v11867_v34 = vpop.eup %11866  ;;  %11886 = vrcp.f32 %v7197_v13 }
0x17f5   : > { %v11869_v42 = vpop.eup %11868  ;;  %11888 = vrcp.f32 %v7182_v40  ;;  %v7200_v44 = vadd.f32 1.0, %v11867_v34 }
0x17f6   : > { %v11871_v30 = vpop.eup %11870  ;;  %v7199_v8 = vadd.f32 1.0, %v11869_v42  ;;  %11890 = vpow2.f32 %v7135_v21 }
0x17f7   : > { %v7756_v50 = vpop.permute.xlu1 %7755  ;;  %v11873_v31 = vpop.eup %11872  ;;  %11892 = vrcp.f32 %v7181_v58 }
0x17f8   : > { %v7848_v11 = vmul.f32 %v11841_v7, %v7756_v50  ;;  %v7754_v55 = vpop.permute.xlu0 %7753  ;;  %v11875_v1 = vpop.eup %11874  ;;  %11894 = vpow2.f32 %v7133_v56  ;;  %v7184_v50 = vadd.f32 1.0, %v11871_v30 }
0x17f9   : > { %v7847_v16 = vmul.f32 %v11843_v33, %v7754_v55  ;;  %v11877_v52 = vpop.eup %11876  ;;  %11896 = vrcp.f32 %v7200_v44  ;;  %v7183_v61 = vadd.f32 1.0, %v11875_v1 }
0x17fa   : > { %v11879_v7 = vpop.eup %11878  ;;  %11898 = vrcp.f32 %v7199_v8 }
0x17fb   : > { %v10683_v38 = vpack.c.bf16 %v7848_v11, %v7847_v16  ;;  %v7792_v18 = vpop.permute.xlu1 %7791  ;;  %v11881_v33 = vpop.eup %11880  ;;  %11900 = vpow2.f32 %v7171_v43 }
0x17fc   : > { %v7866_v5 = vmul.f32 %v11849_v41, %v7792_v18  ;;  %v11883_v48 = vpop.eup %11882  ;;  %v7091_v41 = vsub.f32 0.0, %v18663_v28  ;;  %11902 = vpow2.f32 %v7169_v45 }
0x17fd   : > { %10684 = vmatpush3.bf16.msra.mxu1 %v10683_v38  ;;  %v11885_v11 = vpop.eup %11884  ;;  %11904 = vrcp.f32 %v7184_v50  ;;  %v7201_v0 = vadd.f32 1.0, %v11883_v48 }
0x17fe   : > { %v7790_v53 = vpop.permute.xlu0 %7789  ;;  %v11887_v16 = vpop.eup %11886  ;;  %11906 = vrcp.f32 %v7183_v61  ;;  %v7137_v18 = vmul.f32 1.442695, %v7091_v41 }
0x17ff   : > { %v7865_v22 = vmul.f32 %v11851_v49, %v7790_v53  ;;  %v7202_v49 = vadd.f32 1.0, %v11877_v52  ;;  %v11889_v38 = vpop.eup %11888 }
0x1801   : > { %v10685_v2 = vpack.c.bf16 %v7866_v5, %v7865_v22  ;;  %v7760_v51 = vpop.permute.xlu1 %7759  ;;  %11908 = vrcp.f32 %v7202_v49 }
0x1802   : > { %v7850_v47 = vmul.f32 %v11857_v6, %v7760_v51  ;;  %v7758_v14 = vpop.permute.xlu0 %7757  ;;  %v11891_v6 = vpop.eup %11890  ;;  %11910 = vpow2.f32 %v7139_v29 }
0x1803   : > { %v7849_v59 = vmul.f32 %v11861_v17, %v7758_v14  ;;  %10686 = vmatprep.subr.bf16.mxu1 %v10685_v2  ;;  %v11893_v53 = vpop.eup %11892  ;;  %11912 = vrcp.f32 %v7201_v0  ;;  %v7186_v17 = vadd.f32 1.0, %v11891_v6  ;;  %v18667_v0 = vmov 0.0|0.0   ;;  %v12174_v6 = vld [vmem:[%s13890_s21 + $0x10] sm:$0xff] }
0x1804   : > { %v11895_v36 = vpop.eup %11894  ;;  %11914 = vpow2.f32 %v7137_v18  ;;  %v12173_v18 = vld [vmem:[%s13890_s21 + $0x18] sm:$0xff] }
0x1805   : > { %v10687_v57 = vpack.c.bf16 %v7850_v47, %v7849_v59  ;;  %v7796_v63 = vpop.permute.xlu1 %7795  ;;  %v11897_v24 = vpop.eup %11896  ;;  %v7185_v47 = vadd.f32 1.0, %v11895_v36  ;;  %11916 = vrcp.f32 %v7186_v17  ;;  %v12180_v36 = vld [vmem:[%s13890_s21 + $0x40] sm:$0xff]  ;;  %v12183_v17 = vld [vmem:[%s13890_s21 + $0x68] sm:$0xff] }
0x1806   : > { %v7868_v27 = vmul.f32 %v11865_v37, %v7796_v63  ;;  %v7794_v3 = vpop.permute.xlu0 %7793  ;;  %v11899_v13 = vpop.eup %11898 }
0x1807   : > { %v7867_v46 = vmul.f32 %v11873_v31, %v7794_v3  ;;  %10688 = vmatpush3.bf16.msra.mxu1 %v10687_v57  ;;  %v11901_v2 = vpop.eup %11900  ;;  %11918 = vrcp.f32 %v7185_v47  ;;  %v12190_v47 = vld [vmem:[%s13890_s21 + $0x90] sm:$0xff] }
0x1808   : > { %v11903_v40 = vpop.eup %11902  ;;  %v7204_v42 = vadd.f32 1.0, %v11901_v2  ;;  %v12187_v2 = vld [vmem:[%s13890_s21 + $0x88] sm:$0xff] }
0x1809   : > { %v10689_v20 = vpack.c.bf16 %v7868_v27, %v7867_v46  ;;  %v7764_v10 = vpop.permute.xlu1 %7763  ;;  %v11905_v34 = vpop.eup %11904  ;;  %v7203_v56 = vadd.f32 1.0, %v11903_v40  ;;  %v12192_v40 = vld [vmem:[%s13890_s21 + $0xa0] sm:$0xff] }
0x180a   : > { %v7852_v60 = vmul.f32 %v11879_v7, %v7764_v10  ;;  %v7762_v4 = vpop.permute.xlu0 %7761  ;;  %v11907_v9 = vpop.eup %11906  ;;  %11920 = vrcp.f32 %v7204_v42  ;;  %v12196_v42 = vld [vmem:[%s13890_s21 + $0xc0] sm:$0xff] }
0x180b   : > { %v7851_v12 = vmul.f32 %v11881_v33, %v7762_v4  ;;  %10690 = vmatprep.subr.bf16.mxu1 %v10689_v20  ;;  %v11909_v57 = vpop.eup %11908  ;;  %11922 = vrcp.f32 %v7203_v56  ;;  %v12202_v56 = vld [vmem:[%s13890_s21 + $0xf0] sm:$0xff] }
0x180c   : > { %v11911_v31 = vpop.eup %11910 }
0x180d   : > { %v10691_v55 = vpack.c.bf16 %v7852_v60, %v7851_v12  ;;  %v7800_v32 = vpop.permute.xlu1 %7799  ;;  %v11913_v23 = vpop.eup %11912  ;;  %v7188_v52 = vadd.f32 1.0, %v11911_v31  ;;  %v18668_v31 = vmov 0.0  }
0x180e   : > { %v7870_v54 = vmul.f32 %v11885_v11, %v7800_v32  ;;  %v7798_v35 = vpop.permute.xlu0 %7797  ;;  %v11915_v44 = vpop.eup %11914 }
0x180f   : > { %v7869_v15 = vmul.f32 %v11887_v16, %v7798_v35  ;;  %10692 = vmatpush3.bf16.msra.mxu1 %v10691_v55  ;;  %v7187_v20 = vadd.f32 1.0, %v11915_v44  ;;  %v11917_v10 = vpop.eup %11916  ;;  %11924 = vrcp.f32 %v7188_v52 }
0x1811   : > { %v10693_v28 = vpack.c.bf16 %v7870_v54, %v7869_v15  ;;  %v7768_v5 = vpop.permute.xlu1 %7767  ;;  %v11919_v62 = vpop.eup %11918  ;;  %11926 = vrcp.f32 %v7187_v20 }
0x1812   : > { %v7854_v19 = vmul.f32 %v11889_v38, %v7768_v5  ;;  %v7766_v26 = vpop.permute.xlu0 %7765  ;;  %v12172_v38 = vld [vmem:[%s13890_s21] sm:$0xff] }
0x1813   : > { %v7853_v22 = vmul.f32 %v11893_v53, %v7766_v26  ;;  %10694 = vmatprep.subr.bf16.mxu1 %v10693_v28  ;;  %v12175_v28 = vld [vmem:[%s13890_s21 + $0x28] sm:$0xff]  ;;  %v12176_v5 = vld [vmem:[%s13890_s21 + $0x20] sm:$0xff]  ;;  %v12177_v53 = vld [vmem:[%s13890_s21 + $0x38] sm:$0xff] }
0x1814   : > { %v11921_v12 = vpop.eup %11920  ;;  %v12179_v26 = vld [vmem:[%s13890_s21 + $0x48] sm:$0xff] }
0x1815   : > { %v10695_v25 = vpack.c.bf16 %v7854_v19, %v7853_v22  ;;  %v7804_v39 = vpop.permute.xlu1 %7803  ;;  %v11923_v41 = vpop.eup %11922  ;;  %v12178_v19 = vld [vmem:[%s13890_s21 + $0x30] sm:$0xff]  ;;  %v12181_v22 = vld [vmem:[%s13890_s21 + $0x58] sm:$0xff] }
0x1816   : > { %v7872_v51 = vmul.f32 %v11897_v24, %v7804_v39  ;;  %v7802_v37 = vpop.permute.xlu0 %7801  ;;  %v12182_v24 = vld [vmem:[%s13890_s21 + $0x50] sm:$0xff] }
0x1817   : > { %v7871_v14 = vmul.f32 %v11899_v13, %v7802_v37  ;;  %10696 = vmatpush3.bf16.msra.mxu1 %v10695_v25  ;;  %v12184_v13 = vld [vmem:[%s13890_s21 + $0x60] sm:$0xff]  ;;  %v12185_v25 = vld [vmem:[%s13890_s21 + $0x78] sm:$0xff]  ;;  %v12186_v39 = vld [vmem:[%s13890_s21 + $0x70] sm:$0xff] }
0x1818   : > { %v12189_v37 = vld [vmem:[%s13890_s21 + $0x98] sm:$0xff] }
0x1819   : > { %v10697_v59 = vpack.c.bf16 %v7872_v51, %v7871_v14  ;;  %v7772_v21 = vpop.permute.xlu1 %7771  ;;  %v11925_v32 = vpop.eup %11924  ;;  %v12188_v51 = vld [vmem:[%s13890_s21 + $0x80] sm:$0xff]  ;;  %v12191_v14 = vld [vmem:[%s13890_s21 + $0xa8] sm:$0xff] }
0x181a   : > { %v7856_v58 = vmul.f32 %v11905_v34, %v7772_v21  ;;  %v7770_v30 = vpop.permute.xlu0 %7769  ;;  %v12193_v34 = vld [vmem:[%s13890_s21 + $0xb8] sm:$0xff]  ;;  %v12195_v21 = vld [vmem:[%s13890_s21 + $0xc8] sm:$0xff] }
0x181b   : > { %v7855_v63 = vmul.f32 %v11907_v9, %v7770_v30  ;;  %10698 = vmatprep.subr.bf16.mxu1 %v10697_v59  ;;  %v11927_v54 = vpop.eup %11926  ;;  %v12194_v59 = vld [vmem:[%s13890_s21 + $0xb0] sm:$0xff]  ;;  %v12197_v9 = vld [vmem:[%s13890_s21 + $0xd8] sm:$0xff]  ;;  %v12199_v30 = vld [vmem:[%s13890_s21 + $0xe8] sm:$0xff] }
0x181d   : > { %v10699_v27 = vpack.c.bf16 %v7856_v58, %v7855_v63  ;;  %v7808_v3 = vpop.permute.xlu1 %7807  ;;  %v12198_v58 = vld [vmem:[%s13890_s21 + $0xd0] sm:$0xff]  ;;  %v12201_v63 = vld [vmem:[%s13890_s21 + $0xf8] sm:$0xff] }
0x181e   : > { %v7874_v1 = vmul.f32 %v11909_v57, %v7808_v3  ;;  %v7806_v46 = vpop.permute.xlu0 %7805  ;;  %v12200_v57 = vld [vmem:[%s13890_s21 + $0xe0] sm:$0xff] }
0x181f   : > { %v7873_v8 = vmul.f32 %v11913_v23, %v7806_v46  ;;  %10700 = vmatpush3.bf16.msra.mxu1 %v10699_v27 }
0x1821   : > { %v10701_v43 = vpack.c.bf16 %v7874_v1, %v7873_v8  ;;  %v7776_v7 = vpop.permute.xlu1 %7775 }
0x1822   : > { %v7858_v33 = vmul.f32 %v11917_v10, %v7776_v7 }
0x1823   : > { %10702 = vmatprep.subr.bf16.mxu1 %v10701_v43 }
0x1825   : > { %v7774_v60 = vpop.permute.xlu0 %7773 }
0x1826   : > { %v7857_v4 = vmul.f32 %v11919_v62, %v7774_v60 }
0x1827   : > { %v7812_v45 = vpop.permute.xlu1 %7811 }
0x1828   : > { %v10703_v50 = vpack.c.bf16 %v7858_v33, %v7857_v4  ;;  %v7876_v48 = vmul.f32 %v11921_v12, %v7812_v45 }
0x1829   : > { %v7810_v61 = vpop.permute.xlu0 %7809 }
0x182a   : > { %10704 = vmatpush3.bf16.msra.mxu1 %v10703_v50  ;;  %v7875_v11 = vmul.f32 %v11923_v41, %v7810_v61 }
0x182c   : > { %v10705_v55 = vpack.c.bf16 %v7876_v48, %v7875_v11 }
0x182d   : > { %v7780_v49 = vpop.permute.xlu1 %7779 }
0x182e   : > { %v7860_v16 = vmul.f32 %v11925_v32, %v7780_v49  ;;  %10706 = vmatprep.subr.bf16.mxu1 %v10705_v55 }
0x182f   : > { %v7778_v35 = vpop.permute.xlu0 %7777 }
0x1830   : > { %v7859_v29 = vmul.f32 %v11927_v54, %v7778_v35 }
0x1832   : > { %v10707_v15 = vpack.c.bf16 %v7860_v16, %v7859_v29 }
0x1834   : > { %10708 = vmatpush3.bf16.msra.mxu1 %v10707_v15 }
0x1835   : > { %10733 = vmatprep.subr.bf16.mxu1 %v18667_v0 }
0x1837   : > { %7942 = vmatmul.mubr.f32.vlgmr.msra.gmra.mrb[204].mxu1 %v12172_v38 }
0x1838   : > { %7946 = vmatprep.mubr.f32.mxu1 %v12173_v18 }
0x183b   : > { %7947 = vmatmul.mubr.f32.gmra.mrb[206].mxu1 %v12174_v6 }
0x183c   : > { %7951 = vmatprep.mubr.f32.mxu1 %v12175_v28 }
0x183f   : > { %7952 = vmatmul.mubr.f32.gmra.mrb[208].mxu1 %v12176_v5 }
0x1840   : > { %7956 = vmatprep.mubr.f32.mxu1 %v12177_v53 }
0x1843   : > { %7957 = vmatmul.mubr.f32.gmra.mrb[210].mxu1 %v12178_v19 }
0x1844   : > { %7961 = vmatprep.mubr.f32.mxu1 %v12179_v26 }
0x1847   : > { %7962 = vmatmul.mubr.f32.gmra.mrb[212].mxu1 %v12180_v36 }
0x1848   : > { %7966 = vmatprep.mubr.f32.mxu1 %v12181_v22 }
0x184b   : > { %7967 = vmatmul.mubr.f32.gmra.mrb[214].mxu1 %v12182_v24 }
0x184c   : > { %7971 = vmatprep.mubr.f32.mxu1 %v12183_v17 }
0x184f   : > { %7972 = vmatmul.mubr.f32.gmra.mrb[216].mxu1 %v12184_v13 }
0x1850   : > { %7976 = vmatprep.mubr.f32.mxu1 %v12185_v25 }
0x1853   : > { %7977 = vmatmul.mubr.f32.gmra.mrb[218].mxu1 %v12186_v39 }
0x1854   : > { %7981 = vmatprep.mubr.f32.mxu1 %v12187_v2 }
0x1857   : > { %7982 = vmatmul.mubr.f32.gmra.mrb[220].mxu1 %v12188_v51 }
0x1858   : > { %7986 = vmatprep.mubr.f32.mxu1 %v12189_v37 }
0x185b   : > { %7987 = vmatmul.mubr.f32.gmra.mrb[222].mxu1 %v12190_v47 }
0x185c   : > { %7991 = vmatprep.mubr.f32.mxu1 %v12191_v14 }
0x185f   : > { %7992 = vmatmul.mubr.f32.gmra.mrb[224].mxu1 %v12192_v40 }
0x1860   : > { %7996 = vmatprep.mubr.f32.mxu1 %v12193_v34 }
0x1863   : > { %7997 = vmatmul.mubr.f32.gmra.mrb[226].mxu1 %v12194_v59 }
0x1864   : > { %8001 = vmatprep.mubr.f32.mxu1 %v12195_v21 }
0x1867   : > { %8002 = vmatmul.mubr.f32.gmra.mrb[228].mxu1 %v12196_v42 }
0x1868   : > { %8006 = vmatprep.mubr.f32.mxu1 %v12197_v9  ;;  %v18669_v9 = vmov 1.0  }
0x186b   : > { %8007 = vmatmul.mubr.f32.gmra.mrb[230].mxu1 %v12198_v58 }
0x186c   : > { %8011 = vmatprep.mubr.f32.mxu1 %v12199_v30 }
0x186f   : > { %8012 = vmatmul.mubr.f32.gmra.mrb[232].mxu1 %v12200_v57 }
0x1870   : > { %8016 = vmatprep.mubr.f32.mxu1 %v12201_v63  ;;  %v18670_v63 = vld [vmem:[#allocation40_spill] sm:$0xff] }
0x1873   : > { %8017 = vmatmul.mubr.f32.gmra.mrb[234].mxu1 %v12202_v56 }
0x1874   : > { %10107 = vmatprep.mubr.msk.f32.mxu1 %vm12309_vm6, %v18668_v31 }
0x190a   : > { %v9549_v23 = vpop.f32.mrb[204].mxu1 }
0x190b   : > { %v9550_v27 = vpop.f32.mrb[205].mxu1 }
0x190c   : > { %v17544_v3 = vadd.f32 %v9550_v27, %v9549_v23 }
0x190e   : > { %v9552_v44 = vpop.f32.mrb[206].mxu1 }
0x190f   : > { %v9553_v1 = vpop.f32.mrb[207].mxu1 }
0x1910   : > { %v17546_v46 = vadd.f32 %v9553_v1, %v9552_v44 }
0x1912   : > { %v10710_v8 = vpack.c.bf16 %v17546_v46, %v17544_v3  ;;  %v9555_v52 = vpop.f32.mrb[208].mxu1 }
0x1913   : > { %v9556_v43 = vpop.f32.mrb[209].mxu1 }
0x1914   : > { %10711 = vmatpush3.bf16.msra.mxu0 %v10710_v8  ;;  %v17550_v7 = vadd.f32 %v9556_v43, %v9555_v52 }
0x1915   : > { %10712 = vmatprep.subr.bf16.mxu0 %v18667_v0 }
0x1916   : > { %v9558_v20 = vpop.f32.mrb[210].mxu1 }
0x1917   : > { %v9559_v10 = vpop.f32.mrb[211].mxu1 }
0x1918   : > { %v17553_v33 = vadd.f32 %v9559_v10, %v9558_v20 }
0x191a   : > { %v10713_v62 = vpack.c.bf16 %v17553_v33, %v17550_v7  ;;  %v9561_v60 = vpop.f32.mrb[212].mxu1 }
0x191b   : > { %v9562_v4 = vpop.f32.mrb[213].mxu1 }
0x191c   : > { %v17557_v45 = vadd.f32 %v9562_v4, %v9561_v60  ;;  %10714 = vmatpush3.bf16.msra.mxu0 %v10713_v62 }
0x191d   : > { %10715 = vmatprep.subr.bf16.mxu0 %v18667_v0 }
0x191e   : > { %v9564_v12 = vpop.f32.mrb[214].mxu1 }
0x191f   : > { %v9565_v50 = vpop.f32.mrb[215].mxu1 }
0x1920   : > { %v17560_v48 = vadd.f32 %v9565_v50, %v9564_v12 }
0x1922   : > { %v10716_v41 = vpack.c.bf16 %v17560_v48, %v17557_v45  ;;  %v9567_v61 = vpop.f32.mrb[216].mxu1 }
0x1923   : > { %v9568_v11 = vpop.f32.mrb[217].mxu1 }
0x1924   : > { %v17564_v55 = vadd.f32 %v9568_v11, %v9567_v61  ;;  %10717 = vmatpush3.bf16.msra.mxu0 %v10716_v41 }
0x1925   : > { %10718 = vmatprep.subr.bf16.mxu0 %v18667_v0 }
0x1926   : > { %v9570_v32 = vpop.f32.mrb[218].mxu1 }
0x1927   : > { %v9571_v49 = vpop.f32.mrb[219].mxu1 }
0x1928   : > { %v9572_v16 = vadd.f32 %v9571_v49, %v9570_v32 }
0x192a   : > { %v10719_v54 = vpack.c.bf16 %v9572_v16, %v17564_v55  ;;  %v9573_v35 = vpop.f32.mrb[220].mxu1 }
0x192b   : > { %v9574_v29 = vpop.f32.mrb[221].mxu1 }
0x192c   : > { %v17568_v15 = vadd.f32 %v9574_v29, %v9573_v35  ;;  %10720 = vmatpush3.bf16.msra.mxu0 %v10719_v54 }
0x192d   : > { %10721 = vmatprep.subr.bf16.mxu0 %v18667_v0 }
0x192e   : > { %v9576_v38 = vpop.f32.mrb[222].mxu1 }
0x192f   : > { %v9577_v18 = vpop.f32.mrb[223].mxu1 }
0x1930   : > { %v9578_v6 = vadd.f32 %v9577_v18, %v9576_v38 }
0x1932   : > { %v10722_v28 = vpack.c.bf16 %v9578_v6, %v17568_v15  ;;  %v9579_v5 = vpop.f32.mrb[224].mxu1 }
0x1933   : > { %v9580_v53 = vpop.f32.mrb[225].mxu1 }
0x1934   : > { %v17572_v19 = vadd.f32 %v9580_v53, %v9579_v5  ;;  %10723 = vmatpush3.bf16.msra.mxu0 %v10722_v28 }
0x1935   : > { %10724 = vmatprep.subr.bf16.mxu0 %v18667_v0 }
0x1936   : > { %v9582_v26 = vpop.f32.mrb[226].mxu1 }
0x1937   : > { %v9583_v36 = vpop.f32.mrb[227].mxu1 }
0x1938   : > { %v9584_v22 = vadd.f32 %v9583_v36, %v9582_v26 }
0x193a   : > { %v10725_v24 = vpack.c.bf16 %v9584_v22, %v17572_v19  ;;  %v9585_v17 = vpop.f32.mrb[228].mxu1 }
0x193b   : > { %v9586_v13 = vpop.f32.mrb[229].mxu1 }
0x193c   : > { %v9587_v25 = vadd.f32 %v9586_v13, %v9585_v17  ;;  %10726 = vmatpush3.bf16.msra.mxu0 %v10725_v24 }
0x193d   : > { %10727 = vmatprep.subr.bf16.mxu0 %v18667_v0 }
0x193e   : > { %v9588_v39 = vpop.f32.mrb[230].mxu1 }
0x193f   : > { %v9589_v2 = vpop.f32.mrb[231].mxu1 }
0x1940   : > { %v9590_v51 = vadd.f32 %v9589_v2, %v9588_v39  ;;  %v17658_v39 = vld [vmem:[%s17941_s0 + $0xe] ss:$0 sm:$0xff] }
0x1942   : > { %v10728_v37 = vpack.c.bf16 %v9590_v51, %v9587_v25  ;;  %v9591_v47 = vpop.f32.mrb[232].mxu1 }
0x1943   : > { %v9592_v14 = vpop.f32.mrb[233].mxu1 }
0x1944   : > { %v9593_v40 = vadd.f32 %v9592_v14, %v9591_v47  ;;  %10729 = vmatpush3.bf16.msra.mxu0 %v10728_v37  ;;  %v17671_v14 = vld [vmem:[%s17941_s0 + $0xf] ss:$0 sm:$0xff] }
0x1945   : > { %10730 = vmatprep.subr.bf16.mxu0 %v18667_v0 }
0x1946   : > { %v9594_v34 = vpop.f32.mrb[234].mxu1 }
0x1947   : > { %v9595_v59 = vpop.f32.mrb[235].mxu1 }
0x1948   : > { %v9596_v21 = vadd.f32 %v9595_v59, %v9594_v34 }
0x194a   : > { %v10731_v42 = vpack.c.bf16 %v9596_v21, %v9593_v40 }
0x194c   : > { %10732 = vmatpush3.bf16.msra.mxu0 %v10731_v42 }
0x194d   : > { %10757 = vmatprep.subr.bf16.mxu0 %v18667_v0 }
0x194f   : > { %10073 = vmatmul.mubr.f32.vlgmr.msra.gmra.mrb[216].mxu0 %v18669_v9 }
0x1950   : > { %10142 = vmatprep.mubr.msk.f32.mxu0 %vm12309_vm6, %v18668_v31 }
0x1a22   : > { %v8088_v58 = vpop.f32.mrb[216].mxu0 }
0x1a23   : > { %v8092_v30 = vmul.f32 0.0078125, %v8088_v58  ;;  %v10074_v57 = vpop.f32.mrb[217].mxu0 }
0x1a25   : > { %v8096_v56 = vrot.slane %v8092_v30, %v18670_v63 }
0x1a27   : > { %v17584_v23 = vsub.f32 %v17544_v3, %v8096_v56  ;;  %v17587_v27 = vsub.f32 %v17546_v46, %v8096_v56  ;;  %v17590_v44 = vsub.f32 %v17550_v7, %v8096_v56  ;;  %v17593_v1 = vsub.f32 %v17553_v33, %v8096_v56 }
0x1a28   : > { %v17600_v52 = vsub.f32 %v17557_v45, %v8096_v56  ;;  %v8102_v7 = vsub.f32 %v17560_v48, %v8096_v56  ;;  %v8103_v20 = vsub.f32 %v17564_v55, %v8096_v56  ;;  %v8104_v10 = vsub.f32 %v9572_v16, %v8096_v56 }
0x1a29   : > { %v8113_v31 = vmul.f32 %v17584_v23, %v17584_v23  ;;  %v8114_v8 = vmul.f32 %v17587_v27, %v17587_v27  ;;  %v8115_v46 = vmul.f32 %v17590_v44, %v17590_v44  ;;  %v8116_v43 = vmul.f32 %v17593_v1, %v17593_v1 }
0x1a2a   : > { %v8117_v62 = vmul.f32 %v17600_v52, %v17600_v52  ;;  %v8118_v60 = vmul.f32 %v8102_v7, %v8102_v7  ;;  %v8119_v4 = vmul.f32 %v8103_v20, %v8103_v20  ;;  %v8120_v45 = vmul.f32 %v8104_v10, %v8104_v10 }
0x1a2b   : > { %v10734_v3 = vpack.c.bf16 %v8114_v8, %v8113_v31  ;;  %v10737_v33 = vpack.c.bf16 %v8116_v43, %v8115_v46  ;;  %v17613_v50 = vsub.f32 %v17568_v15, %v8096_v56  ;;  %v17615_v48 = vsub.f32 %v9578_v6, %v8096_v56  ;;  %v18671_v43 = vld [vmem:[#allocation9_spill] sm:$0xff] }
0x1a2c   : > { %v10740_v12 = vpack.c.bf16 %v8118_v60, %v8117_v62  ;;  %v10743_v41 = vpack.c.bf16 %v8120_v45, %v8119_v4  ;;  %v17623_v55 = vsub.f32 %v17572_v19, %v8096_v56  ;;  %v17625_v32 = vsub.f32 %v9584_v22, %v8096_v56  ;;  %v18674_v60 = vld [vmem:[#allocation13_spill] sm:$0xff]  ;;  %v18675_v45 = vld [vmem:[#allocation14_spill] sm:$0xff] }
0x1a2d   : > { %10735 = vmatpush3.bf16.msra.mxu1 %v10734_v3  ;;  %v8121_v61 = vmul.f32 %v17613_v50, %v17613_v50  ;;  %v8122_v11 = vmul.f32 %v17615_v48, %v17615_v48  ;;  %v17628_v49 = vsub.f32 %v9587_v25, %v8096_v56  ;;  %v17634_v29 = vsub.f32 %v9590_v51, %v8096_v56 }
0x1a2e   : > { %10736 = vmatprep.subr.bf16.mxu1 %v18667_v0  ;;  %v8123_v54 = vmul.f32 %v17623_v55, %v17623_v55  ;;  %v8124_v35 = vmul.f32 %v17625_v32, %v17625_v32  ;;  %v17637_v15 = vsub.f32 %v9593_v40, %v8096_v56  ;;  %v17643_v28 = vsub.f32 %v9596_v21, %v8096_v56 }
0x1a2f   : > { %v10746_v16 = vpack.c.bf16 %v8122_v11, %v8121_v61  ;;  %v8125_v18 = vmul.f32 %v17628_v49, %v17628_v49  ;;  %v8126_v6 = vmul.f32 %v17634_v29, %v17634_v29 }
0x1a30   : > { %v10749_v38 = vpack.c.bf16 %v8124_v35, %v8123_v54  ;;  %v8127_v53 = vmul.f32 %v17637_v15, %v17637_v15  ;;  %v8128_v19 = vmul.f32 %v17643_v28, %v17643_v28 }
0x1a31   : > { %10738 = vmatpush3.bf16.msra.mxu1 %v10737_v33  ;;  %v10752_v5 = vpack.c.bf16 %v8126_v6, %v8125_v18  ;;  %v18673_v33 = vld [vmem:[#allocation12_spill] sm:$0xff] }
0x1a32   : > { %10739 = vmatprep.subr.bf16.mxu1 %v18667_v0  ;;  %v10755_v26 = vpack.c.bf16 %v8128_v19, %v8127_v53  ;;  %v18677_v6 = vld [vmem:[#allocation16_spill] sm:$0xff]  ;;  %v18678_v53 = vld [vmem:[#allocation17_spill] sm:$0xff] }
0x1a35   : > { %10741 = vmatpush3.bf16.msra.mxu1 %v10740_v12 }
0x1a36   : > { %10742 = vmatprep.subr.bf16.mxu1 %v18667_v0 }
0x1a39   : > { %10744 = vmatpush3.bf16.msra.mxu1 %v10743_v41  ;;  %v18676_v41 = vld [vmem:[#allocation15_spill] sm:$0xff] }
0x1a3a   : > { %10745 = vmatprep.subr.bf16.mxu1 %v18667_v0 }
0x1a3d   : > { %10747 = vmatpush3.bf16.msra.mxu1 %v10746_v16 }
0x1a3e   : > { %10748 = vmatprep.subr.bf16.mxu1 %v18667_v0 }
0x1a41   : > { %10750 = vmatpush3.bf16.msra.mxu1 %v10749_v38 }
0x1a42   : > { %10751 = vmatprep.subr.bf16.mxu1 %v18667_v0 }
0x1a45   : > { %10753 = vmatpush3.bf16.msra.mxu1 %v10752_v5 }
0x1a46   : > { %10754 = vmatprep.subr.bf16.mxu1 %v18667_v0 }
0x1a49   : > { %10756 = vmatpush3.bf16.msra.mxu1 %v10755_v26 }
0x1a4c   : > { %10108 = vmatmul.mubr.f32.vlgmr.msra.gmra.mrb[236].mxu1 %v18669_v9 }
0x1b1f   : > { %v8195_v36 = vpop.f32.mrb[236].mxu1 }
0x1b20   : > { %v8199_v22 = vmul.f32 0.0078125, %v8195_v36  ;;  %v10109_v24 = vpop.f32.mrb[237].mxu1 }
0x1b22   : > { %v8200_v17 = vadd.f32 1e-05, %v8199_v22 }
0x1b24   : > { %11928 = vrsqrt.f32 %v8200_v17 }
0x1b2e   : > { %v11929_v13 = vpop.eup %11928 }
0x1b2f   : > { %v17653_v25 = vrot.slane %v11929_v13, %v18670_v63 }
0x1b31   : > { %v8206_v2 = vmul.f32 %v17653_v25, %v17584_v23  ;;  %v8207_v51 = vmul.f32 %v17653_v25, %v17587_v27  ;;  %v8208_v37 = vmul.f32 %v17653_v25, %v17590_v44  ;;  %v8209_v47 = vmul.f32 %v17653_v25, %v17593_v1 }
0x1b32   : > { %v8210_v40 = vmul.f32 %v17653_v25, %v17600_v52  ;;  %v8211_v34 = vmul.f32 %v17653_v25, %v8102_v7  ;;  %v8212_v59 = vmul.f32 %v17653_v25, %v8103_v20  ;;  %v8213_v21 = vmul.f32 %v17653_v25, %v8104_v10  ;;  %v18672_v20 = vld [vmem:[#allocation11_spill] sm:$0xff] }
0x1b33   : > { %v8226_v42 = vmul.f32 %v17658_v39, %v8206_v2  ;;  %v8227_v9 = vmul.f32 %v17658_v39, %v8207_v51  ;;  %v8228_v58 = vmul.f32 %v17658_v39, %v8208_v37  ;;  %v8229_v30 = vmul.f32 %v17658_v39, %v8209_v47 }
0x1b34   : > { %v8230_v57 = vmul.f32 %v17658_v39, %v8210_v40  ;;  %v8231_v63 = vmul.f32 %v17658_v39, %v8211_v34  ;;  %v8232_v56 = vmul.f32 %v17658_v39, %v8212_v59  ;;  %v8233_v23 = vmul.f32 %v17658_v39, %v8213_v21 }
0x1b35   : > { %v8246_v27 = vadd.f32 %v17671_v14, %v8226_v42  ;;  %v8247_v44 = vadd.f32 %v17671_v14, %v8227_v9  ;;  %v8248_v1 = vadd.f32 %v17671_v14, %v8228_v58  ;;  %v8249_v31 = vadd.f32 %v17671_v14, %v8229_v30 }
0x1b36   : > { %v8250_v8 = vadd.f32 %v17671_v14, %v8230_v57  ;;  %v8251_v52 = vadd.f32 %v17671_v14, %v8231_v63  ;;  %v8252_v3 = vadd.f32 %v17671_v14, %v8232_v56  ;;  %v8253_v46 = vadd.f32 %v17671_v14, %v8233_v23 }
0x1b37   : > { %v17695_v7 = vadd.f32 %v8246_v27, %v18671_v43  ;;  %v17698_v10 = vadd.f32 %v8247_v44, %v18672_v20  ;;  %v17701_v62 = vadd.f32 %v8248_v1, %v18673_v33  ;;  %v17704_v4 = vadd.f32 %v8249_v31, %v18674_v60 }
0x1b38   : > { %v17707_v12 = vadd.f32 %v8250_v8, %v18675_v45  ;;  %v17710_v61 = vadd.f32 %v8251_v52, %v18676_v41  ;;  %v17717_v5 = vadd.f32 %v8252_v3, %v18677_v6  ;;  %v17720_v19 = vadd.f32 %v8253_v46, %v18678_v53  ;;  %v18679_v8 = vld [vmem:[#allocation18_spill] sm:$0xff]  ;;  %v18680_v3 = vld [vmem:[#allocation19_spill] sm:$0xff] }
0x1b39   : > { %v8294_v11 = vand.u32 2147483647, %v17695_v7  ;;  %v8295_v16 = vand.u32 2147483647, %v17698_v10  ;;  %v8296_v54 = vand.u32 2147483647, %v17701_v62  ;;  %v8214_v59 = vmul.f32 %v17653_v25, %v17613_v50 }
0x1b3a   : > { %v8297_v35 = vand.u32 2147483647, %v17704_v4  ;;  %v8298_v22 = vand.u32 2147483647, %v17707_v12  ;;  %v8299_v24 = vand.u32 2147483647, %v17710_v61  ;;  %v8215_v9 = vmul.f32 %v17653_v25, %v17615_v48 }
0x1b3b   : > { %v8310_v38 = vsub.f32 0.0, %v8294_v11  ;;  %v8311_v18 = vsub.f32 0.0, %v8295_v16  ;;  %v8312_v26 = vsub.f32 0.0, %v8296_v54  ;;  %v8300_v40 = vand.u32 2147483647, %v17717_v5 }
0x1b3c   : > { %v8313_v36 = vsub.f32 0.0, %v8297_v35  ;;  %v8314_v37 = vsub.f32 0.0, %v8298_v22  ;;  %v8315_v47 = vsub.f32 0.0, %v8299_v24  ;;  %v8301_v34 = vand.u32 2147483647, %v17720_v19 }
0x1b3d   : > { %v8326_v17 = vmul.f32 1.442695, %v8310_v38  ;;  %v8328_v13 = vmul.f32 1.442695, %v8311_v18  ;;  %v8330_v2 = vmul.f32 1.442695, %v8312_v26  ;;  %v8234_v57 = vmul.f32 %v17658_v39, %v8214_v59 }
0x1b3e   : > { %v8332_v51 = vmul.f32 1.442695, %v8313_v36  ;;  %v8334_v21 = vmul.f32 1.442695, %v8314_v37  ;;  %v8336_v42 = vmul.f32 1.442695, %v8315_v47  ;;  %v8235_v63 = vmul.f32 %v17658_v39, %v8215_v9 }
0x1b3f   : > { %11930 = vpow2.f32 %v8326_v17  ;;  %v8316_v58 = vsub.f32 0.0, %v8300_v40  ;;  %v8317_v30 = vsub.f32 0.0, %v8301_v34  ;;  %v8216_v56 = vmul.f32 %v17653_v25, %v17623_v55  ;;  %v18681_v36 = vld [vmem:[#allocation20_spill] sm:$0xff] }
0x1b40   : > { %11932 = vpow2.f32 %v8328_v13  ;;  %v8217_v50 = vmul.f32 %v17653_v25, %v17625_v32  ;;  %v8254_v27 = vadd.f32 %v17671_v14, %v8234_v57  ;;  %v8255_v48 = vadd.f32 %v17671_v14, %v8235_v63 }
0x1b41   : > { %11934 = vpow2.f32 %v8330_v2  ;;  %v8338_v23 = vmul.f32 1.442695, %v8316_v58  ;;  %v8340_v44 = vmul.f32 1.442695, %v8317_v30  ;;  %v8236_v1 = vmul.f32 %v17658_v39, %v8216_v56 }
0x1b42   : > { %11936 = vpow2.f32 %v8332_v51  ;;  %v8237_v31 = vmul.f32 %v17658_v39, %v8217_v50  ;;  %v17741_v52 = vadd.f32 %v8254_v27, %v18679_v8  ;;  %v8218_v55 = vmul.f32 %v17653_v25, %v17628_v49  ;;  %v18682_v51 = vld [vmem:[#allocation21_spill] sm:$0xff] }
0x1b43   : > { %11938 = vpow2.f32 %v8334_v21  ;;  %v8219_v32 = vmul.f32 %v17653_v25, %v17634_v29  ;;  %v17748_v46 = vadd.f32 %v8255_v48, %v18680_v3  ;;  %v8256_v43 = vadd.f32 %v17671_v14, %v8236_v1 }
0x1b44   : > { %11940 = vpow2.f32 %v8336_v42  ;;  %v8278_v20 = vmax.f32 %v17695_v7, 0.0  ;;  %v8279_v33 = vmax.f32 %v17698_v10, 0.0  ;;  %v8302_v60 = vand.u32 2147483647, %v17741_v52 }
0x1b45   : > { %11942 = vpow2.f32 %v8338_v23  ;;  %v8257_v45 = vadd.f32 %v17671_v14, %v8237_v31  ;;  %v8280_v41 = vmax.f32 %v17701_v62, 0.0  ;;  %v8281_v49 = vmax.f32 %v17704_v4, 0.0 }
0x1b46   : > { %11944 = vpow2.f32 %v8340_v44  ;;  %v8238_v29 = vmul.f32 %v17658_v39, %v8218_v55  ;;  %v8282_v16 = vmax.f32 %v17707_v12, 0.0  ;;  %v8283_v54 = vmax.f32 %v17710_v61, 0.0 }
0x1b47   : > { %v8284_v35 = vmax.f32 %v17717_v5, 0.0  ;;  %v8239_v38 = vmul.f32 %v17658_v39, %v8219_v32  ;;  %v8303_v53 = vand.u32 2147483647, %v17748_v46  ;;  %v8318_v26 = vsub.f32 0.0, %v8302_v60 }
0x1b48   : > { %v17764_v22 = vadd.f32 %v8256_v43, %v18681_v36  ;;  %v17767_v37 = vadd.f32 %v8257_v45, %v18682_v51  ;;  %v17770_v59 = vadd.f32 %v17671_v14, %v8238_v29  ;;  %v18698_v36 = vld [vmem:[#allocation23_spill] sm:$0xff]  ;;  %v8220_v61 = vmul.f32 %v17653_v25, %v17637_v15 }
0x1b49   : > { %v11931_v11 = vpop.eup %11930  ;;  %v17773_v58 = vadd.f32 %v17671_v14, %v8239_v38  ;;  %v8319_v57 = vsub.f32 0.0, %v8303_v53  ;;  %v8342_v63 = vmul.f32 1.442695, %v8318_v26 }
0x1b4a   : > { %v11933_v18 = vpop.eup %11932  ;;  %v8358_v6 = vadd.f32 1.0, %v11931_v11  ;;  %v8361_v17 = vmul.f32 -0.5, %v11931_v11  ;;  %v8364_v40 = vand.u32 2147483647, %v11931_v11  ;;  %v8304_v7 = vand.u32 2147483647, %v17764_v22 }
0x1b4b   : > { %v11935_v24 = vpop.eup %11934  ;;  %v8367_v13 = vadd.f32 1.0, %v11933_v18  ;;  %v8370_v2 = vmul.f32 -0.5, %v11933_v18  ;;  %v8373_v42 = vand.u32 2147483647, %v11933_v18  ;;  %v8240_v15 = vmul.f32 %v17658_v39, %v8220_v61 }
0x1b4c   : > { %v11937_v47 = vpop.eup %11936  ;;  %11946 = vlog2.f32 %v8358_v6  ;;  %v8376_v34 = vadd.f32 1.0, %v11935_v24  ;;  %v8379_v9 = vmul.f32 -0.5, %v11935_v24  ;;  %v8362_v50 = vadd.f32 1.0, %v8361_v17 }
0x1b4d   : > { %v11939_v21 = vpop.eup %11938  ;;  %11948 = vlog2.f32 %v8367_v13  ;;  %v8385_v30 = vadd.f32 1.0, %v11937_v47  ;;  %v8371_v23 = vadd.f32 1.0, %v8370_v2  ;;  %v8382_v27 = vand.u32 2147483647, %v11935_v24 }
0x1b4e   : > { %11950 = vlog2.f32 %v8376_v34  ;;  %v11941_v56 = vpop.eup %11940  ;;  %v8388_v44 = vmul.f32 -0.5, %v11937_v47  ;;  %vm17777_vm6 = vcmp.lt.f32.partialorder %v8364_v40, 0.0004427343  ;;  %v8394_v31 = vadd.f32 1.0, %v11939_v21 }
0x1b4f   : > { %v17775_v48 = vpop.eup %11942  ;;  %11952 = vlog2.f32 %v8385_v30  ;;  %v8397_v8 = vmul.f32 -0.5, %v11939_v21  ;;  %vm17781_vm8 = vcmp.lt.f32.partialorder %v8373_v42, 0.0004427343  ;;  %v8380_v32 = vadd.f32 1.0, %v8379_v9 }
0x1b50   : > { %v8389_v3 = vadd.f32 1.0, %v8388_v44  ;;  %v8391_v43 = vand.u32 2147483647, %v11937_v47  ;;  %v8400_v60 = vand.u32 2147483647, %v11939_v21  ;;  %v17785_v45 = vpop.eup %11944  ;;  %11954 = vlog2.f32 %v8394_v31 }
0x1b51   : > { %v8398_v29 = vadd.f32 1.0, %v8397_v8  ;;  %v8403_v38 = vadd.f32 1.0, %v11941_v56  ;;  %v8406_v6 = vmul.f32 -0.5, %v11941_v56  ;;  %v8363_v53 = vmul.f32 %v11931_v11, %v8362_v50 }
0x1b52   : > { %v8372_v26 = vmul.f32 %v11933_v18, %v8371_v23  ;;  %vm17787_vm9 = vcmp.lt.f32.partialorder %v8382_v27, 0.0004427343  ;;  %v8412_v17 = vadd.f32 1.0, %v17775_v48  ;;  %v8409_v2 = vand.u32 2147483647, %v11941_v56 }
0x1b53   : > { %11956 = vlog2.f32 %v8403_v38  ;;  %v8407_v13 = vadd.f32 1.0, %v8406_v6  ;;  %v8415_v51 = vmul.f32 -0.5, %v17775_v48  ;;  %v8381_v40 = vmul.f32 %v11935_v24, %v8380_v32 }
0x1b54   : > { %vm17793_vm10 = vcmp.lt.f32.partialorder %v8391_v43, 0.0004427343  ;;  %11958 = vlog2.f32 %v8412_v17  ;;  %v8421_v11 = vadd.f32 1.0, %v17785_v45  ;;  %v8390_v42 = vmul.f32 %v11937_v47, %v8389_v3 }
0x1b55   : > { %v8399_v9 = vmul.f32 %v11939_v21, %v8398_v29  ;;  %vm17798_vm11 = vcmp.lt.f32.partialorder %v8400_v60, 0.0004427343  ;;  %v8418_v50 = vand.u32 2147483647, %v17775_v48  ;;  %v8424_v24 = vmul.f32 -0.5, %v17785_v45 }
0x1b56   : > { %v11947_v18 = vpop.eup %11946  ;;  %11960 = vlog2.f32 %v8421_v11  ;;  %v8344_v44 = vmul.f32 1.442695, %v8319_v57  ;;  %v8408_v32 = vmul.f32 %v11941_v56, %v8407_v13  ;;  %vm17804_vm12 = vcmp.lt.f32.partialorder %v8409_v2, 0.0004427343 }
0x1b57   : > { %v11949_v23 = vpop.eup %11948  ;;  %v8360_v27 = vmul.f32 0.6931472, %v11947_v18  ;;  %v8416_v47 = vadd.f32 1.0, %v8415_v51  ;;  %v8427_v60 = vand.u32 2147483647, %v17785_v45  ;;  %11962 = vpow2.f32 %v8342_v63 }
0x1b58   : > { %v11951_v31 = vpop.eup %11950  ;;  %v8369_v8 = vmul.f32 0.6931472, %v11949_v23  ;;  %vm17815_vm13 = vcmp.lt.f32.partialorder %v8418_v50, 0.0004427343  ;;  %11964 = vpow2.f32 %v8344_v44  ;;  %v8425_v63 = vadd.f32 1.0, %v8424_v24 }
0x1b59   : > { %v8366_v21 = vsel %vm17777_vm6, %v8363_v53, %v8360_v27  ;;  %v8378_v3 = vmul.f32 0.6931472, %v11951_v31  ;;  %v11953_v29 = vpop.eup %11952  ;;  %v17835_v51 = vadd.f32 %v17773_v58, %v18698_v36  ;;  %v8320_v11 = vsub.f32 0.0, %v8304_v7 }
0x1b5a   : > { %v8375_v38 = vsel %vm17781_vm8, %v8372_v26, %v8369_v8  ;;  %v8502_v57 = vadd.f32 %v8366_v21, %v8278_v20  ;;  %v8387_v53 = vmul.f32 0.6931472, %v11953_v29  ;;  %v11955_v17 = vpop.eup %11954  ;;  %v8305_v20 = vand.u32 2147483647, %v17767_v37  ;;  %v18697_v26 = vld [vmem:[#allocation22_spill] sm:$0xff] }
0x1b5b   : > { %v8503_v1 = vadd.f32 %v8375_v38, %v8279_v33  ;;  %v8384_v6 = vsel %vm17787_vm9, %v8381_v40, %v8378_v3  ;;  %v17829_v13 = vadd.f32 %v17770_v59, %v18697_v26  ;;  %v8396_v33 = vmul.f32 0.6931472, %v11955_v17 }
0x1b5c   : > { %v8504_v55 = vadd.f32 %v8384_v6, %v8280_v41  ;;  %v8393_v10 = vsel %vm17793_vm10, %v8390_v42, %v8387_v53  ;;  %v8417_v41 = vmul.f32 %v17775_v48, %v8416_v47  ;;  %v8321_v18 = vsub.f32 0.0, %v8305_v20 }
0x1b5d   : > { %v10758_v2 = vpack.c.bf16 %v8503_v1, %v8502_v57  ;;  %v11957_v40 = vpop.eup %11956  ;;  %v8505_v62 = vadd.f32 %v8393_v10, %v8281_v49  ;;  %v8402_v59 = vsel %vm17798_vm11, %v8399_v9, %v8396_v33  ;;  %v8426_v42 = vmul.f32 %v17785_v45, %v8425_v63 }
0x1b5e   : > { %v11959_v50 = vpop.eup %11958  ;;  %v8405_v34 = vmul.f32 0.6931472, %v11957_v40  ;;  %v8306_v23 = vand.u32 2147483647, %v17829_v13  ;;  %v8506_v4 = vadd.f32 %v8402_v59, %v8282_v16  ;;  %v8346_v48 = vmul.f32 1.442695, %v8320_v11 }
0x1b5f   : > { %10759 = vmatpush3.bf16.msra.mxu0 %v10758_v2  ;;  %v10761_v58 = vpack.c.bf16 %v8505_v62, %v8504_v55  ;;  %v8414_v49 = vmul.f32 0.6931472, %v11959_v50  ;;  %v8348_v44 = vmul.f32 1.442695, %v8321_v18  ;;  %v8307_v9 = vand.u32 2147483647, %v17835_v51 }
0x1b60   : > { %10760 = vmatprep.subr.bf16.mxu0 %v18667_v0  ;;  %v11961_v27 = vpop.eup %11960  ;;  %v8411_v24 = vsel %vm17804_vm12, %v8408_v32, %v8405_v34  ;;  %v8322_v30 = vsub.f32 0.0, %v8306_v23  ;;  %11966 = vpow2.f32 %v8346_v48  ;;  %v8285_v16 = vmax.f32 %v17720_v19, 0.0  ;;  %v18699_v2 = vld [vmem:[#allocation24_spill] sm:$0xff] }
0x1b61   : > { %v8507_v45 = vadd.f32 %v8411_v24, %v8283_v54  ;;  %v8420_v31 = vsel %vm17815_vm13, %v8417_v41, %v8414_v49  ;;  %v8423_v8 = vmul.f32 0.6931472, %v11961_v27  ;;  %v11963_v12 = vpop.eup %11962  ;;  %vm8428_vm14 = vcmp.lt.f32.partialorder %v8427_v60, 0.0004427343 }
0x1b62   : > { %11968 = vpow2.f32 %v8348_v44  ;;  %v8323_v43 = vsub.f32 0.0, %v8307_v9  ;;  %v11965_v32 = vpop.eup %11964  ;;  %v8430_v21 = vadd.f32 1.0, %v11963_v12  ;;  %v8350_v3 = vmul.f32 1.442695, %v8322_v30 }
0x1b63   : > { %10762 = vmatpush3.bf16.msra.mxu0 %v10761_v58  ;;  %v8429_v47 = vsel %vm8428_vm14, %v8426_v42, %v8423_v8  ;;  %v10764_v54 = vpack.c.bf16 %v8507_v45, %v8506_v4  ;;  %v8508_v29 = vadd.f32 %v8420_v31, %v8284_v35  ;;  %v8439_v57 = vadd.f32 1.0, %v11965_v32 }
0x1b64   : > { %10763 = vmatprep.subr.bf16.mxu0 %v18667_v0  ;;  %v8509_v38 = vadd.f32 %v8429_v47, %v8285_v16  ;;  %11970 = vlog2.f32 %v8430_v21  ;;  %v8352_v19 = vmul.f32 1.442695, %v8323_v43  ;;  %v8221_v60 = vmul.f32 %v17653_v25, %v17643_v28 }
0x1b65   : > { %11972 = vlog2.f32 %v8439_v57  ;;  %v8433_v1 = vmul.f32 -0.5, %v11963_v12  ;;  %v8442_v6 = vmul.f32 -0.5, %v11965_v32  ;;  %v8260_v35 = vadd.f32 %v17671_v14, %v8240_v15 }
0x1b66   : > { %11974 = vpow2.f32 %v8350_v3  ;;  %v10767_v56 = vpack.c.bf16 %v8509_v38, %v8508_v29  ;;  %v8241_v5 = vmul.f32 %v17658_v39, %v8221_v60  ;;  %v8436_v7 = vand.u32 2147483647, %v11963_v12  ;;  %v18700_v39 = vld [vmem:[#allocation25_spill] sm:$0xff] }
0x1b67   : > { %10765 = vmatpush3.bf16.msra.mxu0 %v10764_v54  ;;  %11976 = vpow2.f32 %v8352_v19  ;;  %v8434_v55 = vadd.f32 1.0, %v8433_v1  ;;  %v8445_v28 = vand.u32 2147483647, %v11965_v32  ;;  %v8443_v20 = vadd.f32 1.0, %v8442_v6 }
0x1b68   : > { %10766 = vmatprep.subr.bf16.mxu0 %v18667_v0  ;;  %v8261_v63 = vadd.f32 %v17671_v14, %v8241_v5  ;;  %v17869_v10 = vadd.f32 %v8260_v35, %v18699_v2  ;;  %v8286_v40 = vmax.f32 %v17741_v52, 0.0  ;;  %v8287_v62 = vmax.f32 %v17748_v46, 0.0 }
0x1b69   : > { %v8435_v11 = vmul.f32 %v11963_v12, %v8434_v55  ;;  %vm8437_vm15 = vcmp.lt.f32.partialorder %v8436_v7, 0.0004427343  ;;  %vm8446_vm1 = vcmp.lt.f32.partialorder %v8445_v28, 0.0004427343  ;;  %v8444_v59 = vmul.f32 %v11965_v32, %v8443_v20 }
0x1b6a   : > { %v11967_v53 = vpop.eup %11966  ;;  %v17872_v33 = vadd.f32 %v8261_v63, %v18700_v39  ;;  %v8308_v42 = vand.u32 2147483647, %v17869_v10  ;;  %v8288_v61 = vmax.f32 %v17764_v22, 0.0  ;;  %v8289_v19 = vmax.f32 %v17767_v37, 0.0 }
0x1b6b   : > { %10768 = vmatpush3.bf16.msra.mxu0 %v10767_v56  ;;  %v8448_v25 = vadd.f32 1.0, %v11967_v53  ;;  %v8451_v34 = vmul.f32 -0.5, %v11967_v53  ;;  %v8454_v45 = vand.u32 2147483647, %v11967_v53  ;;  %v8291_v37 = vmax.f32 %v17835_v51, 0.0 }
0x1b6c   : > { %10769 = vmatprep.subr.bf16.mxu0 %v18667_v0  ;;  %v11969_v17 = vpop.eup %11968  ;;  %v8309_v52 = vand.u32 2147483647, %v17872_v33  ;;  %v8324_v9 = vsub.f32 0.0, %v8308_v42 }
0x1b6d   : > { %v8457_v26 = vadd.f32 1.0, %v11969_v17  ;;  %11978 = vlog2.f32 %v8448_v25  ;;  %v8460_v4 = vmul.f32 -0.5, %v11969_v17  ;;  %v8452_v44 = vadd.f32 1.0, %v8451_v34 }
0x1b6e   : > { %v11971_v36 = vpop.eup %11970  ;;  %v8325_v8 = vsub.f32 0.0, %v8309_v52  ;;  %v8463_v12 = vand.u32 2147483647, %v11969_v17  ;;  %v8354_v43 = vmul.f32 1.442695, %v8324_v9  ;;  %v8290_v25 = vmax.f32 %v17829_v13, 0.0 }
0x1b6f   : > { %11980 = vlog2.f32 %v8457_v26  ;;  %v11973_v14 = vpop.eup %11972  ;;  %v8432_v41 = vmul.f32 0.6931472, %v11971_v36  ;;  %v8461_v31 = vadd.f32 1.0, %v8460_v4  ;;  %v8453_v29 = vmul.f32 %v11967_v53, %v8452_v44 }
0x1b70   : > { %v11975_v18 = vpop.eup %11974  ;;  %v8441_v50 = vmul.f32 0.6931472, %v11973_v14  ;;  %v8356_v21 = vmul.f32 1.442695, %v8325_v8  ;;  %vm8455_vm2 = vcmp.lt.f32.partialorder %v8454_v45, 0.0004427343 }
0x1b71   : > { %v11977_v23 = vpop.eup %11976  ;;  %v8438_v58 = vsel %vm8437_vm15, %v8435_v11, %v8432_v41  ;;  %v8466_v49 = vadd.f32 1.0, %v11975_v18  ;;  %v8469_v16 = vmul.f32 -0.5, %v11975_v18  ;;  %v8462_v57 = vmul.f32 %v11969_v17, %v8461_v31 }
0x1b72   : > { %v8447_v48 = vsel %vm8446_vm1, %v8444_v59, %v8441_v50  ;;  %v8510_v46 = vadd.f32 %v8438_v58, %v8286_v40  ;;  %v8475_v27 = vadd.f32 1.0, %v11977_v23  ;;  %v8478_v47 = vmul.f32 -0.5, %v11977_v23 }
0x1b73   : > { %v8511_v24 = vadd.f32 %v8447_v48, %v8287_v62  ;;  %11982 = vlog2.f32 %v8466_v49  ;;  %vm8464_vm3 = vcmp.lt.f32.partialorder %v8463_v12, 0.0004427343  ;;  %v8470_v56 = vadd.f32 1.0, %v8469_v16 }
0x1b74   : > { %11984 = vlog2.f32 %v8475_v27  ;;  %v8472_v6 = vand.u32 2147483647, %v11975_v18  ;;  %v8479_v5 = vadd.f32 1.0, %v8478_v47  ;;  %v8481_v63 = vand.u32 2147483647, %v11977_v23 }
0x1b75   : > { %v10770_v30 = vpack.c.bf16 %v8511_v24, %v8510_v46  ;;  %11986 = vpow2.f32 %v8354_v43  ;;  %v8471_v28 = vmul.f32 %v11975_v18, %v8470_v56  ;;  %v8292_v49 = vmax.f32 %v17869_v10, 0.0  ;;  %v546_v10 = vld [vmem:[%s400_s12] sm:$0xff] }
0x1b76   : > { %11988 = vpow2.f32 %v8356_v21  ;;  %vm8473_vm4 = vcmp.lt.f32.partialorder %v8472_v6, 0.0004427343  ;;  %v8480_v20 = vmul.f32 %v11977_v23, %v8479_v5  ;;  %vm8482_vm5 = vcmp.lt.f32.partialorder %v8481_v63, 0.0004427343 }
0x1b77   : > { %v11979_v32 = vpop.eup %11978  ;;  %10771 = vmatpush3.bf16.msra.mxu0 %v10770_v30 }
0x1b78   : > { %10772 = vmatprep.subr.bf16.mxu0 %v18667_v0  ;;  %v8450_v54 = vmul.f32 0.6931472, %v11979_v32 }
0x1b79   : > { %v11981_v3 = vpop.eup %11980 }
0x1b7a   : > { %v8459_v38 = vmul.f32 0.6931472, %v11981_v3  ;;  %v8456_v60 = vsel %vm8455_vm2, %v8453_v29, %v8450_v54 }
0x1b7b   : > { %v8512_v15 = vadd.f32 %v8456_v60, %v8288_v61 }
0x1b7c   : > { %v8465_v1 = vsel %vm8464_vm3, %v8462_v57, %v8459_v38 }
0x1b7d   : > { %v8513_v35 = vadd.f32 %v8465_v1, %v8289_v19  ;;  %v11983_v55 = vpop.eup %11982 }
0x1b7e   : > { %v11985_v22 = vpop.eup %11984  ;;  %v8468_v53 = vmul.f32 0.6931472, %v11983_v55 }
0x1b7f   : > { %v10773_v7 = vpack.c.bf16 %v8513_v35, %v8512_v15  ;;  %v8477_v17 = vmul.f32 0.6931472, %v11985_v22  ;;  %v11987_v36 = vpop.eup %11986 }
0x1b80   : > { %v8474_v26 = vsel %vm8473_vm4, %v8471_v28, %v8468_v53  ;;  %v11989_v62 = vpop.eup %11988  ;;  %v8484_v14 = vadd.f32 1.0, %v11987_v36  ;;  %v8487_v13 = vmul.f32 -0.5, %v11987_v36  ;;  %v8490_v50 = vand.u32 2147483647, %v11987_v36 }
0x1b81   : > { %10774 = vmatpush3.bf16.msra.mxu0 %v10773_v7  ;;  %v8483_v2 = vsel %vm8482_vm5, %v8480_v20, %v8477_v17  ;;  %v8514_v39 = vadd.f32 %v8474_v26, %v8290_v25  ;;  %v8493_v11 = vadd.f32 1.0, %v11989_v62  ;;  %v8496_v18 = vmul.f32 -0.5, %v11989_v62 }
0x1b82   : > { %10775 = vmatprep.subr.bf16.mxu0 %v18667_v0  ;;  %v8515_v40 = vadd.f32 %v8483_v2, %v8291_v37  ;;  %11990 = vlog2.f32 %v8484_v14  ;;  %v8488_v51 = vadd.f32 1.0, %v8487_v13  ;;  %v8499_v34 = vand.u32 2147483647, %v11989_v62 }
0x1b83   : > { %11992 = vlog2.f32 %v8493_v11  ;;  %v8497_v59 = vadd.f32 1.0, %v8496_v18  ;;  %vm8491_vm7 = vcmp.lt.f32.partialorder %v8490_v50, 0.0004427343 }
0x1b84   : > { %v10776_v41 = vpack.c.bf16 %v8515_v40, %v8514_v39  ;;  %v8489_v4 = vmul.f32 %v11987_v36, %v8488_v51  ;;  %vm8500_vm6 = vcmp.lt.f32.partialorder %v8499_v34, 0.0004427343 }
0x1b85   : > { %v8498_v48 = vmul.f32 %v11989_v62, %v8497_v59 }
0x1b86   : > { %10777 = vmatpush3.bf16.msra.mxu0 %v10776_v41 }
0x1b87   : > { %10778 = vmatprep.subr.bf16.mxu0 %v18667_v0  ;;  %v8293_v0 = vmax.f32 %v17872_v33, 0.0 }
0x1b8c   : > { %v11991_v42 = vpop.eup %11990 }
0x1b8d   : > { %v11993_v23 = vpop.eup %11992  ;;  %v8486_v58 = vmul.f32 0.6931472, %v11991_v42 }
0x1b8e   : > { %v8495_v52 = vmul.f32 0.6931472, %v11993_v23 }
0x1b8f   : > { %v8492_v46 = vsel %vm8491_vm7, %v8489_v4, %v8486_v58 }
0x1b90   : > { %v8501_v27 = vsel %vm8500_vm6, %v8498_v48, %v8495_v52  ;;  %v8516_v24 = vadd.f32 %v8492_v46, %v8292_v49 }
0x1b91   : > { %v8517_v44 = vadd.f32 %v8501_v27, %v8293_v0 }
0x1b93   : > { %v10779_v9 = vpack.c.bf16 %v8517_v44, %v8516_v24 }
0x1b95   : > { %10780 = vmatpush3.bf16.msra.mxu0 %v10779_v9 }
0x1b98   : > { %10143 = vmatmul.mubr.f32.vlgmr.msra.gmra.mrb[218].mxu0 %v546_v10 }
0x1c6b   : > { %v8584_v33 = vpop.f32.mrb[218].mxu0 }
0x1c6c   : > { %8588 = vst.msk [vmem:[%s381_s20] sm:$0xff] %vm880_vm0, %v8584_v33  ;;  %v10144_v30 = vpop.f32.mrb[219].mxu0 }
0x1c6d   : > { %12246 = shalt.err (!%p12243_p4)
}
0x1c6e   : > { %s12247_s22 = scalar_lea.hbm %s17896_s24, 128  ;;  %s12251_s15 = scalar_lea.hbm %s17949_s8, 256 }
0x1c6f   : > { %p12248_p5 = scmp.ne.s32.totalorder %s17896_s24, %s12247_s22  ;;  %p12252_p1 = scmp.lt.u32.totalorder %s17896_s24, %s17949_s8 }
0x1c70   : > { %p12253_p3 = scmp.lt.u32.totalorder %s12251_s15, %s12247_s22  ;;  %p12255_p6 = scmp.lt.u32.totalorder %s12247_s22, %s17896_s24 }
0x1c71   : > { %p12249_p7 = pnand %p12248_p5, %p18701_p12 }
0x1c72   : > { %p12254_p11 = por %p12253_p3, %p12252_p1 }
0x1c73   : > { %p12250_p9 = pneg %p12249_p7 }
0x1c74   : > { %p12256_p13 = por %p12255_p6, %p12254_p11 }
0x1c76   : > { %p12257_p8 = pnand %p12256_p13, %p12250_p9 }
0x1c78   : > { %12260 = shalt.err (!%p12257_p8)
}
0x1c79   : > { %10783 = dma.vmem_to_hbm [thread:$0]  (%p18701_p12), %s17898_s4, 128, %s17896_s24, %s8590_s23  }
0x1c7a PF: > { %s8615_s21 = sand.u32 1, %s12287_s27   ;;  %p18702_p10 = scmp.ne.s32.totalorder %s18130_s18, 0 }
0x1c7b   : > { %p18703_p0 = scmp.ge.s32.totalorder %s12299_s30, 2  ;;  %s8616_s16 = scalar_lea.sflag [#allocation4], %s8615_s21 }
0x1c7d   : > { %p10790_p2 = pnand %p18703_p0, %p18702_p10 }
0x1c7f   : > { %12282 = dma.done.wait (!%p10790_p2), %s8616_s16, 128  }
0x1c80   : > { %12284 = vsyncadd (!%p10790_p2), %s8616_s16, 4294967168  ;;  %p21_p4 = scmp.ge.s32.totalorder %s12382_s11, 4   ;;  %s18704_s27 = smov %s12291_s28 }
0x1c81   : > { %s18705_s28 = smov %s12295_s29  ;;  %s18706_s29 = smov %s12394_s14 }
0x1c82   : > { %s18707_s30 = smov %s12382_s11  ;;  %23 = sbr.rel (!%p21_p4) target bundleno = 7 (0x7), region = 113 }
0x1c89   :  { %8621 = vsyncpa [#allocation3], 1 }
0x1c8a   :  { %8623 = vsyncpa [#allocation3 + $0x1], 1 }
0x1c8b   :  { %8624 = vsyncpa [#allocation4], 1 }
0x1c8c   :  { %8626 = vsyncpa [#allocation4 + $0x1], 1 }

</bundles_post_ra>
